<compile_context>
chip_gen: v7x
topology: tpu7x:2x2x1
jax: 0.10.0
libtpu: 0.0.40
codegen_flags: <defaults>
</compile_context>

<pallas_src>
import functools

import jax
import jax.numpy as jnp
from jax.experimental import pallas as pl
from jax.experimental.pallas import tpu as pltpu


# ---------------------------------------------------------------------------
# Fused kernel: T images per grid step.
# ---------------------------------------------------------------------------
def fused_cnn_kernel(xc_ref, w1_ref, b1_ref, w2_ref, b2_ref,
                     wf1_ref, bf1_ref, wf2_ref, bf2_ref,
                     o_ref, p1pad_ref):
    f32 = jnp.float32
    bf16 = jnp.bfloat16
    T = xc_ref.shape[0]                                            # images per step (static)

    # ---- conv1: ONE stacked-M im2col matmul (M = T*1024, K = 27) + bias + ReLU ----
    xcol = xc_ref[...].reshape(T * 1024, 27)                       # bf16, rows (t, h, w)
    a1 = jnp.dot(xcol, w1_ref[...], preferred_element_type=f32)    # (T*1024, 32)
    a1 = jnp.maximum(a1 + b1_ref[...], 0.0)

    # ---- maxpool1 2x2 (32x32 -> 16x16): bulk reshape+max, no per-column loops ----
    yh = jnp.max(a1.reshape(T * 16, 2, 32, 32), axis=1)            # pool H -> (T*16, 32, 32)
    pooled = jnp.max(yh.reshape(T * 16, 16, 2, 32), axis=2)        # pool W -> (T*16, 16, 32)
    pooled = pooled.reshape(T, 16, 16, 32)                         # (t, h, w, c)

    # ---- conv2 halo scratch (T, 18, 24, 32):
    #      H rows 0/17 = zero halo, rows 1..16 hold pooled h=0..15;
    #      W cols 0..15 hold pooled w=0..15, cols 16..23 stay zero so the circular
    #      rolls below wrap zeros in.  Every store is tile-aligned. ----
    zrow = jnp.zeros((T, 1, 24, 32), f32)
    p1pad_ref[:, 0:1, :, :] = zrow
    p1pad_ref[:, 17:18, :, :] = zrow
    p1pad_ref[:, 1:17, 16:24, :] = jnp.zeros((T, 16, 8, 32), f32)
    p1pad_ref[:, 1:17, 0:16, :] = pooled

    # ---- conv2: ONE stacked-M K=288 matmul (M = T*256).  kh slices are outer-dim
    #      (free); kw shifts are two explicit XLU sublane rolls. ----
    p1 = p1pad_ref[...]                                            # (T, 18, 24, 32)
    shifted = (
        pltpu.roll(p1, shift=1, axis=2),                           # kw=0: new[w] = old[w-1]
        p1,                                                        # kw=1: no shift
        pltpu.roll(p1, shift=23, axis=2),                          # kw=2: new[w] = old[w+1]
    )
    taps = []
    for kh in range(3):
        for kw in range(3):
            taps.append(shifted[kw][:, kh:kh + 16, 0:16, :].reshape(T * 256, 32))
    col2 = jnp.concatenate(taps, axis=-1).astype(bf16)             # (T*256, 288), K=(kh,kw,cin)
    a2 = jnp.dot(col2, w2_ref[...], preferred_element_type=f32)    # (T*256, 64)
    a2 = jnp.maximum(a2 + b2_ref[...], 0.0)

    # ---- maxpool2 2x2 (16x16 -> 8x8): bulk reshape+max -> (T*8, 8, 64), rows (t, ph) ----
    yh2 = jnp.max(a2.reshape(T * 8, 2, 16, 64), axis=1)            # (T*8, 16, 64)
    p2 = jnp.max(yh2.reshape(T * 8, 8, 2, 64), axis=2)             # (T*8, 8_pw, 64_c)

    # ---- relayout pooled map to a lane-dense (T, 4096) row per image, K=(ph,pw,c),
    #      using only cheap sublane extracts + lane concats. ----
    q = jnp.concatenate([p2[:, pw, :] for pw in range(8)], axis=-1)    # (T*8, 512), lanes (pw,c)
    q3 = q.reshape(T, 8, 512)                                          # rows t, sublane ph
    fc1_in = jnp.concatenate([q3[:, ph, :] for ph in range(8)], axis=-1)   # (T, 4096)

    # ---- fc1: one true (T, 4096) x (4096, 128) matmul (no diagonal trick) ----
    h1 = jnp.dot(fc1_in.astype(bf16), wf1_ref[...], preferred_element_type=f32) + bf1_ref[...]
    h1 = jnp.maximum(h1, 0.0)
    # TODO(synk): nn.Dropout(0.5) is identity in eval mode; training-mode RNG dropout not implemented.

    # ---- fc2 padded to N=128 -> lane-dense output block ----
    logits = jnp.dot(h1.astype(bf16), wf2_ref[...], preferred_element_type=f32)
    o_ref[0] = (logits + bf2_ref[...]).astype(o_ref.dtype)         # (T, 128)


# ---------------------------------------------------------------------------
# One-time weight re-layout (PyTorch layouts -> kernel-ready bf16 matrices).
# ---------------------------------------------------------------------------
def prepare_params(p):
    bf16, f32 = jnp.bfloat16, jnp.float32
    num_classes = p["fc2_w"].shape[0]
    # conv weights: (Cout, Cin, kh, kw) -> (kh*kw*Cin, Cout), K ordered (kh, kw, cin)
    w1 = jnp.transpose(p["conv1_w"], (2, 3, 1, 0)).reshape(27, 32).astype(bf16)
    w2 = jnp.transpose(p["conv2_w"], (2, 3, 1, 0)).reshape(288, 64).astype(bf16)
    # fc1: torch flatten order is (c, h, w); re-order rows to (h, w, c)
    wf1 = jnp.transpose(p["fc1_w"].reshape(128, 64, 8, 8),
                        (2, 3, 1, 0)).reshape(4096, 128).astype(bf16)
    # fc2 padded to a lane-dense 128-wide output
    wf2 = jnp.zeros((128, 128), f32).at[:, :num_classes].set(p["fc2_w"].T).astype(bf16)
    bf2 = jnp.zeros((1, 128), f32).at[0, :num_classes].set(p["fc2_b"])
    return {
        "w1": w1, "b1": p["conv1_b"].reshape(1, 32).astype(f32),
        "w2": w2, "b2": p["conv2_b"].reshape(1, 64).astype(f32),
        "wf1": wf1, "bf1": p["fc1_b"].reshape(1, 128).astype(f32),
        "wf2": wf2, "bf2": bf2,
    }


def _images_per_step(batch):
    # Largest tile dividing the batch that still leaves >= 2 grid steps
    # (keeps both v7x TensorCores busy under "parallel" semantics).
    for t in (8, 4, 2):
        if batch % t == 0 and batch // t >= 2:
            return t
    return 1


# ---------------------------------------------------------------------------
# Forward wrapper: wrapper-side bf16 im2col for conv1, then one fused pallas_call.
# ---------------------------------------------------------------------------
@functools.partial(jax.jit, static_argnames=("num_classes",))
def cnn_forward(x_nchw, kp, num_classes=10):
    B, C, H, W = x_nchw.shape
    assert (C, H, W) == (3, 32, 32), "fc1 = 64*8*8 implies 3x32x32 inputs"
    T = _images_per_step(B)

    # Conv1 im2col emitted directly in bf16 (halves the dominant HBM read).
    x = jnp.transpose(x_nchw, (0, 2, 3, 1)).astype(jnp.bfloat16)        # NHWC
    xp = jnp.pad(x, ((0, 0), (1, 1), (1, 1), (0, 0)))                   # pad=1
    cols = [xp[:, kh:kh + 32, kw:kw + 32, :] for kh in range(3) for kw in range(3)]
    xcol = jnp.concatenate(cols, axis=-1).reshape(B, 1024, 27)          # K order (kh, kw, cin)

    out = pl.pallas_call(
        fused_cnn_kernel,
        out_shape=jax.ShapeDtypeStruct((B // T, T, 128), jnp.float32),
        grid=(B // T,),
        in_specs=[
            pl.BlockSpec((T, 1024, 27), lambda b: (b, 0, 0)),
            pl.BlockSpec((27, 32), lambda b: (0, 0)),
            pl.BlockSpec((1, 32), lambda b: (0, 0)),
            pl.BlockSpec((288, 64), lambda b: (0, 0)),
            pl.BlockSpec((1, 64), lambda b: (0, 0)),
            pl.BlockSpec((4096, 128), lambda b: (0, 0)),
            pl.BlockSpec((1, 128), lambda b: (0, 0)),
            pl.BlockSpec((128, 128), lambda b: (0, 0)),
            pl.BlockSpec((1, 128), lambda b: (0, 0)),
        ],
        out_specs=pl.BlockSpec((1, T, 128), lambda b: (b, 0, 0)),
        scratch_shapes=[pltpu.VMEM((T, 18, 24, 32), jnp.float32)],
        compiler_params=pltpu.CompilerParams(
            dimension_semantics=("parallel",),
            vmem_limit_bytes=32 * 1024 * 1024),
    )(xcol, kp["w1"], kp["b1"], kp["w2"], kp["b2"],
      kp["wf1"], kp["bf1"], kp["wf2"], kp["bf2"])
    return out.reshape(B, 128)[:, :num_classes]                         # (B, num_classes)


# ---------------------------------------------------------------------------
# Deterministic synthetic parameters (PyTorch-shaped) and pure-JAX reference.
# ---------------------------------------------------------------------------
def init_params(key, num_classes=10):
    ks = jax.random.split(key, 8)
    return {
        "conv1_w": jax.random.normal(ks[0], (32, 3, 3, 3), jnp.float32) * 0.05,
        "conv1_b": jax.random.normal(ks[1], (32,), jnp.float32) * 0.05,
        "conv2_w": jax.random.normal(ks[2], (64, 32, 3, 3), jnp.float32) * 0.05,
        "conv2_b": jax.random.normal(ks[3], (64,), jnp.float32) * 0.05,
        "fc1_w": jax.random.normal(ks[4], (128, 64 * 8 * 8), jnp.float32) * 0.02,
        "fc1_b": jax.random.normal(ks[5], (128,), jnp.float32) * 0.02,
        "fc2_w": jax.random.normal(ks[6], (num_classes, 128), jnp.float32) * 0.02,
        "fc2_b": jax.random.normal(ks[7], (num_classes,), jnp.float32) * 0.02,
    }


def ref_forward(x, p):
    dn = ("NCHW", "OIHW", "NCHW")
    y = jax.lax.conv_general_dilated(x, p["conv1_w"], (1, 1), ((1, 1), (1, 1)),
                                     dimension_numbers=dn)
    y = jax.nn.relu(y + p["conv1_b"][None, :, None, None])
    y = jax.lax.reduce_window(y, -jnp.inf, jax.lax.max, (1, 1, 2, 2), (1, 1, 2, 2), "VALID")
    y = jax.lax.conv_general_dilated(y, p["conv2_w"], (1, 1), ((1, 1), (1, 1)),
                                     dimension_numbers=dn)
    y = jax.nn.relu(y + p["conv2_b"][None, :, None, None])
    y = jax.lax.reduce_window(y, -jnp.inf, jax.lax.max, (1, 1, 2, 2), (1, 1, 2, 2), "VALID")
    y = y.reshape(y.shape[0], -1)
    y = jax.nn.relu(y @ p["fc1_w"].T + p["fc1_b"])
    return y @ p["fc2_w"].T + p["fc2_b"]


if __name__ == "__main__":
    key = jax.random.PRNGKey(0)
    kx, kparam = jax.random.split(key)
    # Forward implies 3 input channels and 32x32 spatial (fc1 expects 64*8*8).
    x = jax.random.normal(kx, (2, 3, 32, 32), jnp.float32)
    params = init_params(kparam, num_classes=10)
    kernel_params = prepare_params(params)          # one-time re-layout, outside the jit

    out = jax.block_until_ready(cnn_forward(x, kernel_params, num_classes=10))
    assert out.shape == (2, 10) and out.dtype == jnp.float32

    ref = ref_forward(x, params)
    err = float(jnp.max(jnp.abs(out - ref)))
    assert err < 1e-2, err                          # bf16 matmul inputs, f32 accumulation
    print("KERNEL_OK")
</pallas_src>

<mosaic_0001>
module attributes {stable_mosaic.version = 11 : i64} {
  func.func @fused_cnn_kernel(%arg0: i32, %arg1: memref<1x1024x27xbf16, #tpu.memory_space<vmem>>, %arg2: memref<27x32xbf16, #tpu.memory_space<vmem>>, %arg3: memref<1x32xf32, #tpu.memory_space<vmem>>, %arg4: memref<288x64xbf16, #tpu.memory_space<vmem>>, %arg5: memref<1x64xf32, #tpu.memory_space<vmem>>, %arg6: memref<4096x128xbf16, #tpu.memory_space<vmem>>, %arg7: memref<1x128xf32, #tpu.memory_space<vmem>>, %arg8: memref<128x128xbf16, #tpu.memory_space<vmem>>, %arg9: memref<1x128xf32, #tpu.memory_space<vmem>>, %arg10: memref<1x1x128xf32, #tpu.memory_space<vmem>>, %arg11: memref<1x18x24x32xf32, #tpu.memory_space<vmem>>) attributes {dimension_semantics = [#tpu.dimension_semantics<parallel>], iteration_bounds = array<i64: 2>, scalar_prefetch = 0 : i64, scratch_operands = 1 : i64, tpu.core_type = #tpu.core_type<tc>, window_params = [{transform_indices = @transform_0, window_bounds = array<i64: 1, 1024, 27>}, {pipeline_mode = #tpu.pipeline_mode<synchronous>, transform_indices = @transform_1, window_bounds = array<i64: 27, 32>}, {pipeline_mode = #tpu.pipeline_mode<synchronous>, transform_indices = @transform_2, window_bounds = array<i64: 1, 32>}, {pipeline_mode = #tpu.pipeline_mode<synchronous>, transform_indices = @transform_3, window_bounds = array<i64: 288, 64>}, {pipeline_mode = #tpu.pipeline_mode<synchronous>, transform_indices = @transform_4, window_bounds = array<i64: 1, 64>}, {pipeline_mode = #tpu.pipeline_mode<synchronous>, transform_indices = @transform_5, window_bounds = array<i64: 4096, 128>}, {pipeline_mode = #tpu.pipeline_mode<synchronous>, transform_indices = @transform_6, window_bounds = array<i64: 1, 128>}, {pipeline_mode = #tpu.pipeline_mode<synchronous>, transform_indices = @transform_7, window_bounds = array<i64: 128, 128>}, {pipeline_mode = #tpu.pipeline_mode<synchronous>, transform_indices = @transform_8, window_bounds = array<i64: 1, 128>}, {transform_indices = @transform_9, window_bounds = array<i64: 1, 1, 128>}]} {
    %c0 = arith.constant 0 : index
    %c0_0 = arith.constant 0 : index
    %c0_1 = arith.constant 0 : index
    %0 = vector.load %arg1[%c0, %c0_0, %c0_1] : memref<1x1024x27xbf16, #tpu.memory_space<vmem>>, vector<1x1024x27xbf16>
    %1 = vector.shape_cast %0 : vector<1x1024x27xbf16> to vector<1024x27xbf16>
    %c0_2 = arith.constant 0 : index
    %c0_3 = arith.constant 0 : index
    %2 = vector.load %arg2[%c0_2, %c0_3] : memref<27x32xbf16, #tpu.memory_space<vmem>>, vector<27x32xbf16>
    %cst = arith.constant dense<0.000000e+00> : vector<1024x32xf32>
    %3 = tpu.matmul %1, %2, %cst {dimension_numbers = #tpu.dot_dimension_numbers<[1], [0], [0], [1], [0, 0, 1, 1], [], []>} : vector<1024x27xbf16>, vector<27x32xbf16>, vector<1024x32xf32> -> vector<1024x32xf32>
    %c0_4 = arith.constant 0 : index
    %c0_5 = arith.constant 0 : index
    %4 = vector.load %arg3[%c0_4, %c0_5] : memref<1x32xf32, #tpu.memory_space<vmem>>, vector<1x32xf32>
    %5 = vector.broadcast %4 : vector<1x32xf32> to vector<1024x32xf32>
    %6 = arith.addf %3, %5 : vector<1024x32xf32>
    %cst_6 = arith.constant 0.000000e+00 : f32
    %7 = vector.broadcast %cst_6 : f32 to vector<1024x32xf32>
    %8 = arith.maximumf %6, %7 : vector<1024x32xf32>
    %9 = vector.shape_cast %8 : vector<1024x32xf32> to vector<16x2x32x32xf32>
    %cst_7 = arith.constant dense<0xFF800000> : vector<16x32x32xf32>
    %10 = vector.multi_reduction <maximumf>, %9, %cst_7 [1] : vector<16x2x32x32xf32> to vector<16x32x32xf32>
    %11 = vector.shape_cast %10 : vector<16x32x32xf32> to vector<16x16x2x32xf32>
    %cst_8 = arith.constant dense<0xFF800000> : vector<16x16x32xf32>
    %12 = vector.multi_reduction <maximumf>, %11, %cst_8 [2] : vector<16x16x2x32xf32> to vector<16x16x32xf32>
    %13 = vector.shape_cast %12 : vector<16x16x32xf32> to vector<1x16x16x32xf32>
    %cst_9 = arith.constant 0.000000e+00 : f32
    %14 = vector.broadcast %cst_9 : f32 to vector<1x1x24x32xf32>
    %c0_10 = arith.constant 0 : index
    %c0_11 = arith.constant 0 : index
    %c0_12 = arith.constant 0 : index
    %c0_13 = arith.constant 0 : index
    %15 = vector.load %arg11[%c0_10, %c0_11, %c0_12, %c0_13] : memref<1x18x24x32xf32, #tpu.memory_space<vmem>>, vector<1x1x24x32xf32>
    tpu.vector_store %arg11[%c0_10, %c0_11, %c0_12, %c0_13], %14 {strides = array<i32>} : memref<1x18x24x32xf32, #tpu.memory_space<vmem>>, vector<1x1x24x32xf32>,
    %c0_14 = arith.constant 0 : index
    %c17 = arith.constant 17 : index
    %c0_15 = arith.constant 0 : index
    %c0_16 = arith.constant 0 : index
    %16 = vector.load %arg11[%c0_14, %c17, %c0_15, %c0_16] : memref<1x18x24x32xf32, #tpu.memory_space<vmem>>, vector<1x1x24x32xf32>
    tpu.vector_store %arg11[%c0_14, %c17, %c0_15, %c0_16], %14 {strides = array<i32>} : memref<1x18x24x32xf32, #tpu.memory_space<vmem>>, vector<1x1x24x32xf32>,
    %cst_17 = arith.constant 0.000000e+00 : f32
    %17 = vector.broadcast %cst_17 : f32 to vector<1x16x8x32xf32>
    %c0_18 = arith.constant 0 : index
    %c1 = arith.constant 1 : index
    %c16 = arith.constant 16 : index
    %c0_19 = arith.constant 0 : index
    %18 = vector.load %arg11[%c0_18, %c1, %c16, %c0_19] : memref<1x18x24x32xf32, #tpu.memory_space<vmem>>, vector<1x16x8x32xf32>
    tpu.vector_store %arg11[%c0_18, %c1, %c16, %c0_19], %17 {strides = array<i32>} : memref<1x18x24x32xf32, #tpu.memory_space<vmem>>, vector<1x16x8x32xf32>,
    %c0_20 = arith.constant 0 : index
    %c1_21 = arith.constant 1 : index
    %c0_22 = arith.constant 0 : index
    %c0_23 = arith.constant 0 : index
    %19 = vector.load %arg11[%c0_20, %c1_21, %c0_22, %c0_23] : memref<1x18x24x32xf32, #tpu.memory_space<vmem>>, vector<1x16x16x32xf32>
    tpu.vector_store %arg11[%c0_20, %c1_21, %c0_22, %c0_23], %13 {strides = array<i32>} : memref<1x18x24x32xf32, #tpu.memory_space<vmem>>, vector<1x16x16x32xf32>,
    %c0_24 = arith.constant 0 : index
    %c0_25 = arith.constant 0 : index
    %c0_26 = arith.constant 0 : index
    %c0_27 = arith.constant 0 : index
    %20 = vector.load %arg11[%c0_24, %c0_25, %c0_26, %c0_27] : memref<1x18x24x32xf32, #tpu.memory_space<vmem>>, vector<1x18x24x32xf32>
    %c1_i32 = arith.constant 1 : i32
    %21 = tpu.dynamic_rotate %20 by %c1_i32 dim 2 : vector<1x18x24x32xf32>, i32 -> vector<1x18x24x32xf32>
    %c23_i32 = arith.constant 23 : i32
    %22 = tpu.dynamic_rotate %20 by %c23_i32 dim 2 : vector<1x18x24x32xf32>, i32 -> vector<1x18x24x32xf32>
    %23 = vector.extract_strided_slice %21 {offsets = [0, 0, 0, 0], sizes = [1, 16, 16, 32], strides = [1, 1, 1, 1]} : vector<1x18x24x32xf32> to vector<1x16x16x32xf32>
    %24 = vector.shape_cast %23 : vector<1x16x16x32xf32> to vector<256x32xf32>
    %25 = vector.extract_strided_slice %20 {offsets = [0, 0, 0, 0], sizes = [1, 16, 16, 32], strides = [1, 1, 1, 1]} : vector<1x18x24x32xf32> to vector<1x16x16x32xf32>
    %26 = vector.shape_cast %25 : vector<1x16x16x32xf32> to vector<256x32xf32>
    %27 = vector.extract_strided_slice %22 {offsets = [0, 0, 0, 0], sizes = [1, 16, 16, 32], strides = [1, 1, 1, 1]} : vector<1x18x24x32xf32> to vector<1x16x16x32xf32>
    %28 = vector.shape_cast %27 : vector<1x16x16x32xf32> to vector<256x32xf32>
    %29 = vector.extract_strided_slice %21 {offsets = [0, 1, 0, 0], sizes = [1, 16, 16, 32], strides = [1, 1, 1, 1]} : vector<1x18x24x32xf32> to vector<1x16x16x32xf32>
    %30 = vector.shape_cast %29 : vector<1x16x16x32xf32> to vector<256x32xf32>
    %31 = vector.extract_strided_slice %20 {offsets = [0, 1, 0, 0], sizes = [1, 16, 16, 32], strides = [1, 1, 1, 1]} : vector<1x18x24x32xf32> to vector<1x16x16x32xf32>
    %32 = vector.shape_cast %31 : vector<1x16x16x32xf32> to vector<256x32xf32>
    %33 = vector.extract_strided_slice %22 {offsets = [0, 1, 0, 0], sizes = [1, 16, 16, 32], strides = [1, 1, 1, 1]} : vector<1x18x24x32xf32> to vector<1x16x16x32xf32>
    %34 = vector.shape_cast %33 : vector<1x16x16x32xf32> to vector<256x32xf32>
    %35 = vector.extract_strided_slice %21 {offsets = [0, 2, 0, 0], sizes = [1, 16, 16, 32], strides = [1, 1, 1, 1]} : vector<1x18x24x32xf32> to vector<1x16x16x32xf32>
    %36 = vector.shape_cast %35 : vector<1x16x16x32xf32> to vector<256x32xf32>
    %37 = vector.extract_strided_slice %20 {offsets = [0, 2, 0, 0], sizes = [1, 16, 16, 32], strides = [1, 1, 1, 1]} : vector<1x18x24x32xf32> to vector<1x16x16x32xf32>
    %38 = vector.shape_cast %37 : vector<1x16x16x32xf32> to vector<256x32xf32>
    %39 = vector.extract_strided_slice %22 {offsets = [0, 2, 0, 0], sizes = [1, 16, 16, 32], strides = [1, 1, 1, 1]} : vector<1x18x24x32xf32> to vector<1x16x16x32xf32>
    %40 = vector.shape_cast %39 : vector<1x16x16x32xf32> to vector<256x32xf32>
    %41 = tpu.concatenate %24, %26, %28, %30, %32, %34, %36, %38, %40 in 1 : vector<256x32xf32>, vector<256x32xf32>, vector<256x32xf32>, vector<256x32xf32>, vector<256x32xf32>, vector<256x32xf32>, vector<256x32xf32>, vector<256x32xf32>, vector<256x32xf32> -> vector<256x288xf32>
    %42 = arith.truncf %41 : vector<256x288xf32> to vector<256x288xbf16>
    %c0_28 = arith.constant 0 : index
    %c0_29 = arith.constant 0 : index
    %43 = vector.load %arg4[%c0_28, %c0_29] : memref<288x64xbf16, #tpu.memory_space<vmem>>, vector<288x64xbf16>
    %cst_30 = arith.constant dense<0.000000e+00> : vector<256x64xf32>
    %44 = tpu.matmul %42, %43, %cst_30 {dimension_numbers = #tpu.dot_dimension_numbers<[1], [0], [0], [1], [0, 0, 1, 1], [], []>} : vector<256x288xbf16>, vector<288x64xbf16>, vector<256x64xf32> -> vector<256x64xf32>
    %c0_31 = arith.constant 0 : index
    %c0_32 = arith.constant 0 : index
    %45 = vector.load %arg5[%c0_31, %c0_32] : memref<1x64xf32, #tpu.memory_space<vmem>>, vector<1x64xf32>
    %46 = vector.broadcast %45 : vector<1x64xf32> to vector<256x64xf32>
    %47 = arith.addf %44, %46 : vector<256x64xf32>
    %cst_33 = arith.constant 0.000000e+00 : f32
    %48 = vector.broadcast %cst_33 : f32 to vector<256x64xf32>
    %49 = arith.maximumf %47, %48 : vector<256x64xf32>
    %50 = vector.shape_cast %49 : vector<256x64xf32> to vector<8x2x16x64xf32>
    %cst_34 = arith.constant dense<0xFF800000> : vector<8x16x64xf32>
    %51 = vector.multi_reduction <maximumf>, %50, %cst_34 [1] : vector<8x2x16x64xf32> to vector<8x16x64xf32>
    %52 = vector.shape_cast %51 : vector<8x16x64xf32> to vector<8x8x2x64xf32>
    %cst_35 = arith.constant dense<0xFF800000> : vector<8x8x64xf32>
    %53 = vector.multi_reduction <maximumf>, %52, %cst_35 [2] : vector<8x8x2x64xf32> to vector<8x8x64xf32>
    %54 = vector.extract_strided_slice %53 {offsets = [0, 0, 0], sizes = [8, 1, 64], strides = [1, 1, 1]} : vector<8x8x64xf32> to vector<8x1x64xf32>
    %55 = vector.shape_cast %54 : vector<8x1x64xf32> to vector<8x64xf32>
    %56 = vector.extract_strided_slice %53 {offsets = [0, 1, 0], sizes = [8, 1, 64], strides = [1, 1, 1]} : vector<8x8x64xf32> to vector<8x1x64xf32>
    %57 = vector.shape_cast %56 : vector<8x1x64xf32> to vector<8x64xf32>
    %58 = vector.extract_strided_slice %53 {offsets = [0, 2, 0], sizes = [8, 1, 64], strides = [1, 1, 1]} : vector<8x8x64xf32> to vector<8x1x64xf32>
    %59 = vector.shape_cast %58 : vector<8x1x64xf32> to vector<8x64xf32>
    %60 = vector.extract_strided_slice %53 {offsets = [0, 3, 0], sizes = [8, 1, 64], strides = [1, 1, 1]} : vector<8x8x64xf32> to vector<8x1x64xf32>
    %61 = vector.shape_cast %60 : vector<8x1x64xf32> to vector<8x64xf32>
    %62 = vector.extract_strided_slice %53 {offsets = [0, 4, 0], sizes = [8, 1, 64], strides = [1, 1, 1]} : vector<8x8x64xf32> to vector<8x1x64xf32>
    %63 = vector.shape_cast %62 : vector<8x1x64xf32> to vector<8x64xf32>
    %64 = vector.extract_strided_slice %53 {offsets = [0, 5, 0], sizes = [8, 1, 64], strides = [1, 1, 1]} : vector<8x8x64xf32> to vector<8x1x64xf32>
    %65 = vector.shape_cast %64 : vector<8x1x64xf32> to vector<8x64xf32>
    %66 = vector.extract_strided_slice %53 {offsets = [0, 6, 0], sizes = [8, 1, 64], strides = [1, 1, 1]} : vector<8x8x64xf32> to vector<8x1x64xf32>
    %67 = vector.shape_cast %66 : vector<8x1x64xf32> to vector<8x64xf32>
    %68 = vector.extract_strided_slice %53 {offsets = [0, 7, 0], sizes = [8, 1, 64], strides = [1, 1, 1]} : vector<8x8x64xf32> to vector<8x1x64xf32>
    %69 = vector.shape_cast %68 : vector<8x1x64xf32> to vector<8x64xf32>
    %70 = tpu.concatenate %55, %57, %59, %61, %63, %65, %67, %69 in 1 : vector<8x64xf32>, vector<8x64xf32>, vector<8x64xf32>, vector<8x64xf32>, vector<8x64xf32>, vector<8x64xf32>, vector<8x64xf32>, vector<8x64xf32> -> vector<8x512xf32>
    %71 = vector.shape_cast %70 : vector<8x512xf32> to vector<1x8x512xf32>
    %72 = vector.extract_strided_slice %71 {offsets = [0, 0, 0], sizes = [1, 1, 512], strides = [1, 1, 1]} : vector<1x8x512xf32> to vector<1x1x512xf32>
    %73 = vector.shape_cast %72 : vector<1x1x512xf32> to vector<1x512xf32>
    %74 = vector.extract_strided_slice %71 {offsets = [0, 1, 0], sizes = [1, 1, 512], strides = [1, 1, 1]} : vector<1x8x512xf32> to vector<1x1x512xf32>
    %75 = vector.shape_cast %74 : vector<1x1x512xf32> to vector<1x512xf32>
    %76 = vector.extract_strided_slice %71 {offsets = [0, 2, 0], sizes = [1, 1, 512], strides = [1, 1, 1]} : vector<1x8x512xf32> to vector<1x1x512xf32>
    %77 = vector.shape_cast %76 : vector<1x1x512xf32> to vector<1x512xf32>
    %78 = vector.extract_strided_slice %71 {offsets = [0, 3, 0], sizes = [1, 1, 512], strides = [1, 1, 1]} : vector<1x8x512xf32> to vector<1x1x512xf32>
    %79 = vector.shape_cast %78 : vector<1x1x512xf32> to vector<1x512xf32>
    %80 = vector.extract_strided_slice %71 {offsets = [0, 4, 0], sizes = [1, 1, 512], strides = [1, 1, 1]} : vector<1x8x512xf32> to vector<1x1x512xf32>
    %81 = vector.shape_cast %80 : vector<1x1x512xf32> to vector<1x512xf32>
    %82 = vector.extract_strided_slice %71 {offsets = [0, 5, 0], sizes = [1, 1, 512], strides = [1, 1, 1]} : vector<1x8x512xf32> to vector<1x1x512xf32>
    %83 = vector.shape_cast %82 : vector<1x1x512xf32> to vector<1x512xf32>
    %84 = vector.extract_strided_slice %71 {offsets = [0, 6, 0], sizes = [1, 1, 512], strides = [1, 1, 1]} : vector<1x8x512xf32> to vector<1x1x512xf32>
    %85 = vector.shape_cast %84 : vector<1x1x512xf32> to vector<1x512xf32>
    %86 = vector.extract_strided_slice %71 {offsets = [0, 7, 0], sizes = [1, 1, 512], strides = [1, 1, 1]} : vector<1x8x512xf32> to vector<1x1x512xf32>
    %87 = vector.shape_cast %86 : vector<1x1x512xf32> to vector<1x512xf32>
    %88 = tpu.concatenate %73, %75, %77, %79, %81, %83, %85, %87 in 1 : vector<1x512xf32>, vector<1x512xf32>, vector<1x512xf32>, vector<1x512xf32>, vector<1x512xf32>, vector<1x512xf32>, vector<1x512xf32>, vector<1x512xf32> -> vector<1x4096xf32>
    %89 = arith.truncf %88 : vector<1x4096xf32> to vector<1x4096xbf16>
    %c0_36 = arith.constant 0 : index
    %c0_37 = arith.constant 0 : index
    %90 = vector.load %arg6[%c0_36, %c0_37] : memref<4096x128xbf16, #tpu.memory_space<vmem>>, vector<4096x128xbf16>
    %cst_38 = arith.constant dense<0.000000e+00> : vector<1x128xf32>
    %91 = tpu.matmul %89, %90, %cst_38 {dimension_numbers = #tpu.dot_dimension_numbers<[1], [0], [0], [1], [0, 0, 1, 1], [], []>} : vector<1x4096xbf16>, vector<4096x128xbf16>, vector<1x128xf32> -> vector<1x128xf32>
    %c0_39 = arith.constant 0 : index
    %c0_40 = arith.constant 0 : index
    %92 = vector.load %arg7[%c0_39, %c0_40] : memref<1x128xf32, #tpu.memory_space<vmem>>, vector<1x128xf32>
    %93 = arith.addf %91, %92 : vector<1x128xf32>
    %cst_41 = arith.constant 0.000000e+00 : f32
    %94 = vector.broadcast %cst_41 : f32 to vector<1x128xf32>
    %95 = arith.maximumf %93, %94 : vector<1x128xf32>
    %96 = arith.truncf %95 : vector<1x128xf32> to vector<1x128xbf16>
    %c0_42 = arith.constant 0 : index
    %c0_43 = arith.constant 0 : index
    %97 = vector.load %arg8[%c0_42, %c0_43] : memref<128x128xbf16, #tpu.memory_space<vmem>>, vector<128x128xbf16>
    %cst_44 = arith.constant dense<0.000000e+00> : vector<1x128xf32>
    %98 = tpu.matmul %96, %97, %cst_44 {dimension_numbers = #tpu.dot_dimension_numbers<[1], [0], [0], [1], [0, 0, 1, 1], [], []>} : vector<1x128xbf16>, vector<128x128xbf16>, vector<1x128xf32> -> vector<1x128xf32>
    %c0_45 = arith.constant 0 : index
    %c0_46 = arith.constant 0 : index
    %99 = vector.load %arg9[%c0_45, %c0_46] : memref<1x128xf32, #tpu.memory_space<vmem>>, vector<1x128xf32>
    %100 = arith.addf %98, %99 : vector<1x128xf32>
    %c0_47 = arith.constant 0 : index
    %c0_48 = arith.constant 0 : index
    %c0_49 = arith.constant 0 : index
    %101 = vector.load %arg10[%c0_47, %c0_48, %c0_49] : memref<1x1x128xf32, #tpu.memory_space<vmem>>, vector<1x1x128xf32>
    %102 = vector.shape_cast %101 : vector<1x1x128xf32> to vector<1x128xf32>
    %103 = vector.shape_cast %100 : vector<1x128xf32> to vector<1x1x128xf32>
    tpu.vector_store %arg10[%c0_47, %c0_48, %c0_49], %103 {strides = array<i32>} : memref<1x1x128xf32, #tpu.memory_space<vmem>>, vector<1x1x128xf32>,
    return
  }
  func.func @transform_0(%arg0: i32) -> (i32, i32, i32) {
    %c0_i32 = arith.constant 0 : i32
    %c0_i32_0 = arith.constant 0 : i32
    %c0_i32_1 = arith.constant 0 : i32
    return %arg0, %c0_i32, %c0_i32_0 : i32, i32, i32
  }
  func.func @transform_1(%arg0: i32) -> (i32, i32) {
    %c0_i32 = arith.constant 0 : i32
    %c0_i32_0 = arith.constant 0 : i32
    %c0_i32_1 = arith.constant 0 : i32
    return %c0_i32, %c0_i32_0 : i32, i32
  }
  func.func @transform_2(%arg0: i32) -> (i32, i32) {
    %c0_i32 = arith.constant 0 : i32
    %c0_i32_0 = arith.constant 0 : i32
    %c0_i32_1 = arith.constant 0 : i32
    return %c0_i32, %c0_i32_0 : i32, i32
  }
  func.func @transform_3(%arg0: i32) -> (i32, i32) {
    %c0_i32 = arith.constant 0 : i32
    %c0_i32_0 = arith.constant 0 : i32
    %c0_i32_1 = arith.constant 0 : i32
    return %c0_i32, %c0_i32_0 : i32, i32
  }
  func.func @transform_4(%arg0: i32) -> (i32, i32) {
    %c0_i32 = arith.constant 0 : i32
    %c0_i32_0 = arith.constant 0 : i32
    %c0_i32_1 = arith.constant 0 : i32
    return %c0_i32, %c0_i32_0 : i32, i32
  }
  func.func @transform_5(%arg0: i32) -> (i32, i32) {
    %c0_i32 = arith.constant 0 : i32
    %c0_i32_0 = arith.constant 0 : i32
    %c0_i32_1 = arith.constant 0 : i32
    return %c0_i32, %c0_i32_0 : i32, i32
  }
  func.func @transform_6(%arg0: i32) -> (i32, i32) {
    %c0_i32 = arith.constant 0 : i32
    %c0_i32_0 = arith.constant 0 : i32
    %c0_i32_1 = arith.constant 0 : i32
    return %c0_i32, %c0_i32_0 : i32, i32
  }
  func.func @transform_7(%arg0: i32) -> (i32, i32) {
    %c0_i32 = arith.constant 0 : i32
    %c0_i32_0 = arith.constant 0 : i32
    %c0_i32_1 = arith.constant 0 : i32
    return %c0_i32, %c0_i32_0 : i32, i32
  }
  func.func @transform_8(%arg0: i32) -> (i32, i32) {
    %c0_i32 = arith.constant 0 : i32
    %c0_i32_0 = arith.constant 0 : i32
    %c0_i32_1 = arith.constant 0 : i32
    return %c0_i32, %c0_i32_0 : i32, i32
  }
  func.func @transform_9(%arg0: i32) -> (i32, i32, i32) {
    %c0_i32 = arith.constant 0 : i32
    %c0_i32_0 = arith.constant 0 : i32
    %c0_i32_1 = arith.constant 0 : i32
    return %arg0, %c0_i32, %c0_i32_0 : i32, i32, i32
  }
}

</mosaic_0001>

<bundles_post_ra>
// kernel: cnn_forward.1
= control target key start
LH: loop header
LB: loop body
LE: loop exit
PB: predicated region body
PF: predicated region fallthrough
CT: control target
= control target key end

     0   :  { %14 = vsyncpa [#allocation4], 0  ;;  %s18330_s0 = inlined_call_operand.vmem [shape: bf16[2,1024,27], index: 0, kind: input, shape index: {}]   ;;  %s18331_s1 = inlined_call_operand.vmem [shape: bf16[27,32], index: 1, kind: input, shape index: {}]   ;;  %s18332_s2 = inlined_call_operand.vmem [shape: f32[1,32], index: 2, kind: input, shape index: {}]   ;;  %s18333_s3 = inlined_call_operand.vmem [shape: bf16[288,64], index: 3, kind: input, shape index: {}]   ;;  %s18334_s4 = inlined_call_operand.vmem [shape: f32[1,64], index: 4, kind: input, shape index: {}]   ;;  %s18335_s5 = inlined_call_operand.vmem [shape: bf16[4096,128], index: 5, kind: input, shape index: {}]   ;;  %s18336_s6 = inlined_call_operand.vmem [shape: f32[1,128], index: 6, kind: input, shape index: {}]   ;;  %s18337_s7 = inlined_call_operand.vmem [shape: bf16[128,128], index: 7, kind: input, shape index: {}]   ;;  %s18338_s8 = inlined_call_operand.vmem [shape: f32[1,128], index: 8, kind: input, shape index: {}]   ;;  %s18339_s9 = inlined_call_operand.hbm [shape: f32[2,1,128], index: 9, kind: output, shape index: {}]  }
   0x1   :  { %16 = vsyncpa [#allocation4 + $0x1], 0  ;;  %s13529_s30 = smov 0   ;;  %s13531_s10 = smov 0  }
   0x2   :  { %s13533_s11 = smov 0   ;;  %s13535_s12 = smov 0  }
   0x3 LB: > { %s13550_s13 = sadd.s32 4294967295, %s13469_s12   ;;  %s11302_s14 = sadd.s32 4294967294, %s13469_s12   ;;  %s13469_s12 = sphi %s13535_s12, %s18605_s12   ;;  %s13465_s11 = sphi %s13533_s11, %s18604_s11   ;;  %s13461_s10 = sphi %s13531_s10, %s18603_s10   ;;  %s13457_s30 = sphi %s13529_s30, %s18602_s30  }
   0x4   : > { %s13554_s15 = sadd.s32 1, %s13469_s12   ;;  %s223_s16 = sadd.s32 1, %s13465_s11 }
   0x5   : > { %s220_s17 = ssub.s32 %s13469_s12, %s13554_s15  ;;  %p233_p0 = scmp.ne.s32.totalorder %s13465_s11, %s13461_s10 }
   0x6   : > { %p221_p1 = scmp.eq.s32.totalorder %s220_s17, 0  ;;  %p234_p2 = scmp.eq.s32.totalorder %s13550_s13, 1 }
   0x7   : > { %p239_p3 = scmp.ne.s32.totalorder %s13461_s10, %s13457_s30  ;;  %p240_p4 = scmp.eq.s32.totalorder %s11302_s14, 1 }
   0x8   : > { %s13565_s18 = scalar_select %p221_p1, %s13465_s11, %s223_s16  }
   0x9   : > { %p13567_p5 = por %p234_p2, %p233_p0  ;;  %p13571_p6 = por %p240_p4, %p239_p3 }
   0xa   : > { %p11305_p7 = scmp.ge.s32.totalorder %s13469_s12, 1  ;;  %p290_p8 = scmp.lt.s32.totalorder %s13469_s12, 3 }
   0xc   : > { %p291_p9 = pnand %p11305_p7, %p290_p8 }
   0xe   : > { %294 = sbr.rel (%p291_p9) target bundleno = 2420 (0x974), region = 56 }
  0x15   : > { %v13023_v0 = vld [vmem:[%s18331_s1] sm:$0xff]   ;;  %vm994_vm0 = vcmask 1044480   ;;  %v13024_v1 = vld [vmem:[%s18331_s1 + $0x8] sm:$0x3f]   ;;  %vm995_vm1 = vcmask 1045504   ;;  %p325_p10 = scmp.lt.s32.totalorder %s13550_s13, 1  ;;  %v1935_v60 = vlaneseq }
  0x16   : > { %12299 = vmatprep.subr.bf16.mxu0 %v13023_v0  ;;  %v13471_v2 = vmov 65535   ;;  %vm801_vm2 = vcmask 220160   ;;  %vm1674_vm3 = vcmask 261120   ;;  %v18340_v59 = vmov 0.0   ;;  %s13473_s17 = smov 64   ;;  %s13474_s21 = smov 32  }
  0x17   : > { %12300 = vmatpush3.bf16.msra.mxu0 %v13023_v0  ;;  %v996_v3 = vsel %vm994_vm0, 4294967295, %v13471_v2  ;;  %s326_s25 = scalar_select %p325_p10, %s13550_s13, 1  ;;  %5068 = vst.msk [vmem:[#allocation2] sm:$0xff] %vm1674_vm3, %v18340_v59  ;;  %5069 = vst.msk [vmem:[#allocation2 + $0x8] sm:$0xff] %vm1674_vm3, %v18340_v59  ;;  %v13740_v61 = vshrl.u32 %v1935_v60, 7  ;;  %vm3275_vm5 = vcmask 254976  }
  0x18   : > { %v997_v4 = vsel %vm995_vm1, %v996_v3, 0  ;;  %5070 = vst.msk [vmem:[#allocation2 + $0x10] sm:$0xff] %vm1674_vm3, %v18340_v59  ;;  %5072 = vst.msk [vmem:[#allocation2 + $0x198] sm:$0xff] %vm1674_vm3, %v18340_v59  ;;  %vm5348_vm6 = vcmask 1041409   ;;  %vm5350_vm7 = vcmask 1042434   ;;  %vm5352_vm8 = vcmask 1043459  }
  0x19   : > { %v999_v5 = vand.u32 %v13024_v1, %v997_v4  ;;  %s11741_s26 = sshll.u32 %s326_s25, 9  ;;  %5073 = vst.msk [vmem:[#allocation2 + $0x1a0] sm:$0xff] %vm1674_vm3, %v18340_v59  ;;  %5074 = vst.msk [vmem:[#allocation2 + $0x1a8] sm:$0xff] %vm1674_vm3, %v18340_v59  ;;  %vm5844_vm4 = vcmp.lt.s32.totalorder %v13740_v61, 7  ;;  %vm5354_vm9 = vcmask 1044484   ;;  %vm5356_vm10 = vcmask 1045509  }
  0x1a   : > { %s13588_s29 = scalar_lea.vmem %s18330_s0, %s11741_s26  ;;  %5076 = vst.msk [vmem:[#allocation2 + $0x28] sm:$0xff] %vm1674_vm3, %v18340_v59  ;;  %5077 = vst.msk [vmem:[#allocation2 + $0x40] sm:$0xff] %vm1674_vm3, %v18340_v59  ;;  %vm5358_vm11 = vcmask 1046534   ;;  %vm5360_vm12 = vcmask 1047559   ;;  %vm5753_vm13 = vcmp.lt.s32.totalorder %v13740_v61, 1  ;;  %s13476_s24 = smov 96  }
  0x1b   : > { %12301 = vmatprep.subr.bf16.mxu0 %v999_v5  ;;  %v13025_v6 = vld [vmem:[%s13588_s29] sm:$0xff]   ;;  %v13026_v7 = vld [vmem:[%s13588_s29 + $0x8] sm:$0xff]   ;;  %v13027_v8 = vld [vmem:[%s13588_s29 + $0x10] sm:$0xff]   ;;  %5078 = vst.msk [vmem:[#allocation2 + $0x58] sm:$0xff] %vm1674_vm3, %v18340_v59  ;;  %vm6593_vm14 = vcmask 523264   ;;  %vm6626_vm15 = vcmask 785408  }
  0x1c   : > { %12302 = vmatpush3.bf16.msra.mxu0 %v999_v5  ;;  %12303 = vmatprep.mubr.msk.bf16.mxu0 %vm801_vm2, %v13025_v6  ;;  %v13028_v9 = vld [vmem:[%s13588_s29 + $0x18] sm:$0xff]   ;;  %v13029_v10 = vld [vmem:[%s13588_s29 + $0x20] sm:$0xff]   ;;  %v13030_v11 = vld [vmem:[%s13588_s29 + $0x28] sm:$0xff]   ;;  %5079 = vst.msk [vmem:[#allocation2 + $0x70] sm:$0xff] %vm1674_vm3, %v18340_v59  ;;  %vm7756_vm0 = vcmask 517120   ;;  %vm13477_vm1 = vmmov 0  }
  0x1d   : > { %v13031_v12 = vld [vmem:[%s13588_s29 + $0x30] sm:$0xff]   ;;  %v13032_v13 = vld [vmem:[%s13588_s29 + $0x38] sm:$0xff]   ;;  %v13033_v14 = vld [vmem:[%s13588_s29 + $0x40] sm:$0xff]   ;;  %5080 = vst.msk [vmem:[#allocation2 + $0x88] sm:$0xff] %vm1674_vm3, %v18340_v59  ;;  %s11738_s25 = sshll.u32 %s13550_s13, 4  ;;  %s13478_s16 = smov [#allocation3]  }
  0x1e   : > { %v13034_v15 = vld [vmem:[%s13588_s29 + $0x48] sm:$0xff]   ;;  %v13035_v16 = vld [vmem:[%s13588_s29 + $0x50] sm:$0xff]   ;;  %v13036_v17 = vld [vmem:[%s13588_s29 + $0x58] sm:$0xff]   ;;  %5081 = vst.msk [vmem:[#allocation2 + $0xa0] sm:$0xff] %vm1674_vm3, %v18340_v59  ;;  %s13411_s22 = sshll.u32 %s13478_s16, 4  ;;  %s13412_s22 = int_to_ptr.vmem [resolvable:$false] %s13411_s22 }
  0x1f   : > { %12304 = vmatmul.mubr.msk.bf16.vlgmr.msra.gmra.mrb[0].mxu0 %vm801_vm2, %v13026_v7  ;;  %v13037_v18 = vld [vmem:[%s13588_s29 + $0x60] sm:$0xff]   ;;  %v13038_v19 = vld [vmem:[%s13588_s29 + $0x68] sm:$0xff]   ;;  %v13039_v20 = vld [vmem:[%s13588_s29 + $0x70] sm:$0xff]   ;;  %5082 = vst.msk [vmem:[#allocation2 + $0xb8] sm:$0xff] %vm1674_vm3, %v18340_v59 }
  0x20   : > { %12307 = vmatprep.mubr.msk.bf16.mxu0 %vm801_vm2, %v13027_v8  ;;  %v13040_v21 = vld [vmem:[%s13588_s29 + $0x78] sm:$0xff]   ;;  %v13041_v22 = vld [vmem:[%s13588_s29 + $0x80] sm:$0xff]   ;;  %v13042_v23 = vld [vmem:[%s13588_s29 + $0x88] sm:$0xff]   ;;  %5083 = vst.msk [vmem:[#allocation2 + $0xd0] sm:$0xff] %vm1674_vm3, %v18340_v59 }
  0x21   : > { %v13043_v24 = vld [vmem:[%s13588_s29 + $0x90] sm:$0xff]   ;;  %v13044_v25 = vld [vmem:[%s13588_s29 + $0x98] sm:$0xff]   ;;  %v13045_v26 = vld [vmem:[%s13588_s29 + $0xa0] sm:$0xff]   ;;  %5084 = vst.msk [vmem:[#allocation2 + $0xe8] sm:$0xff] %vm1674_vm3, %v18340_v59 }
  0x22   : > { %v13046_v27 = vld [vmem:[%s13588_s29 + $0xa8] sm:$0xff]   ;;  %v13047_v28 = vld [vmem:[%s13588_s29 + $0xb0] sm:$0xff]   ;;  %v13048_v29 = vld [vmem:[%s13588_s29 + $0xb8] sm:$0xff]   ;;  %5085 = vst.msk [vmem:[#allocation2 + $0x100] sm:$0xff] %vm1674_vm3, %v18340_v59 }
  0x23   : > { %v13049_v30 = vld [vmem:[%s13588_s29 + $0xc0] sm:$0xff]   ;;  %v13050_v31 = vld [vmem:[%s13588_s29 + $0xc8] sm:$0xff]   ;;  %v13051_v32 = vld [vmem:[%s13588_s29 + $0xd0] sm:$0xff]   ;;  %5086 = vst.msk [vmem:[#allocation2 + $0x118] sm:$0xff] %vm1674_vm3, %v18340_v59 }
  0x24   : > { %v13052_v33 = vld [vmem:[%s13588_s29 + $0xd8] sm:$0xff]   ;;  %v13053_v34 = vld [vmem:[%s13588_s29 + $0xe0] sm:$0xff]   ;;  %v13054_v35 = vld [vmem:[%s13588_s29 + $0xe8] sm:$0xff]   ;;  %5087 = vst.msk [vmem:[#allocation2 + $0x130] sm:$0xff] %vm1674_vm3, %v18340_v59 }
  0x25   : > { %v13055_v36 = vld [vmem:[%s13588_s29 + $0xf0] sm:$0xff]   ;;  %v13056_v37 = vld [vmem:[%s13588_s29 + $0xf8] sm:$0xff]   ;;  %v13057_v38 = vld [vmem:[%s13588_s29 + $0x100] sm:$0xff]   ;;  %5088 = vst.msk [vmem:[#allocation2 + $0x148] sm:$0xff] %vm1674_vm3, %v18340_v59 }
  0x26   : > { %v13058_v39 = vld [vmem:[%s13588_s29 + $0x108] sm:$0xff]   ;;  %v13059_v40 = vld [vmem:[%s13588_s29 + $0x110] sm:$0xff]   ;;  %v13060_v41 = vld [vmem:[%s13588_s29 + $0x118] sm:$0xff]   ;;  %5089 = vst.msk [vmem:[#allocation2 + $0x160] sm:$0xff] %vm1674_vm3, %v18340_v59 }
  0x27   : > { %12308 = vmatmul.mubr.msk.bf16.gmra.mrb[4].mxu0 %vm801_vm2, %v13028_v9  ;;  %v13061_v42 = vld [vmem:[%s13588_s29 + $0x120] sm:$0xff]   ;;  %v13062_v43 = vld [vmem:[%s13588_s29 + $0x128] sm:$0xff]   ;;  %v13063_v44 = vld [vmem:[%s13588_s29 + $0x130] sm:$0xff]   ;;  %5090 = vst.msk [vmem:[#allocation2 + $0x178] sm:$0xff] %vm1674_vm3, %v18340_v59 }
  0x28   : > { %12311 = vmatprep.mubr.msk.bf16.mxu0 %vm801_vm2, %v13029_v10  ;;  %v13064_v45 = vld [vmem:[%s13588_s29 + $0x138] sm:$0xff]   ;;  %v13065_v46 = vld [vmem:[%s13588_s29 + $0x140] sm:$0xff]   ;;  %v13066_v47 = vld [vmem:[%s13588_s29 + $0x148] sm:$0xff]   ;;  %5091 = vst.msk [vmem:[#allocation2 + $0x190] sm:$0xff] %vm1674_vm3, %v18340_v59 }
  0x29   : > { %v13067_v48 = vld [vmem:[%s13588_s29 + $0x150] sm:$0xff]   ;;  %v13068_v49 = vld [vmem:[%s13588_s29 + $0x158] sm:$0xff]   ;;  %v13069_v50 = vld [vmem:[%s13588_s29 + $0x160] sm:$0xff]  }
  0x2a   : > { %v13070_v51 = vld [vmem:[%s13588_s29 + $0x168] sm:$0xff]   ;;  %v13071_v52 = vld [vmem:[%s13588_s29 + $0x170] sm:$0xff]   ;;  %v13072_v53 = vld [vmem:[%s13588_s29 + $0x178] sm:$0xff]  }
  0x2b   : > { %v13073_v54 = vld [vmem:[%s13588_s29 + $0x180] sm:$0xff]   ;;  %v13074_v55 = vld [vmem:[%s13588_s29 + $0x188] sm:$0xff]   ;;  %v13075_v56 = vld [vmem:[%s13588_s29 + $0x190] sm:$0xff]  }
  0x2c   : > { %v13076_v57 = vld [vmem:[%s13588_s29 + $0x198] sm:$0xff]   ;;  %v13077_v58 = vld [vmem:[%s13588_s29 + $0x1a0] sm:$0xff]   ;;  %v5644_v63 = vld [vmem:[#allocation2 + $0x8] sm:$0xff] }
  0x2d   : > { %v5643_v62 = vld [vmem:[#allocation2] sm:$0xff]  ;;  %v5645_v0 = vld [vmem:[#allocation2 + $0x10] sm:$0xff]  ;;  %v13078_v1 = vld [vmem:[%s13588_s29 + $0x1a8] sm:$0xff]   ;;  %v5808_v3 = vrot.slane %v5644_v63, 1 }
  0x2e   : > { %v5790_v2 = vrot.slane %v5643_v62, 1  ;;  %v5826_v4 = vrot.slane %v5645_v0, 1  ;;  %v13079_v5 = vld [vmem:[%s13588_s29 + $0x1b0] sm:$0xff]   ;;  %v13752_v8 = vld [vmem:[%s18332_s2] ss:$0 sm:$0xff] }
  0x2f   : > { %12312 = vmatmul.mubr.msk.bf16.gmra.mrb[8].mxu0 %vm801_vm2, %v13030_v11  ;;  %v13080_v11 = vld [vmem:[%s13588_s29 + $0x1b8] sm:$0xff]   ;;  %v13085_v60 = vld [vmem:[%s13588_s29 + $0x1e0] sm:$0xff]  }
  0x30   : > { %12315 = vmatprep.mubr.msk.bf16.mxu0 %vm801_vm2, %v13031_v12  ;;  %v5845_v6 = vsel %vm5844_vm4, %v5808_v3, %v5826_v4  ;;  %v5863_v7 = vsel %vm5844_vm4, %v5790_v2, %v5808_v3  ;;  %v12533_v12 = vpack.i.bf16 %v5644_v63, %v5643_v62 }
  0x31   : > { %v12538_v9 = vpack.i.bf16 %v5845_v6, %v5863_v7 }
  0x32   : > { %12534 = vrot.lane.b32.xlu0 %v12533_v12, %s13474_s21 }
  0x33   : > { %12539 = vrot.lane.b32.xlu1 %v12538_v9, %s13473_s17 }
  0x37   : > { %12316 = vmatmul.mubr.msk.bf16.gmra.mrb[12].mxu0 %vm801_vm2, %v13032_v13 }
  0x38   : > { %12319 = vmatprep.mubr.msk.bf16.mxu0 %vm801_vm2, %v13033_v14 }
  0x3f   : > { %12320 = vmatmul.mubr.msk.bf16.gmra.mrb[16].mxu0 %vm801_vm2, %v13034_v15 }
  0x40   : > { %12323 = vmatprep.mubr.msk.bf16.mxu0 %vm801_vm2, %v13035_v16 }
  0x47   : > { %12324 = vmatmul.mubr.msk.bf16.gmra.mrb[20].mxu0 %vm801_vm2, %v13036_v17  ;;  %v13081_v17 = vld [vmem:[%s13588_s29 + $0x1c0] sm:$0xff]  }
  0x48   : > { %12327 = vmatprep.mubr.msk.bf16.mxu0 %vm801_vm2, %v13037_v18 }
  0x4f   : > { %12328 = vmatmul.mubr.msk.bf16.gmra.mrb[24].mxu0 %vm801_vm2, %v13038_v19 }
  0x50   : > { %12331 = vmatprep.mubr.msk.bf16.mxu0 %vm801_vm2, %v13039_v20 }
  0x57   : > { %12332 = vmatmul.mubr.msk.bf16.gmra.mrb[28].mxu0 %vm801_vm2, %v13040_v21 }
  0x58   : > { %12335 = vmatprep.mubr.msk.bf16.mxu0 %vm801_vm2, %v13041_v22  ;;  %v13475_v22 = vmov 1983009808  }
  0x5f   : > { %12336 = vmatmul.mubr.msk.bf16.gmra.mrb[32].mxu0 %vm801_vm2, %v13042_v23  ;;  %v1933_v23 = vunpack.c.l.s4 %v13475_v22 }
  0x60   : > { %12339 = vmatprep.mubr.msk.bf16.mxu0 %vm801_vm2, %v13043_v24 }
  0x67   : > { %12340 = vmatmul.mubr.msk.bf16.gmra.mrb[36].mxu0 %vm801_vm2, %v13044_v25 }
  0x68   : > { %12343 = vmatprep.mubr.msk.bf16.mxu0 %vm801_vm2, %v13045_v26  ;;  %v13082_v26 = vld [vmem:[%s13588_s29 + $0x1c8] sm:$0xff]  }
  0x6f   : > { %12344 = vmatmul.mubr.msk.bf16.gmra.mrb[40].mxu0 %vm801_vm2, %v13046_v27 }
  0x70   : > { %12347 = vmatprep.mubr.msk.bf16.mxu0 %vm801_vm2, %v13047_v28 }
  0x77   : > { %12348 = vmatmul.mubr.msk.bf16.gmra.mrb[44].mxu0 %vm801_vm2, %v13048_v29 }
  0x78   : > { %12351 = vmatprep.mubr.msk.bf16.mxu0 %vm801_vm2, %v13049_v30  ;;  %v1934_v30 = vunpack.c.0.s8 %v1933_v23 }
  0x7f   : > { %12352 = vmatmul.mubr.msk.bf16.gmra.mrb[48].mxu0 %vm801_vm2, %v13050_v31  ;;  %v13083_v31 = vld [vmem:[%s13588_s29 + $0x1d0] sm:$0xff]  }
  0x80   : > { %12355 = vmatprep.mubr.msk.bf16.mxu0 %vm801_vm2, %v13051_v32 }
  0x87   : > { %12356 = vmatmul.mubr.msk.bf16.gmra.mrb[52].mxu0 %vm801_vm2, %v13052_v33 }
  0x88   : > { %12359 = vmatprep.mubr.msk.bf16.mxu0 %vm801_vm2, %v13053_v34 }
  0x8f   : > { %12360 = vmatmul.mubr.msk.bf16.gmra.mrb[56].mxu0 %vm801_vm2, %v13054_v35 }
  0x90   : > { %12363 = vmatprep.mubr.msk.bf16.mxu0 %vm801_vm2, %v13055_v36 }
  0x97   : > { %12364 = vmatmul.mubr.msk.bf16.gmra.mrb[60].mxu0 %vm801_vm2, %v13056_v37 }
  0x98   : > { %12367 = vmatprep.mubr.msk.bf16.mxu0 %vm801_vm2, %v13057_v38 }
  0x9f   : > { %12368 = vmatmul.mubr.msk.bf16.gmra.mrb[64].mxu0 %vm801_vm2, %v13058_v39 }
  0xa0   : > { %12371 = vmatprep.mubr.msk.bf16.mxu0 %vm801_vm2, %v13059_v40 }
  0xa7   : > { %12372 = vmatmul.mubr.msk.bf16.gmra.mrb[68].mxu0 %vm801_vm2, %v13060_v41  ;;  %v13775_v41 = vsub.s32 %v1934_v30, %v13740_v61 }
  0xa8   : > { %12375 = vmatprep.mubr.msk.bf16.mxu0 %vm801_vm2, %v13061_v42 }
  0xa9   : > { %18394 = vst [vmem:[#allocation6_spill] sm:$0xff] %v13775_v41 }
  0xaf   : > { %12376 = vmatmul.mubr.msk.bf16.gmra.mrb[72].mxu0 %vm801_vm2, %v13062_v43 }
  0xb0   : > { %12379 = vmatprep.mubr.msk.bf16.mxu0 %vm801_vm2, %v13063_v44  ;;  %v13778_v44 = vld [vmem:[#allocation2 + $0x28] sm:$0xff] }
  0xb1   : > { %v5827_v2 = vrot.slane %v13778_v44, 1 }
  0xb7   : > { %12380 = vmatmul.mubr.msk.bf16.gmra.mrb[76].mxu0 %vm801_vm2, %v13064_v45 }
  0xb8   : > { %12383 = vmatprep.mubr.msk.bf16.mxu0 %vm801_vm2, %v13065_v46 }
  0xbf   : > { %12384 = vmatmul.mubr.msk.bf16.gmra.mrb[80].mxu0 %vm801_vm2, %v13066_v47 }
  0xc0   : > { %12387 = vmatprep.mubr.msk.bf16.mxu0 %vm801_vm2, %v13067_v48 }
  0xc7   : > { %12388 = vmatmul.mubr.msk.bf16.gmra.mrb[84].mxu0 %vm801_vm2, %v13068_v49 }
  0xc8   : > { %12391 = vmatprep.mubr.msk.bf16.mxu0 %vm801_vm2, %v13069_v50 }
  0xcf   : > { %12392 = vmatmul.mubr.msk.bf16.gmra.mrb[88].mxu0 %vm801_vm2, %v13070_v51 }
  0xd0   : > { %12395 = vmatprep.mubr.msk.bf16.mxu0 %vm801_vm2, %v13071_v52 }
  0xd7   : > { %12396 = vmatmul.mubr.msk.bf16.gmra.mrb[92].mxu0 %vm801_vm2, %v13072_v53  ;;  %v13084_v53 = vld [vmem:[%s13588_s29 + $0x1d8] sm:$0xff]  }
  0xd8   : > { %12399 = vmatprep.mubr.msk.bf16.mxu0 %vm801_vm2, %v13073_v54 }
  0xdf   : > { %12400 = vmatmul.mubr.msk.bf16.gmra.mrb[96].mxu0 %vm801_vm2, %v13074_v55 }
  0xe0   : > { %12403 = vmatprep.mubr.msk.bf16.mxu0 %vm801_vm2, %v13075_v56 }
  0xe7   : > { %12404 = vmatmul.mubr.msk.bf16.gmra.mrb[100].mxu0 %vm801_vm2, %v13076_v57 }
  0xe8   : > { %12407 = vmatprep.mubr.msk.bf16.mxu0 %vm801_vm2, %v13077_v58 }
  0xef   : > { %12408 = vmatmul.mubr.msk.bf16.gmra.mrb[104].mxu0 %vm801_vm2, %v13078_v1 }
  0xf0   : > { %12411 = vmatprep.mubr.msk.bf16.mxu0 %vm801_vm2, %v13079_v5 }
  0xf2   : > { %v12305_v10 = vpop.f32.mrb[0].mxu0 }
  0xf3   : > { %v1044_v13 = vadd.f32 %v12305_v10, %v13752_v8  ;;  %v1035_v14 = vpop.f32.mrb[1].mxu0 }
  0xf4   : > { %v1036_v15 = vadd.f32 %v13752_v8, %v1035_v14  ;;  %v12306_v16 = vpop.f32.mrb[2].mxu0 }
  0xf5   : > { %v1047_v18 = vadd.f32 %v12306_v16, %v13752_v8  ;;  %v1038_v19 = vpop.f32.mrb[3].mxu0  ;;  %v1548_v20 = vmax.f32 %v1044_v13, 0.0 }
  0xf6   : > { %v1546_v21 = vmax.f32 %v1036_v15, 0.0  ;;  %v1039_v24 = vadd.f32 %v13752_v8, %v1038_v19 }
  0xf7   : > { %12412 = vmatmul.mubr.msk.bf16.gmra.mrb[108].mxu0 %vm801_vm2, %v13080_v11  ;;  %v1549_v25 = vmax.f32 %v1047_v18, 0.0  ;;  %v1681_v27 = vsel %vm1674_vm3, %v1548_v20, -inf }
  0xf8   : > { %12415 = vmatprep.mubr.msk.bf16.mxu0 %vm801_vm2, %v13081_v17  ;;  %v1675_v28 = vsel %vm1674_vm3, %v1546_v21, -inf  ;;  %v1547_v32 = vmax.f32 %v1039_v24, 0.0 }
  0xf9   : > { %v1684_v35 = vsel %vm1674_vm3, %v1549_v25, -inf }
  0xfa   : > { %v12309_v29 = vpop.f32.mrb[4].mxu0  ;;  %v1678_v50 = vsel %vm1674_vm3, %v1547_v32, -inf }
  0xfb   : > { %v1060_v33 = vadd.f32 %v12309_v29, %v13752_v8  ;;  %v1051_v34 = vpop.f32.mrb[5].mxu0 }
  0xfc   : > { %v1052_v36 = vadd.f32 %v13752_v8, %v1051_v34  ;;  %v12310_v37 = vpop.f32.mrb[6].mxu0 }
  0xfd   : > { %v1552_v38 = vmax.f32 %v1060_v33, 0.0  ;;  %v1063_v39 = vadd.f32 %v12310_v37, %v13752_v8  ;;  %v1054_v40 = vpop.f32.mrb[7].mxu0 }
  0xfe   : > { %v1550_v42 = vmax.f32 %v1052_v36, 0.0  ;;  %v1055_v43 = vadd.f32 %v13752_v8, %v1054_v40 }
  0xff   : > { %v1682_v45 = vsel %vm1674_vm3, %v1552_v38, -inf  ;;  %v1553_v46 = vmax.f32 %v1063_v39, 0.0  ;;  %12416 = vmatmul.mubr.msk.bf16.gmra.mrb[112].mxu0 %vm801_vm2, %v13082_v26 }
 0x100   : > { %v1683_v47 = vmax.f32 %v1681_v27, %v1682_v45  ;;  %v1676_v48 = vsel %vm1674_vm3, %v1550_v42, -inf  ;;  %v1551_v49 = vmax.f32 %v1055_v43, 0.0  ;;  %12419 = vmatprep.mubr.msk.bf16.mxu0 %vm801_vm2, %v13083_v31  ;;  %v13087_v42 = vld [vmem:[%s13588_s29 + $0x1f0] sm:$0xff]  }
 0x101   : > { %v1677_v51 = vmax.f32 %v1675_v28, %v1676_v48  ;;  %v1685_v52 = vsel %vm1674_vm3, %v1553_v46, -inf }
 0x102   : > { %v1965_v54 = vcombine.high %v1683_v47, %v1683_v47  ;;  %v1972_v55 = vrot.slane %v1683_v47, %v13775_v41  ;;  %v13788_v56 = vmax.f32 %v1684_v35, %v1685_v52  ;;  %v1679_v57 = vsel %vm1674_vm3, %v1551_v49, -inf  ;;  %v13791_v58 = vpop.f32.mrb[8].mxu0  ;;  %v13086_v35 = vld [vmem:[%s13588_s29 + $0x1e8] sm:$0xff]  }
 0x103   : > { %v1931_v62 = vcombine.high %v1677_v51, %v1677_v51  ;;  %v1938_v63 = vrot.slane %v1677_v51, %v13775_v41  ;;  %v13795_v0 = vmax.f32 %v1678_v50, %v1679_v57  ;;  %v13797_v1 = vpop.f32.mrb[9].mxu0 }
 0x104   : > { %v1979_v3 = vrot.slane %v1965_v54, %v13775_v41  ;;  %v1980_v4 = vcombine.high %v1972_v55, %v1972_v55  ;;  %v3332_v5 = vsel %vm3275_vm5, %v1972_v55, -inf  ;;  %v1982_v6 = vcombine.high %v13788_v56, %v13788_v56  ;;  %v13804_v7 = vpop.f32.mrb[10].mxu0 }
 0x105   : > { %v3333_v9 = vrot.slane %v3332_v5, 4  ;;  %v1945_v10 = vrot.slane %v1931_v62, %v13775_v41  ;;  %v1946_v11 = vcombine.high %v1938_v63, %v1938_v63  ;;  %v3276_v12 = vsel %vm3275_vm5, %v1938_v63, -inf  ;;  %v13808_v13 = vpop.f32.mrb[11].mxu0 }
 0x106   : > { %v1981_v14 = vcombine.high %v1979_v3, %v1979_v3  ;;  %v3339_v15 = vsel %vm3275_vm5, %v1980_v4, -inf  ;;  %v3346_v16 = vsel %vm3275_vm5, %v1979_v3, -inf  ;;  %v3277_v17 = vrot.slane %v3276_v12, 4 }
 0x107   : > { %v3334_v18 = vmax.f32 %v3332_v5, %v3333_v9  ;;  %v3340_v19 = vrot.slane %v3339_v15, 4  ;;  %v3347_v20 = vrot.slane %v3346_v16, 4  ;;  %v1947_v21 = vcombine.high %v1945_v10, %v1945_v10  ;;  %12420 = vmatmul.mubr.msk.bf16.gmra.mrb[116].mxu0 %vm801_vm2, %v13084_v53 }
 0x108   : > { %v3353_v22 = vsel %vm3275_vm5, %v1981_v14, -inf  ;;  %v3278_v23 = vmax.f32 %v3276_v12, %v3277_v17  ;;  %v3283_v24 = vsel %vm3275_vm5, %v1946_v11, -inf  ;;  %v3290_v25 = vsel %vm3275_vm5, %v1945_v10, -inf  ;;  %12423 = vmatprep.mubr.msk.bf16.mxu0 %vm801_vm2, %v13085_v60 }
 0x109   : > { %v3335_v26 = vrot.slane %v3334_v18, 2  ;;  %v3341_v27 = vmax.f32 %v3339_v15, %v3340_v19  ;;  %v3348_v28 = vmax.f32 %v3346_v16, %v3347_v20  ;;  %v3354_v29 = vrot.slane %v3353_v22, 4 }
 0x10a   : > { %v3279_v30 = vrot.slane %v3278_v23, 2  ;;  %v3284_v31 = vrot.slane %v3283_v24, 4  ;;  %v3291_v32 = vrot.slane %v3290_v25, 4  ;;  %v3297_v33 = vsel %vm3275_vm5, %v1947_v21, -inf  ;;  %v13818_v34 = vpop.f32.mrb[12].mxu0  ;;  %v13088_v21 = vld [vmem:[%s13588_s29 + $0x1f8] sm:$0xff]   ;;  %s18288_s29 = scalar_lea.hbm %s18339_s9, %s11738_s25 }
 0x10b   : > { %v3336_v36 = vmax.f32 %v3334_v18, %v3335_v26  ;;  %v3342_v37 = vrot.slane %v3341_v27, 2  ;;  %v3349_v38 = vrot.slane %v3348_v28, 2  ;;  %v3355_v39 = vmax.f32 %v3353_v22, %v3354_v29  ;;  %v13821_v40 = vpop.f32.mrb[13].mxu0 }
 0x10c   : > { %v3280_v43 = vmax.f32 %v3278_v23, %v3279_v30  ;;  %v3285_v45 = vmax.f32 %v3283_v24, %v3284_v31  ;;  %v3292_v46 = vmax.f32 %v3290_v25, %v3291_v32  ;;  %v3298_v47 = vrot.slane %v3297_v33, 4  ;;  %v13824_v48 = vpop.f32.mrb[14].mxu0 }
 0x10d   : > { %v3337_v49 = vrot.slane %v3336_v36, 1  ;;  %v3343_v50 = vmax.f32 %v3341_v27, %v3342_v37  ;;  %v3350_v51 = vmax.f32 %v3348_v28, %v3349_v38  ;;  %v3356_v52 = vrot.slane %v3355_v39, 2  ;;  %v13826_v53 = vpop.f32.mrb[15].mxu0 }
 0x10e   : > { %v3281_v54 = vrot.slane %v3280_v43, 1  ;;  %v3286_v55 = vrot.slane %v3285_v45, 2  ;;  %v3293_v57 = vrot.slane %v3292_v46, 2  ;;  %v3299_v60 = vmax.f32 %v3297_v33, %v3298_v47 }
 0x10f   : > { %v3344_v62 = vrot.slane %v3343_v50, 1  ;;  %v3351_v63 = vrot.slane %v3350_v51, 1  ;;  %v3357_v3 = vmax.f32 %v3355_v39, %v3356_v52  ;;  %12424 = vmatmul.mubr.msk.bf16.gmra.mrb[120].mxu0 %vm801_vm2, %v13086_v35  ;;  %v3338_v4 = vmax.f32 %v3336_v36, %v3337_v49 }
 0x110   : > { %v3287_v5 = vmax.f32 %v3285_v45, %v3286_v55  ;;  %v3294_v9 = vmax.f32 %v3292_v46, %v3293_v57  ;;  %v3300_v10 = vrot.slane %v3299_v60, 2  ;;  %12427 = vmatprep.mubr.msk.bf16.mxu0 %vm801_vm2, %v13087_v42  ;;  %v1989_v15 = vrot.slane %v13788_v56, %v13775_v41 }
 0x111   : > { %v3345_v11 = vmax.f32 %v3343_v50, %v3344_v62  ;;  %v3352_v12 = vmax.f32 %v3350_v51, %v3351_v63  ;;  %v3358_v14 = vrot.slane %v3357_v3, 1  ;;  %v1996_v19 = vrot.slane %v1982_v6, %v13775_v41 }
 0x112   : > { %v3288_v16 = vrot.slane %v3287_v5, 1  ;;  %v3295_v17 = vrot.slane %v3294_v9, 1  ;;  %v3301_v18 = vmax.f32 %v3299_v60, %v3300_v10  ;;  %v13836_v20 = vpop.f32.mrb[16].mxu0  ;;  %v3282_v23 = vmax.f32 %v3280_v43, %v3281_v54 }
 0x113   : > { %v5362_v22 = vsel %vm5348_vm6, %v3345_v11, %v3338_v4  ;;  %v1997_v24 = vcombine.high %v1989_v15, %v1989_v15  ;;  %v3360_v25 = vsel %vm3275_vm5, %v1989_v15, -inf  ;;  %v13841_v26 = vpop.f32.mrb[17].mxu0  ;;  %v3359_v27 = vmax.f32 %v3357_v3, %v3358_v14 }
 0x114   : > { %v3289_v28 = vmax.f32 %v3287_v5, %v3288_v16  ;;  %v3296_v29 = vmax.f32 %v3294_v9, %v3295_v17  ;;  %v3302_v30 = vrot.slane %v3301_v18, 1  ;;  %v13843_v31 = vpop.f32.mrb[18].mxu0  ;;  %v1998_v32 = vcombine.high %v1996_v19, %v1996_v19 }
 0x115   : > { %v3361_v56 = vrot.slane %v3360_v25, 4  ;;  %v3367_v6 = vsel %vm3275_vm5, %v1997_v24, -inf  ;;  %v3374_v33 = vsel %vm3275_vm5, %v1996_v19, -inf  ;;  %v13847_v35 = vpop.f32.mrb[19].mxu0  ;;  %v5363_v36 = vsel %vm5350_vm7, %v3352_v12, %v5362_v22 }
 0x116   : > { %v5349_v37 = vsel %vm5348_vm6, %v3289_v28, %v3282_v23  ;;  %v3368_v38 = vrot.slane %v3367_v6, 4  ;;  %v3375_v39 = vrot.slane %v3374_v33, 4  ;;  %v13851_v42 = vmax.f32 %v3301_v18, %v3302_v30 }
 0x117   : > { %v3362_v43 = vmax.f32 %v3360_v25, %v3361_v56  ;;  %v3381_v45 = vsel %vm3275_vm5, %v1998_v32, -inf  ;;  %v13856_v46 = vadd.f32 %v13791_v58, %v13752_v8  ;;  %12428 = vmatmul.mubr.msk.bf16.gmra.mrb[124].mxu0 %vm801_vm2, %v13088_v21  ;;  %v1948_v51 = vcombine.high %v13795_v0, %v13795_v0 }
 0x118   : > { %v3369_v47 = vmax.f32 %v3367_v6, %v3368_v38  ;;  %v3376_v49 = vmax.f32 %v3374_v33, %v3375_v39  ;;  %v3382_v50 = vrot.slane %v3381_v45, 4  ;;  %v13862_v52 = vsel %vm5350_vm7, %v3296_v29, %v5349_v37 }
 0x119   : > { %v3363_v54 = vrot.slane %v3362_v43, 2  ;;  %v5364_v55 = vsel %vm5352_vm8, %v3359_v27, %v5363_v36  ;;  %v1955_v58 = vrot.slane %v13795_v0, %v13775_v41  ;;  %v1962_v63 = vrot.slane %v1948_v51, %v13775_v41 }
 0x11a   : > { %v3370_v57 = vrot.slane %v3369_v47, 2  ;;  %v3377_v60 = vrot.slane %v3376_v49, 2  ;;  %v3383_v62 = vmax.f32 %v3381_v45, %v3382_v50  ;;  %v13868_v3 = vpop.f32.mrb[20].mxu0  ;;  %v1556_v10 = vmax.f32 %v13856_v46, 0.0 }
 0x11b   : > { %v3364_v4 = vmax.f32 %v3362_v43, %v3363_v54  ;;  %v1963_v5 = vcombine.high %v1955_v58, %v1955_v58  ;;  %v3304_v9 = vsel %vm3275_vm5, %v1955_v58, -inf  ;;  %v13872_v11 = vpop.f32.mrb[21].mxu0  ;;  %v1964_v16 = vcombine.high %v1962_v63, %v1962_v63 }
 0x11c   : > { %v3371_v12 = vmax.f32 %v3369_v47, %v3370_v57  ;;  %v3378_v14 = vmax.f32 %v3376_v49, %v3377_v60  ;;  %v3384_v15 = vrot.slane %v3383_v62, 2  ;;  %v13874_v0 = vpop.f32.mrb[22].mxu0  ;;  %v3305_v18 = vrot.slane %v3304_v9, 4 }
 0x11d   : > { %v3365_v17 = vrot.slane %v3364_v4, 1  ;;  %v3311_v19 = vsel %vm3275_vm5, %v1963_v5, -inf  ;;  %v3318_v21 = vsel %vm3275_vm5, %v1962_v63, -inf  ;;  %v13878_v22 = vpop.f32.mrb[23].mxu0  ;;  %v3325_v32 = vsel %vm3275_vm5, %v1964_v16, -inf }
 0x11e   : > { %v3372_v23 = vrot.slane %v3371_v12, 1  ;;  %v3379_v24 = vrot.slane %v3378_v14, 1  ;;  %v3385_v25 = vmax.f32 %v3383_v62, %v3384_v15  ;;  %v3312_v27 = vrot.slane %v3311_v19, 4 }
 0x11f   : > { %v3366_v28 = vmax.f32 %v3364_v4, %v3365_v17  ;;  %v3306_v29 = vmax.f32 %v3304_v9, %v3305_v18  ;;  %v3319_v30 = vrot.slane %v3318_v21, 4  ;;  %v3326_v43 = vrot.slane %v3325_v32, 4 }
 0x120   : > { %v3373_v56 = vmax.f32 %v3371_v12, %v3372_v23  ;;  %v3380_v6 = vmax.f32 %v3378_v14, %v3379_v24  ;;  %v3386_v33 = vrot.slane %v3385_v25, 1  ;;  %v3313_v36 = vmax.f32 %v3311_v19, %v3312_v27 }
 0x121   : > { %v5365_v37 = vsel %vm5354_vm9, %v3366_v28, %v5364_v55  ;;  %v3307_v38 = vrot.slane %v3306_v29, 2  ;;  %v3320_v39 = vmax.f32 %v3318_v21, %v3319_v30  ;;  %v1068_v49 = vadd.f32 %v13752_v8, %v13797_v1 }
 0x122   : > { %v3387_v45 = vmax.f32 %v3385_v25, %v3386_v33  ;;  %v5366_v46 = vsel %vm5356_vm10, %v3373_v56, %v5365_v37  ;;  %v3314_v47 = vrot.slane %v3313_v36, 2  ;;  %v13885_v50 = vpop.f32.mrb[24].mxu0  ;;  %v3327_v57 = vmax.f32 %v3325_v32, %v3326_v43 }
 0x123   : > { %v5367_v51 = vsel %vm5358_vm11, %v3380_v6, %v5366_v46  ;;  %v3308_v54 = vmax.f32 %v3306_v29, %v3307_v38  ;;  %v3321_v58 = vrot.slane %v3320_v39, 2  ;;  %v13888_v60 = vpop.f32.mrb[25].mxu0  ;;  %v1554_v63 = vmax.f32 %v1068_v49, 0.0 }
 0x124   : > { %v5368_v55 = vsel %vm5360_vm12, %v3387_v45, %v5367_v51  ;;  %v3315_v62 = vmax.f32 %v3313_v36, %v3314_v47  ;;  %v1079_v4 = vadd.f32 %v13804_v7, %v13752_v8  ;;  %v13893_v5 = vpop.f32.mrb[26].mxu0  ;;  %v3328_v12 = vrot.slane %v3327_v57, 2 }
 0x125   : > { %5612 = vst.msk [vmem:[#allocation2 + $0x20] sm:$0xff] %vm1674_vm3, %v5368_v55  ;;  %v3309_v1 = vrot.slane %v3308_v54, 1  ;;  %v3322_v9 = vmax.f32 %v3320_v39, %v3321_v58  ;;  %v1071_v14 = vadd.f32 %v13752_v8, %v13808_v13  ;;  %v13898_v15 = vpop.f32.mrb[27].mxu0  ;;  %v5353_v17 = vsel %vm5352_vm8, %v13851_v42, %v13862_v52 }
 0x126   : > { %v3316_v16 = vrot.slane %v3315_v62, 1  ;;  %v1693_v18 = vsel %vm1674_vm3, %v1556_v10, -inf  ;;  %v1092_v7 = vadd.f32 %v13818_v34, %v13752_v8  ;;  %v3329_v23 = vmax.f32 %v3327_v57, %v3328_v12 }
 0x127   : > { %v3310_v19 = vmax.f32 %v3308_v54, %v3309_v1  ;;  %v3323_v21 = vrot.slane %v3322_v9, 1  ;;  %v1687_v24 = vsel %vm1674_vm3, %v1554_v63, -inf  ;;  %v1557_v27 = vmax.f32 %v1079_v4, 0.0 }
 0x128   : > { %v3317_v25 = vmax.f32 %v3315_v62, %v3316_v16  ;;  %v1560_v13 = vmax.f32 %v1092_v7, 0.0  ;;  %v1084_v28 = vadd.f32 %v13752_v8, %v13821_v40  ;;  %v3330_v30 = vrot.slane %v3329_v23, 1 }
 0x129   : > { %v3324_v29 = vmax.f32 %v3322_v9, %v3323_v21  ;;  %v5355_v42 = vsel %vm5354_vm9, %v3310_v19, %v5353_v17  ;;  %v1555_v52 = vmax.f32 %v1071_v14, 0.0  ;;  %v1095_v56 = vadd.f32 %v13824_v48, %v13752_v8 }
 0x12a   : > { %v5357_v10 = vsel %vm5356_vm10, %v3317_v25, %v5355_v42  ;;  %v1694_v34 = vsel %vm1674_vm3, %v1560_v13, -inf  ;;  %v1558_v32 = vmax.f32 %v1084_v28, 0.0  ;;  %v13914_v6 = vpop.f32.mrb[28].mxu0  ;;  %v3331_v33 = vmax.f32 %v3329_v23, %v3330_v30 }
 0x12b   : > { %v5359_v36 = vsel %vm5358_vm11, %v3324_v29, %v5357_v10  ;;  %v1695_v37 = vmax.f32 %v1693_v18, %v1694_v34  ;;  %v13919_v40 = vadd.f32 %v13752_v8, %v13826_v53  ;;  %v13921_v38 = vpop.f32.mrb[29].mxu0  ;;  %v1696_v39 = vsel %vm1674_vm3, %v1557_v27, -inf }
 0x12c   : > { %v1688_v43 = vsel %vm1674_vm3, %v1558_v32, -inf  ;;  %v1561_v45 = vmax.f32 %v1095_v56, 0.0  ;;  %v13927_v48 = vadd.f32 %v13836_v20, %v13752_v8  ;;  %v13929_v46 = vpop.f32.mrb[30].mxu0  ;;  %v5361_v47 = vsel %vm5360_vm12, %v3331_v33, %v5359_v36 }
 0x12d   : > { %v2033_v49 = vcombine.high %v1695_v37, %v1695_v37  ;;  %v2040_v51 = vrot.slane %v1695_v37, %v13775_v41  ;;  %v1689_v53 = vmax.f32 %v1687_v24, %v1688_v43  ;;  %v13933_v54 = vpop.f32.mrb[31].mxu0  ;;  %5611 = vst.msk [vmem:[#allocation2 + $0x18] sm:$0xff] %vm1674_vm3, %v5361_v47  ;;  %v13937_v58 = vsel %vm1674_vm3, %v1555_v52, -inf }
 0x12e   : > { %v1697_v57 = vsel %vm1674_vm3, %v1561_v45, -inf  ;;  %v1559_v20 = vmax.f32 %v13919_v40, 0.0  ;;  %v13943_v55 = vadd.f32 %v13752_v8, %v13841_v26  ;;  %v1564_v16 = vmax.f32 %v13927_v48, 0.0 }
 0x12f   : > { %v2047_v62 = vrot.slane %v2033_v49, %v13775_v41  ;;  %v2048_v63 = vcombine.high %v2040_v51, %v2040_v51  ;;  %v3444_v4 = vsel %vm3275_vm5, %v2040_v51, -inf  ;;  %v1999_v1 = vcombine.high %v1689_v53, %v1689_v53 }
 0x130   : > { %v3445_v9 = vrot.slane %v3444_v4, 4  ;;  %v2006_v12 = vrot.slane %v1689_v53, %v13775_v41  ;;  %v13948_v14 = vmax.f32 %v1696_v39, %v1697_v57 }
 0x131   : > { %v2049_v17 = vcombine.high %v2047_v62, %v2047_v62  ;;  %v3451_v18 = vsel %vm3275_vm5, %v2048_v63, -inf  ;;  %v3458_v7 = vsel %vm3275_vm5, %v2047_v62, -inf  ;;  %v2013_v26 = vrot.slane %v1999_v1, %v13775_v41 }
 0x132   : > { %v3446_v19 = vmax.f32 %v3444_v4, %v3445_v9  ;;  %v3452_v21 = vrot.slane %v3451_v18, 4  ;;  %v3459_v23 = vrot.slane %v3458_v7, 4  ;;  %v2014_v24 = vcombine.high %v2006_v12, %v2006_v12  ;;  %v13954_v25 = vpop.f32.mrb[32].mxu0 }
 0x133   : > { %v3465_v27 = vsel %vm3275_vm5, %v2049_v17, -inf  ;;  %v2015_v13 = vcombine.high %v2013_v26, %v2013_v26  ;;  %v3388_v28 = vsel %vm3275_vm5, %v2006_v12, -inf  ;;  %v3402_v29 = vsel %vm3275_vm5, %v2013_v26, -inf  ;;  %v13959_v30 = vpop.f32.mrb[33].mxu0 }
 0x134   : > { %v3447_v42 = vrot.slane %v3446_v19, 2  ;;  %v3453_v52 = vmax.f32 %v3451_v18, %v3452_v21  ;;  %v3460_v10 = vmax.f32 %v3458_v7, %v3459_v23  ;;  %v3466_v34 = vrot.slane %v3465_v27, 4  ;;  %v13961_v32 = vpop.f32.mrb[34].mxu0 }
 0x135   : > { %v3389_v56 = vrot.slane %v3388_v28, 4  ;;  %v3395_v33 = vsel %vm3275_vm5, %v2014_v24, -inf  ;;  %v3403_v36 = vrot.slane %v3402_v29, 4  ;;  %v3409_v37 = vsel %vm3275_vm5, %v2015_v13, -inf  ;;  %v13965_v39 = vpop.f32.mrb[35].mxu0 }
 0x136   : > { %v3448_v43 = vmax.f32 %v3446_v19, %v3447_v42  ;;  %v3454_v45 = vrot.slane %v3453_v52, 2  ;;  %v3461_v47 = vrot.slane %v3460_v10, 2  ;;  %v3467_v49 = vmax.f32 %v3465_v27, %v3466_v34 }
 0x137   : > { %v3390_v51 = vmax.f32 %v3388_v28, %v3389_v56  ;;  %v3396_v53 = vrot.slane %v3395_v33, 4  ;;  %v3404_v57 = vmax.f32 %v3402_v29, %v3403_v36  ;;  %v3410_v62 = vrot.slane %v3409_v37, 4 }
 0x138   : > { %v3449_v63 = vrot.slane %v3448_v43, 1  ;;  %v3455_v4 = vmax.f32 %v3453_v52, %v3454_v45  ;;  %v3462_v1 = vmax.f32 %v3460_v10, %v3461_v47  ;;  %v3468_v9 = vrot.slane %v3467_v49, 2 }
 0x139   : > { %v3391_v12 = vrot.slane %v3390_v51, 2  ;;  %v3397_v17 = vmax.f32 %v3395_v33, %v3396_v53  ;;  %v3405_v18 = vrot.slane %v3404_v57, 2  ;;  %v3411_v7 = vmax.f32 %v3409_v37, %v3410_v62 }
 0x13a   : > { %v3450_v26 = vmax.f32 %v3448_v43, %v3449_v63  ;;  %v3456_v21 = vrot.slane %v3455_v4, 1  ;;  %v3463_v23 = vrot.slane %v3462_v1, 1  ;;  %v3469_v24 = vmax.f32 %v3467_v49, %v3468_v9  ;;  %v13967_v19 = vpop.f32.mrb[36].mxu0 }
 0x13b   : > { %v3392_v13 = vmax.f32 %v3390_v51, %v3391_v12  ;;  %v3398_v27 = vrot.slane %v3397_v17, 2  ;;  %v3406_v28 = vmax.f32 %v3404_v57, %v3405_v18  ;;  %v3412_v42 = vrot.slane %v3411_v7, 2  ;;  %v13969_v29 = vpop.f32.mrb[37].mxu0 }
 0x13c   : > { %v3457_v34 = vmax.f32 %v3455_v4, %v3456_v21  ;;  %v3464_v52 = vmax.f32 %v3462_v1, %v3463_v23  ;;  %v3470_v10 = vrot.slane %v3469_v24, 1  ;;  %v2050_v56 = vcombine.high %v13948_v14, %v13948_v14  ;;  %v13973_v33 = vpop.f32.mrb[38].mxu0 }
 0x13d   : > { %v3393_v36 = vrot.slane %v3392_v13, 1  ;;  %v3399_v37 = vmax.f32 %v3397_v17, %v3398_v27  ;;  %v3407_v43 = vrot.slane %v3406_v28, 1  ;;  %v3413_v45 = vmax.f32 %v3411_v7, %v3412_v42 }
 0x13e   : > { %v5376_v47 = vsel %vm5348_vm6, %v3457_v34, %v3450_v26  ;;  %v2057_v49 = vrot.slane %v13948_v14, %v13775_v41  ;;  %v2064_v51 = vrot.slane %v2050_v56, %v13775_v41  ;;  %v1691_v53 = vsel %vm1674_vm3, %v1559_v20, -inf }
 0x13f   : > { %v3471_v57 = vmax.f32 %v3469_v24, %v3470_v10  ;;  %v5377_v62 = vsel %vm5350_vm7, %v3464_v52, %v5376_v47  ;;  %v3394_v63 = vmax.f32 %v3392_v13, %v3393_v36  ;;  %v3400_v4 = vrot.slane %v3399_v37, 1  ;;  %v13988_v24 = vpop.f32.mrb[39].mxu0 }
 0x140   : > { %v3414_v1 = vrot.slane %v3413_v45, 1  ;;  %v2065_v9 = vcombine.high %v2057_v49, %v2057_v49  ;;  %v2066_v12 = vcombine.high %v2064_v51, %v2064_v51  ;;  %v3472_v17 = vsel %vm3275_vm5, %v2057_v49, -inf }
 0x141   : > { %v3401_v18 = vmax.f32 %v3399_v37, %v3400_v4  ;;  %v3408_v7 = vmax.f32 %v3406_v28, %v3407_v43  ;;  %v3473_v26 = vrot.slane %v3472_v17, 4  ;;  %v3486_v14 = vsel %vm3275_vm5, %v2064_v51, -inf }
 0x142   : > { %v3479_v21 = vsel %vm3275_vm5, %v2065_v9, -inf  ;;  %v3487_v40 = vrot.slane %v3486_v14, 4  ;;  %v3493_v20 = vsel %vm3275_vm5, %v2066_v12, -inf  ;;  %v1562_v23 = vmax.f32 %v13943_v55, 0.0 }
 0x143   : > { %v5369_v13 = vsel %vm5348_vm6, %v3401_v18, %v3394_v63  ;;  %v3474_v27 = vmax.f32 %v3472_v17, %v3473_v26  ;;  %v3480_v42 = vrot.slane %v3479_v21, 4  ;;  %v3494_v34 = vrot.slane %v3493_v20, 4 }
 0x144   : > { %v3415_v52 = vmax.f32 %v3413_v45, %v3414_v1  ;;  %v3488_v10 = vmax.f32 %v3486_v14, %v3487_v40  ;;  %v5378_v28 = vsel %vm5352_vm8, %v3471_v57, %v5377_v62  ;;  %v1692_v56 = vmax.f32 %v13937_v58, %v1691_v53 }
 0x145   : > { %v5370_v36 = vsel %vm5350_vm7, %v3408_v7, %v5369_v13  ;;  %v3475_v37 = vrot.slane %v3474_v27, 2  ;;  %v3481_v43 = vmax.f32 %v3479_v21, %v3480_v42  ;;  %v3495_v47 = vmax.f32 %v3493_v20, %v3494_v34 }
 0x146   : > { %v3489_v49 = vrot.slane %v3488_v10, 2  ;;  %v2016_v51 = vcombine.high %v1692_v56, %v1692_v56  ;;  %v2023_v4 = vrot.slane %v1692_v56, %v13775_v41  ;;  %v13998_v63 = vsel %vm1674_vm3, %v1564_v16, -inf }
 0x147   : > { %v3476_v45 = vmax.f32 %v3474_v27, %v3475_v37  ;;  %v3482_v1 = vrot.slane %v3481_v43, 2  ;;  %v3496_v9 = vrot.slane %v3495_v47, 2  ;;  %v1111_v58 = vadd.f32 %v13843_v31, %v13752_v8 }
 0x148   : > { %v3490_v53 = vmax.f32 %v3488_v10, %v3489_v49  ;;  %v2030_v57 = vrot.slane %v2016_v51, %v13775_v41  ;;  %v2031_v62 = vcombine.high %v2023_v4, %v2023_v4  ;;  %v3416_v12 = vsel %vm3275_vm5, %v2023_v4, -inf }
 0x149   : > { %v3477_v17 = vrot.slane %v3476_v45, 1  ;;  %v3483_v18 = vmax.f32 %v3481_v43, %v3482_v1  ;;  %v3497_v7 = vmax.f32 %v3495_v47, %v3496_v9  ;;  %v3417_v26 = vrot.slane %v3416_v12, 4  ;;  %v14009_v1 = vpop.f32.mrb[40].mxu0 }
 0x14a   : > { %v3491_v48 = vrot.slane %v3490_v53, 1  ;;  %v2032_v14 = vcombine.high %v2030_v57, %v2030_v57  ;;  %v3423_v16 = vsel %vm3275_vm5, %v2031_v62, -inf  ;;  %v3430_v21 = vsel %vm3275_vm5, %v2030_v57, -inf  ;;  %v14015_v62 = vld [vmem:[%s18332_s2] ss:$0 sm:$0xff] }
 0x14b   : > { %v3478_v40 = vmax.f32 %v3476_v45, %v3477_v17  ;;  %v3484_v20 = vrot.slane %v3483_v18, 1  ;;  %v3498_v13 = vrot.slane %v3497_v7, 1  ;;  %v3418_v8 = vmax.f32 %v3416_v12, %v3417_v26 }
 0x14c   : > { %v3424_v31 = vrot.slane %v3423_v16, 4  ;;  %v3431_v27 = vrot.slane %v3430_v21, 4  ;;  %v3437_v42 = vsel %vm3275_vm5, %v2032_v14, -inf  ;;  %v5371_v34 = vsel %vm5352_vm8, %v3415_v52, %v5370_v36 }
 0x14d   : > { %v3485_v10 = vmax.f32 %v3483_v18, %v3484_v20  ;;  %v3492_v56 = vmax.f32 %v3490_v53, %v3491_v48  ;;  %v5379_v37 = vsel %vm5354_vm9, %v3478_v40, %v5378_v28  ;;  %v3419_v43 = vrot.slane %v3418_v8, 2  ;;  %v14019_v28 = vpop.f32.mrb[41].mxu0 }
 0x14e   : > { %v3499_v47 = vmax.f32 %v3497_v7, %v3498_v13  ;;  %v3425_v49 = vmax.f32 %v3423_v16, %v3424_v31  ;;  %v3432_v51 = vmax.f32 %v3430_v21, %v3431_v27  ;;  %v3438_v4 = vrot.slane %v3437_v42, 4  ;;  %v14022_v18 = vpop.f32.mrb[42].mxu0 }
 0x14f   : > { %v5380_v45 = vsel %vm5356_vm10, %v3485_v10, %v5379_v37  ;;  %v3420_v9 = vmax.f32 %v3418_v8, %v3419_v43  ;;  %v1565_v57 = vmax.f32 %v1111_v58, 0.0  ;;  %v1124_v52 = vadd.f32 %v14015_v62, %v13868_v3 }
 0x150   : > { %v5381_v36 = vsel %vm5358_vm11, %v3492_v56, %v5380_v45  ;;  %v3426_v53 = vrot.slane %v3425_v49, 2  ;;  %v3433_v12 = vrot.slane %v3432_v51, 2  ;;  %v3439_v17 = vmax.f32 %v3437_v42, %v3438_v4  ;;  %v14045_v45 = vpop.f32.mrb[43].mxu0 }
 0x151   : > { %v5382_v7 = vsel %vm5360_vm12, %v3499_v47, %v5381_v36  ;;  %v3421_v58 = vrot.slane %v3420_v9, 1  ;;  %v1699_v26 = vsel %vm1674_vm3, %v1562_v23, -inf  ;;  %v14030_v48 = vadd.f32 %v14015_v62, %v13847_v35 }
 0x152   : > { %5614 = vst.msk [vmem:[#allocation2 + $0x38] sm:$0xff] %vm1674_vm3, %v5382_v7  ;;  %v3427_v3 = vmax.f32 %v3425_v49, %v3426_v53  ;;  %v3434_v14 = vmax.f32 %v3432_v51, %v3433_v12  ;;  %v3440_v16 = vrot.slane %v3439_v17, 2  ;;  %v1568_v21 = vmax.f32 %v1124_v52, 0.0 }
 0x153   : > { %v3422_v40 = vmax.f32 %v3420_v9, %v3421_v58  ;;  %v1708_v20 = vsel %vm1674_vm3, %v1565_v57, -inf  ;;  %v1116_v13 = vadd.f32 %v14015_v62, %v13872_v11  ;;  %v1127_v55 = vadd.f32 %v14015_v62, %v13874_v0 }
 0x154   : > { %v3428_v23 = vrot.slane %v3427_v3, 1  ;;  %v3435_v8 = vrot.slane %v3434_v14, 1  ;;  %v3441_v31 = vmax.f32 %v3439_v17, %v3440_v16  ;;  %v1706_v35 = vsel %vm1674_vm3, %v1568_v21, -inf }
 0x155   : > { %v5372_v27 = vsel %vm5354_vm9, %v3422_v40, %v5371_v34  ;;  %v1707_v42 = vmax.f32 %v13998_v63, %v1706_v35  ;;  %v1566_v10 = vmax.f32 %v1116_v13, 0.0  ;;  %v1569_v56 = vmax.f32 %v1127_v55, 0.0 }
 0x156   : > { %v3429_v37 = vmax.f32 %v3427_v3, %v3428_v23  ;;  %v3436_v43 = vmax.f32 %v3434_v14, %v3435_v8  ;;  %v3442_v47 = vrot.slane %v3441_v31, 1  ;;  %v1563_v49 = vmax.f32 %v14030_v48, 0.0 }
 0x157   : > { %v2101_v11 = vcombine.high %v1707_v42, %v1707_v42  ;;  %v2108_v51 = vrot.slane %v1707_v42, %v13775_v41  ;;  %v1700_v0 = vsel %vm1674_vm3, %v1566_v10, -inf  ;;  %v1709_v4 = vsel %vm1674_vm3, %v1569_v56, -inf }
 0x158   : > { %v3443_v9 = vmax.f32 %v3441_v31, %v3442_v47  ;;  %v5373_v34 = vsel %vm5356_vm10, %v3429_v37, %v5372_v27  ;;  %v1701_v63 = vmax.f32 %v1699_v26, %v1700_v0  ;;  %v1710_v57 = vmax.f32 %v1708_v20, %v1709_v4 }
 0x159   : > { %v5374_v52 = vsel %vm5358_vm11, %v3436_v43, %v5373_v34  ;;  %v2115_v36 = vrot.slane %v2101_v11, %v13775_v41  ;;  %v2116_v53 = vcombine.high %v2108_v51, %v2108_v51  ;;  %v3556_v12 = vsel %vm3275_vm5, %v2108_v51, -inf }
 0x15a   : > { %v5375_v17 = vsel %vm5360_vm12, %v3443_v9, %v5374_v52  ;;  %v3557_v7 = vrot.slane %v3556_v12, 4  ;;  %v2067_v58 = vcombine.high %v1701_v63, %v1701_v63  ;;  %v2074_v3 = vrot.slane %v1701_v63, %v13775_v41 }
 0x15b   : > { %5613 = vst.msk [vmem:[#allocation2 + $0x30] sm:$0xff] %vm1674_vm3, %v5375_v17  ;;  %v2117_v14 = vcombine.high %v2115_v36, %v2115_v36  ;;  %v3563_v16 = vsel %vm3275_vm5, %v2116_v53, -inf  ;;  %v3570_v26 = vsel %vm3275_vm5, %v2115_v36, -inf  ;;  %v14058_v21 = vadd.f32 %v14015_v62, %v13878_v22 }
 0x15c   : > { %v3558_v40 = vmax.f32 %v3556_v12, %v3557_v7  ;;  %v3564_v20 = vrot.slane %v3563_v16, 4  ;;  %v3571_v13 = vrot.slane %v3570_v26, 4  ;;  %v2081_v55 = vrot.slane %v2067_v58, %v13775_v41 }
 0x15d   : > { %v3577_v23 = vsel %vm3275_vm5, %v2117_v14, -inf  ;;  %v2082_v8 = vcombine.high %v2074_v3, %v2074_v3  ;;  %v3500_v31 = vsel %vm3275_vm5, %v2074_v3, -inf  ;;  %v2118_v35 = vcombine.high %v1710_v57, %v1710_v57 }
 0x15e   : > { %v3559_v27 = vrot.slane %v3558_v40, 2  ;;  %v3565_v42 = vmax.f32 %v3563_v16, %v3564_v20  ;;  %v3572_v10 = vmax.f32 %v3570_v26, %v3571_v13  ;;  %v3578_v56 = vrot.slane %v3577_v23, 4 }
 0x15f   : > { %v2083_v37 = vcombine.high %v2081_v55, %v2081_v55  ;;  %v3501_v43 = vrot.slane %v3500_v31, 4  ;;  %v3507_v22 = vsel %vm3275_vm5, %v2082_v8, -inf  ;;  %v3514_v47 = vsel %vm3275_vm5, %v2081_v55, -inf }
 0x160   : > { %v3560_v11 = vmax.f32 %v3558_v40, %v3559_v27  ;;  %v3566_v51 = vrot.slane %v3565_v42, 2  ;;  %v3573_v0 = vrot.slane %v3572_v10, 2  ;;  %v3579_v4 = vmax.f32 %v3577_v23, %v3578_v56 }
 0x161   : > { %v3502_v9 = vmax.f32 %v3500_v31, %v3501_v43  ;;  %v3508_v34 = vrot.slane %v3507_v22, 4  ;;  %v3515_v63 = vrot.slane %v3514_v47, 4  ;;  %v3521_v52 = vsel %vm3275_vm5, %v2083_v37, -inf  ;;  %v14067_v31 = vpop.f32.mrb[44].mxu0 }
 0x162   : > { %v3561_v36 = vrot.slane %v3560_v11, 1  ;;  %v3567_v53 = vmax.f32 %v3565_v42, %v3566_v51  ;;  %v3574_v12 = vmax.f32 %v3572_v10, %v3573_v0  ;;  %v3580_v17 = vrot.slane %v3579_v4, 2  ;;  %v14070_v51 = vpop.f32.mrb[45].mxu0 }
 0x163   : > { %v3503_v7 = vrot.slane %v3502_v9, 2  ;;  %v3509_v58 = vmax.f32 %v3507_v22, %v3508_v34  ;;  %v3516_v3 = vmax.f32 %v3514_v47, %v3515_v63  ;;  %v3522_v14 = vrot.slane %v3521_v52, 4  ;;  %v14072_v34 = vpop.f32.mrb[46].mxu0 }
 0x164   : > { %v3568_v16 = vrot.slane %v3567_v53, 1  ;;  %v3575_v26 = vrot.slane %v3574_v12, 1  ;;  %v3581_v20 = vmax.f32 %v3579_v4, %v3580_v17  ;;  %v2125_v40 = vrot.slane %v1710_v57, %v13775_v41 }
 0x165   : > { %v3504_v13 = vmax.f32 %v3502_v9, %v3503_v7  ;;  %v3510_v55 = vrot.slane %v3509_v58, 2  ;;  %v3517_v23 = vrot.slane %v3516_v3, 2  ;;  %v3523_v8 = vmax.f32 %v3521_v52, %v3522_v14 }
 0x166   : > { %v3562_v27 = vmax.f32 %v3560_v11, %v3561_v36  ;;  %v3569_v56 = vmax.f32 %v3567_v53, %v3568_v16  ;;  %v3582_v42 = vrot.slane %v3581_v20, 1  ;;  %v2132_v10 = vrot.slane %v2118_v35, %v13775_v41 }
 0x167   : > { %v3505_v37 = vrot.slane %v3504_v13, 1  ;;  %v3511_v43 = vmax.f32 %v3509_v58, %v3510_v55  ;;  %v3518_v22 = vmax.f32 %v3516_v3, %v3517_v23  ;;  %v3524_v47 = vrot.slane %v3523_v8, 2 }
 0x168   : > { %v3576_v0 = vmax.f32 %v3574_v12, %v3575_v26  ;;  %v3583_v4 = vmax.f32 %v3581_v20, %v3582_v42  ;;  %v2133_v57 = vcombine.high %v2125_v40, %v2125_v40  ;;  %v2134_v9 = vcombine.high %v2132_v10, %v2132_v10 }
 0x169   : > { %v5390_v63 = vsel %vm5348_vm6, %v3569_v56, %v3562_v27  ;;  %v3506_v52 = vmax.f32 %v3504_v13, %v3505_v37  ;;  %v3512_v11 = vrot.slane %v3511_v43, 1  ;;  %v3519_v36 = vrot.slane %v3518_v22, 1 }
 0x16a   : > { %v3525_v53 = vmax.f32 %v3523_v8, %v3524_v47  ;;  %v3584_v35 = vsel %vm3275_vm5, %v2125_v40, -inf  ;;  %v3591_v17 = vsel %vm3275_vm5, %v2133_v57, -inf  ;;  %v3598_v7 = vsel %vm3275_vm5, %v2132_v10, -inf  ;;  %v14082_v10 = vld [vmem:[#allocation2 + $0x28] sm:$0xff] }
 0x16b   : > { %v3513_v58 = vmax.f32 %v3511_v43, %v3512_v11  ;;  %v3520_v3 = vmax.f32 %v3518_v22, %v3519_v36  ;;  %v3585_v12 = vrot.slane %v3584_v35, 4  ;;  %v3592_v14 = vrot.slane %v3591_v17, 4  ;;  %v14091_v11 = vpop.f32.mrb[47].mxu0 }
 0x16c   : > { %v5391_v16 = vsel %vm5350_vm7, %v3576_v0, %v5390_v63  ;;  %v3526_v26 = vrot.slane %v3525_v53, 1  ;;  %v3599_v20 = vrot.slane %v3598_v7, 4  ;;  %v3605_v55 = vsel %vm3275_vm5, %v2134_v9, -inf }
 0x16d   : > { %v5383_v13 = vsel %vm5348_vm6, %v3513_v58, %v3506_v52  ;;  %v3586_v23 = vmax.f32 %v3584_v35, %v3585_v12  ;;  %v3593_v8 = vmax.f32 %v3591_v17, %v3592_v14  ;;  %v3606_v27 = vrot.slane %v3605_v55, 4 }
 0x16e   : > { %v3527_v40 = vmax.f32 %v3525_v53, %v3526_v26  ;;  %v3600_v56 = vmax.f32 %v3598_v7, %v3599_v20  ;;  %v1567_v42 = vmax.f32 %v14058_v21, 0.0  ;;  %v5734_v37 = vrot.slane %v14082_v10, 7 }
 0x16f   : > { %v5384_v43 = vsel %vm5350_vm7, %v3520_v3, %v5383_v13  ;;  %v3587_v22 = vrot.slane %v3586_v23, 2  ;;  %v3594_v47 = vrot.slane %v3593_v8, 2  ;;  %v3607_v0 = vmax.f32 %v3605_v55, %v3606_v27 }
 0x170   : > { %v1702_v57 = vsel %vm1674_vm3, %v1563_v49, -inf  ;;  %v3601_v9 = vrot.slane %v3600_v56, 2  ;;  %v5392_v63 = vsel %vm5352_vm8, %v3583_v4, %v5391_v16  ;;  %v1703_v52 = vsel %vm1674_vm3, %v1567_v42, -inf }
 0x171   : > { %v3588_v21 = vmax.f32 %v3586_v23, %v3587_v22  ;;  %v3595_v36 = vmax.f32 %v3593_v8, %v3594_v47  ;;  %v3608_v53 = vrot.slane %v3607_v0, 2  ;;  %v1704_v35 = vmax.f32 %v1702_v57, %v1703_v52 }
 0x172   : > { %v3602_v17 = vmax.f32 %v3600_v56, %v3601_v9  ;;  %v14094_v7 = vsel %vm5352_vm8, %v3527_v40, %v5384_v43  ;;  %v1140_v48 = vadd.f32 %v14015_v62, %v13885_v50  ;;  %v1132_v49 = vadd.f32 %v14015_v62, %v13888_v60 }
 0x173   : > { %v3589_v58 = vrot.slane %v3588_v21, 1  ;;  %v3596_v4 = vrot.slane %v3595_v36, 1  ;;  %v3609_v3 = vmax.f32 %v3607_v0, %v3608_v53  ;;  %v2084_v12 = vcombine.high %v1704_v35, %v1704_v35 }
 0x174   : > { %v3603_v14 = vrot.slane %v3602_v17, 1  ;;  %v2091_v16 = vrot.slane %v1704_v35, %v13775_v41  ;;  %v1572_v26 = vmax.f32 %v1140_v48, 0.0  ;;  %v1570_v20 = vmax.f32 %v1132_v49, 0.0  ;;  %v5646_v35 = vld [vmem:[#allocation2 + $0x18] sm:$0xff] }
 0x175   : > { %v3590_v55 = vmax.f32 %v3588_v21, %v3589_v58  ;;  %v3597_v13 = vmax.f32 %v3595_v36, %v3596_v4  ;;  %v3610_v23 = vrot.slane %v3609_v3, 1  ;;  %v2098_v8 = vrot.slane %v2084_v12, %v13775_v41 }
 0x176   : > { %v3604_v27 = vmax.f32 %v3602_v17, %v3603_v14  ;;  %v2099_v40 = vcombine.high %v2091_v16, %v2091_v16  ;;  %v3528_v50 = vsel %vm3275_vm5, %v2091_v16, -inf  ;;  %v14104_v60 = vsel %vm1674_vm3, %v1572_v26, -inf  ;;  %v5647_v17 = vld [vmem:[#allocation2 + $0x20] sm:$0xff] }
 0x177   : > { %v3611_v56 = vmax.f32 %v3609_v3, %v3610_v23  ;;  %v5393_v42 = vsel %vm5354_vm9, %v3590_v55, %v5392_v63  ;;  %v2100_v43 = vcombine.high %v2098_v8, %v2098_v8  ;;  %v3529_v22 = vrot.slane %v3528_v50, 4 }
 0x178   : > { %v5394_v47 = vsel %vm5356_vm10, %v3597_v13, %v5393_v42  ;;  %v3535_v0 = vsel %vm3275_vm5, %v2099_v40, -inf  ;;  %v3542_v57 = vsel %vm3275_vm5, %v2098_v8, -inf  ;;  %v14111_v9 = vsel %vm1674_vm3, %v1570_v20, -inf }
 0x179   : > { %v5395_v52 = vsel %vm5358_vm11, %v3604_v27, %v5394_v47  ;;  %v3530_v21 = vmax.f32 %v3528_v50, %v3529_v22  ;;  %v3536_v36 = vrot.slane %v3535_v0, 4  ;;  %v3543_v53 = vrot.slane %v3542_v57, 4 }
 0x17a   : > { %v5396_v63 = vsel %vm5360_vm12, %v3611_v56, %v5395_v52  ;;  %v3549_v48 = vsel %vm3275_vm5, %v2100_v43, -inf  ;;  %v1143_v49 = vadd.f32 %v14015_v62, %v13893_v5  ;;  %v1135_v58 = vadd.f32 %v14015_v62, %v13898_v15 }
 0x17b   : > { %5616 = vst.msk [vmem:[#allocation2 + $0x50] sm:$0xff] %vm1674_vm3, %v5396_v63  ;;  %v3531_v4 = vrot.slane %v3530_v21, 2  ;;  %v3537_v3 = vmax.f32 %v3535_v0, %v3536_v36  ;;  %v3544_v12 = vmax.f32 %v3542_v57, %v3543_v53  ;;  %v3550_v14 = vrot.slane %v3549_v48, 4 }
 0x17c   : > { %v1573_v16 = vmax.f32 %v1143_v49, 0.0  ;;  %v1571_v26 = vmax.f32 %v1135_v58, 0.0  ;;  %v12543_v20 = vpack.i.bf16 %v5647_v17, %v5646_v35  ;;  %v5791_v55 = vrot.slane %v5646_v35, 1 }
 0x17d   : > { %v3532_v13 = vmax.f32 %v3530_v21, %v3531_v4  ;;  %v3538_v23 = vrot.slane %v3537_v3, 2  ;;  %v3545_v8 = vrot.slane %v3544_v12, 2  ;;  %v3551_v27 = vmax.f32 %v3549_v48, %v3550_v14 }
 0x17e   : > { %v1720_v40 = vsel %vm1674_vm3, %v1573_v16, -inf  ;;  %v14123_v5 = vsel %vm1674_vm3, %v1571_v26, -inf  ;;  %12544 = vrot.lane.b32.xlu1 %v12543_v20, %s13474_s21  ;;  %v5809_v15 = vrot.slane %v5647_v17, 1  ;;  %v5698_v50 = vrot.slane %v5646_v35, 7 }
 0x17f   : > { %v3533_v56 = vrot.slane %v3532_v13, 1  ;;  %v3539_v42 = vmax.f32 %v3537_v3, %v3538_v23  ;;  %v3546_v43 = vmax.f32 %v3544_v12, %v3545_v8  ;;  %v3552_v22 = vrot.slane %v3551_v27, 2 }
 0x180   : > { %v5846_v47 = vsel %vm5844_vm4, %v5809_v15, %v5827_v2  ;;  %v5864_v0 = vsel %vm5844_vm4, %v5791_v55, %v5809_v15  ;;  %v5716_v57 = vrot.slane %v5647_v17, 7  ;;  %v14141_v44 = vsel %vm5753_vm13, %v5734_v37, %v5698_v50 }
 0x181   : > { %v3534_v52 = vmax.f32 %v3532_v13, %v3533_v56  ;;  %v3540_v21 = vrot.slane %v3539_v42, 1  ;;  %v3547_v36 = vrot.slane %v3546_v43, 1  ;;  %v3553_v53 = vmax.f32 %v3551_v27, %v3552_v22  ;;  %18396 = vst [vmem:[#allocation8_spill] sm:$0xff] %v14141_v44 }
 0x182   : > { %v12548_v35 = vpack.i.bf16 %v5846_v47, %v5864_v0  ;;  %v14135_v63 = vsel %vm5753_vm13, %v5698_v50, %v5716_v57  ;;  %v1156_v2 = vadd.f32 %v14015_v62, %v13914_v6  ;;  %v1148_v10 = vadd.f32 %v14015_v62, %v13921_v38 }
 0x183   : > { %18395 = vst [vmem:[#allocation7_spill] sm:$0xff] %v14135_v63  ;;  %v3541_v17 = vmax.f32 %v3539_v42, %v3540_v21  ;;  %v3548_v48 = vmax.f32 %v3546_v43, %v3547_v36  ;;  %v3554_v49 = vrot.slane %v3553_v53, 1  ;;  %v5386_v58 = vsel %vm5354_vm9, %v3534_v52, %v14094_v7 }
 0x184   : > { %12549 = vrot.lane.b32.xlu0 %v12548_v35, %s13474_s21  ;;  %v12553_v4 = vpack.i.bf16 %v14135_v63, %v14141_v44  ;;  %v1576_v3 = vmax.f32 %v1156_v2, 0.0  ;;  %v1159_v37 = vadd.f32 %v14015_v62, %v13929_v46  ;;  %v1151_v14 = vadd.f32 %v14015_v62, %v13933_v54 }
 0x185   : > { %v3555_v12 = vmax.f32 %v3553_v53, %v3554_v49  ;;  %v5387_v6 = vsel %vm5356_vm10, %v3541_v17, %v5386_v58  ;;  %v1574_v26 = vmax.f32 %v1148_v10, 0.0  ;;  %v14164_v13 = vadd.f32 %v14015_v62, %v13954_v25 }
 0x186   : > { %v5388_v7 = vsel %vm5358_vm11, %v3548_v48, %v5387_v6  ;;  %12554 = vrot.lane.b32.xlu1 %v12553_v4, %s13476_s24  ;;  %v1718_v16 = vsel %vm1674_vm3, %v1576_v3, -inf  ;;  %v1577_v20 = vmax.f32 %v1159_v37, 0.0  ;;  %v1575_v46 = vmax.f32 %v1151_v14, 0.0 }
 0x187   : > { %v5389_v38 = vsel %vm5360_vm12, %v3555_v12, %v5388_v7  ;;  %v1719_v55 = vmax.f32 %v14104_v60, %v1718_v16  ;;  %v1712_v54 = vsel %vm1674_vm3, %v1574_v26, -inf  ;;  %v14171_v8 = vadd.f32 %v14015_v62, %v13959_v30 }
 0x188   : > { %5615 = vst.msk [vmem:[#allocation2 + $0x48] sm:$0xff] %vm1674_vm3, %v5389_v38  ;;  %v1721_v23 = vsel %vm1674_vm3, %v1577_v20, -inf  ;;  %v14175_v27 = vadd.f32 %v14015_v62, %v13961_v32  ;;  %v1713_v25 = vmax.f32 %v14111_v9, %v1712_v54  ;;  %v14182_v56 = vsel %vm1674_vm3, %v1575_v46, -inf }
 0x189   : > { %v2169_v60 = vcombine.high %v1719_v55, %v1719_v55  ;;  %v2176_v15 = vrot.slane %v1719_v55, %v13775_v41  ;;  %v14179_v50 = vmax.f32 %v1720_v40, %v1721_v23  ;;  %v1580_v42 = vmax.f32 %v14164_v13, 0.0  ;;  %v14205_v23 = vpop.f32.mrb[48].mxu0 }
 0x18a   : > { %12559 = vrot.lane.b32.xlu1 %v12548_v35, %s13473_s17  ;;  %v1578_v30 = vmax.f32 %v14171_v8, 0.0  ;;  %v1581_v43 = vmax.f32 %v14175_v27, 0.0  ;;  %v2135_v0 = vcombine.high %v1713_v25, %v1713_v25  ;;  %v2142_v40 = vrot.slane %v1713_v25, %v13775_v41 }
 0x18b   : > { %v2183_v32 = vrot.slane %v2169_v60, %v13775_v41  ;;  %v2184_v22 = vcombine.high %v2176_v15, %v2176_v15  ;;  %v3668_v47 = vsel %vm3275_vm5, %v2176_v15, -inf  ;;  %v2186_v57 = vcombine.high %v14179_v50, %v14179_v50 }
 0x18c   : > { %v3669_v9 = vrot.slane %v3668_v47, 4  ;;  %v14195_v52 = vrot.slane %v14179_v50, %v13775_v41  ;;  %v2149_v35 = vrot.slane %v2135_v0, %v13775_v41  ;;  %v2150_v49 = vcombine.high %v2142_v40, %v2142_v40 }
 0x18d   : > { %v2185_v21 = vcombine.high %v2183_v32, %v2183_v32  ;;  %v3675_v36 = vsel %vm3275_vm5, %v2184_v22, -inf  ;;  %v3682_v53 = vsel %vm3275_vm5, %v2183_v32, -inf  ;;  %v3612_v3 = vsel %vm3275_vm5, %v2142_v40, -inf  ;;  %v14207_v32 = vpop.f32.mrb[49].mxu0 }
 0x18e   : > { %v3670_v2 = vmax.f32 %v3668_v47, %v3669_v9  ;;  %v3676_v17 = vrot.slane %v3675_v36, 4  ;;  %v3683_v48 = vrot.slane %v3682_v53, 4  ;;  %v2151_v4 = vcombine.high %v2149_v35, %v2149_v35  ;;  %v14209_v40 = vpop.f32.mrb[50].mxu0 }
 0x18f   : > { %v3689_v58 = vsel %vm3275_vm5, %v2185_v21, -inf  ;;  %v3626_v10 = vsel %vm3275_vm5, %v2149_v35, -inf  ;;  %v3613_v7 = vrot.slane %v3612_v3, 4  ;;  %v3619_v16 = vsel %vm3275_vm5, %v2150_v49, -inf }
 0x190   : > { %v3671_v37 = vrot.slane %v3670_v2, 2  ;;  %v3677_v12 = vmax.f32 %v3675_v36, %v3676_v17  ;;  %v3684_v6 = vmax.f32 %v3682_v53, %v3683_v48  ;;  %v3690_v14 = vrot.slane %v3689_v58, 4 }
 0x191   : > { %v3627_v26 = vrot.slane %v3626_v10, 4  ;;  %v3633_v20 = vsel %vm3275_vm5, %v2151_v4, -inf  ;;  %v3614_v60 = vmax.f32 %v3612_v3, %v3613_v7  ;;  %v3620_v15 = vrot.slane %v3619_v16, 4 }
 0x192   : > { %v3672_v38 = vmax.f32 %v3670_v2, %v3671_v37  ;;  %v3678_v55 = vrot.slane %v3677_v12, 2  ;;  %v3685_v46 = vrot.slane %v3684_v6, 2  ;;  %v3691_v54 = vmax.f32 %v3689_v58, %v3690_v14  ;;  %v14211_v2 = vpop.f32.mrb[51].mxu0 }
 0x193   : > { %v3628_v25 = vmax.f32 %v3626_v10, %v3627_v26  ;;  %v3634_v50 = vrot.slane %v3633_v20, 4  ;;  %v3615_v21 = vrot.slane %v3614_v60, 2  ;;  %v3621_v36 = vmax.f32 %v3619_v16, %v3620_v15  ;;  %v14213_v4 = vpop.f32.mrb[52].mxu0 }
 0x194   : > { %v3673_v22 = vrot.slane %v3672_v38, 1  ;;  %v3679_v47 = vmax.f32 %v3677_v12, %v3678_v55  ;;  %v3686_v0 = vmax.f32 %v3684_v6, %v3685_v46  ;;  %v3692_v9 = vrot.slane %v3691_v54, 2 }
 0x195   : > { %v3629_v53 = vrot.slane %v3628_v25, 2  ;;  %v3635_v35 = vmax.f32 %v3633_v20, %v3634_v50  ;;  %v3616_v3 = vmax.f32 %v3614_v60, %v3615_v21  ;;  %v3622_v10 = vrot.slane %v3621_v36, 2 }
 0x196   : > { %v3674_v17 = vmax.f32 %v3672_v38, %v3673_v22  ;;  %v3680_v48 = vrot.slane %v3679_v47, 1  ;;  %v3687_v49 = vrot.slane %v3686_v0, 1  ;;  %v3693_v58 = vmax.f32 %v3691_v54, %v3692_v9 }
 0x197   : > { %v3630_v37 = vmax.f32 %v3628_v25, %v3629_v53  ;;  %v3636_v12 = vrot.slane %v3635_v35, 2  ;;  %v2200_v26 = vrot.slane %v2186_v57, %v13775_v41  ;;  %v3617_v16 = vrot.slane %v3616_v3, 1 }
 0x198   : > { %v3681_v6 = vmax.f32 %v3679_v47, %v3680_v48  ;;  %v3688_v14 = vmax.f32 %v3686_v0, %v3687_v49  ;;  %v3694_v7 = vrot.slane %v3693_v58, 1  ;;  %v3623_v55 = vmax.f32 %v3621_v36, %v3622_v10  ;;  %v14224_v48 = vpop.f32.mrb[53].mxu0 }
 0x199   : > { %v3631_v20 = vrot.slane %v3630_v37, 1  ;;  %v3637_v46 = vmax.f32 %v3635_v35, %v3636_v12  ;;  %v2201_v54 = vcombine.high %v14195_v52, %v14195_v52  ;;  %v2202_v50 = vcombine.high %v2200_v26, %v2200_v26 }
 0x19a   : > { %v3695_v15 = vmax.f32 %v3693_v58, %v3694_v7  ;;  %v5404_v38 = vsel %vm5348_vm6, %v3681_v6, %v3674_v17  ;;  %v3618_v25 = vmax.f32 %v3616_v3, %v3617_v16  ;;  %v3624_v22 = vrot.slane %v3623_v55, 1 }
 0x19b   : > { %v5405_v60 = vsel %vm5350_vm7, %v3688_v14, %v5404_v38  ;;  %v3632_v47 = vmax.f32 %v3630_v37, %v3631_v20  ;;  %v3638_v0 = vrot.slane %v3637_v46, 1  ;;  %v3696_v57 = vsel %vm3275_vm5, %v14195_v52, -inf  ;;  %v14230_v37 = vpop.f32.mrb[54].mxu0 }
 0x19c   : > { %v3703_v9 = vsel %vm3275_vm5, %v2201_v54, -inf  ;;  %v3710_v21 = vsel %vm3275_vm5, %v2200_v26, -inf  ;;  %v3625_v36 = vmax.f32 %v3623_v55, %v3624_v22  ;;  %v3697_v53 = vrot.slane %v3696_v57, 4  ;;  %v14236_v54 = vpop.f32.mrb[55].mxu0 }
 0x19d   : > { %v3704_v35 = vrot.slane %v3703_v9, 4  ;;  %v3711_v17 = vrot.slane %v3710_v21, 4  ;;  %v3639_v49 = vmax.f32 %v3637_v46, %v3638_v0  ;;  %v3717_v58 = vsel %vm3275_vm5, %v2202_v50, -inf }
 0x19e   : > { %v5406_v3 = vsel %vm5352_vm8, %v3695_v15, %v5405_v60  ;;  %v1716_v10 = vmax.f32 %v14123_v5, %v14182_v56  ;;  %v5397_v52 = vsel %vm5348_vm6, %v3625_v36, %v3618_v25  ;;  %v3698_v12 = vmax.f32 %v3696_v57, %v3697_v53 }
 0x19f   : > { %v3705_v6 = vmax.f32 %v3703_v9, %v3704_v35  ;;  %v3712_v14 = vmax.f32 %v3710_v21, %v3711_v17  ;;  %v5398_v7 = vsel %vm5350_vm7, %v3632_v47, %v5397_v52  ;;  %v3718_v26 = vrot.slane %v3717_v58, 4 }
 0x1a0   : > { %v2152_v16 = vcombine.high %v1716_v10, %v1716_v10  ;;  %v2159_v55 = vrot.slane %v1716_v10, %v13775_v41  ;;  %v3699_v20 = vrot.slane %v3698_v12, 2  ;;  %v5399_v15 = vsel %vm5352_vm8, %v3639_v49, %v5398_v7 }
 0x1a1   : > { %v3706_v46 = vrot.slane %v3705_v6, 2  ;;  %v3713_v38 = vrot.slane %v3712_v14, 2  ;;  %v3719_v5 = vmax.f32 %v3717_v58, %v3718_v26  ;;  %v1732_v13 = vsel %vm1674_vm3, %v1581_v43, -inf }
 0x1a2   : > { %v2166_v56 = vrot.slane %v2152_v16, %v13775_v41  ;;  %v2167_v50 = vcombine.high %v2159_v55, %v2159_v55  ;;  %v3640_v60 = vsel %vm3275_vm5, %v2159_v55, -inf  ;;  %v3700_v25 = vmax.f32 %v3698_v12, %v3699_v20 }
 0x1a3   : > { %v3707_v22 = vmax.f32 %v3705_v6, %v3706_v46  ;;  %v3714_v47 = vmax.f32 %v3712_v14, %v3713_v38  ;;  %v3641_v0 = vrot.slane %v3640_v60, 4  ;;  %v3720_v57 = vrot.slane %v3719_v5, 2 }
 0x1a4   : > { %v2168_v9 = vcombine.high %v2166_v56, %v2166_v56  ;;  %v3647_v21 = vsel %vm3275_vm5, %v2167_v50, -inf  ;;  %v3654_v36 = vsel %vm3275_vm5, %v2166_v56, -inf  ;;  %v3701_v53 = vrot.slane %v3700_v25, 1 }
 0x1a5   : > { %v3708_v35 = vrot.slane %v3707_v22, 1  ;;  %v3715_v17 = vrot.slane %v3714_v47, 1  ;;  %v3642_v49 = vmax.f32 %v3640_v60, %v3641_v0  ;;  %v3721_v58 = vmax.f32 %v3719_v5, %v3720_v57  ;;  %v5649_v0 = vld [vmem:[#allocation2 + $0x30] sm:$0xff]  ;;  %v5650_v57 = vld [vmem:[#allocation2 + $0x38] sm:$0xff] }
 0x1a6   : > { %v3648_v10 = vrot.slane %v3647_v21, 4  ;;  %v3655_v52 = vrot.slane %v3654_v36, 4  ;;  %v3661_v7 = vsel %vm3275_vm5, %v2168_v9, -inf  ;;  %v3702_v26 = vmax.f32 %v3700_v25, %v3701_v53  ;;  %v5651_v53 = vld [vmem:[#allocation2 + $0x40] sm:$0xff] }
 0x1a7   : > { %v3709_v12 = vmax.f32 %v3707_v22, %v3708_v35  ;;  %v3716_v6 = vmax.f32 %v3714_v47, %v3715_v17  ;;  %v3643_v14 = vrot.slane %v3642_v49, 2  ;;  %v3722_v16 = vrot.slane %v3721_v58, 1 }
 0x1a8   : > { %v3649_v55 = vmax.f32 %v3647_v21, %v3648_v10  ;;  %v3656_v20 = vmax.f32 %v3654_v36, %v3655_v52  ;;  %v3662_v46 = vrot.slane %v3661_v7, 4  ;;  %v5407_v38 = vsel %vm5354_vm9, %v3702_v26, %v5406_v3 }
 0x1a9   : > { %v3644_v56 = vmax.f32 %v3642_v49, %v3643_v14  ;;  %v1729_v50 = vsel %vm1674_vm3, %v1580_v42, -inf  ;;  %v14250_v5 = vsel %vm1674_vm3, %v1578_v30, -inf  ;;  %v3723_v60 = vmax.f32 %v3721_v58, %v3722_v16 }
 0x1aa   : > { %v5408_v25 = vsel %vm5356_vm10, %v3709_v12, %v5407_v38  ;;  %v3650_v22 = vrot.slane %v3649_v55, 2  ;;  %v3657_v47 = vrot.slane %v3656_v20, 2  ;;  %v3663_v21 = vmax.f32 %v3661_v7, %v3662_v46 }
 0x1ab   : > { %v5409_v9 = vsel %vm5358_vm11, %v3716_v6, %v5408_v25  ;;  %v3645_v3 = vrot.slane %v3644_v56, 1  ;;  %v1167_v36 = vadd.f32 %v14015_v62, %v13965_v39  ;;  %v12563_v49 = vpack.i.bf16 %v5650_v57, %v5649_v0 }
 0x1ac   : > { %v5410_v8 = vsel %vm5360_vm12, %v3723_v60, %v5409_v9  ;;  %v3651_v42 = vmax.f32 %v3649_v55, %v3650_v22  ;;  %v3658_v30 = vmax.f32 %v3656_v20, %v3657_v47  ;;  %v3664_v17 = vrot.slane %v3663_v21, 2 }
 0x1ad   : > { %5618 = vst.msk [vmem:[#allocation2 + $0x68] sm:$0xff] %vm1674_vm3, %v5410_v8  ;;  %v3646_v35 = vmax.f32 %v3644_v56, %v3645_v3  ;;  %v1579_v52 = vmax.f32 %v1167_v36, 0.0  ;;  %v5792_v7 = vrot.slane %v5649_v0, 1  ;;  %12564 = vrot.lane.b32.xlu0 %v12563_v49, %s13476_s24  ;;  %12569 = vrot.lane.b32.xlu1 %v12563_v49, %s13474_s21  ;;  %v5810_v26 = vrot.slane %v5650_v57, 1 }
 0x1ae   : > { %v3652_v58 = vrot.slane %v3651_v42, 1  ;;  %v3659_v10 = vrot.slane %v3658_v30, 1  ;;  %v3665_v27 = vmax.f32 %v3663_v21, %v3664_v17  ;;  %v5828_v12 = vrot.slane %v5651_v53, 1 }
 0x1af   : > { %v5400_v43 = vsel %vm5354_vm9, %v3646_v35, %v5399_v15  ;;  %v1726_v14 = vsel %vm1674_vm3, %v1579_v52, -inf  ;;  %v5699_v16 = vrot.slane %v5649_v0, 7  ;;  %v14271_v46 = vsel %vm5844_vm4, %v5792_v7, %v5810_v26 }
 0x1b0   : > { %v3653_v39 = vmax.f32 %v3651_v42, %v3652_v58  ;;  %v3660_v6 = vmax.f32 %v3658_v30, %v3659_v10  ;;  %v3666_v55 = vrot.slane %v3665_v27, 1  ;;  %v14267_v20 = vsel %vm5844_vm4, %v5810_v26, %v5828_v12  ;;  %18398 = vst [vmem:[#allocation10_spill] sm:$0xff] %v14271_v46 }
 0x1b1   : > { %18397 = vst [vmem:[#allocation9_spill] sm:$0xff] %v14267_v20  ;;  %v5717_v15 = vrot.slane %v5650_v57, 7  ;;  %v12578_v56 = vpack.i.bf16 %v14267_v20, %v14271_v46  ;;  %v5735_v60 = vrot.slane %v5651_v53, 7  ;;  %v1188_v25 = vadd.f32 %v14015_v62, %v13967_v19 }
 0x1b2   : > { %v5401_v38 = vsel %vm5356_vm10, %v3653_v39, %v5400_v43  ;;  %v3667_v22 = vmax.f32 %v3665_v27, %v3666_v55  ;;  %v1180_v9 = vadd.f32 %v14015_v62, %v13969_v29  ;;  %v1191_v19 = vadd.f32 %v14015_v62, %v13973_v33 }
 0x1b3   : > { %v5402_v47 = vsel %vm5358_vm11, %v3660_v6, %v5401_v38  ;;  %v14281_v0 = vsel %vm5753_vm13, %v5699_v16, %v5717_v15  ;;  %12579 = vrot.lane.b32.xlu0 %v12578_v56, %s13474_s21  ;;  %v14288_v57 = vsel %vm5753_vm13, %v5735_v60, %v5699_v16  ;;  %v1584_v3 = vmax.f32 %v1188_v25, 0.0 }
 0x1b4   : > { %18399 = vst [vmem:[#allocation11_spill] sm:$0xff] %v14281_v0  ;;  %18400 = vst [vmem:[#allocation12_spill] sm:$0xff] %v14288_v57  ;;  %v1183_v21 = vadd.f32 %v14015_v62, %v13988_v24  ;;  %v5403_v8 = vsel %vm5360_vm12, %v3667_v22, %v5402_v47  ;;  %v12573_v42 = vpack.i.bf16 %v14281_v0, %v14288_v57  ;;  %v1582_v30 = vmax.f32 %v1180_v9, 0.0 }
 0x1b5   : > { %5617 = vst.msk [vmem:[#allocation2 + $0x60] sm:$0xff] %vm1674_vm3, %v5403_v8  ;;  %v1730_v29 = vsel %vm1674_vm3, %v1584_v3, -inf  ;;  %v1585_v36 = vmax.f32 %v1191_v19, 0.0  ;;  %v14303_v24 = vadd.f32 %v14015_v62, %v14009_v1  ;;  %v14307_v17 = vadd.f32 %v14015_v62, %v14019_v28 }
 0x1b6   : > { %v1583_v53 = vmax.f32 %v1183_v21, 0.0  ;;  %12574 = vrot.lane.b32.xlu1 %v12573_v42, %s13473_s17  ;;  %v1731_v35 = vmax.f32 %v1729_v50, %v1730_v29  ;;  %v1724_v33 = vsel %vm1674_vm3, %v1582_v30, -inf  ;;  %v14314_v52 = vadd.f32 %v14015_v62, %v14022_v18 }
 0x1b7   : > { %v1725_v49 = vmax.f32 %v14250_v5, %v1724_v33  ;;  %v1733_v58 = vsel %vm1674_vm3, %v1585_v36, -inf  ;;  %v1588_v5 = vmax.f32 %v14303_v24, 0.0  ;;  %v1586_v26 = vmax.f32 %v14307_v17, 0.0 }
 0x1b8   : > { %v1727_v10 = vsel %vm1674_vm3, %v1583_v53, -inf  ;;  %v2237_v50 = vcombine.high %v1731_v35, %v1731_v35  ;;  %v2244_v7 = vrot.slane %v1731_v35, %v13775_v41  ;;  %v14317_v27 = vmax.f32 %v1732_v13, %v1733_v58 }
 0x1b9   : > { %v14319_v1 = vmax.f32 %v1726_v14, %v1727_v10  ;;  %v2203_v43 = vcombine.high %v1725_v49, %v1725_v49  ;;  %v2210_v28 = vrot.slane %v1725_v49, %v13775_v41  ;;  %v14386_v24 = vsel %vm1674_vm3, %v1586_v26, -inf }
 0x1ba   : > { %v2251_v12 = vrot.slane %v2237_v50, %v13775_v41  ;;  %v2252_v39 = vcombine.high %v2244_v7, %v2244_v7  ;;  %v3780_v62 = vsel %vm3275_vm5, %v2244_v7, -inf  ;;  %v2254_v18 = vcombine.high %v14317_v27, %v14317_v27  ;;  %12584 = vrot.lane.b32.xlu1 %v12573_v42, %s13476_s24 }
 0x1bb   : > { %v3781_v13 = vrot.slane %v3780_v62, 4  ;;  %v2217_v6 = vrot.slane %v2203_v43, %v13775_v41  ;;  %v2218_v14 = vcombine.high %v2210_v28, %v2210_v28  ;;  %v3724_v16 = vsel %vm3275_vm5, %v2210_v28, -inf  ;;  %v14338_v43 = vpop.f32.mrb[56].mxu0 }
 0x1bc   : > { %v2253_v55 = vcombine.high %v2251_v12, %v2251_v12  ;;  %v3787_v15 = vsel %vm3275_vm5, %v2252_v39, -inf  ;;  %v3794_v38 = vsel %vm3275_vm5, %v2251_v12, -inf  ;;  %v3725_v60 = vrot.slane %v3724_v16, 4 }
 0x1bd   : > { %v3782_v25 = vmax.f32 %v3780_v62, %v3781_v13  ;;  %v3788_v22 = vrot.slane %v3787_v15, 4  ;;  %v3795_v47 = vrot.slane %v3794_v38, 4  ;;  %v2219_v9 = vcombine.high %v2217_v6, %v2217_v6 }
 0x1be   : > { %v3801_v3 = vsel %vm3275_vm5, %v2253_v55, -inf  ;;  %v3726_v19 = vmax.f32 %v3724_v16, %v3725_v60  ;;  %v3731_v21 = vsel %vm3275_vm5, %v2218_v14, -inf  ;;  %v3738_v8 = vsel %vm3275_vm5, %v2217_v6, -inf  ;;  %12589 = vrot.lane.b32.xlu1 %v12578_v56, %s13473_s17  ;;  %v14340_v56 = vpop.f32.mrb[57].mxu0 }
 0x1bf   : > { %v3783_v42 = vrot.slane %v3782_v25, 2  ;;  %v3789_v30 = vmax.f32 %v3787_v15, %v3788_v22  ;;  %v3796_v29 = vmax.f32 %v3794_v38, %v3795_v47  ;;  %v3802_v36 = vrot.slane %v3801_v3, 4  ;;  %v14342_v55 = vpop.f32.mrb[58].mxu0 }
 0x1c0   : > { %v3727_v53 = vrot.slane %v3726_v19, 2  ;;  %v3732_v35 = vrot.slane %v3731_v21, 4  ;;  %v3739_v33 = vrot.slane %v3738_v8, 4  ;;  %v3745_v49 = vsel %vm3275_vm5, %v2219_v9, -inf  ;;  %v14344_v22 = vpop.f32.mrb[59].mxu0 }
 0x1c1   : > { %v3784_v58 = vmax.f32 %v3782_v25, %v3783_v42  ;;  %v3790_v10 = vrot.slane %v3789_v30, 2  ;;  %v3797_v50 = vrot.slane %v3796_v29, 2  ;;  %v3803_v7 = vmax.f32 %v3801_v3, %v3802_v36 }
 0x1c2   : > { %v3728_v28 = vmax.f32 %v3726_v19, %v3727_v53  ;;  %v3733_v12 = vmax.f32 %v3731_v21, %v3732_v35  ;;  %v3740_v39 = vmax.f32 %v3738_v8, %v3739_v33  ;;  %v3746_v62 = vrot.slane %v3745_v49, 4  ;;  %v14346_v21 = vpop.f32.mrb[60].mxu0 }
 0x1c3   : > { %v3785_v13 = vrot.slane %v3784_v58, 1  ;;  %v3791_v6 = vmax.f32 %v3789_v30, %v3790_v10  ;;  %v3798_v14 = vmax.f32 %v3796_v29, %v3797_v50  ;;  %v3804_v16 = vrot.slane %v3803_v7, 2 }
 0x1c4   : > { %v3729_v15 = vrot.slane %v3728_v28, 1  ;;  %v3734_v38 = vrot.slane %v3733_v12, 2  ;;  %v3741_v60 = vrot.slane %v3740_v39, 2  ;;  %v3747_v25 = vmax.f32 %v3745_v49, %v3746_v62 }
 0x1c5   : > { %v3786_v47 = vmax.f32 %v3784_v58, %v3785_v13  ;;  %v3792_v9 = vrot.slane %v3791_v6, 1  ;;  %v3799_v3 = vrot.slane %v3798_v14, 1  ;;  %v3805_v19 = vmax.f32 %v3803_v7, %v3804_v16 }
 0x1c6   : > { %v3730_v8 = vmax.f32 %v3728_v28, %v3729_v15  ;;  %v3735_v42 = vmax.f32 %v3733_v12, %v3734_v38  ;;  %v3742_v36 = vmax.f32 %v3740_v39, %v3741_v60  ;;  %v3748_v30 = vrot.slane %v3747_v25, 2 }
 0x1c7   : > { %v3793_v29 = vmax.f32 %v3791_v6, %v3792_v9  ;;  %v3800_v53 = vmax.f32 %v3798_v14, %v3799_v3  ;;  %v3806_v35 = vrot.slane %v3805_v19, 1  ;;  %v2261_v33 = vrot.slane %v14317_v27, %v13775_v41 }
 0x1c8   : > { %v3736_v10 = vrot.slane %v3735_v42, 1  ;;  %v3743_v49 = vrot.slane %v3742_v36, 1  ;;  %v3749_v50 = vmax.f32 %v3747_v25, %v3748_v30  ;;  %v2268_v58 = vrot.slane %v2254_v18, %v13775_v41 }
 0x1c9   : > { %v3807_v7 = vmax.f32 %v3805_v19, %v3806_v35  ;;  %v5418_v28 = vsel %vm5348_vm6, %v3793_v29, %v3786_v47  ;;  %v2269_v12 = vcombine.high %v2261_v33, %v2261_v33  ;;  %v3808_v39 = vsel %vm3275_vm5, %v2261_v33, -inf  ;;  %v14365_v35 = vpop.f32.mrb[61].mxu0 }
 0x1ca   : > { %v5419_v62 = vsel %vm5350_vm7, %v3800_v53, %v5418_v28  ;;  %v3737_v13 = vmax.f32 %v3735_v42, %v3736_v10  ;;  %v3744_v6 = vmax.f32 %v3742_v36, %v3743_v49  ;;  %v3750_v14 = vrot.slane %v3749_v50, 1 }
 0x1cb   : > { %v2270_v16 = vcombine.high %v2268_v58, %v2268_v58  ;;  %v3809_v15 = vrot.slane %v3808_v39, 4  ;;  %v3815_v38 = vsel %vm3275_vm5, %v2269_v12, -inf  ;;  %v3822_v60 = vsel %vm3275_vm5, %v2268_v58, -inf }
 0x1cc   : > { %v3751_v25 = vmax.f32 %v3749_v50, %v3750_v14  ;;  %v5411_v27 = vsel %vm5348_vm6, %v3737_v13, %v3730_v8  ;;  %v3816_v18 = vrot.slane %v3815_v38, 4  ;;  %v3823_v9 = vrot.slane %v3822_v60, 4  ;;  %v14377_v50 = vpop.f32.mrb[62].mxu0 }
 0x1cd   : > { %v5412_v47 = vsel %vm5350_vm7, %v3744_v6, %v5411_v27  ;;  %v3810_v3 = vmax.f32 %v3808_v39, %v3809_v15  ;;  %v3829_v19 = vsel %vm3275_vm5, %v2270_v16, -inf  ;;  %v5420_v42 = vsel %vm5352_vm8, %v3807_v7, %v5419_v62  ;;  %v14380_v39 = vpop.f32.mrb[63].mxu0 }
 0x1ce   : > { %v3817_v36 = vmax.f32 %v3815_v38, %v3816_v18  ;;  %v3824_v30 = vmax.f32 %v3822_v60, %v3823_v9  ;;  %v3830_v29 = vrot.slane %v3829_v19, 4  ;;  %v2220_v53 = vcombine.high %v14319_v1, %v14319_v1 }
 0x1cf   : > { %v3811_v33 = vrot.slane %v3810_v3, 2  ;;  %v2227_v8 = vrot.slane %v14319_v1, %v13775_v41  ;;  %v14370_v10 = vsel %vm5352_vm8, %v3751_v25, %v5412_v47  ;;  %v14375_v49 = vsel %vm1674_vm3, %v1588_v5, -inf }
 0x1d0   : > { %v3818_v58 = vrot.slane %v3817_v36, 2  ;;  %v3825_v7 = vrot.slane %v3824_v30, 2  ;;  %v3831_v28 = vmax.f32 %v3829_v19, %v3830_v29  ;;  %v2234_v12 = vrot.slane %v2220_v53, %v13775_v41 }
 0x1d1   : > { %v3812_v62 = vmax.f32 %v3810_v3, %v3811_v33  ;;  %v2235_v13 = vcombine.high %v2227_v8, %v2227_v8  ;;  %v3752_v1 = vsel %vm3275_vm5, %v2227_v8, -inf }
 0x1d2   : > { %v3819_v5 = vmax.f32 %v3817_v36, %v3818_v58  ;;  %v3826_v6 = vmax.f32 %v3824_v30, %v3825_v7  ;;  %v3832_v14 = vrot.slane %v3831_v28, 2  ;;  %v2236_v16 = vcombine.high %v2234_v12, %v2234_v12 }
 0x1d3   : > { %v3813_v15 = vrot.slane %v3812_v62, 1  ;;  %v3753_v38 = vrot.slane %v3752_v1, 4  ;;  %v3759_v60 = vsel %vm3275_vm5, %v2235_v13, -inf  ;;  %v3766_v25 = vsel %vm3275_vm5, %v2234_v12, -inf }
 0x1d4   : > { %v3820_v27 = vrot.slane %v3819_v5, 1  ;;  %v3827_v18 = vrot.slane %v3826_v6, 1  ;;  %v3833_v9 = vmax.f32 %v3831_v28, %v3832_v14  ;;  %v3760_v47 = vrot.slane %v3759_v60, 4 }
 0x1d5   : > { %v3814_v3 = vmax.f32 %v3812_v62, %v3813_v15  ;;  %v3754_v19 = vmax.f32 %v3752_v1, %v3753_v38  ;;  %v3767_v17 = vrot.slane %v3766_v25, 4  ;;  %v3773_v26 = vsel %vm3275_vm5, %v2236_v16, -inf  ;;  %v5652_v62 = vld [vmem:[#allocation2 + $0x48] sm:$0xff]  ;;  %v14394_v1 = vld [vmem:[#allocation2 + $0x50] sm:$0xff] }
 0x1d6   : > { %v3821_v29 = vmax.f32 %v3819_v5, %v3820_v27  ;;  %v3828_v36 = vmax.f32 %v3826_v6, %v3827_v18  ;;  %v3834_v30 = vrot.slane %v3833_v9, 1  ;;  %v3761_v53 = vmax.f32 %v3759_v60, %v3760_v47  ;;  %v14402_v60 = vld [vmem:[%s18332_s2] ss:$0 sm:$0xff]  ;;  %v5654_v47 = vld [vmem:[#allocation2 + $0x58] sm:$0xff] }
 0x1d7   : > { %v5421_v33 = vsel %vm5354_vm9, %v3814_v3, %v5420_v42  ;;  %v3755_v8 = vrot.slane %v3754_v19, 2  ;;  %v3768_v58 = vmax.f32 %v3766_v25, %v3767_v17  ;;  %v3774_v7 = vrot.slane %v3773_v26, 4 }
 0x1d8   : > { %v3835_v13 = vmax.f32 %v3833_v9, %v3834_v30  ;;  %v5422_v12 = vsel %vm5356_vm10, %v3821_v29, %v5421_v33  ;;  %v3762_v59 = vrot.slane %v3761_v53, 2  ;;  %v1589_v28 = vmax.f32 %v14314_v52, 0.0 }
 0x1d9   : > { %v5423_v14 = vsel %vm5358_vm11, %v3828_v36, %v5422_v12  ;;  %v3756_v5 = vmax.f32 %v3754_v19, %v3755_v8  ;;  %v3769_v6 = vrot.slane %v3768_v58, 2  ;;  %v3775_v16 = vmax.f32 %v3773_v26, %v3774_v7 }
 0x1da   : > { %v5424_v15 = vsel %vm5360_vm12, %v3835_v13, %v5423_v14  ;;  %v3763_v42 = vmax.f32 %v3761_v53, %v3762_v59  ;;  %v1744_v38 = vsel %vm1674_vm3, %v1589_v28, -inf  ;;  %v1199_v52 = vadd.f32 %v14402_v60, %v14045_v45 }
 0x1db   : > { %5620 = vst.msk [vmem:[#allocation2 + $0x80] sm:$0xff] %vm1674_vm3, %v5424_v15  ;;  %v3757_v25 = vrot.slane %v3756_v5, 1  ;;  %v3770_v27 = vmax.f32 %v3768_v58, %v3769_v6  ;;  %v3776_v18 = vrot.slane %v3775_v16, 2  ;;  %v12593_v9 = vpack.i.bf16 %v14394_v1, %v5652_v62 }
 0x1dc   : > { %v3764_v3 = vrot.slane %v3763_v42, 1  ;;  %v1587_v59 = vmax.f32 %v1199_v52, 0.0  ;;  %v5700_v19 = vrot.slane %v5652_v62, 7  ;;  %v5718_v36 = vrot.slane %v14394_v1, 7 }
 0x1dd   : > { %v3758_v17 = vmax.f32 %v3756_v5, %v3757_v25  ;;  %v3771_v26 = vrot.slane %v3770_v27, 1  ;;  %v3777_v29 = vmax.f32 %v3775_v16, %v3776_v18  ;;  %12594 = vrot.lane.b32.xlu0 %v12593_v9, %s13476_s24  ;;  %12599 = vrot.lane.b32.xlu1 %v12593_v9, %s13474_s21  ;;  %v5736_v53 = vrot.slane %v5654_v47, 7 }
 0x1de   : > { %v3765_v30 = vmax.f32 %v3763_v42, %v3764_v3  ;;  %v1738_v45 = vsel %vm1674_vm3, %v1587_v59, -inf  ;;  %v1220_v33 = vadd.f32 %v14402_v60, %v14067_v31  ;;  %v14418_v13 = vsel %vm5753_vm13, %v5700_v19, %v5718_v36 }
 0x1df   : > { %v3772_v8 = vmax.f32 %v3770_v27, %v3771_v26  ;;  %v3778_v58 = vrot.slane %v3777_v29, 1  ;;  %v5414_v7 = vsel %vm5354_vm9, %v3758_v17, %v14370_v10  ;;  %18401 = vst [vmem:[#allocation13_spill] sm:$0xff] %v14418_v13  ;;  %v14423_v28 = vsel %vm5753_vm13, %v5736_v53, %v5700_v19 }
 0x1e0   : > { %v5415_v12 = vsel %vm5356_vm10, %v3765_v30, %v5414_v7  ;;  %18402 = vst [vmem:[#allocation14_spill] sm:$0xff] %v14423_v28  ;;  %v1592_v14 = vmax.f32 %v1220_v33, 0.0  ;;  %v1212_v5 = vadd.f32 %v14402_v60, %v14070_v51  ;;  %v12603_v10 = vpack.i.bf16 %v14418_v13, %v14423_v28 }
 0x1e1   : > { %v3779_v31 = vmax.f32 %v3777_v29, %v3778_v58  ;;  %v5416_v6 = vsel %vm5358_vm11, %v3772_v8, %v5415_v12  ;;  %v1223_v42 = vadd.f32 %v14402_v60, %v14072_v34  ;;  %v1215_v52 = vadd.f32 %v14402_v60, %v14091_v11 }
 0x1e2   : > { %v1742_v16 = vsel %vm1674_vm3, %v1592_v14, -inf  ;;  %v1590_v15 = vmax.f32 %v1212_v5, 0.0  ;;  %12604 = vrot.lane.b32.xlu0 %v12603_v10, %s13473_s17  ;;  %12614 = vrot.lane.b32.xlu1 %v12603_v10, %s13476_s24  ;;  %v5793_v27 = vrot.slane %v5652_v62, 1  ;;  %v5811_v18 = vrot.slane %v14394_v1, 1 }
 0x1e3   : > { %v5417_v25 = vsel %vm5360_vm12, %v3779_v31, %v5416_v6  ;;  %v1743_v51 = vmax.f32 %v14375_v49, %v1742_v16  ;;  %v1593_v3 = vmax.f32 %v1223_v42, 0.0  ;;  %v1591_v34 = vmax.f32 %v1215_v52, 0.0 }
 0x1e4   : > { %5619 = vst.msk [vmem:[#allocation2 + $0x78] sm:$0xff] %vm1674_vm3, %v5417_v25  ;;  %v1736_v9 = vsel %vm1674_vm3, %v1590_v15, -inf  ;;  %v5829_v59 = vrot.slane %v5654_v47, 1  ;;  %v14446_v26 = vsel %vm5844_vm4, %v5793_v27, %v5811_v18  ;;  %v14456_v47 = vadd.f32 %v14402_v60, %v14205_v23 }
 0x1e5   : > { %v2305_v19 = vcombine.high %v1743_v51, %v1743_v51  ;;  %v2312_v11 = vrot.slane %v1743_v51, %v13775_v41  ;;  %v1737_v17 = vmax.f32 %v14386_v24, %v1736_v9  ;;  %18403 = vst [vmem:[#allocation15_spill] sm:$0xff] %v14446_v26  ;;  %v1745_v49 = vsel %vm1674_vm3, %v1593_v3, -inf }
 0x1e6   : > { %v1739_v62 = vsel %vm1674_vm3, %v1591_v34, -inf  ;;  %v14452_v1 = vsel %vm5844_vm4, %v5811_v18, %v5829_v59  ;;  %v14461_v8 = vmax.f32 %v1744_v38, %v1745_v49 }
 0x1e7   : > { %18404 = vst [vmem:[#allocation16_spill] sm:$0xff] %v14452_v1  ;;  %v2319_v29 = vrot.slane %v2305_v19, %v13775_v41  ;;  %v2320_v36 = vcombine.high %v2312_v11, %v2312_v11  ;;  %v3892_v24 = vsel %vm3275_vm5, %v2312_v11, -inf  ;;  %v2271_v30 = vcombine.high %v1737_v17, %v1737_v17 }
 0x1e8   : > { %v3893_v53 = vrot.slane %v3892_v24, 4  ;;  %v2278_v33 = vrot.slane %v1737_v17, %v13775_v41  ;;  %v14463_v58 = vmax.f32 %v1738_v45, %v1739_v62 }
 0x1e9   : > { %v2321_v7 = vcombine.high %v2319_v29, %v2319_v29  ;;  %v3899_v12 = vsel %vm3275_vm5, %v2320_v36, -inf  ;;  %v3906_v14 = vsel %vm3275_vm5, %v2319_v29, -inf  ;;  %v2285_v23 = vrot.slane %v2271_v30, %v13775_v41 }
 0x1ea   : > { %v3894_v5 = vmax.f32 %v3892_v24, %v3893_v53  ;;  %v3900_v31 = vrot.slane %v3899_v12, 4  ;;  %v3907_v6 = vrot.slane %v3906_v14, 4  ;;  %v2286_v10 = vcombine.high %v2278_v33, %v2278_v33 }
 0x1eb   : > { %v3913_v16 = vsel %vm3275_vm5, %v2321_v7, -inf  ;;  %v2287_v15 = vcombine.high %v2285_v23, %v2285_v23  ;;  %v3836_v42 = vsel %vm3275_vm5, %v2278_v33, -inf  ;;  %v3850_v38 = vsel %vm3275_vm5, %v2285_v23, -inf  ;;  %v14473_v23 = vpop.f32.mrb[64].mxu0 }
 0x1ec   : > { %v3895_v45 = vrot.slane %v3894_v5, 2  ;;  %v3901_v52 = vmax.f32 %v3899_v12, %v3900_v31  ;;  %v3908_v25 = vmax.f32 %v3906_v14, %v3907_v6  ;;  %v3914_v51 = vrot.slane %v3913_v16, 4 }
 0x1ed   : > { %v3837_v27 = vrot.slane %v3836_v42, 4  ;;  %v3843_v18 = vsel %vm3275_vm5, %v2286_v10, -inf  ;;  %v3851_v9 = vrot.slane %v3850_v38, 4  ;;  %v3857_v3 = vsel %vm3275_vm5, %v2287_v15, -inf  ;;  %v14475_v15 = vpop.f32.mrb[65].mxu0 }
 0x1ee   : > { %v3896_v34 = vmax.f32 %v3894_v5, %v3895_v45  ;;  %v3902_v59 = vrot.slane %v3901_v52, 2  ;;  %v3909_v19 = vrot.slane %v3908_v25, 2  ;;  %v3915_v11 = vmax.f32 %v3913_v16, %v3914_v51  ;;  %v14477_v51 = vpop.f32.mrb[66].mxu0 }
 0x1ef   : > { %v3838_v17 = vmax.f32 %v3836_v42, %v3837_v27  ;;  %v3844_v49 = vrot.slane %v3843_v18, 4  ;;  %v3852_v62 = vmax.f32 %v3850_v38, %v3851_v9  ;;  %v3858_v29 = vrot.slane %v3857_v3, 4  ;;  %v14481_v9 = vpop.f32.mrb[67].mxu0 }
 0x1f0   : > { %v3897_v36 = vrot.slane %v3896_v34, 1  ;;  %v3903_v24 = vmax.f32 %v3901_v52, %v3902_v59  ;;  %v3910_v30 = vmax.f32 %v3908_v25, %v3909_v19  ;;  %v3916_v53 = vrot.slane %v3915_v11, 2 }
 0x1f1   : > { %v3839_v33 = vrot.slane %v3838_v17, 2  ;;  %v3845_v7 = vmax.f32 %v3843_v18, %v3844_v49  ;;  %v3853_v12 = vrot.slane %v3852_v62, 2  ;;  %v3859_v14 = vmax.f32 %v3857_v3, %v3858_v29 }
 0x1f2   : > { %v3898_v31 = vmax.f32 %v3896_v34, %v3897_v36  ;;  %v3904_v6 = vrot.slane %v3903_v24, 1  ;;  %v3911_v5 = vrot.slane %v3910_v30, 1  ;;  %v3917_v10 = vmax.f32 %v3915_v11, %v3916_v53  ;;  %v14483_v11 = vpop.f32.mrb[68].mxu0 }
 0x1f3   : > { %v3840_v16 = vmax.f32 %v3838_v17, %v3839_v33  ;;  %v3846_v42 = vrot.slane %v3845_v7, 2  ;;  %v3854_v38 = vmax.f32 %v3852_v62, %v3853_v12  ;;  %v3860_v45 = vrot.slane %v3859_v14, 2 }
 0x1f4   : > { %v3905_v52 = vmax.f32 %v3903_v24, %v3904_v6  ;;  %v3912_v25 = vmax.f32 %v3910_v30, %v3911_v5  ;;  %v3918_v27 = vrot.slane %v3917_v10, 1  ;;  %v2322_v18 = vcombine.high %v14461_v8, %v14461_v8 }
 0x1f5   : > { %v3841_v3 = vrot.slane %v3840_v16, 1  ;;  %v3847_v34 = vmax.f32 %v3845_v7, %v3846_v42  ;;  %v3855_v59 = vrot.slane %v3854_v38, 1  ;;  %v3861_v19 = vmax.f32 %v3859_v14, %v3860_v45 }
 0x1f6   : > { %v3919_v17 = vmax.f32 %v3917_v10, %v3918_v27  ;;  %v5432_v49 = vsel %vm5348_vm6, %v3905_v52, %v3898_v31  ;;  %v2329_v62 = vrot.slane %v14461_v8, %v13775_v41  ;;  %v2336_v29 = vrot.slane %v2322_v18, %v13775_v41 }
 0x1f7   : > { %v5433_v36 = vsel %vm5350_vm7, %v3912_v25, %v5432_v49  ;;  %v3842_v24 = vmax.f32 %v3840_v16, %v3841_v3  ;;  %v3848_v30 = vrot.slane %v3847_v34, 1  ;;  %v3856_v53 = vmax.f32 %v3854_v38, %v3855_v59  ;;  %v14495_v16 = vpop.f32.mrb[69].mxu0 }
 0x1f8   : > { %v3862_v33 = vrot.slane %v3861_v19, 1  ;;  %v2337_v12 = vcombine.high %v2329_v62, %v2329_v62  ;;  %v2338_v7 = vcombine.high %v2336_v29, %v2336_v29  ;;  %v3920_v14 = vsel %vm3275_vm5, %v2329_v62, -inf  ;;  %v14498_v3 = vpop.f32.mrb[70].mxu0 }
 0x1f9   : > { %v3849_v6 = vmax.f32 %v3847_v34, %v3848_v30  ;;  %v3921_v5 = vrot.slane %v3920_v14, 4  ;;  %v3934_v10 = vsel %vm3275_vm5, %v2336_v29, -inf  ;;  %v5434_v31 = vsel %vm5352_vm8, %v3919_v17, %v5433_v36 }
 0x1fa   : > { %v3863_v42 = vmax.f32 %v3861_v19, %v3862_v33  ;;  %v3927_v8 = vsel %vm3275_vm5, %v2337_v12, -inf  ;;  %v3935_v45 = vrot.slane %v3934_v10, 4  ;;  %v3941_v52 = vsel %vm3275_vm5, %v2338_v7, -inf  ;;  %v14508_v7 = vpop.f32.mrb[71].mxu0 }
 0x1fb   : > { %v5425_v38 = vsel %vm5348_vm6, %v3849_v6, %v3842_v24  ;;  %v3922_v25 = vmax.f32 %v3920_v14, %v3921_v5  ;;  %v3928_v27 = vrot.slane %v3927_v8, 4  ;;  %v3942_v18 = vrot.slane %v3941_v52, 4 }
 0x1fc   : > { %v5426_v34 = vsel %vm5350_vm7, %v3856_v53, %v5425_v38  ;;  %v3936_v59 = vmax.f32 %v3934_v10, %v3935_v45  ;;  %v2288_v19 = vcombine.high %v14463_v58, %v14463_v58  ;;  %v2295_v17 = vrot.slane %v14463_v58, %v13775_v41 }
 0x1fd   : > { %v3923_v49 = vrot.slane %v3922_v25, 2  ;;  %v3929_v62 = vmax.f32 %v3927_v8, %v3928_v27  ;;  %v3943_v29 = vmax.f32 %v3941_v52, %v3942_v18  ;;  %v5427_v36 = vsel %vm5352_vm8, %v3863_v42, %v5426_v34 }
 0x1fe   : > { %v3937_v24 = vrot.slane %v3936_v59, 2  ;;  %v2302_v30 = vrot.slane %v2288_v19, %v13775_v41  ;;  %v2303_v33 = vcombine.high %v2295_v17, %v2295_v17  ;;  %v3864_v12 = vsel %vm3275_vm5, %v2295_v17, -inf }
 0x1ff   : > { %v3924_v53 = vmax.f32 %v3922_v25, %v3923_v49  ;;  %v3930_v14 = vrot.slane %v3929_v62, 2  ;;  %v3944_v6 = vrot.slane %v3943_v29, 2  ;;  %v3865_v5 = vrot.slane %v3864_v12, 4 }
 0x200   : > { %v3938_v10 = vmax.f32 %v3936_v59, %v3937_v24  ;;  %v2304_v45 = vcombine.high %v2302_v30, %v2302_v30  ;;  %v3871_v58 = vsel %vm3275_vm5, %v2303_v33, -inf  ;;  %v3878_v8 = vsel %vm3275_vm5, %v2302_v30, -inf }
 0x201   : > { %v3925_v52 = vrot.slane %v3924_v53, 1  ;;  %v3931_v42 = vmax.f32 %v3929_v62, %v3930_v14  ;;  %v3945_v38 = vmax.f32 %v3943_v29, %v3944_v6  ;;  %v3866_v27 = vmax.f32 %v3864_v12, %v3865_v5 }
 0x202   : > { %v3939_v18 = vrot.slane %v3938_v10, 1  ;;  %v3872_v34 = vrot.slane %v3871_v58, 4  ;;  %v3879_v19 = vrot.slane %v3878_v8, 4  ;;  %v3885_v17 = vsel %vm3275_vm5, %v2304_v45, -inf }
 0x203   : > { %v3926_v20 = vmax.f32 %v3924_v53, %v3925_v52  ;;  %v3932_v25 = vrot.slane %v3931_v42, 1  ;;  %v3946_v49 = vrot.slane %v3945_v38, 1  ;;  %v3867_v46 = vrot.slane %v3866_v27, 2 }
 0x204   : > { %v3940_v28 = vmax.f32 %v3938_v10, %v3939_v18  ;;  %v3873_v59 = vmax.f32 %v3871_v58, %v3872_v34  ;;  %v3880_v24 = vmax.f32 %v3878_v8, %v3879_v19  ;;  %v3886_v13 = vrot.slane %v3885_v17, 4  ;;  %v5655_v18 = vld [vmem:[#allocation2 + $0x60] sm:$0xff]  ;;  %v5656_v34 = vld [vmem:[#allocation2 + $0x68] sm:$0xff] }
 0x205   : > { %v3933_v33 = vmax.f32 %v3931_v42, %v3932_v25  ;;  %v3947_v57 = vmax.f32 %v3945_v38, %v3946_v49  ;;  %v5435_v30 = vsel %vm5354_vm9, %v3926_v20, %v5434_v31  ;;  %v3868_v62 = vmax.f32 %v3866_v27, %v3867_v46 }
 0x206   : > { %v3874_v29 = vrot.slane %v3873_v59, 2  ;;  %v3881_v12 = vrot.slane %v3880_v24, 2  ;;  %v3887_v14 = vmax.f32 %v3885_v17, %v3886_v13  ;;  %v12608_v6 = vpack.i.bf16 %v14452_v1, %v14446_v26 }
 0x207   : > { %v5436_v53 = vsel %vm5356_vm10, %v3933_v33, %v5435_v30  ;;  %v3869_v5 = vrot.slane %v3868_v62, 1  ;;  %v1596_v13 = vmax.f32 %v14456_v47, 0.0  ;;  %v1228_v31 = vadd.f32 %v14402_v60, %v14207_v32 }
 0x208   : > { %v5437_v45 = vsel %vm5358_vm11, %v3940_v28, %v5436_v53  ;;  %v3875_v58 = vmax.f32 %v3873_v59, %v3874_v29  ;;  %v3882_v8 = vmax.f32 %v3880_v24, %v3881_v12  ;;  %v3888_v52 = vrot.slane %v3887_v14, 2  ;;  %12609 = vrot.lane.b32.xlu0 %v12608_v6, %s13474_s21  ;;  %12619 = vrot.lane.b32.xlu1 %v12608_v6, %s13473_s17  ;;  %v5657_v24 = vld [vmem:[#allocation2 + $0x70] sm:$0xff] }
 0x209   : > { %v5438_v20 = vsel %vm5360_vm12, %v3947_v57, %v5437_v45  ;;  %v3870_v46 = vmax.f32 %v3868_v62, %v3869_v5  ;;  %v1239_v27 = vadd.f32 %v14402_v60, %v14209_v40  ;;  %v1753_v19 = vsel %vm1674_vm3, %v1596_v13, -inf }
 0x20a   : > { %5622 = vst.msk [vmem:[#allocation2 + $0x98] sm:$0xff] %vm1674_vm3, %v5438_v20  ;;  %v3876_v42 = vrot.slane %v3875_v58, 1  ;;  %v3883_v38 = vrot.slane %v3882_v8, 1  ;;  %v3889_v28 = vmax.f32 %v3887_v14, %v3888_v52  ;;  %v1594_v17 = vmax.f32 %v1228_v31, 0.0 }
 0x20b   : > { %v5428_v57 = vsel %vm5354_vm9, %v3870_v46, %v5427_v36  ;;  %v1231_v47 = vadd.f32 %v14402_v60, %v14211_v2  ;;  %v1597_v59 = vmax.f32 %v1239_v27, 0.0  ;;  %v12623_v62 = vpack.i.bf16 %v5656_v34, %v5655_v18 }
 0x20c   : > { %v3877_v25 = vmax.f32 %v3875_v58, %v3876_v42  ;;  %v3884_v32 = vmax.f32 %v3882_v8, %v3883_v38  ;;  %v3890_v49 = vrot.slane %v3889_v28, 1  ;;  %v1747_v33 = vsel %vm1674_vm3, %v1594_v17, -inf }
 0x20d   : > { %v1595_v30 = vmax.f32 %v1231_v47, 0.0  ;;  %v1756_v36 = vsel %vm1674_vm3, %v1597_v59, -inf  ;;  %v5701_v12 = vrot.slane %v5655_v18, 7  ;;  %12624 = vrot.lane.b32.xlu0 %v12623_v62, %s13476_s24  ;;  %12629 = vrot.lane.b32.xlu1 %v12623_v62, %s13474_s21  ;;  %v5719_v2 = vrot.slane %v5656_v34, 7 }
 0x20e   : > { %v3891_v40 = vmax.f32 %v3889_v28, %v3890_v49  ;;  %v5429_v29 = vsel %vm5356_vm10, %v3877_v25, %v5428_v57  ;;  %v5737_v53 = vrot.slane %v5657_v24, 7  ;;  %v1252_v45 = vadd.f32 %v14402_v60, %v14213_v4 }
 0x20f   : > { %v5430_v14 = vsel %vm5358_vm11, %v3884_v32, %v5429_v29  ;;  %v1750_v6 = vsel %vm1674_vm3, %v1595_v30, -inf  ;;  %v1244_v58 = vadd.f32 %v14402_v60, %v14224_v48  ;;  %v1255_v8 = vadd.f32 %v14402_v60, %v14230_v37 }
 0x210   : > { %v5431_v5 = vsel %vm5360_vm12, %v3891_v40, %v5430_v14  ;;  %v14550_v52 = vsel %vm5753_vm13, %v5701_v12, %v5719_v2  ;;  %v14554_v20 = vsel %vm5753_vm13, %v5737_v53, %v5701_v12  ;;  %v1247_v46 = vadd.f32 %v14402_v60, %v14236_v54  ;;  %v14598_v2 = vpop.f32.mrb[72].mxu0 }
 0x211   : > { %5621 = vst.msk [vmem:[#allocation2 + $0x90] sm:$0xff] %vm1674_vm3, %v5431_v5  ;;  %18405 = vst [vmem:[#allocation17_spill] sm:$0xff] %v14550_v52  ;;  %v5794_v4 = vrot.slane %v5655_v18, 1  ;;  %v12633_v48 = vpack.i.bf16 %v14550_v52, %v14554_v20  ;;  %v1600_v13 = vmax.f32 %v1252_v45, 0.0  ;;  %v1598_v31 = vmax.f32 %v1244_v58, 0.0 }
 0x212   : > { %18406 = vst [vmem:[#allocation18_spill] sm:$0xff] %v14554_v20  ;;  %v1601_v37 = vmax.f32 %v1255_v8, 0.0  ;;  %v1599_v42 = vmax.f32 %v1247_v46, 0.0  ;;  %v5812_v38 = vrot.slane %v5656_v34, 1  ;;  %v5830_v28 = vrot.slane %v5657_v24, 1  ;;  %v14604_v8 = vpop.f32.mrb[73].mxu0 }
 0x213   : > { %12634 = vrot.lane.b32.xlu0 %v12633_v48, %s13473_s17  ;;  %12644 = vrot.lane.b32.xlu1 %v12633_v48, %s13476_s24  ;;  %v1754_v27 = vsel %vm1674_vm3, %v1600_v13, -inf  ;;  %v1748_v57 = vsel %vm1674_vm3, %v1598_v31, -inf  ;;  %v14566_v54 = vadd.f32 %v14402_v60, %v14338_v43  ;;  %v14570_v18 = vadd.f32 %v14402_v60, %v14340_v56  ;;  %v14608_v31 = vpop.f32.mrb[74].mxu0 }
 0x214   : > { %v1755_v17 = vmax.f32 %v1753_v19, %v1754_v27  ;;  %v1749_v47 = vmax.f32 %v1747_v33, %v1748_v57  ;;  %v1757_v34 = vsel %vm1674_vm3, %v1601_v37, -inf  ;;  %v1751_v25 = vsel %vm1674_vm3, %v1599_v42, -inf  ;;  %v14610_v27 = vpop.f32.mrb[75].mxu0 }
 0x215   : > { %v1758_v32 = vmax.f32 %v1756_v36, %v1757_v34  ;;  %v14574_v49 = vmax.f32 %v1750_v6, %v1751_v25  ;;  %v14578_v59 = vsel %vm5844_vm4, %v5812_v38, %v5830_v28  ;;  %v14582_v43 = vsel %vm5844_vm4, %v5794_v4, %v5812_v38  ;;  %v14616_v52 = vpop.f32.mrb[76].mxu0 }
 0x216   : > { %18407 = vst [vmem:[#allocation19_spill] sm:$0xff] %v14578_v59  ;;  %18408 = vst [vmem:[#allocation20_spill] sm:$0xff] %v14582_v43  ;;  %v2373_v24 = vcombine.high %v1755_v17, %v1755_v17  ;;  %v2380_v56 = vrot.slane %v1755_v17, %v13775_v41  ;;  %v2339_v19 = vcombine.high %v1749_v47, %v1749_v47 }
 0x217   : > { %v2346_v33 = vrot.slane %v1749_v47, %v13775_v41  ;;  %v2390_v30 = vcombine.high %v1758_v32, %v1758_v32  ;;  %v14587_v62 = vrot.slane %v1758_v32, %v13775_v41  ;;  %v14593_v29 = vrot.slane %v14574_v49, %v13775_v41 }
 0x218   : > { %v2387_v36 = vrot.slane %v2373_v24, %v13775_v41  ;;  %v2388_v12 = vcombine.high %v2380_v56, %v2380_v56  ;;  %v4004_v14 = vsel %vm3275_vm5, %v2380_v56, -inf  ;;  %v2353_v6 = vrot.slane %v2339_v19, %v13775_v41 }
 0x219   : > { %v4005_v53 = vrot.slane %v4004_v14, 4  ;;  %v2354_v5 = vcombine.high %v2346_v33, %v2346_v33  ;;  %v3948_v45 = vsel %vm3275_vm5, %v2346_v33, -inf  ;;  %v14602_v58 = vrot.slane %v2390_v30, %v13775_v41 }
 0x21a   : > { %v2389_v46 = vcombine.high %v2387_v36, %v2387_v36  ;;  %v4011_v4 = vsel %vm3275_vm5, %v2388_v12, -inf  ;;  %v4018_v48 = vsel %vm3275_vm5, %v2387_v36, -inf  ;;  %v2355_v13 = vcombine.high %v2353_v6, %v2353_v6 }
 0x21b   : > { %v4006_v37 = vmax.f32 %v4004_v14, %v4005_v53  ;;  %v4012_v42 = vrot.slane %v4011_v4, 4  ;;  %v4019_v38 = vrot.slane %v4018_v48, 4  ;;  %v3949_v28 = vrot.slane %v3948_v45, 4 }
 0x21c   : > { %v4025_v57 = vsel %vm3275_vm5, %v2389_v46, -inf  ;;  %v3955_v17 = vsel %vm3275_vm5, %v2354_v5, -inf  ;;  %v3962_v47 = vsel %vm3275_vm5, %v2353_v6, -inf  ;;  %v3969_v34 = vsel %vm3275_vm5, %v2355_v13, -inf }
 0x21d   : > { %v4007_v25 = vrot.slane %v4006_v37, 2  ;;  %v4013_v32 = vmax.f32 %v4011_v4, %v4012_v42  ;;  %v4020_v24 = vmax.f32 %v4018_v48, %v4019_v38  ;;  %v4026_v56 = vrot.slane %v4025_v57, 4 }
 0x21e   : > { %v3950_v19 = vmax.f32 %v3948_v45, %v3949_v28  ;;  %v3956_v33 = vrot.slane %v3955_v17, 4  ;;  %v3963_v30 = vrot.slane %v3962_v47, 4  ;;  %v3970_v36 = vrot.slane %v3969_v34, 4 }
 0x21f   : > { %v4008_v12 = vmax.f32 %v4006_v37, %v4007_v25  ;;  %v4014_v14 = vrot.slane %v4013_v32, 2  ;;  %v4021_v53 = vrot.slane %v4020_v24, 2  ;;  %v4027_v10 = vmax.f32 %v4025_v57, %v4026_v56 }
 0x220   : > { %v3951_v40 = vrot.slane %v3950_v19, 2  ;;  %v3957_v46 = vmax.f32 %v3955_v17, %v3956_v33  ;;  %v3964_v26 = vmax.f32 %v3962_v47, %v3963_v30  ;;  %v3971_v5 = vmax.f32 %v3969_v34, %v3970_v36 }
 0x221   : > { %v4009_v1 = vrot.slane %v4008_v12, 1  ;;  %v4015_v6 = vmax.f32 %v4013_v32, %v4014_v14  ;;  %v4022_v20 = vmax.f32 %v4020_v24, %v4021_v53  ;;  %v4028_v13 = vrot.slane %v4027_v10, 2  ;;  %v14620_v24 = vpop.f32.mrb[77].mxu0 }
 0x222   : > { %v3952_v4 = vmax.f32 %v3950_v19, %v3951_v40  ;;  %v3958_v48 = vrot.slane %v3957_v46, 2  ;;  %v3965_v45 = vrot.slane %v3964_v26, 2  ;;  %v3972_v42 = vrot.slane %v3971_v5, 2 }
 0x223   : > { %v4010_v38 = vmax.f32 %v4008_v12, %v4009_v1  ;;  %v4016_v28 = vrot.slane %v4015_v6, 1  ;;  %v4023_v37 = vrot.slane %v4022_v20, 1  ;;  %v4029_v25 = vmax.f32 %v4027_v10, %v4028_v13  ;;  %v14622_v1 = vpop.f32.mrb[78].mxu0 }
 0x224   : > { %v3953_v0 = vrot.slane %v3952_v4, 1  ;;  %v3959_v57 = vmax.f32 %v3957_v46, %v3958_v48  ;;  %v3966_v56 = vmax.f32 %v3964_v26, %v3965_v45  ;;  %v3973_v17 = vmax.f32 %v3971_v5, %v3972_v42 }
 0x225   : > { %v4017_v47 = vmax.f32 %v4015_v6, %v4016_v28  ;;  %v4024_v34 = vmax.f32 %v4022_v20, %v4023_v37  ;;  %v4030_v33 = vrot.slane %v4029_v25, 1  ;;  %v2405_v32 = vcombine.high %v14587_v62, %v14587_v62 }
 0x226   : > { %v3954_v40 = vmax.f32 %v3952_v4, %v3953_v0  ;;  %v3960_v19 = vrot.slane %v3959_v57, 1  ;;  %v3967_v30 = vrot.slane %v3966_v56, 1  ;;  %v3974_v36 = vrot.slane %v3973_v17, 1 }
 0x227   : > { %v4031_v12 = vmax.f32 %v4029_v25, %v4030_v33  ;;  %v5446_v10 = vsel %vm5348_vm6, %v4017_v47, %v4010_v38  ;;  %v2406_v26 = vcombine.high %v14602_v58, %v14602_v58  ;;  %v4032_v20 = vsel %vm3275_vm5, %v14587_v62, -inf }
 0x228   : > { %v5447_v14 = vsel %vm5350_vm7, %v4024_v34, %v5446_v10  ;;  %v3961_v53 = vmax.f32 %v3959_v57, %v3960_v19  ;;  %v3968_v46 = vmax.f32 %v3966_v56, %v3967_v30  ;;  %v3975_v5 = vmax.f32 %v3973_v17, %v3974_v36  ;;  %v14643_v34 = vpop.f32.mrb[79].mxu0 }
 0x229   : > { %v4033_v0 = vrot.slane %v4032_v20, 4  ;;  %v4039_v6 = vsel %vm3275_vm5, %v2405_v32, -inf  ;;  %v4046_v13 = vsel %vm3275_vm5, %v14602_v58, -inf  ;;  %v4053_v4 = vsel %vm3275_vm5, %v2406_v26, -inf  ;;  %18410 = vst [vmem:[#allocation21_spill] sm:$0xff] %v14643_v34 }
 0x22a   : > { %v5439_v48 = vsel %vm5348_vm6, %v3961_v53, %v3954_v40  ;;  %v4040_v45 = vrot.slane %v4039_v6, 4  ;;  %v4047_v42 = vrot.slane %v4046_v13, 4  ;;  %v4054_v38 = vrot.slane %v4053_v4, 4 }
 0x22b   : > { %v5440_v62 = vsel %vm5350_vm7, %v3968_v46, %v5439_v48  ;;  %v4034_v28 = vmax.f32 %v4032_v20, %v4033_v0  ;;  %v5448_v37 = vsel %vm5352_vm8, %v4031_v12, %v5447_v14  ;;  %v18409_v25 = vcombine.high %v14574_v49, %v14574_v49 }
 0x22c   : > { %v4041_v56 = vmax.f32 %v4039_v6, %v4040_v45  ;;  %v4048_v17 = vmax.f32 %v4046_v13, %v4047_v42  ;;  %v4055_v58 = vmax.f32 %v4053_v4, %v4054_v38  ;;  %v2371_v47 = vcombine.high %v14593_v29, %v14593_v29 }
 0x22d   : > { %v2370_v57 = vrot.slane %v18409_v25, %v13775_v41  ;;  %v4035_v33 = vrot.slane %v4034_v28, 2  ;;  %v3976_v40 = vsel %vm3275_vm5, %v14593_v29, -inf }
 0x22e   : > { %v4042_v30 = vrot.slane %v4041_v56, 2  ;;  %v4049_v36 = vrot.slane %v4048_v17, 2  ;;  %v4056_v12 = vrot.slane %v4055_v58, 2  ;;  %v3977_v49 = vrot.slane %v3976_v40, 4 }
 0x22f   : > { %v2372_v32 = vcombine.high %v2370_v57, %v2370_v57  ;;  %v3990_v19 = vsel %vm3275_vm5, %v2370_v57, -inf  ;;  %v4036_v10 = vmax.f32 %v4034_v28, %v4035_v33  ;;  %v3983_v26 = vsel %vm3275_vm5, %v2371_v47, -inf }
 0x230   : > { %v3991_v20 = vrot.slane %v3990_v19, 4  ;;  %v4043_v53 = vmax.f32 %v4041_v56, %v4042_v30  ;;  %v4050_v46 = vmax.f32 %v4048_v17, %v4049_v36  ;;  %v4057_v0 = vmax.f32 %v4055_v58, %v4056_v12 }
 0x231   : > { %v3997_v14 = vsel %vm3275_vm5, %v2372_v32, -inf  ;;  %v3978_v6 = vmax.f32 %v3976_v40, %v3977_v49  ;;  %v4037_v13 = vrot.slane %v4036_v10, 1  ;;  %v3984_v4 = vrot.slane %v3983_v26, 4 }
 0x232   : > { %v3992_v48 = vmax.f32 %v3990_v19, %v3991_v20  ;;  %v3998_v29 = vrot.slane %v3997_v14, 4  ;;  %v4044_v45 = vrot.slane %v4043_v53, 1  ;;  %v4051_v42 = vrot.slane %v4050_v46, 1 }
 0x233   : > { %v4058_v38 = vrot.slane %v4057_v0, 1  ;;  %v3979_v25 = vrot.slane %v3978_v6, 2  ;;  %v4038_v57 = vmax.f32 %v4036_v10, %v4037_v13  ;;  %v3985_v63 = vmax.f32 %v3983_v26, %v3984_v4  ;;  %v14669_v13 = vld [vmem:[#allocation2 + $0x88] sm:$0xff] }
 0x234   : > { %v3993_v28 = vrot.slane %v3992_v48, 2  ;;  %v3999_v33 = vmax.f32 %v3997_v14, %v3998_v29  ;;  %v4045_v47 = vmax.f32 %v4043_v53, %v4044_v45  ;;  %v4052_v44 = vmax.f32 %v4050_v46, %v4051_v42  ;;  %v5658_v46 = vld [vmem:[#allocation2 + $0x78] sm:$0xff] }
 0x235   : > { %v4059_v34 = vmax.f32 %v4057_v0, %v4058_v38  ;;  %v3980_v32 = vmax.f32 %v3978_v6, %v3979_v25  ;;  %v5449_v56 = vsel %vm5354_vm9, %v4038_v57, %v5448_v37  ;;  %v3986_v17 = vrot.slane %v3985_v63, 2  ;;  %v14659_v0 = vld [vmem:[#allocation2 + $0x80] sm:$0xff] }
 0x236   : > { %v3994_v58 = vmax.f32 %v3992_v48, %v3993_v28  ;;  %v4000_v40 = vrot.slane %v3999_v33, 2  ;;  %v5450_v19 = vsel %vm5356_vm10, %v4045_v47, %v5449_v56  ;;  %v5441_v36 = vsel %vm5352_vm8, %v3975_v5, %v5440_v62 }
 0x237   : > { %v3981_v30 = vrot.slane %v3980_v32, 1  ;;  %v12638_v12 = vpack.i.bf16 %v14578_v59, %v14582_v43  ;;  %v5451_v49 = vsel %vm5358_vm11, %v4052_v44, %v5450_v19  ;;  %v3987_v10 = vmax.f32 %v3985_v63, %v3986_v17 }
 0x238   : > { %v3995_v26 = vrot.slane %v3994_v58, 1  ;;  %v4001_v20 = vmax.f32 %v3999_v33, %v4000_v40  ;;  %v5452_v14 = vsel %vm5360_vm12, %v4059_v34, %v5451_v49  ;;  %v1604_v37 = vmax.f32 %v14566_v54, 0.0 }
 0x239   : > { %v3982_v53 = vmax.f32 %v3980_v32, %v3981_v30  ;;  %12639 = vrot.lane.b32.xlu0 %v12638_v12, %s13474_s21  ;;  %5624 = vst.msk [vmem:[#allocation2 + $0xb0] sm:$0xff] %vm1674_vm3, %v5452_v14  ;;  %v3988_v5 = vrot.slane %v3987_v10, 1  ;;  %v1602_v6 = vmax.f32 %v14570_v18, 0.0  ;;  %12649 = vrot.lane.b32.xlu1 %v12638_v12, %s13473_s17  ;;  %v1271_v34 = vadd.f32 %v14402_v60, %v14342_v55 }
 0x23a   : > { %v4002_v62 = vrot.slane %v4001_v20, 1  ;;  %v3996_v44 = vmax.f32 %v3994_v58, %v3995_v26  ;;  %v1263_v54 = vadd.f32 %v14402_v60, %v14344_v22  ;;  %v1765_v29 = vsel %vm1674_vm3, %v1604_v37, -inf }
 0x23b   : > { %v5442_v63 = vsel %vm5354_vm9, %v3982_v53, %v5441_v36  ;;  %v3989_v4 = vmax.f32 %v3987_v10, %v3988_v5  ;;  %v12653_v45 = vpack.i.bf16 %v14659_v0, %v5658_v46  ;;  %v1759_v18 = vsel %vm1674_vm3, %v1602_v6, -inf }
 0x23c   : > { %v4003_v48 = vmax.f32 %v4001_v20, %v4002_v62  ;;  %v1605_v42 = vmax.f32 %v1271_v34, 0.0  ;;  %v5702_v38 = vrot.slane %v5658_v46, 7  ;;  %v5720_v55 = vrot.slane %v14659_v0, 7 }
 0x23d   : > { %v5443_v25 = vsel %vm5356_vm10, %v3989_v4, %v5442_v63  ;;  %12654 = vrot.lane.b32.xlu0 %v12653_v45, %s13476_s24  ;;  %v5738_v22 = vrot.slane %v14669_v13, 7  ;;  %v1284_v57 = vadd.f32 %v14402_v60, %v14346_v21  ;;  %v1603_v47 = vmax.f32 %v1263_v54, 0.0  ;;  %12659 = vrot.lane.b32.xlu1 %v12653_v45, %s13474_s21  ;;  %v13089_v4 = vld [vmem:[%s18333_s3 + $0x40] sm:$0xff]  }
 0x23e   : > { %v5444_v28 = vsel %vm5358_vm11, %v3996_v44, %v5443_v25  ;;  %v1768_v33 = vsel %vm1674_vm3, %v1605_v42, -inf  ;;  %v1276_v32 = vadd.f32 %v14402_v60, %v14365_v35  ;;  %v14688_v17 = vsel %vm5753_vm13, %v5702_v38, %v5720_v55  ;;  %11808 = vmatprep.subr.bf16.mxu1 %v13089_v4 }
 0x23f   : > { %v5445_v56 = vsel %vm5360_vm12, %v4003_v48, %v5444_v28  ;;  %18411 = vst [vmem:[#allocation22_spill] sm:$0xff] %v14688_v17  ;;  %v14692_v58 = vsel %vm5753_vm13, %v5738_v22, %v5702_v38  ;;  %v1608_v21 = vmax.f32 %v1284_v57, 0.0  ;;  %v1287_v35 = vadd.f32 %v14402_v60, %v14377_v50 }
 0x240   : > { %18412 = vst [vmem:[#allocation23_spill] sm:$0xff] %v14692_v58  ;;  %5623 = vst.msk [vmem:[#allocation2 + $0xa8] sm:$0xff] %vm1674_vm3, %v5445_v56  ;;  %v12663_v40 = vpack.i.bf16 %v14688_v17, %v14692_v58  ;;  %v1606_v19 = vmax.f32 %v1276_v32, 0.0  ;;  %v1279_v36 = vadd.f32 %v14402_v60, %v14380_v39  ;;  %v5795_v12 = vrot.slane %v5658_v46, 1 }
 0x241   : > { %v1766_v30 = vsel %vm1674_vm3, %v1608_v21, -inf  ;;  %v5813_v49 = vrot.slane %v14659_v0, 1  ;;  %v1762_v10 = vsel %vm1674_vm3, %v1603_v47, -inf  ;;  %v1609_v14 = vmax.f32 %v1287_v35, 0.0 }
 0x242   : > { %12664 = vrot.lane.b32.xlu0 %v12663_v40, %s13473_s17  ;;  %12674 = vrot.lane.b32.xlu1 %v12663_v40, %s13476_s24  ;;  %v1767_v26 = vmax.f32 %v1765_v29, %v1766_v30  ;;  %v1760_v20 = vsel %vm1674_vm3, %v1606_v19, -inf  ;;  %v1607_v50 = vmax.f32 %v1279_v36, 0.0  ;;  %v5831_v37 = vrot.slane %v14669_v13, 1 }
 0x243   : > { %v1761_v53 = vmax.f32 %v1759_v18, %v1760_v20  ;;  %v14712_v39 = vsel %vm5844_vm4, %v5795_v12, %v5813_v49  ;;  %v1769_v62 = vsel %vm1674_vm3, %v1609_v14, -inf  ;;  %v14718_v6 = vadd.f32 %v14402_v60, %v14473_v23  ;;  %v14731_v60 = vpop.f32.mrb[80].mxu0  ;;  %v13090_v23 = vld [vmem:[%s18333_s3] sm:$0xff]  }
 0x244   : > { %18413 = vst [vmem:[#allocation24_spill] sm:$0xff] %v14712_v39  ;;  %v2441_v46 = vcombine.high %v1767_v26, %v1767_v26  ;;  %v2448_v5 = vrot.slane %v1767_v26, %v13775_v41  ;;  %v14721_v34 = vmax.f32 %v1768_v33, %v1769_v62  ;;  %v1763_v54 = vsel %vm1674_vm3, %v1607_v50, -inf  ;;  %v14738_v22 = vpop.f32.mrb[81].mxu0  ;;  %11809 = vmatpush3.bf16.msra.mxu1 %v13090_v23  ;;  %v13091_v50 = vld [vmem:[%s18333_s3 + $0x48] sm:$0xff]  }
 0x245   : > { %v2407_v44 = vcombine.high %v1761_v53, %v1761_v53  ;;  %v2414_v63 = vrot.slane %v1761_v53, %v13775_v41  ;;  %v14729_v18 = vmax.f32 %v1762_v10, %v1763_v54  ;;  %v14742_v32 = vpop.f32.mrb[82].mxu0  ;;  %11810 = vmatprep.subr.bf16.mxu1 %v13091_v50 }
 0x246   : > { %v2455_v48 = vrot.slane %v2441_v46, %v13775_v41  ;;  %v2456_v29 = vcombine.high %v2448_v5, %v2448_v5  ;;  %v4116_v45 = vsel %vm3275_vm5, %v2448_v5, -inf  ;;  %v14744_v35 = vpop.f32.mrb[83].mxu0  ;;  %v2458_v13 = vcombine.high %v14721_v34, %v14721_v34 }
 0x247   : > { %v4117_v42 = vrot.slane %v4116_v45, 4  ;;  %v2421_v38 = vrot.slane %v2407_v44, %v13775_v41  ;;  %v2422_v25 = vcombine.high %v2414_v63, %v2414_v63  ;;  %v4060_v55 = vsel %vm3275_vm5, %v2414_v63, -inf  ;;  %v13092_v63 = vld [vmem:[%s18333_s3 + $0x8] sm:$0xff]  }
 0x248   : > { %v2457_v57 = vcombine.high %v2455_v48, %v2455_v48  ;;  %v4123_v28 = vsel %vm3275_vm5, %v2456_v29, -inf  ;;  %v4130_v33 = vsel %vm3275_vm5, %v2455_v48, -inf  ;;  %v4061_v47 = vrot.slane %v4060_v55, 4  ;;  %11811 = vmatpush3.bf16.msra.mxu1 %v13092_v63 }
 0x249   : > { %v4118_v56 = vmax.f32 %v4116_v45, %v4117_v42  ;;  %v4124_v21 = vrot.slane %v4123_v28, 4  ;;  %v4131_v40 = vrot.slane %v4130_v33, 4  ;;  %v2423_v19 = vcombine.high %v2421_v38, %v2421_v38 }
 0x24a   : > { %v4137_v30 = vsel %vm3275_vm5, %v2457_v57, -inf  ;;  %v4062_v36 = vmax.f32 %v4060_v55, %v4061_v47  ;;  %v4067_v12 = vsel %vm3275_vm5, %v2422_v25, -inf  ;;  %v4074_v10 = vsel %vm3275_vm5, %v2421_v38, -inf }
 0x24b   : > { %v4119_v26 = vrot.slane %v4118_v56, 2  ;;  %v4125_v20 = vmax.f32 %v4123_v28, %v4124_v21  ;;  %v4132_v14 = vmax.f32 %v4130_v33, %v4131_v40  ;;  %v4138_v53 = vrot.slane %v4137_v30, 4 }
 0x24c   : > { %v4063_v46 = vrot.slane %v4062_v36, 2  ;;  %v4068_v5 = vrot.slane %v4067_v12, 4  ;;  %v4075_v62 = vrot.slane %v4074_v10, 4  ;;  %v4081_v44 = vsel %vm3275_vm5, %v2423_v19, -inf }
 0x24d   : > { %v4120_v54 = vmax.f32 %v4118_v56, %v4119_v26  ;;  %v4126_v4 = vrot.slane %v4125_v20, 2  ;;  %v4133_v48 = vrot.slane %v4132_v14, 2  ;;  %v4139_v29 = vmax.f32 %v4137_v30, %v4138_v53 }
 0x24e   : > { %v4064_v45 = vmax.f32 %v4062_v36, %v4063_v46  ;;  %v4069_v23 = vmax.f32 %v4067_v12, %v4068_v5  ;;  %v4076_v42 = vmax.f32 %v4074_v10, %v4075_v62  ;;  %v4082_v38 = vrot.slane %v4081_v44, 4 }
 0x24f   : > { %v4121_v25 = vrot.slane %v4120_v54, 1  ;;  %v4127_v55 = vmax.f32 %v4125_v20, %v4126_v4  ;;  %v4134_v57 = vmax.f32 %v4132_v14, %v4133_v48  ;;  %v4140_v28 = vrot.slane %v4139_v29, 2 }
 0x250   : > { %v4070_v33 = vrot.slane %v4069_v23, 2  ;;  %v4077_v47 = vrot.slane %v4076_v42, 2  ;;  %v4083_v21 = vmax.f32 %v4081_v44, %v4082_v38  ;;  %v14762_v56 = vsel %vm5844_vm4, %v5813_v49, %v5831_v37  ;;  %v14768_v37 = vpop.f32.mrb[84].mxu0 }
 0x251   : > { %18414 = vst [vmem:[#allocation25_spill] sm:$0xff] %v14762_v56  ;;  %v4128_v40 = vrot.slane %v4127_v55, 1  ;;  %v4135_v19 = vrot.slane %v4134_v57, 1  ;;  %v4141_v30 = vmax.f32 %v4139_v29, %v4140_v28  ;;  %v4065_v36 = vrot.slane %v4064_v45, 1 }
 0x252   : > { %v4122_v12 = vmax.f32 %v4120_v54, %v4121_v25  ;;  %v4071_v10 = vmax.f32 %v4069_v23, %v4070_v33  ;;  %v4078_v26 = vmax.f32 %v4076_v42, %v4077_v47  ;;  %v4084_v20 = vrot.slane %v4083_v21, 2  ;;  %v13093_v42 = vld [vmem:[%s18333_s3 + $0x50] sm:$0xff]   ;;  %v14781_v47 = vpop.f32.mrb[85].mxu0 }
 0x253   : > { %v4129_v14 = vmax.f32 %v4127_v55, %v4128_v40  ;;  %v4136_v53 = vmax.f32 %v4134_v57, %v4135_v19  ;;  %v4142_v50 = vrot.slane %v4141_v30, 1  ;;  %v2465_v49 = vrot.slane %v14721_v34, %v13775_v41  ;;  %11812 = vmatprep.subr.bf16.mxu1 %v13093_v42 }
 0x254   : > { %v4072_v46 = vrot.slane %v4071_v10, 1  ;;  %v4079_v0 = vrot.slane %v4078_v26, 1  ;;  %v4085_v5 = vmax.f32 %v4083_v21, %v4084_v20  ;;  %v4066_v63 = vmax.f32 %v4064_v45, %v4065_v36  ;;  %v14790_v36 = vpop.f32.mrb[86].mxu0 }
 0x255   : > { %v4143_v62 = vmax.f32 %v4141_v30, %v4142_v50  ;;  %v5460_v44 = vsel %vm5348_vm6, %v4129_v14, %v4122_v12  ;;  %v2472_v54 = vrot.slane %v2458_v13, %v13775_v41  ;;  %v2424_v23 = vcombine.high %v14729_v18, %v14729_v18 }
 0x256   : > { %v4073_v4 = vmax.f32 %v4071_v10, %v4072_v46  ;;  %v4080_v48 = vmax.f32 %v4078_v26, %v4079_v0  ;;  %v4086_v29 = vrot.slane %v4085_v5, 1  ;;  %v2473_v38 = vcombine.high %v2465_v49, %v2465_v49 }
 0x257   : > { %v2474_v34 = vcombine.high %v2472_v54, %v2472_v54  ;;  %v4144_v25 = vsel %vm3275_vm5, %v2465_v49, -inf  ;;  %v4158_v55 = vsel %vm3275_vm5, %v2472_v54, -inf  ;;  %v5461_v45 = vsel %vm5350_vm7, %v4136_v53, %v5460_v44 }
 0x258   : > { %v5453_v57 = vsel %vm5348_vm6, %v4073_v4, %v4066_v63  ;;  %v4145_v28 = vrot.slane %v4144_v25, 4  ;;  %v4159_v33 = vrot.slane %v4158_v55, 4  ;;  %v14783_v21 = vmax.f32 %v4085_v5, %v4086_v29 }
 0x259   : > { %v14786_v40 = vsel %vm5350_vm7, %v4080_v48, %v5453_v57  ;;  %v4151_v19 = vsel %vm3275_vm5, %v2473_v38, -inf  ;;  %v4165_v30 = vsel %vm3275_vm5, %v2474_v34, -inf  ;;  %v5462_v14 = vsel %vm5352_vm8, %v4143_v62, %v5461_v45 }
 0x25a   : > { %v4146_v12 = vmax.f32 %v4144_v25, %v4145_v28  ;;  %v4152_v10 = vrot.slane %v4151_v19, 4  ;;  %v4160_v26 = vmax.f32 %v4158_v55, %v4159_v33  ;;  %v4166_v20 = vrot.slane %v4165_v30, 4  ;;  %v14806_v33 = vpop.f32.mrb[87].mxu0 }
 0x25b   : > { %v2431_v53 = vrot.slane %v14729_v18, %v13775_v41  ;;  %v2438_v50 = vrot.slane %v2424_v23, %v13775_v41  ;;  %v12668_v13 = vpack.i.bf16 %v14762_v56, %v14712_v39  ;;  %v13094_v18 = vld [vmem:[%s18333_s3 + $0x10] sm:$0xff]  }
 0x25c   : > { %v4147_v46 = vrot.slane %v4146_v12, 2  ;;  %v4153_v0 = vmax.f32 %v4151_v19, %v4152_v10  ;;  %v4161_v5 = vrot.slane %v4160_v26, 2  ;;  %v4167_v49 = vmax.f32 %v4165_v30, %v4166_v20  ;;  %11813 = vmatpush3.bf16.msra.mxu1 %v13094_v18 }
 0x25d   : > { %v2439_v44 = vcombine.high %v2431_v53, %v2431_v53  ;;  %v2440_v63 = vcombine.high %v2438_v50, %v2438_v50  ;;  %v4088_v54 = vsel %vm3275_vm5, %v2431_v53, -inf  ;;  %v4102_v4 = vsel %vm3275_vm5, %v2438_v50, -inf  ;;  %12669 = vrot.lane.b32.xlu0 %v12668_v13, %s13474_s21  ;;  %12679 = vrot.lane.b32.xlu1 %v12668_v13, %s13473_s17  ;;  %v14822_v13 = vld [vmem:[#allocation2 + $0x98] sm:$0xff] }
 0x25e   : > { %v4148_v62 = vmax.f32 %v4146_v12, %v4147_v46  ;;  %v4154_v48 = vrot.slane %v4153_v0, 2  ;;  %v4162_v29 = vmax.f32 %v4160_v26, %v4161_v5  ;;  %v4168_v23 = vrot.slane %v4167_v49, 2 }
 0x25f   : > { %v4089_v42 = vrot.slane %v4088_v54, 4  ;;  %v4095_v38 = vsel %vm3275_vm5, %v2439_v44, -inf  ;;  %v4103_v34 = vrot.slane %v4102_v4, 4  ;;  %v4109_v25 = vsel %vm3275_vm5, %v2440_v63, -inf }
 0x260   : > { %v4149_v55 = vrot.slane %v4148_v62, 1  ;;  %v4155_v45 = vmax.f32 %v4153_v0, %v4154_v48  ;;  %v4163_v57 = vrot.slane %v4162_v29, 1  ;;  %v4169_v28 = vmax.f32 %v4167_v49, %v4168_v23 }
 0x261   : > { %v4090_v19 = vmax.f32 %v4088_v54, %v4089_v42  ;;  %v4096_v30 = vrot.slane %v4095_v38, 4  ;;  %v4104_v10 = vmax.f32 %v4102_v4, %v4103_v34  ;;  %v4110_v12 = vrot.slane %v4109_v25, 4 }
 0x262   : > { %v4150_v20 = vmax.f32 %v4148_v62, %v4149_v55  ;;  %v4156_v26 = vrot.slane %v4155_v45, 1  ;;  %v4164_v53 = vmax.f32 %v4162_v29, %v4163_v57  ;;  %v4170_v50 = vrot.slane %v4169_v28, 1  ;;  %v14815_v62 = vld [vmem:[%s18332_s2] ss:$0 sm:$0xff]  ;;  %v5661_v55 = vld [vmem:[#allocation2 + $0x90] sm:$0xff] }
 0x263   : > { %v4091_v46 = vrot.slane %v4090_v19, 2  ;;  %v4097_v5 = vmax.f32 %v4095_v38, %v4096_v30  ;;  %v4105_v44 = vrot.slane %v4104_v10, 2  ;;  %v4111_v56 = vmax.f32 %v4109_v25, %v4110_v12 }
 0x264   : > { %v4157_v63 = vmax.f32 %v4155_v45, %v4156_v26  ;;  %v4171_v18 = vmax.f32 %v4169_v28, %v4170_v50  ;;  %v5463_v0 = vsel %vm5354_vm9, %v4150_v20, %v5462_v14  ;;  %v1612_v4 = vmax.f32 %v14718_v6, 0.0  ;;  %v14833_v26 = vld [vmem:[#allocation2 + $0xa0] sm:$0xff] }
 0x265   : > { %v4092_v48 = vmax.f32 %v4090_v19, %v4091_v46  ;;  %v4098_v49 = vrot.slane %v4097_v5, 2  ;;  %v4106_v23 = vmax.f32 %v4104_v10, %v4105_v44  ;;  %v4112_v39 = vrot.slane %v4111_v56, 2 }
 0x266   : > { %v5464_v54 = vsel %vm5356_vm10, %v4157_v63, %v5463_v0  ;;  %v1292_v29 = vadd.f32 %v14815_v62, %v14475_v15  ;;  %v1303_v14 = vadd.f32 %v14815_v62, %v14477_v51  ;;  %v5455_v57 = vsel %vm5352_vm8, %v14783_v21, %v14786_v40 }
 0x267   : > { %v5465_v42 = vsel %vm5358_vm11, %v4164_v53, %v5464_v54  ;;  %v4093_v38 = vrot.slane %v4092_v48, 1  ;;  %v4099_v34 = vmax.f32 %v4097_v5, %v4098_v49  ;;  %v4107_v25 = vrot.slane %v4106_v23, 1 }
 0x268   : > { %v5466_v6 = vsel %vm5360_vm12, %v4171_v18, %v5465_v42  ;;  %v4113_v45 = vmax.f32 %v4111_v56, %v4112_v39  ;;  %v1610_v28 = vmax.f32 %v1292_v29, 0.0  ;;  %v1777_v19 = vsel %vm1674_vm3, %v1612_v4, -inf }
 0x269   : > { %5626 = vst.msk [vmem:[#allocation2 + $0xc8] sm:$0xff] %vm1674_vm3, %v5466_v6  ;;  %v4094_v15 = vmax.f32 %v4092_v48, %v4093_v38  ;;  %v4100_v51 = vrot.slane %v4099_v34, 1  ;;  %v4108_v30 = vmax.f32 %v4106_v23, %v4107_v25  ;;  %v1295_v12 = vadd.f32 %v14815_v62, %v14481_v9 }
 0x26a   : > { %v4114_v10 = vrot.slane %v4113_v45, 1  ;;  %v12683_v20 = vpack.i.bf16 %v14822_v13, %v5661_v55  ;;  %v1613_v21 = vmax.f32 %v1303_v14, 0.0  ;;  %v1771_v53 = vsel %vm1674_vm3, %v1610_v28, -inf }
 0x26b   : > { %v4101_v39 = vmax.f32 %v4099_v34, %v4100_v51  ;;  %v5456_v56 = vsel %vm5354_vm9, %v4094_v15, %v5455_v57  ;;  %v5703_v50 = vrot.slane %v5661_v55, 7  ;;  %v5721_v46 = vrot.slane %v14822_v13, 7 }
 0x26c   : > { %v4115_v40 = vmax.f32 %v4113_v45, %v4114_v10  ;;  %12684 = vrot.lane.b32.xlu0 %v12683_v20, %s13476_s24  ;;  %12689 = vrot.lane.b32.xlu1 %v12683_v20, %s13474_s21  ;;  %v5739_v9 = vrot.slane %v14833_v26, 7  ;;  %v1316_v44 = vadd.f32 %v14815_v62, %v14483_v11  ;;  %v1308_v63 = vadd.f32 %v14815_v62, %v14495_v16 }
 0x26d   : > { %v5457_v5 = vsel %vm5356_vm10, %v4101_v39, %v5456_v56  ;;  %v1611_v0 = vmax.f32 %v1295_v12, 0.0  ;;  %v14849_v48 = vsel %vm5753_vm13, %v5703_v50, %v5721_v46  ;;  %v1319_v49 = vadd.f32 %v14815_v62, %v14498_v3 }
 0x26e   : > { %v5458_v18 = vsel %vm5358_vm11, %v4108_v30, %v5457_v5  ;;  %18415 = vst [vmem:[#allocation26_spill] sm:$0xff] %v14849_v48  ;;  %v14856_v54 = vsel %vm5753_vm13, %v5739_v9, %v5703_v50  ;;  %v1616_v11 = vmax.f32 %v1316_v44, 0.0  ;;  %v1614_v4 = vmax.f32 %v1308_v63, 0.0 }
 0x26f   : > { %v5459_v23 = vsel %vm5360_vm12, %v4115_v40, %v5458_v18  ;;  %18416 = vst [vmem:[#allocation27_spill] sm:$0xff] %v14856_v54  ;;  %v12693_v16 = vpack.i.bf16 %v14849_v48, %v14856_v54  ;;  %v1617_v29 = vmax.f32 %v1319_v49, 0.0  ;;  %v14863_v14 = vadd.f32 %v14815_v62, %v14508_v7 }
 0x270   : > { %5625 = vst.msk [vmem:[#allocation2 + $0xc0] sm:$0xff] %vm1674_vm3, %v5459_v23  ;;  %v1778_v3 = vsel %vm1674_vm3, %v1616_v11, -inf  ;;  %v1772_v42 = vsel %vm1674_vm3, %v1614_v4, -inf  ;;  %v5796_v38 = vrot.slane %v5661_v55, 1  ;;  %v18356_v34 = vrot.slane %v14822_v13, 1 }
 0x271   : > { %v1780_v25 = vsel %vm1674_vm3, %v1613_v21, -inf  ;;  %12694 = vrot.lane.b32.xlu0 %v12693_v16, %s13473_s17  ;;  %12704 = vrot.lane.b32.xlu1 %v12693_v16, %s13476_s24  ;;  %v1779_v6 = vmax.f32 %v1777_v19, %v1778_v3  ;;  %v1773_v45 = vmax.f32 %v1771_v53, %v1772_v42  ;;  %v1781_v57 = vsel %vm1674_vm3, %v1617_v29, -inf }
 0x272   : > { %v14873_v7 = vsel %vm1674_vm3, %v1611_v0, -inf  ;;  %v1782_v28 = vmax.f32 %v1780_v25, %v1781_v57  ;;  %v1615_v15 = vmax.f32 %v14863_v14, 0.0  ;;  %v5832_v19 = vrot.slane %v14833_v26, 1 }
 0x273   : > { %v2509_v51 = vcombine.high %v1779_v6, %v1779_v6  ;;  %v2516_v55 = vrot.slane %v1779_v6, %v13775_v41  ;;  %v2475_v30 = vcombine.high %v1773_v45, %v1773_v45  ;;  %v2482_v10 = vrot.slane %v1773_v45, %v13775_v41 }
 0x274   : > { %v2526_v12 = vcombine.high %v1782_v28, %v1782_v28  ;;  %v14879_v20 = vrot.slane %v1782_v28, %v13775_v41  ;;  %v14886_v39 = vsel %vm5844_vm4, %v5796_v38, %v18356_v34 }
 0x275   : > { %18417 = vst [vmem:[#allocation28_spill] sm:$0xff] %v14886_v39  ;;  %v2523_v56 = vrot.slane %v2509_v51, %v13775_v41  ;;  %v2524_v21 = vcombine.high %v2516_v55, %v2516_v55  ;;  %v4228_v40 = vsel %vm3275_vm5, %v2516_v55, -inf  ;;  %v2489_v53 = vrot.slane %v2475_v30, %v13775_v41 }
 0x276   : > { %v4229_v50 = vrot.slane %v4228_v40, 4  ;;  %v2490_v46 = vcombine.high %v2482_v10, %v2482_v10  ;;  %v4172_v5 = vsel %vm3275_vm5, %v2482_v10, -inf  ;;  %v14893_v9 = vrot.slane %v2526_v12, %v13775_v41 }
 0x277   : > { %v2525_v44 = vcombine.high %v2523_v56, %v2523_v56  ;;  %v4235_v63 = vsel %vm3275_vm5, %v2524_v21, -inf  ;;  %v4242_v18 = vsel %vm3275_vm5, %v2523_v56, -inf  ;;  %v2491_v0 = vcombine.high %v2489_v53, %v2489_v53 }
 0x278   : > { %v4230_v49 = vmax.f32 %v4228_v40, %v4229_v50  ;;  %v4236_v23 = vrot.slane %v4235_v63, 4  ;;  %v4243_v11 = vrot.slane %v4242_v18, 4  ;;  %v4173_v4 = vrot.slane %v4172_v5, 4 }
 0x279   : > { %v4249_v16 = vsel %vm3275_vm5, %v2525_v44, -inf  ;;  %v4179_v29 = vsel %vm3275_vm5, %v2490_v46, -inf  ;;  %v4186_v3 = vsel %vm3275_vm5, %v2489_v53, -inf  ;;  %v4193_v42 = vsel %vm3275_vm5, %v2491_v0, -inf }
 0x27a   : > { %v4231_v38 = vrot.slane %v4230_v49, 2  ;;  %v4237_v25 = vmax.f32 %v4235_v63, %v4236_v23  ;;  %v4244_v6 = vmax.f32 %v4242_v18, %v4243_v11  ;;  %v4250_v45 = vrot.slane %v4249_v16, 4  ;;  %v13095_v63 = vld [vmem:[%s18333_s3 + $0x58] sm:$0xff]  }
 0x27b   : > { %v4174_v57 = vmax.f32 %v4172_v5, %v4173_v4  ;;  %v4180_v28 = vrot.slane %v4179_v29, 4  ;;  %v4187_v51 = vrot.slane %v4186_v3, 4  ;;  %v4194_v55 = vrot.slane %v4193_v42, 4  ;;  %11814 = vmatprep.subr.bf16.mxu1 %v13095_v63 }
 0x27c   : > { %v4232_v30 = vmax.f32 %v4230_v49, %v4231_v38  ;;  %v4238_v10 = vrot.slane %v4237_v25, 2  ;;  %v4245_v12 = vrot.slane %v4244_v6, 2  ;;  %v4251_v56 = vmax.f32 %v4249_v16, %v4250_v45  ;;  %v13096_v49 = vld [vmem:[%s18333_s3 + $0x18] sm:$0xff]   ;;  %v14907_v45 = vpop.f32.mrb[88].mxu0 }
 0x27d   : > { %v4175_v21 = vrot.slane %v4174_v57, 2  ;;  %v4181_v40 = vmax.f32 %v4179_v29, %v4180_v28  ;;  %v4188_v50 = vmax.f32 %v4186_v3, %v4187_v51  ;;  %v4195_v46 = vmax.f32 %v4193_v42, %v4194_v55  ;;  %11815 = vmatpush3.bf16.msra.mxu1 %v13096_v49  ;;  %v13098_v28 = vld [vmem:[%s18333_s3 + $0x20] sm:$0xff]  }
 0x27e   : > { %v4233_v44 = vrot.slane %v4232_v30, 1  ;;  %v4239_v53 = vmax.f32 %v4237_v25, %v4238_v10  ;;  %v4246_v34 = vmax.f32 %v4244_v6, %v4245_v12  ;;  %v4252_v0 = vrot.slane %v4251_v56, 2  ;;  %v14917_v12 = vpop.f32.mrb[89].mxu0 }
 0x27f   : > { %v4176_v5 = vmax.f32 %v4174_v57, %v4175_v21  ;;  %v4182_v18 = vrot.slane %v4181_v40, 2  ;;  %v4189_v23 = vrot.slane %v4188_v50, 2  ;;  %v4196_v11 = vrot.slane %v4195_v46, 2  ;;  %v13097_v57 = vld [vmem:[%s18333_s3 + $0x60] sm:$0xff]  }
 0x280   : > { %v4234_v4 = vmax.f32 %v4232_v30, %v4233_v44  ;;  %v4240_v16 = vrot.slane %v4239_v53, 1  ;;  %v4247_v29 = vrot.slane %v4246_v34, 1  ;;  %v4253_v3 = vmax.f32 %v4251_v56, %v4252_v0  ;;  %v13099_v56 = vld [vmem:[%s18333_s3 + $0x68] sm:$0xff]   ;;  %11816 = vmatprep.subr.bf16.mxu1 %v13097_v57  ;;  %v14933_v44 = vpop.f32.mrb[90].mxu0 }
 0x281   : > { %v4177_v42 = vrot.slane %v4176_v5, 1  ;;  %v4183_v38 = vmax.f32 %v4181_v40, %v4182_v18  ;;  %v4190_v25 = vmax.f32 %v4188_v50, %v4189_v23  ;;  %v4197_v6 = vmax.f32 %v4195_v46, %v4196_v11  ;;  %11817 = vmatpush3.bf16.msra.mxu1 %v13098_v28  ;;  %v13100_v23 = vld [vmem:[%s18333_s3 + $0x28] sm:$0xff]  }
 0x282   : > { %v4241_v51 = vmax.f32 %v4239_v53, %v4240_v16  ;;  %v4248_v55 = vmax.f32 %v4246_v34, %v4247_v29  ;;  %v4254_v30 = vrot.slane %v4253_v3, 1  ;;  %v2541_v10 = vcombine.high %v14879_v20, %v14879_v20  ;;  %11818 = vmatprep.subr.bf16.mxu1 %v13099_v56 }
 0x283   : > { %v4184_v21 = vrot.slane %v4183_v38, 1  ;;  %v4191_v40 = vrot.slane %v4190_v25, 1  ;;  %v1775_v50 = vsel %vm1674_vm3, %v1615_v15, -inf  ;;  %v18418_v34 = vrot.slane %v14822_v13, 1  ;;  %v14940_v15 = vpop.f32.mrb[91].mxu0 }
 0x284   : > { %v5474_v53 = vsel %vm5348_vm6, %v4241_v51, %v4234_v4  ;;  %v4198_v0 = vrot.slane %v4197_v6, 1  ;;  %v2542_v63 = vcombine.high %v14893_v9, %v14893_v9  ;;  %v4256_v14 = vsel %vm3275_vm5, %v14879_v20, -inf  ;;  %v14950_v16 = vpop.f32.mrb[92].mxu0 }
 0x285   : > { %v14931_v46 = vsel %vm5844_vm4, %v18418_v34, %v5832_v19  ;;  %v4255_v26 = vmax.f32 %v4253_v3, %v4254_v30  ;;  %v5475_v13 = vsel %vm5350_vm7, %v4248_v55, %v5474_v53  ;;  %v4178_v18 = vmax.f32 %v4176_v5, %v4177_v42  ;;  %11819 = vmatpush3.bf16.msra.mxu1 %v13100_v23 }
 0x286   : > { %18419 = vst [vmem:[#allocation29_spill] sm:$0xff] %v14931_v46  ;;  %v4185_v19 = vmax.f32 %v4183_v38, %v4184_v21  ;;  %v4257_v11 = vrot.slane %v4256_v14, 4  ;;  %v4263_v49 = vsel %vm3275_vm5, %v2541_v10, -inf  ;;  %v4270_v4 = vsel %vm3275_vm5, %v14893_v9, -inf }
 0x287   : > { %v4277_v20 = vsel %vm3275_vm5, %v2542_v63, -inf  ;;  %v4192_v29 = vmax.f32 %v4190_v25, %v4191_v40  ;;  %v4264_v3 = vrot.slane %v4263_v49, 4  ;;  %v4271_v5 = vrot.slane %v4270_v4, 4 }
 0x288   : > { %v4278_v42 = vrot.slane %v4277_v20, 4  ;;  %v14952_v38 = vmax.f32 %v4197_v6, %v4198_v0  ;;  %v5467_v57 = vsel %vm5348_vm6, %v4185_v19, %v4178_v18  ;;  %v4258_v28 = vmax.f32 %v4256_v14, %v4257_v11  ;;  %v13101_v6 = vld [vmem:[%s18333_s3 + $0x70] sm:$0xff]  }
 0x289   : > { %v1776_v51 = vmax.f32 %v14873_v7, %v1775_v50  ;;  %v4265_v55 = vmax.f32 %v4263_v49, %v4264_v3  ;;  %v4272_v30 = vmax.f32 %v4270_v4, %v4271_v5  ;;  %v5476_v9 = vsel %vm5352_vm8, %v4255_v26, %v5475_v13  ;;  %v14966_v26 = vpop.f32.mrb[93].mxu0  ;;  %11820 = vmatprep.subr.bf16.mxu1 %v13101_v6 }
 0x28a   : > { %v4279_v10 = vmax.f32 %v4277_v20, %v4278_v42  ;;  %v4259_v56 = vrot.slane %v4258_v28, 2  ;;  %v12698_v40 = vpack.i.bf16 %v14931_v46, %v14886_v39  ;;  %v14969_v11 = vpop.f32.mrb[94].mxu0 }
 0x28b   : > { %v2492_v21 = vcombine.high %v1776_v51, %v1776_v51  ;;  %v2499_v25 = vrot.slane %v1776_v51, %v13775_v41  ;;  %v4266_v34 = vrot.slane %v4265_v55, 2  ;;  %v4273_v53 = vrot.slane %v4272_v30, 2 }
 0x28c   : > { %v4280_v7 = vrot.slane %v4279_v10, 2  ;;  %v4260_v50 = vmax.f32 %v4258_v28, %v4259_v56  ;;  %12699 = vrot.lane.b32.xlu0 %v12698_v40, %s13474_s21  ;;  %12709 = vrot.lane.b32.xlu1 %v12698_v40, %s13473_s17 }
 0x28d   : > { %v2506_v0 = vrot.slane %v2492_v21, %v13775_v41  ;;  %v2507_v63 = vcombine.high %v2499_v25, %v2499_v25  ;;  %v4200_v14 = vsel %vm3275_vm5, %v2499_v25, -inf  ;;  %v4267_v13 = vmax.f32 %v4265_v55, %v4266_v34 }
 0x28e   : > { %v4274_v18 = vmax.f32 %v4272_v30, %v4273_v53  ;;  %v4281_v19 = vmax.f32 %v4279_v10, %v4280_v7  ;;  %v4201_v23 = vrot.slane %v4200_v14, 4  ;;  %v4261_v49 = vrot.slane %v4260_v50, 1  ;;  %v13102_v10 = vld [vmem:[%s18333_s3 + $0x30] sm:$0xff]  }
 0x28f   : > { %v2508_v4 = vcombine.high %v2506_v0, %v2506_v0  ;;  %v4207_v20 = vsel %vm3275_vm5, %v2507_v63, -inf  ;;  %v4214_v3 = vsel %vm3275_vm5, %v2506_v0, -inf  ;;  %v4268_v5 = vrot.slane %v4267_v13, 1  ;;  %11821 = vmatpush3.bf16.msra.mxu1 %v13102_v10 }
 0x290   : > { %v4275_v42 = vrot.slane %v4274_v18, 1  ;;  %v4282_v28 = vrot.slane %v4281_v19, 1  ;;  %v4202_v51 = vmax.f32 %v4200_v14, %v4201_v23  ;;  %v4262_v56 = vmax.f32 %v4260_v50, %v4261_v49 }
 0x291   : > { %v4208_v21 = vrot.slane %v4207_v20, 4  ;;  %v4215_v55 = vrot.slane %v4214_v3, 4  ;;  %v4221_v30 = vsel %vm3275_vm5, %v2508_v4, -inf  ;;  %v5468_v25 = vsel %vm5350_vm7, %v4192_v29, %v5467_v57  ;;  %v14982_v4 = vpop.f32.mrb[95].mxu0 }
 0x292   : > { %v4269_v40 = vmax.f32 %v4267_v13, %v4268_v5  ;;  %v4276_v6 = vmax.f32 %v4274_v18, %v4275_v42  ;;  %v4203_v34 = vrot.slane %v4202_v51, 2  ;;  %v5477_v53 = vsel %vm5354_vm9, %v4262_v56, %v5476_v9  ;;  %v14985_v5 = vld [vmem:[#allocation2 + $0xa8] sm:$0xff]  ;;  %v14987_v9 = vld [vmem:[#allocation2 + $0xb0] sm:$0xff] }
 0x293   : > { %v4209_v7 = vmax.f32 %v4207_v20, %v4208_v21  ;;  %v4216_v0 = vmax.f32 %v4214_v3, %v4215_v55  ;;  %v4222_v63 = vrot.slane %v4221_v30, 4  ;;  %v4283_v50 = vmax.f32 %v4281_v19, %v4282_v28 }
 0x294   : > { %v5478_v14 = vsel %vm5356_vm10, %v4269_v40, %v5477_v53  ;;  %v4204_v23 = vmax.f32 %v4202_v51, %v4203_v34  ;;  %v1332_v49 = vadd.f32 %v14815_v62, %v14598_v2  ;;  %v5469_v3 = vsel %vm5352_vm8, %v14952_v38, %v5468_v25  ;;  %v14999_v38 = vld [vmem:[#allocation2 + $0xb8] sm:$0xff] }
 0x295   : > { %v5479_v29 = vsel %vm5358_vm11, %v4276_v6, %v5478_v14  ;;  %v4210_v57 = vrot.slane %v4209_v7, 2  ;;  %v4217_v13 = vrot.slane %v4216_v0, 2  ;;  %v4223_v18 = vmax.f32 %v4221_v30, %v4222_v63 }
 0x296   : > { %v5480_v20 = vsel %vm5360_vm12, %v4283_v50, %v5479_v29  ;;  %v4205_v19 = vrot.slane %v4204_v23, 1  ;;  %v1324_v2 = vadd.f32 %v14815_v62, %v14604_v8  ;;  %v1335_v56 = vadd.f32 %v14815_v62, %v14608_v31 }
 0x297   : > { %5628 = vst.msk [vmem:[#allocation2 + $0xe0] sm:$0xff] %vm1674_vm3, %v5480_v20  ;;  %v4211_v42 = vmax.f32 %v4209_v7, %v4210_v57  ;;  %v4218_v28 = vmax.f32 %v4216_v0, %v4217_v13  ;;  %v4224_v51 = vrot.slane %v4223_v18, 2  ;;  %v12713_v55 = vpack.i.bf16 %v14987_v9, %v14985_v5 }
 0x298   : > { %v4206_v21 = vmax.f32 %v4204_v23, %v4205_v19  ;;  %v1620_v6 = vmax.f32 %v1332_v49, 0.0  ;;  %v1618_v25 = vmax.f32 %v1324_v2, 0.0  ;;  %v5704_v34 = vrot.slane %v14985_v5, 7 }
 0x299   : > { %v4212_v30 = vrot.slane %v4211_v42, 1  ;;  %v4219_v10 = vrot.slane %v4218_v28, 1  ;;  %v4225_v40 = vmax.f32 %v4223_v18, %v4224_v51  ;;  %12714 = vrot.lane.b32.xlu0 %v12713_v55, %s13476_s24  ;;  %v1621_v31 = vmax.f32 %v1335_v56, 0.0  ;;  %12719 = vrot.lane.b32.xlu1 %v12713_v55, %s13474_s21 }
 0x29a   : > { %v5470_v8 = vsel %vm5354_vm9, %v4206_v21, %v5469_v3  ;;  %v15006_v0 = vadd.f32 %v14815_v62, %v14610_v27  ;;  %v5722_v50 = vrot.slane %v14987_v9, 7  ;;  %v5740_v14 = vrot.slane %v14999_v38, 7  ;;  %v18422_v21 = vld [vmem:[#allocation21_spill] sm:$0xff] }
 0x29b   : > { %v4213_v53 = vmax.f32 %v4211_v42, %v4212_v30  ;;  %v4226_v7 = vrot.slane %v4225_v40, 1  ;;  %v4220_v63 = vmax.f32 %v4218_v28, %v4219_v10  ;;  %v1348_v23 = vadd.f32 %v14815_v62, %v14616_v52 }
 0x29c   : > { %v1340_v57 = vadd.f32 %v14815_v62, %v14620_v24  ;;  %v1351_v27 = vadd.f32 %v14815_v62, %v14622_v1  ;;  %v15021_v18 = vsel %vm5753_vm13, %v5704_v34, %v5722_v50  ;;  %v15025_v20 = vsel %vm5753_vm13, %v5740_v14, %v5704_v34 }
 0x29d   : > { %v4227_v49 = vmax.f32 %v4225_v40, %v4226_v7  ;;  %v5471_v29 = vsel %vm5356_vm10, %v4213_v53, %v5470_v8  ;;  %18420 = vst [vmem:[#allocation30_spill] sm:$0xff] %v15021_v18  ;;  %18421 = vst [vmem:[#allocation31_spill] sm:$0xff] %v15025_v20  ;;  %v1624_v52 = vmax.f32 %v1348_v23, 0.0  ;;  %v12723_v3 = vpack.i.bf16 %v15021_v18, %v15025_v20 }
 0x29e   : > { %v5472_v13 = vsel %vm5358_vm11, %v4220_v63, %v5471_v29  ;;  %v1622_v24 = vmax.f32 %v1340_v57, 0.0  ;;  %v1789_v1 = vsel %vm1674_vm3, %v1620_v6, -inf  ;;  %v1625_v42 = vmax.f32 %v1351_v27, 0.0 }
 0x29f   : > { %v5473_v19 = vsel %vm5360_vm12, %v4227_v49, %v5472_v13  ;;  %v1790_v2 = vsel %vm1674_vm3, %v1624_v52, -inf  ;;  %v1783_v28 = vsel %vm1674_vm3, %v1618_v25, -inf  ;;  %12724 = vrot.lane.b32.xlu0 %v12723_v3, %s13473_s17  ;;  %12734 = vrot.lane.b32.xlu1 %v12723_v3, %s13476_s24  ;;  %v15039_v55 = vadd.f32 %v14815_v62, %v18422_v21 }
 0x2a0   : > { %5627 = vst.msk [vmem:[#allocation2 + $0xd8] sm:$0xff] %vm1674_vm3, %v5473_v19  ;;  %v1791_v51 = vmax.f32 %v1789_v1, %v1790_v2  ;;  %v1784_v56 = vsel %vm1674_vm3, %v1622_v24, -inf  ;;  %v1792_v30 = vsel %vm1674_vm3, %v1621_v31, -inf  ;;  %v1793_v40 = vsel %vm1674_vm3, %v1625_v42, -inf }
 0x2a1   : > { %v1785_v10 = vmax.f32 %v1783_v28, %v1784_v56  ;;  %v1619_v6 = vmax.f32 %v15006_v0, 0.0  ;;  %v15045_v34 = vmax.f32 %v1792_v30, %v1793_v40  ;;  %v5833_v50 = vrot.slane %v14999_v38, 1  ;;  %v13103_v40 = vld [vmem:[%s18333_s3 + $0x78] sm:$0xff]  }
 0x2a2   : > { %v2577_v8 = vcombine.high %v1791_v51, %v1791_v51  ;;  %v2584_v25 = vrot.slane %v1791_v51, %v13775_v41  ;;  %v1623_v49 = vmax.f32 %v15039_v55, 0.0  ;;  %11822 = vmatprep.subr.bf16.mxu1 %v13103_v40 }
 0x2a3   : > { %v2543_v53 = vcombine.high %v1785_v10, %v1785_v10  ;;  %v2550_v7 = vrot.slane %v1785_v10, %v13775_v41 }
 0x2a4   : > { %v2591_v14 = vrot.slane %v2577_v8, %v13775_v41  ;;  %v2592_v31 = vcombine.high %v2584_v25, %v2584_v25  ;;  %v4340_v23 = vsel %vm3275_vm5, %v2584_v25, -inf }
 0x2a5   : > { %v4341_v0 = vrot.slane %v4340_v23, 4  ;;  %v2557_v29 = vrot.slane %v2543_v53, %v13775_v41  ;;  %v2558_v57 = vcombine.high %v2550_v7, %v2550_v7  ;;  %v4284_v27 = vsel %vm3275_vm5, %v2550_v7, -inf }
 0x2a6   : > { %v2593_v13 = vcombine.high %v2591_v14, %v2591_v14  ;;  %v4347_v52 = vsel %vm3275_vm5, %v2592_v31, -inf  ;;  %v4354_v19 = vsel %vm3275_vm5, %v2591_v14, -inf  ;;  %v4285_v3 = vrot.slane %v4284_v27, 4  ;;  %v13104_v14 = vld [vmem:[%s18333_s3 + $0x38] sm:$0xff]  }
 0x2a7   : > { %v4342_v38 = vmax.f32 %v4340_v23, %v4341_v0  ;;  %v4348_v24 = vrot.slane %v4347_v52, 4  ;;  %v4355_v1 = vrot.slane %v4354_v19, 4  ;;  %v2559_v2 = vcombine.high %v2557_v29, %v2557_v29  ;;  %11823 = vmatpush3.bf16.msra.mxu1 %v13104_v14 }
 0x2a8   : > { %v4361_v42 = vsel %vm3275_vm5, %v2593_v13, -inf  ;;  %v4286_v28 = vmax.f32 %v4284_v27, %v4285_v3  ;;  %v4291_v51 = vsel %vm3275_vm5, %v2558_v57, -inf  ;;  %v4298_v56 = vsel %vm3275_vm5, %v2557_v29, -inf }
 0x2a9   : > { %v4343_v21 = vrot.slane %v4342_v38, 2  ;;  %v4349_v55 = vmax.f32 %v4347_v52, %v4348_v24  ;;  %v4356_v30 = vmax.f32 %v4354_v19, %v4355_v1  ;;  %v4362_v10 = vrot.slane %v4361_v42, 4 }
 0x2aa   : > { %v4287_v8 = vrot.slane %v4286_v28, 2  ;;  %v4292_v25 = vrot.slane %v4291_v51, 4  ;;  %v4299_v53 = vrot.slane %v4298_v56, 4  ;;  %v4305_v7 = vsel %vm3275_vm5, %v2559_v2, -inf }
 0x2ab   : > { %v4344_v31 = vmax.f32 %v4342_v38, %v4343_v21  ;;  %v4350_v23 = vrot.slane %v4349_v55, 2  ;;  %v4357_v0 = vrot.slane %v4356_v30, 2  ;;  %v4363_v29 = vmax.f32 %v4361_v42, %v4362_v10  ;;  %v15069_v38 = vpop.f32.mrb[96].mxu0 }
 0x2ac   : > { %v4288_v57 = vmax.f32 %v4286_v28, %v4287_v8  ;;  %v4293_v27 = vmax.f32 %v4291_v51, %v4292_v25  ;;  %v4300_v13 = vmax.f32 %v4298_v56, %v4299_v53  ;;  %v4306_v52 = vrot.slane %v4305_v7, 4 }
 0x2ad   : > { %v4351_v19 = vmax.f32 %v4349_v55, %v4350_v23  ;;  %v4358_v3 = vmax.f32 %v4356_v30, %v4357_v0  ;;  %v4364_v24 = vrot.slane %v4363_v29, 2  ;;  %v2594_v1 = vcombine.high %v15045_v34, %v15045_v34 }
 0x2ae   : > { %v4345_v2 = vrot.slane %v4344_v31, 1  ;;  %v4294_v63 = vrot.slane %v4293_v27, 2  ;;  %v4301_v46 = vrot.slane %v4300_v13, 2  ;;  %v4307_v39 = vmax.f32 %v4305_v7, %v4306_v52 }
 0x2af   : > { %v1786_v42 = vsel %vm1674_vm3, %v1619_v6, -inf  ;;  %v4352_v21 = vrot.slane %v4351_v19, 1  ;;  %v4359_v28 = vrot.slane %v4358_v3, 1  ;;  %v4365_v51 = vmax.f32 %v4363_v29, %v4364_v24 }
 0x2b0   : > { %v4289_v56 = vrot.slane %v4288_v57, 1  ;;  %v4295_v10 = vmax.f32 %v4293_v27, %v4294_v63  ;;  %v4302_v40 = vmax.f32 %v4300_v13, %v4301_v46  ;;  %v5797_v55 = vrot.slane %v14985_v5, 1 }
 0x2b1   : > { %v4353_v30 = vmax.f32 %v4351_v19, %v4352_v21  ;;  %v2601_v8 = vrot.slane %v15045_v34, %v13775_v41  ;;  %v1787_v25 = vsel %vm1674_vm3, %v1623_v49, -inf  ;;  %v18423_v53 = vrot.slane %v14987_v9, 1 }
 0x2b2   : > { %v4346_v6 = vmax.f32 %v4344_v31, %v4345_v2  ;;  %v4366_v14 = vrot.slane %v4365_v51, 1  ;;  %v4308_v23 = vrot.slane %v4307_v39, 2  ;;  %v2608_v63 = vrot.slane %v2594_v1, %v13775_v41 }
 0x2b3   : > { %v15080_v7 = vsel %vm5844_vm4, %v18423_v53, %v5833_v50  ;;  %v4360_v46 = vmax.f32 %v4358_v3, %v4359_v28  ;;  %v4296_v0 = vrot.slane %v4295_v10, 1  ;;  %v2609_v5 = vcombine.high %v2601_v8, %v2601_v8  ;;  %v15093_v28 = vpop.f32.mrb[97].mxu0 }
 0x2b4   : > { %18424 = vst [vmem:[#allocation21_spill] sm:$0xff] %v15080_v7  ;;  %v4368_v29 = vsel %vm3275_vm5, %v2601_v8, -inf  ;;  %v5488_v34 = vsel %vm5348_vm6, %v4353_v30, %v4346_v6  ;;  %v4290_v27 = vmax.f32 %v4288_v57, %v4289_v56  ;;  %v4303_v49 = vrot.slane %v4302_v40, 1 }
 0x2b5   : > { %v18425_v13 = vmov %v18423_v53  ;;  %v2610_v31 = vcombine.high %v2608_v63, %v2608_v63  ;;  %v4369_v52 = vrot.slane %v4368_v29, 4  ;;  %v4375_v19 = vsel %vm3275_vm5, %v2609_v5, -inf }
 0x2b6   : > { %v15089_v50 = vsel %vm5844_vm4, %v5797_v55, %v18425_v13  ;;  %v4382_v3 = vsel %vm3275_vm5, %v2608_v63, -inf  ;;  %v4367_v24 = vmax.f32 %v4365_v51, %v4366_v14  ;;  %v4309_v1 = vmax.f32 %v4307_v39, %v4308_v23  ;;  %v15097_v55 = vpop.f32.mrb[98].mxu0 }
 0x2b7   : > { %18426 = vst [vmem:[#allocation32_spill] sm:$0xff] %v15089_v50  ;;  %v4376_v2 = vrot.slane %v4375_v19, 4  ;;  %v4383_v21 = vrot.slane %v4382_v3, 4  ;;  %v5489_v57 = vsel %vm5350_vm7, %v4360_v46, %v5488_v34  ;;  %v4297_v56 = vmax.f32 %v4295_v10, %v4296_v0  ;;  %v15099_v13 = vpop.f32.mrb[99].mxu0 }
 0x2b8   : > { %v4370_v9 = vmax.f32 %v4368_v29, %v4369_v52  ;;  %v4389_v30 = vsel %vm3275_vm5, %v2610_v31, -inf  ;;  %v1788_v5 = vmax.f32 %v1786_v42, %v1787_v25  ;;  %v4304_v51 = vmax.f32 %v4302_v40, %v4303_v49 }
 0x2b9   : > { %v4377_v8 = vmax.f32 %v4375_v19, %v4376_v2  ;;  %v4384_v53 = vmax.f32 %v4382_v3, %v4383_v21  ;;  %v4390_v6 = vrot.slane %v4389_v30, 4  ;;  %v12728_v14 = vpack.i.bf16 %v15080_v7, %v15089_v50  ;;  %v15110_v21 = vpop.f32.mrb[100].mxu0 }
 0x2ba   : > { %v4371_v39 = vrot.slane %v4370_v9, 2  ;;  %v2560_v10 = vcombine.high %v1788_v5, %v1788_v5  ;;  %v4310_v0 = vrot.slane %v4309_v1, 1  ;;  %v5481_v29 = vsel %vm5348_vm6, %v4297_v56, %v4290_v27 }
 0x2bb   : > { %v4378_v23 = vrot.slane %v4377_v8, 2  ;;  %v4385_v63 = vrot.slane %v4384_v53, 2  ;;  %v4391_v46 = vmax.f32 %v4389_v30, %v4390_v6  ;;  %v2567_v31 = vrot.slane %v1788_v5, %v13775_v41  ;;  %12729 = vrot.lane.b32.xlu0 %v12728_v14, %s13474_s21  ;;  %12739 = vrot.lane.b32.xlu1 %v12728_v14, %s13473_s17 }
 0x2bc   : > { %v4372_v34 = vmax.f32 %v4370_v9, %v4371_v39  ;;  %v2574_v49 = vrot.slane %v2560_v10, %v13775_v41  ;;  %v5490_v19 = vsel %vm5352_vm8, %v4367_v24, %v5489_v57 }
 0x2bd   : > { %v4379_v42 = vmax.f32 %v4377_v8, %v4378_v23  ;;  %v4386_v40 = vmax.f32 %v4384_v53, %v4385_v63  ;;  %v4392_v25 = vrot.slane %v4391_v46, 2  ;;  %v2575_v3 = vcombine.high %v2567_v31, %v2567_v31 }
 0x2be   : > { %v4373_v52 = vrot.slane %v4372_v34, 1  ;;  %v4312_v2 = vsel %vm3275_vm5, %v2567_v31, -inf  ;;  %v2576_v30 = vcombine.high %v2574_v49, %v2574_v49  ;;  %v4326_v53 = vsel %vm3275_vm5, %v2574_v49, -inf  ;;  %v15118_v49 = vld [vmem:[#allocation2 + $0xc0] sm:$0xff] }
 0x2bf   : > { %v4380_v27 = vrot.slane %v4379_v42, 1  ;;  %v4387_v56 = vrot.slane %v4386_v40, 1  ;;  %v4393_v9 = vmax.f32 %v4391_v46, %v4392_v25  ;;  %v4313_v5 = vrot.slane %v4312_v2, 4 }
 0x2c0   : > { %v4374_v6 = vmax.f32 %v4372_v34, %v4373_v52  ;;  %v4319_v8 = vsel %vm3275_vm5, %v2575_v3, -inf  ;;  %v4327_v10 = vrot.slane %v4326_v53, 4  ;;  %v4333_v31 = vsel %vm3275_vm5, %v2576_v30, -inf }
 0x2c1   : > { %v4381_v39 = vmax.f32 %v4379_v42, %v4380_v27  ;;  %v4388_v14 = vmax.f32 %v4386_v40, %v4387_v56  ;;  %v4394_v23 = vrot.slane %v4393_v9, 1  ;;  %v4320_v63 = vrot.slane %v4319_v8, 4  ;;  %v15120_v42 = vld [vmem:[#allocation2 + $0xc8] sm:$0xff] }
 0x2c2   : > { %v5491_v24 = vsel %vm5354_vm9, %v4374_v6, %v5490_v19  ;;  %v4314_v57 = vmax.f32 %v4312_v2, %v4313_v5  ;;  %v4334_v34 = vrot.slane %v4333_v31, 4  ;;  %v4328_v50 = vmax.f32 %v4326_v53, %v4327_v10 }
 0x2c3   : > { %v4395_v7 = vmax.f32 %v4393_v9, %v4394_v23  ;;  %v5492_v46 = vsel %vm5356_vm10, %v4381_v39, %v5491_v24  ;;  %v4321_v25 = vmax.f32 %v4319_v8, %v4320_v63  ;;  %v4311_v40 = vmax.f32 %v4309_v1, %v4310_v0 }
 0x2c4   : > { %v5493_v52 = vsel %vm5358_vm11, %v4388_v14, %v5492_v46  ;;  %v4315_v3 = vrot.slane %v4314_v57, 2  ;;  %v4335_v27 = vmax.f32 %v4333_v31, %v4334_v34  ;;  %v5482_v56 = vsel %vm5350_vm7, %v4304_v51, %v5481_v29  ;;  %v5669_v31 = vld [vmem:[#allocation2 + $0xd0] sm:$0xff]  ;;  %v15137_v46 = vld [vmem:[#allocation2 + $0x8] sm:$0xff] }
 0x2c5   : > { %v5494_v19 = vsel %vm5360_vm12, %v4395_v7, %v5493_v52  ;;  %v4322_v2 = vrot.slane %v4321_v25, 2  ;;  %v4329_v30 = vrot.slane %v4328_v50, 2  ;;  %v12743_v8 = vpack.i.bf16 %v15120_v42, %v15118_v49  ;;  %v15140_v34 = vld [vmem:[#allocation2 + $0x10] sm:$0xff] }
 0x2c6   : > { %5630 = vst.msk [vmem:[#allocation2 + $0xf8] sm:$0xff] %vm1674_vm3, %v5494_v19  ;;  %v4316_v9 = vmax.f32 %v4314_v57, %v4315_v3  ;;  %v4336_v5 = vrot.slane %v4335_v27, 2  ;;  %v5483_v1 = vsel %vm5352_vm8, %v4311_v40, %v5482_v56  ;;  %v1364_v51 = vadd.f32 %v14815_v62, %v14731_v60 }
 0x2c7   : > { %v4323_v6 = vmax.f32 %v4321_v25, %v4322_v2  ;;  %v4330_v39 = vmax.f32 %v4328_v50, %v4329_v30  ;;  %12744 = vrot.lane.b32.xlu0 %v12743_v8, %s13476_s24  ;;  %12749 = vrot.lane.b32.xlu1 %v12743_v8, %s13474_s21  ;;  %v1356_v50 = vadd.f32 %v14815_v62, %v14738_v22  ;;  %v5723_v56 = vrot.slane %v15120_v42, 7 }
 0x2c8   : > { %v4317_v53 = vrot.slane %v4316_v9, 1  ;;  %v4337_v23 = vmax.f32 %v4335_v27, %v4336_v5  ;;  %v1367_v10 = vadd.f32 %v14815_v62, %v14742_v32  ;;  %v1628_v19 = vmax.f32 %v1364_v51, 0.0  ;;  %v15149_v27 = vpop.permute.xlu1 %12539  ;;  %v15172_v51 = vpop.f32.mrb[101].mxu0 }
 0x2c9   : > { %v4324_v14 = vrot.slane %v4323_v6, 1  ;;  %v4331_v0 = vrot.slane %v4330_v39, 1  ;;  %v1359_v22 = vadd.f32 %v14815_v62, %v14744_v35  ;;  %v5705_v32 = vrot.slane %v15118_v49, 7 }
 0x2ca   : > { %v4318_v7 = vmax.f32 %v4316_v9, %v4317_v53  ;;  %v4338_v63 = vrot.slane %v4337_v23, 1  ;;  %v5741_v9 = vrot.slane %v5669_v31, 7  ;;  %v1380_v30 = vadd.f32 %v14815_v62, %v14768_v37 }
 0x2cb   : > { %v4325_v29 = vmax.f32 %v4323_v6, %v4324_v14  ;;  %v4332_v24 = vmax.f32 %v4330_v39, %v4331_v0  ;;  %v15154_v6 = vld [vmem:[#allocation2] sm:$0xff]  ;;  %v1626_v8 = vmax.f32 %v1356_v50, 0.0  ;;  %v1629_v53 = vmax.f32 %v1367_v10, 0.0  ;;  %v15179_v50 = vpop.f32.mrb[102].mxu0 }
 0x2cc   : > { %v5484_v57 = vsel %vm5354_vm9, %v4318_v7, %v5483_v1  ;;  %v4339_v52 = vmax.f32 %v4337_v23, %v4338_v63  ;;  %v15161_v39 = vsel %vm5753_vm13, %v5705_v32, %v5723_v56  ;;  %v15165_v14 = vsel %vm5753_vm13, %v5741_v9, %v5705_v32 }
 0x2cd   : > { %v5485_v3 = vsel %vm5356_vm10, %v4325_v29, %v5484_v57  ;;  %18427 = vst [vmem:[#allocation33_spill] sm:$0xff] %v15161_v39  ;;  %18428 = vst [vmem:[#allocation34_spill] sm:$0xff] %v15165_v14  ;;  %v1632_v23 = vmax.f32 %v1380_v30, 0.0  ;;  %v1372_v37 = vadd.f32 %v14815_v62, %v14781_v47  ;;  %v1801_v1 = vsel %vm1674_vm3, %v1628_v19, -inf }
 0x2ce   : > { %v5486_v40 = vsel %vm5358_vm11, %v4332_v24, %v5485_v3  ;;  %v1627_v7 = vmax.f32 %v1359_v22, 0.0  ;;  %v12753_v0 = vpack.i.bf16 %v15161_v39, %v15165_v14  ;;  %v1383_v24 = vadd.f32 %v14815_v62, %v14790_v36 }
 0x2cf   : > { %v5487_v2 = vsel %vm5360_vm12, %v4339_v52, %v5486_v40  ;;  %v1802_v29 = vsel %vm1674_vm3, %v1632_v23, -inf  ;;  %v1630_v63 = vmax.f32 %v1372_v37, 0.0  ;;  %v1375_v57 = vadd.f32 %v14815_v62, %v14806_v33  ;;  %v15185_v40 = vpop.f32.mrb[103].mxu0 }
 0x2d0   : > { %5629 = vst.msk [vmem:[#allocation2 + $0xf0] sm:$0xff] %vm1674_vm3, %v5487_v2  ;;  %v1795_v47 = vsel %vm1674_vm3, %v1626_v8, -inf  ;;  %12754 = vrot.lane.b32.xlu0 %v12753_v0, %s13473_s17  ;;  %12764 = vrot.lane.b32.xlu1 %v12753_v0, %s13476_s24  ;;  %v1803_v10 = vmax.f32 %v1801_v1, %v1802_v29  ;;  %v18361_v52 = vrot.slane %v15120_v42, 1  ;;  %v5834_v3 = vrot.slane %v5669_v31, 1 }
 0x2d1   : > { %v1804_v19 = vsel %vm1674_vm3, %v1629_v53, -inf  ;;  %v1796_v36 = vsel %vm1674_vm3, %v1630_v63, -inf  ;;  %v1633_v22 = vmax.f32 %v1383_v24, 0.0  ;;  %v1631_v33 = vmax.f32 %v1375_v57, 0.0 }
 0x2d2   : > { %v1798_v62 = vsel %vm1674_vm3, %v1627_v7, -inf  ;;  %v2645_v32 = vcombine.high %v1803_v10, %v1803_v10  ;;  %v2652_v2 = vrot.slane %v1803_v10, %v13775_v41  ;;  %v1797_v56 = vmax.f32 %v1795_v47, %v1796_v36 }
 0x2d3   : > { %v1805_v9 = vsel %vm1674_vm3, %v1633_v22, -inf  ;;  %v1799_v30 = vsel %vm1674_vm3, %v1631_v33, -inf  ;;  %v15198_v8 = vsel %vm5844_vm4, %v18361_v52, %v5834_v3 }
 0x2d4   : > { %18429 = vst [vmem:[#allocation35_spill] sm:$0xff] %v15198_v8  ;;  %v2659_v53 = vrot.slane %v2645_v32, %v13775_v41  ;;  %v2660_v23 = vcombine.high %v2652_v2, %v2652_v2  ;;  %v4452_v37 = vsel %vm3275_vm5, %v2652_v2, -inf  ;;  %v2611_v1 = vcombine.high %v1797_v56, %v1797_v56 }
 0x2d5   : > { %v4453_v7 = vrot.slane %v4452_v37, 4  ;;  %v2618_v0 = vrot.slane %v1797_v56, %v13775_v41  ;;  %v1806_v29 = vmax.f32 %v1804_v19, %v1805_v9  ;;  %v15203_v63 = vmax.f32 %v1798_v62, %v1799_v30 }
 0x2d6   : > { %v2661_v24 = vcombine.high %v2659_v53, %v2659_v53  ;;  %v4459_v57 = vsel %vm3275_vm5, %v2660_v23, -inf  ;;  %v4466_v47 = vsel %vm3275_vm5, %v2659_v53, -inf  ;;  %v2625_v10 = vrot.slane %v2611_v1, %v13775_v41 }
 0x2d7   : > { %v4454_v3 = vmax.f32 %v4452_v37, %v4453_v7  ;;  %v4460_v36 = vrot.slane %v4459_v57, 4  ;;  %v4467_v22 = vrot.slane %v4466_v47, 4  ;;  %v2626_v33 = vcombine.high %v2618_v0, %v2618_v0 }
 0x2d8   : > { %v4473_v32 = vsel %vm3275_vm5, %v2661_v24, -inf  ;;  %v2627_v2 = vcombine.high %v2625_v10, %v2625_v10  ;;  %v4396_v35 = vsel %vm3275_vm5, %v2618_v0, -inf  ;;  %v4410_v19 = vsel %vm3275_vm5, %v2625_v10, -inf }
 0x2d9   : > { %v4455_v62 = vrot.slane %v4454_v3, 2  ;;  %v4461_v56 = vmax.f32 %v4459_v57, %v4460_v36  ;;  %v4468_v9 = vmax.f32 %v4466_v47, %v4467_v22  ;;  %v4474_v30 = vrot.slane %v4473_v32, 4 }
 0x2da   : > { %v4397_v23 = vrot.slane %v4396_v35, 4  ;;  %v4403_v53 = vsel %vm3275_vm5, %v2626_v33, -inf  ;;  %v4411_v60 = vrot.slane %v4410_v19, 4  ;;  %v4417_v37 = vsel %vm3275_vm5, %v2627_v2, -inf }
 0x2db   : > { %v4456_v1 = vmax.f32 %v4454_v3, %v4455_v62  ;;  %v4462_v7 = vrot.slane %v4461_v56, 2  ;;  %v4469_v5 = vrot.slane %v4468_v9, 2  ;;  %v4475_v25 = vmax.f32 %v4473_v32, %v4474_v30 }
 0x2dc   : > { %v4398_v24 = vmax.f32 %v4396_v35, %v4397_v23  ;;  %v4404_v31 = vrot.slane %v4403_v53, 4  ;;  %v4412_v52 = vmax.f32 %v4410_v19, %v4411_v60  ;;  %v4418_v0 = vrot.slane %v4417_v37, 4 }
 0x2dd   : > { %v4457_v59 = vrot.slane %v4456_v1, 1  ;;  %v4463_v10 = vmax.f32 %v4461_v56, %v4462_v7  ;;  %v4470_v43 = vmax.f32 %v4468_v9, %v4469_v5  ;;  %v4476_v57 = vrot.slane %v4475_v25, 2 }
 0x2de   : > { %v4399_v47 = vrot.slane %v4398_v24, 2  ;;  %v4405_v36 = vmax.f32 %v4403_v53, %v4404_v31  ;;  %v4413_v22 = vrot.slane %v4412_v52, 2  ;;  %v4419_v14 = vmax.f32 %v4417_v37, %v4418_v0 }
 0x2df   : > { %v4458_v33 = vmax.f32 %v4456_v1, %v4457_v59  ;;  %v4464_v39 = vrot.slane %v4463_v10, 1  ;;  %v4471_v18 = vrot.slane %v4470_v43, 1  ;;  %v4477_v2 = vmax.f32 %v4475_v25, %v4476_v57 }
 0x2e0   : > { %v4400_v3 = vmax.f32 %v4398_v24, %v4399_v47  ;;  %v4406_v62 = vrot.slane %v4405_v36, 2  ;;  %v4414_v20 = vmax.f32 %v4412_v52, %v4413_v22  ;;  %v4420_v32 = vrot.slane %v4419_v14, 2 }
 0x2e1   : > { %v4465_v35 = vmax.f32 %v4463_v10, %v4464_v39  ;;  %v4472_v30 = vmax.f32 %v4470_v43, %v4471_v18  ;;  %v4478_v60 = vrot.slane %v4477_v2, 1  ;;  %v2662_v19 = vcombine.high %v1806_v29, %v1806_v29 }
 0x2e2   : > { %v4401_v23 = vrot.slane %v4400_v3, 1  ;;  %v4407_v56 = vmax.f32 %v4405_v36, %v4406_v62  ;;  %v4415_v5 = vrot.slane %v4414_v20, 1  ;;  %v4421_v9 = vmax.f32 %v4419_v14, %v4420_v32 }
 0x2e3   : > { %v4479_v7 = vmax.f32 %v4477_v2, %v4478_v60  ;;  %v5502_v31 = vsel %vm5348_vm6, %v4465_v35, %v4458_v33  ;;  %v2669_v59 = vrot.slane %v1806_v29, %v13775_v41  ;;  %v2676_v53 = vrot.slane %v2662_v19, %v13775_v41  ;;  %v15235_v60 = vpop.f32.mrb[104].mxu0 }
 0x2e4   : > { %v5503_v25 = vsel %vm5350_vm7, %v4472_v30, %v5502_v31  ;;  %v4402_v37 = vmax.f32 %v4400_v3, %v4401_v23  ;;  %v4408_v52 = vrot.slane %v4407_v56, 1  ;;  %v18430_v39 = vrot.slane %v15120_v42, 1 }
 0x2e5   : > { %v18431_v43 = vrot.slane %v15118_v49, 1  ;;  %v4422_v14 = vrot.slane %v4421_v9, 1  ;;  %v2677_v1 = vcombine.high %v2669_v59, %v2669_v59  ;;  %v2678_v24 = vcombine.high %v2676_v53, %v2676_v53 }
 0x2e6   : > { %v4480_v0 = vsel %vm3275_vm5, %v2669_v59, -inf  ;;  %v4409_v29 = vmax.f32 %v4407_v56, %v4408_v52  ;;  %v4416_v10 = vmax.f32 %v4414_v20, %v4415_v5  ;;  %v4494_v47 = vsel %vm3275_vm5, %v2676_v53, -inf }
 0x2e7   : > { %v15223_v18 = vsel %vm5844_vm4, %v18431_v43, %v18430_v39  ;;  %v4481_v57 = vrot.slane %v4480_v0, 4  ;;  %v4487_v36 = vsel %vm3275_vm5, %v2677_v1, -inf  ;;  %v4495_v22 = vrot.slane %v4494_v47, 4 }
 0x2e8   : > { %18432 = vst [vmem:[#allocation36_spill] sm:$0xff] %v15223_v18  ;;  %v4501_v42 = vsel %vm3275_vm5, %v2678_v24, -inf  ;;  %v5504_v49 = vsel %vm5352_vm8, %v4479_v7, %v5503_v25  ;;  %v5495_v33 = vsel %vm5348_vm6, %v4409_v29, %v4402_v37  ;;  %v4488_v3 = vrot.slane %v4487_v36, 4  ;;  %v15238_v7 = vpop.f32.mrb[105].mxu0  ;;  %v15244_v37 = vpop.permute.xlu1 %12544 }
 0x2e9   : > { %v4482_v2 = vmax.f32 %v4480_v0, %v4481_v57  ;;  %v4502_v62 = vrot.slane %v4501_v42, 4  ;;  %v4423_v32 = vmax.f32 %v4421_v9, %v4422_v14  ;;  %v4496_v35 = vmax.f32 %v4494_v47, %v4495_v22  ;;  %v15242_v25 = vpop.f32.mrb[106].mxu0 }
 0x2ea   : > { %v2628_v20 = vcombine.high %v15203_v63, %v15203_v63  ;;  %v2635_v30 = vrot.slane %v15203_v63, %v13775_v41  ;;  %v5496_v19 = vsel %vm5350_vm7, %v4416_v10, %v5495_v33  ;;  %v4489_v56 = vmax.f32 %v4487_v36, %v4488_v3  ;;  %18433 = vst [vmem:[#allocation37_spill] sm:$0xff] %v15242_v25  ;;  %v15246_v14 = vpop.f32.mrb[107].mxu0 }
 0x2eb   : > { %v4483_v23 = vrot.slane %v4482_v2, 2  ;;  %v4503_v5 = vmax.f32 %v4501_v42, %v4502_v62  ;;  %v4497_v31 = vrot.slane %v4496_v35, 2  ;;  %18434 = vst [vmem:[#allocation38_spill] sm:$0xff] %v15246_v14 }
 0x2ec   : > { %v2642_v59 = vrot.slane %v2628_v20, %v13775_v41  ;;  %v2643_v9 = vcombine.high %v2635_v30, %v2635_v30  ;;  %v4424_v53 = vsel %vm3275_vm5, %v2635_v30, -inf  ;;  %v4490_v52 = vrot.slane %v4489_v56, 2  ;;  %v15254_v54 = vpop.permute.xlu1 %12554 }
 0x2ed   : > { %v4484_v63 = vmax.f32 %v4482_v2, %v4483_v23  ;;  %v4504_v39 = vrot.slane %v4503_v5, 2  ;;  %v4425_v43 = vrot.slane %v4424_v53, 4  ;;  %v4498_v1 = vmax.f32 %v4496_v35, %v4497_v31  ;;  %v15251_v23 = vpop.f32.mrb[108].mxu0 }
 0x2ee   : > { %v2644_v24 = vcombine.high %v2642_v59, %v2642_v59  ;;  %v4431_v0 = vsel %vm3275_vm5, %v2643_v9, -inf  ;;  %v4438_v29 = vsel %vm3275_vm5, %v2642_v59, -inf  ;;  %v4491_v57 = vmax.f32 %v4489_v56, %v4490_v52  ;;  %18435 = vst [vmem:[#allocation39_spill] sm:$0xff] %v15251_v23 }
 0x2ef   : > { %v4485_v10 = vrot.slane %v4484_v63, 1  ;;  %v4505_v47 = vmax.f32 %v4503_v5, %v4504_v39  ;;  %v4426_v36 = vmax.f32 %v4424_v53, %v4425_v43  ;;  %v4499_v22 = vrot.slane %v4498_v1, 1 }
 0x2f0   : > { %v4432_v42 = vrot.slane %v4431_v0, 4  ;;  %v4439_v33 = vrot.slane %v4438_v29, 4  ;;  %v4445_v2 = vsel %vm3275_vm5, %v2644_v24, -inf  ;;  %v4492_v62 = vrot.slane %v4491_v57, 1 }
 0x2f1   : > { %v4486_v3 = vmax.f32 %v4484_v63, %v4485_v10  ;;  %v4506_v20 = vrot.slane %v4505_v47, 1  ;;  %v4427_v30 = vrot.slane %v4426_v36, 2  ;;  %v4446_v9 = vrot.slane %v4445_v2, 4 }
 0x2f2   : > { %v4433_v35 = vmax.f32 %v4431_v0, %v4432_v42  ;;  %v4440_v31 = vmax.f32 %v4438_v29, %v4439_v33  ;;  %v5497_v59 = vsel %vm5352_vm8, %v4423_v32, %v5496_v19  ;;  %v4493_v56 = vmax.f32 %v4491_v57, %v4492_v62  ;;  %v12535_v42 = vpop.permute.xlu0 %12534 }
 0x2f3   : > { %v4500_v5 = vmax.f32 %v4498_v1, %v4499_v22  ;;  %v5505_v53 = vsel %vm5354_vm9, %v4486_v3, %v5504_v49  ;;  %v4428_v52 = vmax.f32 %v4426_v36, %v4427_v30  ;;  %v4447_v63 = vmax.f32 %v4445_v2, %v4446_v9 }
 0x2f4   : > { %v4434_v39 = vrot.slane %v4433_v35, 2  ;;  %v4441_v43 = vrot.slane %v4440_v31, 2  ;;  %v12758_v24 = vpack.i.bf16 %v15198_v8, %v15223_v18  ;;  %v4507_v10 = vmax.f32 %v4505_v47, %v4506_v20 }
 0x2f5   : > { %v5506_v0 = vsel %vm5356_vm10, %v4493_v56, %v5505_v53  ;;  %v4429_v29 = vrot.slane %v4428_v52, 1  ;;  %v4448_v57 = vrot.slane %v4447_v63, 2  ;;  %v12537_v49 = vunpack.i.h.bf16 %v12535_v42 }
 0x2f6   : > { %v5507_v32 = vsel %vm5358_vm11, %v4500_v5, %v5506_v0  ;;  %v4435_v19 = vmax.f32 %v4433_v35, %v4434_v39  ;;  %v4442_v33 = vmax.f32 %v4440_v31, %v4441_v43  ;;  %12759 = vrot.lane.b32.xlu0 %v12758_v24, %s13474_s21  ;;  %v12536_v1 = vunpack.i.l.bf16 %v12535_v42  ;;  %12769 = vrot.lane.b32.xlu1 %v12758_v24, %s13473_s17  ;;  %v15271_v35 = vld [vmem:[#allocation2 + $0xd8] sm:$0xff]  ;;  %v15273_v31 = vld [vmem:[#allocation2 + $0xe0] sm:$0xff] }
 0x2f7   : > { %v5508_v36 = vsel %vm5360_vm12, %v4507_v10, %v5507_v32  ;;  %v4430_v22 = vmax.f32 %v4428_v52, %v4429_v29  ;;  %v18436_v47 = vrot.slane %v15137_v46, 7  ;;  %v18437_v2 = vrot.slane %v15154_v6, 7  ;;  %v15283_v52 = vpop.permute.xlu1 %12559  ;;  %v15288_v39 = vld [vmem:[%s18332_s2] ss:$0 sm:$0xff] }
 0x2f8   : > { %5632 = vst.msk [vmem:[#allocation2 + $0x110] sm:$0xff] %vm1674_vm3, %v5508_v36  ;;  %v4436_v62 = vrot.slane %v4435_v19, 1  ;;  %v4443_v20 = vrot.slane %v4442_v33, 1  ;;  %v4449_v30 = vmax.f32 %v4447_v63, %v4448_v57  ;;  %v18439_v56 = vrot.slane %v15140_v34, 7 }
 0x2f9   : > { %v5754_v3 = vsel %vm5753_vm13, %v18437_v2, %v18436_v47  ;;  %v18438_v9 = vmov %v18437_v2  ;;  %v12546_v5 = vunpack.i.l.bf16 %v15244_v37  ;;  %v5498_v53 = vsel %vm5354_vm9, %v4430_v22, %v5497_v59 }
 0x2fa   : > { %v5772_v46 = vsel %vm5753_vm13, %v18439_v56, %v18438_v9  ;;  %v1396_v43 = vadd.f32 %v15288_v39, %v14907_v45  ;;  %v4437_v6 = vmax.f32 %v4435_v19, %v4436_v62  ;;  %v4450_v63 = vrot.slane %v4449_v30, 1  ;;  %v15303_v19 = vld [vmem:[#allocation2 + $0xe8] sm:$0xff] }
 0x2fb   : > { %v1388_v34 = vadd.f32 %v15288_v39, %v14917_v12  ;;  %v1399_v24 = vadd.f32 %v15288_v39, %v14933_v44  ;;  %v4444_v10 = vmax.f32 %v4442_v33, %v4443_v20  ;;  %v1391_v0 = vadd.f32 %v15288_v39, %v14940_v15  ;;  %v18440_v33 = vld [vmem:[#allocation8_spill] sm:$0xff]  ;;  %v15315_v15 = vpop.permute.xlu0 %12549 }
 0x2fc   : > { %v12773_v29 = vpack.i.bf16 %v15273_v31, %v15271_v35  ;;  %v12547_v42 = vunpack.i.h.bf16 %v15244_v37  ;;  %v4451_v45 = vmax.f32 %v4449_v30, %v4450_v63  ;;  %v5499_v32 = vsel %vm5356_vm10, %v4437_v6, %v5498_v53  ;;  %v15319_v37 = vpop.permute.xlu1 %12569  ;;  %v18441_v30 = vld [vmem:[#allocation7_spill] sm:$0xff] }
 0x2fd   : > { %v15306_v12 = vsel %vm1674_vm3, %v5772_v46, %v12536_v1  ;;  %v15309_v44 = vsel %vm1674_vm3, %v5754_v3, %v12537_v49  ;;  %v15313_v57 = vsel %vm1674_vm3, %v18440_v33, %v12546_v5  ;;  %v5500_v36 = vsel %vm5358_vm11, %v4444_v10, %v5499_v32 }
 0x2fe   : > { %12774 = vrot.lane.b32.xlu0 %v12773_v29, %s13476_s24  ;;  %v5501_v22 = vsel %vm5360_vm12, %v4451_v45, %v5500_v36  ;;  %v1636_v47 = vmax.f32 %v1396_v43, 0.0  ;;  %v1634_v1 = vmax.f32 %v1388_v34, 0.0  ;;  %v1637_v2 = vmax.f32 %v1399_v24, 0.0  ;;  %12779 = vrot.lane.b32.xlu1 %v12773_v29, %s13474_s21  ;;  %v15346_v34 = vpop.f32.mrb[109].mxu0 }
 0x2ff   : > { %5631 = vst.msk [vmem:[#allocation2 + $0x108] sm:$0xff] %vm1674_vm3, %v5501_v22  ;;  %v1635_v49 = vmax.f32 %v1391_v0, 0.0  ;;  %v5706_v3 = vrot.slane %v15271_v35, 7  ;;  %v5724_v62 = vrot.slane %v15273_v31, 7  ;;  %v5742_v20 = vrot.slane %v15303_v19, 7  ;;  %18444 = vst [vmem:[#allocation40_spill] sm:$0xff] %v15346_v34  ;;  %v15348_v24 = vpop.permute.xlu0 %12564 }
 0x300   : > { %v15329_v9 = vsel %vm1674_vm3, %v18441_v30, %v12547_v42  ;;  %v1412_v46 = vadd.f32 %v15288_v39, %v14950_v16  ;;  %v1404_v5 = vadd.f32 %v15288_v39, %v14966_v26  ;;  %v15352_v0 = vpop.f32.mrb[110].mxu0  ;;  %v1813_v29 = vsel %vm1674_vm3, %v1636_v47, -inf  ;;  %v15360_v33 = vpop.permute.xlu1 %12574 }
 0x301   : > { %v15340_v6 = vsel %vm5753_vm13, %v5706_v3, %v5724_v62  ;;  %v15344_v63 = vsel %vm5753_vm13, %v5742_v20, %v5706_v3  ;;  %18445 = vst [vmem:[#allocation41_spill] sm:$0xff] %v15352_v0  ;;  %v1807_v42 = vsel %vm1674_vm3, %v1634_v1, -inf  ;;  %v1816_v45 = vsel %vm1674_vm3, %v1637_v2, -inf  ;;  %v15362_v36 = vpop.f32.mrb[111].mxu0 }
 0x302   : > { %18442 = vst [vmem:[#allocation8_spill] sm:$0xff] %v15340_v6  ;;  %18443 = vst [vmem:[#allocation7_spill] sm:$0xff] %v15344_v63  ;;  %v12783_v16 = vpack.i.bf16 %v15340_v6, %v15344_v63  ;;  %v1640_v26 = vmax.f32 %v1412_v46, 0.0  ;;  %v1638_v10 = vmax.f32 %v1404_v5, 0.0  ;;  %v15358_v32 = vsel %vm1674_vm3, %v1635_v49, -inf }
 0x303   : > { %18446 = vst [vmem:[#allocation42_spill] sm:$0xff] %v15362_v36  ;;  %v1415_v47 = vadd.f32 %v15288_v39, %v14969_v11  ;;  %v1407_v1 = vadd.f32 %v15288_v39, %v14982_v4 }
 0x304   : > { %12784 = vrot.lane.b32.xlu0 %v12783_v16, %s13473_s17  ;;  %12794 = vrot.lane.b32.xlu1 %v12783_v16, %s13476_s24  ;;  %v1814_v22 = vsel %vm1674_vm3, %v1640_v26, -inf  ;;  %v1808_v3 = vsel %vm1674_vm3, %v1638_v10, -inf }
 0x305   : > { %v1815_v62 = vmax.f32 %v1813_v29, %v1814_v22  ;;  %v1809_v20 = vmax.f32 %v1807_v42, %v1808_v3  ;;  %v1641_v46 = vmax.f32 %v1415_v47, 0.0  ;;  %v1639_v5 = vmax.f32 %v1407_v1, 0.0 }
 0x306   : > { %v5835_v42 = vrot.slane %v15303_v19, 1 }
 0x307   : > { %v2713_v26 = vcombine.high %v1815_v62, %v1815_v62  ;;  %v2720_v10 = vrot.slane %v1815_v62, %v13775_v41  ;;  %v2679_v43 = vcombine.high %v1809_v20, %v1809_v20  ;;  %v2686_v11 = vrot.slane %v1809_v20, %v13775_v41 }
 0x308   : > { %v1817_v4 = vsel %vm1674_vm3, %v1641_v46, -inf  ;;  %v15380_v59 = vsel %vm1674_vm3, %v1639_v5, -inf }
 0x309   : > { %v2727_v22 = vrot.slane %v2713_v26, %v13775_v41  ;;  %v2728_v3 = vcombine.high %v2720_v10, %v2720_v10  ;;  %v4564_v47 = vsel %vm3275_vm5, %v2720_v10, -inf  ;;  %v2693_v1 = vrot.slane %v2679_v43, %v13775_v41 }
 0x30a   : > { %v4565_v62 = vrot.slane %v4564_v47, 4  ;;  %v2694_v2 = vcombine.high %v2686_v11, %v2686_v11  ;;  %v4508_v20 = vsel %vm3275_vm5, %v2686_v11, -inf  ;;  %v1818_v49 = vmax.f32 %v1816_v45, %v1817_v4 }
 0x30b   : > { %v2729_v46 = vcombine.high %v2727_v22, %v2727_v22  ;;  %v4571_v5 = vsel %vm3275_vm5, %v2728_v3, -inf  ;;  %v4578_v30 = vsel %vm3275_vm5, %v2727_v22, -inf  ;;  %v2695_v56 = vcombine.high %v2693_v1, %v2693_v1 }
 0x30c   : > { %v4566_v53 = vmax.f32 %v4564_v47, %v4565_v62  ;;  %v4572_v19 = vrot.slane %v4571_v5, 4  ;;  %v4579_v16 = vrot.slane %v4578_v30, 4  ;;  %v4509_v26 = vrot.slane %v4508_v20, 4 }
 0x30d   : > { %v4585_v29 = vsel %vm3275_vm5, %v2729_v46, -inf  ;;  %v4515_v10 = vsel %vm3275_vm5, %v2694_v2, -inf  ;;  %v4522_v43 = vsel %vm3275_vm5, %v2693_v1, -inf  ;;  %v4529_v8 = vsel %vm3275_vm5, %v2695_v56, -inf }
 0x30e   : > { %v4567_v11 = vrot.slane %v4566_v53, 2  ;;  %v4573_v45 = vmax.f32 %v4571_v5, %v4572_v19  ;;  %v4580_v4 = vmax.f32 %v4578_v30, %v4579_v16  ;;  %v4586_v18 = vrot.slane %v4585_v29, 4 }
 0x30f   : > { %v4510_v3 = vmax.f32 %v4508_v20, %v4509_v26  ;;  %v4516_v63 = vrot.slane %v4515_v10, 4  ;;  %v4523_v22 = vrot.slane %v4522_v43, 4  ;;  %v4530_v6 = vrot.slane %v4529_v8, 4 }
 0x310   : > { %v4568_v47 = vmax.f32 %v4566_v53, %v4567_v11  ;;  %v4574_v62 = vrot.slane %v4573_v45, 2  ;;  %v4581_v48 = vrot.slane %v4580_v4, 2  ;;  %v4587_v58 = vmax.f32 %v4585_v29, %v4586_v18 }
 0x311   : > { %v4511_v17 = vrot.slane %v4510_v3, 2  ;;  %v4517_v46 = vmax.f32 %v4515_v10, %v4516_v63  ;;  %v4524_v36 = vmax.f32 %v4522_v43, %v4523_v22  ;;  %v4531_v2 = vmax.f32 %v4529_v8, %v4530_v6 }
 0x312   : > { %v4569_v0 = vrot.slane %v4568_v47, 1  ;;  %v4575_v1 = vmax.f32 %v4573_v45, %v4574_v62  ;;  %v4582_v34 = vmax.f32 %v4580_v4, %v4581_v48  ;;  %v4588_v56 = vrot.slane %v4587_v58, 2 }
 0x313   : > { %v4512_v23 = vmax.f32 %v4510_v3, %v4511_v17  ;;  %v4518_v5 = vrot.slane %v4517_v46, 2  ;;  %v4525_v30 = vrot.slane %v4524_v36, 2  ;;  %v4532_v16 = vrot.slane %v4531_v2, 2 }
 0x314   : > { %v4570_v20 = vmax.f32 %v4568_v47, %v4569_v0  ;;  %v4576_v19 = vrot.slane %v4575_v1, 1  ;;  %v4583_v26 = vrot.slane %v4582_v34, 1  ;;  %v4589_v14 = vmax.f32 %v4587_v58, %v4588_v56  ;;  %v15414_v56 = vpop.f32.mrb[112].mxu0 }
 0x315   : > { %v4513_v53 = vrot.slane %v4512_v23, 1  ;;  %v4519_v11 = vmax.f32 %v4517_v46, %v4518_v5  ;;  %v4526_v25 = vmax.f32 %v4524_v36, %v4525_v30  ;;  %v4533_v18 = vmax.f32 %v4531_v2, %v4532_v16 }
 0x316   : > { %v4577_v29 = vmax.f32 %v4575_v1, %v4576_v19  ;;  %v4584_v63 = vmax.f32 %v4582_v34, %v4583_v26  ;;  %v4590_v10 = vrot.slane %v4589_v14, 1  ;;  %v2730_v8 = vcombine.high %v1818_v49, %v1818_v49 }
 0x317   : > { %v4520_v6 = vrot.slane %v4519_v11, 1  ;;  %v4527_v43 = vrot.slane %v4526_v25, 1  ;;  %v4534_v48 = vrot.slane %v4533_v18, 1  ;;  %v18447_v17 = vrot.slane %v15273_v31, 1 }
 0x318   : > { %v5516_v0 = vsel %vm5348_vm6, %v4577_v29, %v4570_v20  ;;  %v2737_v58 = vrot.slane %v1818_v49, %v13775_v41  ;;  %v2744_v36 = vrot.slane %v2730_v8, %v13775_v41  ;;  %v18450_v34 = vrot.slane %v15271_v35, 1 }
 0x319   : > { %v15398_v45 = vsel %vm5844_vm4, %v18447_v17, %v5835_v42  ;;  %v18449_v4 = vmov %v18447_v17  ;;  %v4591_v22 = vmax.f32 %v4589_v14, %v4590_v10  ;;  %v5517_v47 = vsel %vm5350_vm7, %v4584_v63, %v5516_v0 }
 0x31a   : > { %18448 = vst [vmem:[#allocation43_spill] sm:$0xff] %v15398_v45  ;;  %v15409_v3 = vsel %vm5844_vm4, %v18450_v34, %v18449_v4  ;;  %v4514_v62 = vmax.f32 %v4512_v23, %v4513_v53  ;;  %v4521_v42 = vmax.f32 %v4519_v11, %v4520_v6  ;;  %v2745_v46 = vcombine.high %v2737_v58, %v2737_v58 }
 0x31b   : > { %18451 = vst [vmem:[#allocation44_spill] sm:$0xff] %v15409_v3  ;;  %v2746_v2 = vcombine.high %v2744_v36, %v2744_v36  ;;  %v4592_v1 = vsel %vm3275_vm5, %v2737_v58, -inf  ;;  %v4606_v49 = vsel %vm3275_vm5, %v2744_v36, -inf  ;;  %v4528_v31 = vmax.f32 %v4526_v25, %v4527_v43 }
 0x31c   : > { %v15416_v5 = vmax.f32 %v4533_v18, %v4534_v48  ;;  %v4593_v35 = vrot.slane %v4592_v1, 4  ;;  %v4607_v30 = vrot.slane %v4606_v49, 4  ;;  %v5509_v16 = vsel %vm5348_vm6, %v4521_v42, %v4514_v62  ;;  %v15427_v48 = vpop.f32.mrb[113].mxu0 }
 0x31d   : > { %v4599_v14 = vsel %vm3275_vm5, %v2745_v46, -inf  ;;  %v4613_v23 = vsel %vm3275_vm5, %v2746_v2, -inf  ;;  %v1812_v20 = vmax.f32 %v15358_v32, %v15380_v59  ;;  %v5518_v29 = vsel %vm5352_vm8, %v4591_v22, %v5517_v47  ;;  %v15432_v34 = vpop.f32.mrb[114].mxu0 }
 0x31e   : > { %v4594_v19 = vmax.f32 %v4592_v1, %v4593_v35  ;;  %v4600_v26 = vrot.slane %v4599_v14, 4  ;;  %v4608_v53 = vmax.f32 %v4606_v49, %v4607_v30  ;;  %v4614_v11 = vrot.slane %v4613_v23, 4  ;;  %v15437_v46 = vpop.f32.mrb[115].mxu0 }
 0x31f   : > { %v2696_v25 = vcombine.high %v1812_v20, %v1812_v20  ;;  %v2703_v18 = vrot.slane %v1812_v20, %v13775_v41  ;;  %v12788_v63 = vpack.i.bf16 %v15398_v45, %v15409_v3 }
 0x320   : > { %v4595_v10 = vrot.slane %v4594_v19, 2  ;;  %v4601_v8 = vmax.f32 %v4599_v14, %v4600_v26  ;;  %v4609_v6 = vrot.slane %v4608_v53, 2  ;;  %v4615_v43 = vmax.f32 %v4613_v23, %v4614_v11 }
 0x321   : > { %v2710_v59 = vrot.slane %v2696_v25, %v13775_v41  ;;  %v2711_v32 = vcombine.high %v2703_v18, %v2703_v18  ;;  %v4536_v17 = vsel %vm3275_vm5, %v2703_v18, -inf  ;;  %12789 = vrot.lane.b32.xlu0 %v12788_v63, %s13474_s21  ;;  %12799 = vrot.lane.b32.xlu1 %v12788_v63, %s13473_s17 }
 0x322   : > { %v4596_v0 = vmax.f32 %v4594_v19, %v4595_v10  ;;  %v4602_v58 = vrot.slane %v4601_v8, 2  ;;  %v4610_v36 = vmax.f32 %v4608_v53, %v4609_v6  ;;  %v4616_v4 = vrot.slane %v4615_v43, 2 }
 0x323   : > { %v2712_v22 = vcombine.high %v2710_v59, %v2710_v59  ;;  %v4537_v47 = vrot.slane %v4536_v17, 4  ;;  %v4543_v62 = vsel %vm3275_vm5, %v2711_v32, -inf  ;;  %v4550_v42 = vsel %vm3275_vm5, %v2710_v59, -inf  ;;  %v15443_v32 = vpop.f32.mrb[116].mxu0 }
 0x324   : > { %v4597_v2 = vrot.slane %v4596_v0, 1  ;;  %v4603_v1 = vmax.f32 %v4601_v8, %v4602_v58  ;;  %v4611_v49 = vrot.slane %v4610_v36, 1  ;;  %v4617_v35 = vmax.f32 %v4615_v43, %v4616_v4 }
 0x325   : > { %v4538_v30 = vmax.f32 %v4536_v17, %v4537_v47  ;;  %v4544_v14 = vrot.slane %v4543_v62, 4  ;;  %v4551_v23 = vrot.slane %v4550_v42, 4  ;;  %v4557_v20 = vsel %vm3275_vm5, %v2712_v22, -inf }
 0x326   : > { %v5510_v19 = vsel %vm5350_vm7, %v4528_v31, %v5509_v16  ;;  %v4598_v26 = vmax.f32 %v4596_v0, %v4597_v2  ;;  %v4604_v53 = vrot.slane %v4603_v1, 1  ;;  %v4618_v11 = vrot.slane %v4617_v35, 1 }
 0x327   : > { %v4539_v25 = vrot.slane %v4538_v30, 2  ;;  %v4545_v18 = vmax.f32 %v4543_v62, %v4544_v14  ;;  %v4552_v63 = vmax.f32 %v4550_v42, %v4551_v23  ;;  %v4558_v10 = vrot.slane %v4557_v20, 4 }
 0x328   : > { %v12576_v6 = vunpack.i.l.bf16 %v15360_v33  ;;  %v4605_v59 = vmax.f32 %v4603_v1, %v4604_v53  ;;  %v4612_v8 = vmax.f32 %v4610_v36, %v4611_v49  ;;  %v5519_v43 = vsel %vm5354_vm9, %v4598_v26, %v5518_v29  ;;  %v13379_v1 = vld [vmem:[#allocation2 + $0x18] sm:$0xff] }
 0x329   : > { %v4540_v17 = vmax.f32 %v4538_v30, %v4539_v25  ;;  %v4546_v58 = vrot.slane %v4545_v18, 2  ;;  %v4553_v4 = vrot.slane %v4552_v63, 2  ;;  %v4559_v22 = vmax.f32 %v4557_v20, %v4558_v10 }
 0x32a   : > { %v4619_v31 = vmax.f32 %v4617_v35, %v4618_v11  ;;  %v5520_v16 = vsel %vm5356_vm10, %v4605_v59, %v5519_v43  ;;  %v5511_v0 = vsel %vm5352_vm8, %v15416_v5, %v5510_v19  ;;  %v18452_v49 = vunpack.i.l.bf16 %v15315_v15  ;;  %v13380_v35 = vld [vmem:[#allocation2 + $0x20] sm:$0xff]  ;;  %v12580_v59 = vpop.permute.xlu0 %12579 }
 0x32b   : > { %v5521_v47 = vsel %vm5358_vm11, %v4612_v8, %v5520_v16  ;;  %v4541_v62 = vrot.slane %v4540_v17, 1  ;;  %v4547_v42 = vmax.f32 %v4545_v18, %v4546_v58  ;;  %v4554_v36 = vmax.f32 %v4552_v63, %v4553_v4 }
 0x32c   : > { %v5522_v29 = vsel %vm5360_vm12, %v4619_v31, %v5521_v47  ;;  %v4560_v2 = vrot.slane %v4559_v22, 2  ;;  %v6659_v30 = vsel %vm1674_vm3, %v13379_v1, %v18452_v49  ;;  %v18453_v14 = vunpack.i.h.bf16 %v15315_v15  ;;  %v15486_v1 = vld [vmem:[#allocation2 + $0xf0] sm:$0xff]  ;;  %v15488_v49 = vld [vmem:[#allocation2 + $0xf8] sm:$0xff] }
 0x32d   : > { %5634 = vst.msk [vmem:[#allocation2 + $0x128] sm:$0xff] %vm1674_vm3, %v5522_v29  ;;  %v4542_v5 = vmax.f32 %v4540_v17, %v4541_v62  ;;  %v4548_v20 = vrot.slane %v4547_v42, 1  ;;  %v4555_v19 = vrot.slane %v4554_v36, 1  ;;  %v6691_v26 = vsel %vm6593_vm14, %v6659_v30, %v12576_v6 }
 0x32e   : > { %v6660_v23 = vsel %vm1674_vm3, %v13380_v35, %v18453_v14  ;;  %v12556_v53 = vunpack.i.l.bf16 %v15254_v54  ;;  %v4561_v11 = vmax.f32 %v4559_v22, %v4560_v2  ;;  %v18454_v25 = vunpack.i.h.bf16 %v15360_v33 }
 0x32f   : > { %v18455_v63 = vunpack.i.l.bf16 %v15348_v24  ;;  %v12561_v10 = vunpack.i.l.bf16 %v15283_v52  ;;  %v4549_v8 = vmax.f32 %v4547_v42, %v4548_v20  ;;  %v5512_v43 = vsel %vm5354_vm9, %v4542_v5, %v5511_v0  ;;  %v15503_v20 = vpop.permute.xlu0 %12594 }
 0x330   : > { %v6692_v18 = vsel %vm6593_vm14, %v6660_v23, %v18454_v25  ;;  %v18456_v17 = vunpack.i.h.bf16 %v15348_v24  ;;  %v12562_v58 = vunpack.i.h.bf16 %v15283_v52  ;;  %v4556_v4 = vmax.f32 %v4554_v36, %v4555_v19  ;;  %v15482_v36 = vpop.permute.xlu1 %12584 }
 0x331   : > { %v6723_v15 = vsel %vm6626_vm15, %v6691_v26, %v18455_v63  ;;  %v4562_v33 = vrot.slane %v4561_v11, 1  ;;  %v12572_v31 = vunpack.i.h.bf16 %v15319_v37  ;;  %v5513_v16 = vsel %vm5356_vm10, %v4549_v8, %v5512_v43  ;;  %v18460_v26 = vld [vmem:[#allocation11_spill] sm:$0xff] }
 0x332   : > { %v6724_v6 = vsel %vm6626_vm15, %v6692_v18, %v18456_v17  ;;  %v18457_v47 = vunpack.i.l.bf16 %v15149_v27  ;;  %v18458_v0 = vunpack.i.h.bf16 %v15149_v27  ;;  %v12582_v42 = vunpack.i.h.bf16 %v12580_v59 }
 0x333   : > { %v6756_v22 = vpack.c.bf16 %v6724_v6, %v6723_v15  ;;  %v4563_v29 = vmax.f32 %v4561_v11, %v4562_v33  ;;  %v5514_v52 = vsel %vm5358_vm11, %v4556_v4, %v5513_v16  ;;  %v1428_v2 = vadd.f32 %v15288_v39, %v15069_v38  ;;  %v13381_v11 = vld [vmem:[#allocation2 + $0x38] sm:$0xff] }
 0x334   : > { %v6594_v62 = vsel %vm6593_vm14, %v15306_v12, %v18457_v47  ;;  %v6595_v24 = vsel %vm6593_vm14, %v15309_v44, %v18458_v0  ;;  %v15492_v27 = vsel %vm6593_vm14, %v15313_v57, %v12561_v10  ;;  %v1420_v12 = vadd.f32 %v15288_v39, %v15093_v28  ;;  %v15505_v57 = vld [vmem:[#allocation2 + $0x100] sm:$0xff]  ;;  %v13382_v10 = vld [vmem:[#allocation2 + $0x30] sm:$0xff]  ;;  %v15533_v43 = vpop.permute.xlu1 %12589 }
 0x335   : > { %7034 = vmatprep.mubr.bf16.mxu1 %v6756_v22  ;;  %v6627_v44 = vsel %vm6626_vm15, %v6594_v62, %v12556_v53  ;;  %v18459_v30 = vunpack.i.h.bf16 %v15254_v54  ;;  %v12581_v14 = vunpack.i.l.bf16 %v12580_v59  ;;  %v5515_v38 = vsel %vm5360_vm12, %v4563_v29, %v5514_v52  ;;  %v15550_v62 = vpop.permute.xlu0 %12604 }
 0x336   : > { %v1431_v5 = vadd.f32 %v15288_v39, %v15097_v55  ;;  %v15509_v28 = vsel %vm6593_vm14, %v15329_v9, %v12562_v58  ;;  %5633 = vst.msk [vmem:[#allocation2 + $0x120] sm:$0xff] %vm1674_vm3, %v5515_v38  ;;  %v1423_v54 = vadd.f32 %v15288_v39, %v15099_v13  ;;  %v12803_v19 = vpack.i.bf16 %v15488_v49, %v15486_v1 }
 0x337   : > { %v6628_v35 = vsel %vm6626_vm15, %v6595_v24, %v18459_v30  ;;  %v15518_v53 = vsel %vm1674_vm3, %v18460_v26, %v12572_v31  ;;  %v15522_v25 = vsel %vm1674_vm3, %v13381_v11, %v12582_v42  ;;  %v1644_v9 = vmax.f32 %v1428_v2, 0.0 }
 0x338   : > { %v6755_v23 = vpack.c.bf16 %v6628_v35, %v6627_v44  ;;  %v1642_v18 = vmax.f32 %v1420_v12, 0.0  ;;  %12804 = vrot.lane.b32.xlu0 %v12803_v19, %s13476_s24  ;;  %12809 = vrot.lane.b32.xlu1 %v12803_v19, %s13474_s21  ;;  %v5707_v13 = vrot.slane %v15486_v1, 7  ;;  %v5725_v63 = vrot.slane %v15488_v49, 7  ;;  %v15565_v12 = vpop.f32.mrb[117].mxu0 }
 0x339   : > { %v5743_v15 = vrot.slane %v15505_v57, 7  ;;  %v15530_v59 = vsel %vm1674_vm3, %v13382_v10, %v12581_v14  ;;  %v1645_v17 = vmax.f32 %v1431_v5, 0.0  ;;  %v1444_v6 = vadd.f32 %v15288_v39, %v15110_v21  ;;  %v15572_v38 = vpop.f32.mrb[118].mxu0 }
 0x33a   : > { %7035 = vmatmul.mubr.bf16.vlgmr.msra.gmra.mrb[0].mxu1 %v6755_v23  ;;  %v1643_v58 = vmax.f32 %v1423_v54, 0.0  ;;  %v15539_v4 = vsel %vm5753_vm13, %v5707_v13, %v5725_v63  ;;  %v1436_v22 = vadd.f32 %v15288_v39, %v15172_v51  ;;  %v1825_v21 = vsel %vm1674_vm3, %v1644_v9, -inf }
 0x33b   : > { %18461 = vst [vmem:[#allocation11_spill] sm:$0xff] %v15539_v4  ;;  %v15543_v33 = vsel %vm5753_vm13, %v5743_v15, %v5707_v13  ;;  %v1648_v47 = vmax.f32 %v1444_v6, 0.0  ;;  %v1819_v0 = vsel %vm1674_vm3, %v1642_v18, -inf  ;;  %v1828_v29 = vsel %vm1674_vm3, %v1645_v17, -inf }
 0x33c   : > { %18462 = vst [vmem:[#allocation45_spill] sm:$0xff] %v15543_v33  ;;  %v12813_v16 = vpack.i.bf16 %v15539_v4, %v15543_v33  ;;  %v1646_v42 = vmax.f32 %v1436_v22, 0.0  ;;  %v1447_v52 = vadd.f32 %v15288_v39, %v15179_v50  ;;  %v15563_v2 = vadd.f32 %v15288_v39, %v15185_v40  ;;  %v15576_v40 = vpop.f32.mrb[119].mxu0 }
 0x33d   : > { %v1826_v51 = vsel %vm1674_vm3, %v1648_v47, -inf  ;;  %v15568_v44 = vsel %vm1674_vm3, %v1643_v58, -inf }
 0x33e   : > { %12814 = vrot.lane.b32.xlu0 %v12813_v16, %s13473_s17  ;;  %12824 = vrot.lane.b32.xlu1 %v12813_v16, %s13476_s24  ;;  %v1827_v30 = vmax.f32 %v1825_v21, %v1826_v51  ;;  %v1820_v35 = vsel %vm1674_vm3, %v1646_v42, -inf  ;;  %v1649_v50 = vmax.f32 %v1447_v52, 0.0  ;;  %v1647_v11 = vmax.f32 %v15563_v2, 0.0 }
 0x33f   : > { %v1821_v23 = vmax.f32 %v1819_v0, %v1820_v35 }
 0x340   : > { %v2781_v19 = vcombine.high %v1827_v30, %v1827_v30  ;;  %v2788_v26 = vrot.slane %v1827_v30, %v13775_v41  ;;  %v1829_v63 = vsel %vm1674_vm3, %v1649_v50, -inf }
 0x341   : > { %v2747_v18 = vcombine.high %v1821_v23, %v1821_v23  ;;  %v2754_v13 = vrot.slane %v1821_v23, %v13775_v41  ;;  %v1830_v58 = vmax.f32 %v1828_v29, %v1829_v63 }
 0x342   : > { %v2795_v10 = vrot.slane %v2781_v19, %v13775_v41  ;;  %v2796_v17 = vcombine.high %v2788_v26, %v2788_v26  ;;  %v4676_v6 = vsel %vm3275_vm5, %v2788_v26, -inf }
 0x343   : > { %v4677_v22 = vrot.slane %v4676_v6, 4  ;;  %v2761_v16 = vrot.slane %v2747_v18, %v13775_v41  ;;  %v2762_v47 = vcombine.high %v2754_v13, %v2754_v13  ;;  %v4620_v21 = vsel %vm3275_vm5, %v2754_v13, -inf }
 0x344   : > { %v2797_v0 = vcombine.high %v2795_v10, %v2795_v10  ;;  %v4683_v42 = vsel %vm3275_vm5, %v2796_v17, -inf  ;;  %v4690_v51 = vsel %vm3275_vm5, %v2795_v10, -inf  ;;  %v4621_v52 = vrot.slane %v4620_v21, 4 }
 0x345   : > { %v4678_v2 = vmax.f32 %v4676_v6, %v4677_v22  ;;  %v4684_v30 = vrot.slane %v4683_v42, 4  ;;  %v4691_v35 = vrot.slane %v4690_v51, 4  ;;  %v2763_v23 = vcombine.high %v2761_v16, %v2761_v16 }
 0x346   : > { %v4697_v50 = vsel %vm3275_vm5, %v2797_v0, -inf  ;;  %v4622_v19 = vmax.f32 %v4620_v21, %v4621_v52  ;;  %v4627_v29 = vsel %vm3275_vm5, %v2762_v47, -inf  ;;  %v4634_v26 = vsel %vm3275_vm5, %v2761_v16, -inf }
 0x347   : > { %v4679_v18 = vrot.slane %v4678_v2, 2  ;;  %v4685_v63 = vmax.f32 %v4683_v42, %v4684_v30  ;;  %v4692_v13 = vmax.f32 %v4690_v51, %v4691_v35  ;;  %v4698_v8 = vrot.slane %v4697_v50, 4 }
 0x348   : > { %v4623_v31 = vrot.slane %v4622_v19, 2  ;;  %v4628_v17 = vrot.slane %v4627_v29, 4  ;;  %v4635_v24 = vrot.slane %v4634_v26, 4  ;;  %v4641_v10 = vsel %vm3275_vm5, %v2763_v23, -inf }
 0x349   : > { %v4680_v6 = vmax.f32 %v4678_v2, %v4679_v18  ;;  %v4686_v22 = vrot.slane %v4685_v63, 2  ;;  %v4693_v55 = vrot.slane %v4692_v13, 2  ;;  %v4699_v14 = vmax.f32 %v4697_v50, %v4698_v8 }
 0x34a   : > { %v4624_v5 = vmax.f32 %v4622_v19, %v4623_v31  ;;  %v4629_v0 = vmax.f32 %v4627_v29, %v4628_v17  ;;  %v4636_v21 = vmax.f32 %v4634_v26, %v4635_v24  ;;  %v4642_v52 = vrot.slane %v4641_v10, 4 }
 0x34b   : > { %v4681_v47 = vrot.slane %v4680_v6, 1  ;;  %v4687_v15 = vmax.f32 %v4685_v63, %v4686_v22  ;;  %v4694_v16 = vmax.f32 %v4692_v13, %v4693_v55  ;;  %v4700_v54 = vrot.slane %v4699_v14, 2 }
 0x34c   : > { %v4630_v42 = vrot.slane %v4629_v0, 2  ;;  %v4637_v51 = vrot.slane %v4636_v21, 2  ;;  %v4643_v30 = vmax.f32 %v4641_v10, %v4642_v52  ;;  %v1823_v35 = vsel %vm1674_vm3, %v1647_v11, -inf }
 0x34d   : > { %v4688_v9 = vrot.slane %v4687_v15, 1  ;;  %v4695_v45 = vrot.slane %v4694_v16, 1  ;;  %v4701_v23 = vmax.f32 %v4699_v14, %v4700_v54  ;;  %v4625_v2 = vrot.slane %v4624_v5, 1 }
 0x34e   : > { %v4682_v18 = vmax.f32 %v4680_v6, %v4681_v47  ;;  %v4631_v3 = vmax.f32 %v4629_v0, %v4630_v42  ;;  %v4638_v8 = vmax.f32 %v4636_v21, %v4637_v51  ;;  %v4644_v31 = vrot.slane %v4643_v30, 2  ;;  %v15607_v0 = vpop.f32.mrb[120].mxu0 }
 0x34f   : > { %v4689_v50 = vmax.f32 %v4687_v15, %v4688_v9  ;;  %v4696_v24 = vmax.f32 %v4694_v16, %v4695_v45  ;;  %v4702_v19 = vrot.slane %v4701_v23, 1  ;;  %v2798_v29 = vcombine.high %v1830_v58, %v1830_v58 }
 0x350   : > { %v4632_v26 = vrot.slane %v4631_v3, 1  ;;  %v4639_v55 = vrot.slane %v4638_v8, 1  ;;  %v4645_v63 = vmax.f32 %v4643_v30, %v4644_v31  ;;  %v2805_v13 = vrot.slane %v1830_v58, %v13775_v41 }
 0x351   : > { %v5530_v17 = vsel %vm5348_vm6, %v4689_v50, %v4682_v18  ;;  %v2812_v11 = vrot.slane %v2798_v29, %v13775_v41  ;;  %v1824_v14 = vmax.f32 %v15568_v44, %v1823_v35  ;;  %v18463_v54 = vrot.slane %v15488_v49, 1 }
 0x352   : > { %v18464_v10 = vrot.slane %v15486_v1, 1  ;;  %v4703_v9 = vmax.f32 %v4701_v23, %v4702_v19  ;;  %v4626_v15 = vmax.f32 %v4624_v5, %v4625_v2  ;;  %v4633_v6 = vmax.f32 %v4631_v3, %v4632_v26  ;;  %v15627_v26 = vpop.f32.mrb[121].mxu0 }
 0x353   : > { %v4646_v22 = vrot.slane %v4645_v63, 1  ;;  %v2813_v58 = vcombine.high %v2805_v13, %v2805_v13  ;;  %v2814_v21 = vcombine.high %v2812_v11, %v2812_v11  ;;  %v4704_v52 = vsel %vm3275_vm5, %v2805_v13, -inf }
 0x354   : > { %v15605_v45 = vsel %vm5844_vm4, %v18464_v10, %v18463_v54  ;;  %v4718_v44 = vsel %vm3275_vm5, %v2812_v11, -inf  ;;  %v5531_v47 = vsel %vm5350_vm7, %v4696_v24, %v5530_v17  ;;  %v4640_v16 = vmax.f32 %v4638_v8, %v4639_v55 }
 0x355   : > { %18465 = vst [vmem:[#allocation46_spill] sm:$0xff] %v15605_v45  ;;  %v4705_v1 = vrot.slane %v4704_v52, 4  ;;  %v4719_v42 = vrot.slane %v4718_v44, 4  ;;  %v15612_v51 = vmax.f32 %v4645_v63, %v4646_v22  ;;  %v5523_v30 = vsel %vm5348_vm6, %v4633_v6, %v4626_v15 }
 0x356   : > { %v4711_v3 = vsel %vm3275_vm5, %v2813_v58, -inf  ;;  %v4725_v5 = vsel %vm3275_vm5, %v2814_v21, -inf  ;;  %v5532_v31 = vsel %vm5352_vm8, %v4703_v9, %v5531_v47  ;;  %v2764_v50 = vcombine.high %v1824_v14, %v1824_v14 }
 0x357   : > { %v4706_v35 = vmax.f32 %v4704_v52, %v4705_v1  ;;  %v4712_v23 = vrot.slane %v4711_v3, 4  ;;  %v4720_v2 = vmax.f32 %v4718_v44, %v4719_v42  ;;  %v4726_v18 = vrot.slane %v4725_v5, 4 }
 0x358   : > { %v2771_v24 = vrot.slane %v1824_v14, %v13775_v41  ;;  %v18466_v8 = vrot.slane %v15505_v57, 1  ;;  %v18467_v19 = vmov %v18463_v54  ;;  %v2778_v11 = vrot.slane %v2764_v50, %v13775_v41  ;;  %v15633_v14 = vpop.f32.mrb[122].mxu0 }
 0x359   : > { %v4707_v55 = vrot.slane %v4706_v35, 2  ;;  %v4713_v63 = vmax.f32 %v4711_v3, %v4712_v23  ;;  %v4721_v13 = vrot.slane %v4720_v2, 2  ;;  %v4727_v17 = vmax.f32 %v4725_v5, %v4726_v18  ;;  %v15635_v22 = vpop.f32.mrb[123].mxu0 }
 0x35a   : > { %v15625_v29 = vsel %vm5844_vm4, %v18467_v19, %v18466_v8  ;;  %v2779_v54 = vcombine.high %v2771_v24, %v2771_v24  ;;  %v4648_v10 = vsel %vm3275_vm5, %v2771_v24, -inf  ;;  %v2780_v58 = vcombine.high %v2778_v11, %v2778_v11 }
 0x35b   : > { %18468 = vst [vmem:[#allocation47_spill] sm:$0xff] %v15625_v29  ;;  %v12818_v57 = vpack.i.bf16 %v15625_v29, %v15605_v45  ;;  %v4708_v49 = vmax.f32 %v4706_v35, %v4707_v55  ;;  %v4714_v9 = vrot.slane %v4713_v63, 2  ;;  %v4722_v15 = vmax.f32 %v4720_v2, %v4721_v13 }
 0x35c   : > { %v4728_v6 = vrot.slane %v4727_v17, 2  ;;  %v4649_v21 = vrot.slane %v4648_v10, 4  ;;  %v4655_v52 = vsel %vm3275_vm5, %v2779_v54, -inf  ;;  %v4662_v44 = vsel %vm3275_vm5, %v2778_v11, -inf  ;;  %v15642_v54 = vpop.f32.mrb[124].mxu0 }
 0x35d   : > { %12819 = vrot.lane.b32.xlu0 %v12818_v57, %s13474_s21  ;;  %v4709_v47 = vrot.slane %v4708_v49, 1  ;;  %v4715_v1 = vmax.f32 %v4713_v63, %v4714_v9  ;;  %v4723_v42 = vrot.slane %v4722_v15, 1  ;;  %v4656_v23 = vrot.slane %v4655_v52, 4  ;;  %18469 = vst [vmem:[#allocation48_spill] sm:$0xff] %v15642_v54  ;;  %12829 = vrot.lane.b32.xlu1 %v12818_v57, %s13473_s17 }
 0x35e   : > { %v4729_v3 = vmax.f32 %v4727_v17, %v4728_v6  ;;  %v4650_v5 = vmax.f32 %v4648_v10, %v4649_v21  ;;  %v4663_v35 = vrot.slane %v4662_v44, 4  ;;  %v4669_v2 = vsel %vm3275_vm5, %v2780_v58, -inf }
 0x35f   : > { %v5524_v18 = vsel %vm5350_vm7, %v4640_v16, %v5523_v30  ;;  %v4710_v50 = vmax.f32 %v4708_v49, %v4709_v47  ;;  %v4716_v24 = vrot.slane %v4715_v1, 1  ;;  %v4657_v55 = vmax.f32 %v4655_v52, %v4656_v23 }
 0x360   : > { %v4730_v8 = vrot.slane %v4729_v3, 1  ;;  %v4651_v19 = vrot.slane %v4650_v5, 2  ;;  %v4664_v13 = vmax.f32 %v4662_v44, %v4663_v35  ;;  %v4670_v11 = vrot.slane %v4669_v2, 4  ;;  %v15652_v44 = vpop.permute.xlu1 %12599 }
 0x361   : > { %v4717_v29 = vmax.f32 %v4715_v1, %v4716_v24  ;;  %v4724_v63 = vmax.f32 %v4722_v15, %v4723_v42  ;;  %v5533_v17 = vsel %vm5354_vm9, %v4710_v50, %v5532_v31  ;;  %v4658_v9 = vrot.slane %v4657_v55, 2  ;;  %v18473_v24 = vld [vmem:[#allocation12_spill] sm:$0xff] }
 0x362   : > { %v4652_v10 = vmax.f32 %v4650_v5, %v4651_v19  ;;  %v4665_v6 = vrot.slane %v4664_v13, 2  ;;  %v4671_v21 = vmax.f32 %v4669_v2, %v4670_v11  ;;  %v12596_v58 = vunpack.i.l.bf16 %v15503_v20 }
 0x363   : > { %v18470_v16 = vunpack.i.l.bf16 %v15550_v62  ;;  %v4731_v49 = vmax.f32 %v4729_v3, %v4730_v8  ;;  %v5534_v52 = vsel %vm5356_vm10, %v4717_v29, %v5533_v17  ;;  %v4659_v47 = vmax.f32 %v4657_v55, %v4658_v9  ;;  %v12610_v17 = vpop.permute.xlu0 %12609  ;;  %v15679_v9 = vld [vmem:[#allocation2 + $0x108] sm:$0xff] }
 0x364   : > { %v5535_v31 = vsel %vm5358_vm11, %v4724_v63, %v5534_v52  ;;  %v4653_v15 = vrot.slane %v4652_v10, 1  ;;  %v4666_v1 = vmax.f32 %v4664_v13, %v4665_v6  ;;  %v18471_v42 = vunpack.i.h.bf16 %v15550_v62  ;;  %v15681_v6 = vld [vmem:[#allocation2 + $0x110] sm:$0xff] }
 0x365   : > { %v6693_v30 = vsel %vm6593_vm14, %v15530_v59, %v18470_v16  ;;  %v5536_v23 = vsel %vm5360_vm12, %v4731_v49, %v5535_v31  ;;  %v4672_v59 = vrot.slane %v4671_v21, 2  ;;  %v5525_v29 = vsel %vm5352_vm8, %v15612_v51, %v5524_v18 }
 0x366   : > { %v6694_v5 = vsel %vm6593_vm14, %v15522_v25, %v18471_v42  ;;  %v12597_v57 = vunpack.i.h.bf16 %v15503_v20  ;;  %5636 = vst.msk [vmem:[#allocation2 + $0x140] sm:$0xff] %vm1674_vm3, %v5536_v23  ;;  %v4654_v3 = vmax.f32 %v4652_v10, %v4653_v15  ;;  %v4660_v35 = vrot.slane %v4659_v47, 1 }
 0x367   : > { %v4667_v2 = vrot.slane %v4666_v1, 1  ;;  %v18472_v50 = vunpack.i.l.bf16 %v15319_v37  ;;  %v12591_v25 = vunpack.i.l.bf16 %v15533_v43  ;;  %v4673_v8 = vmax.f32 %v4671_v21, %v4672_v59  ;;  %v18478_v59 = vld [vmem:[#allocation38_spill] sm:$0xff] }
 0x368   : > { %v6725_v19 = vsel %vm6626_vm15, %v6693_v30, %v12596_v58  ;;  %v18474_v55 = vunpack.i.h.bf16 %v15533_v43  ;;  %v4661_v51 = vmax.f32 %v4659_v47, %v4660_v35  ;;  %v5526_v18 = vsel %vm5354_vm9, %v4654_v3, %v5525_v29  ;;  %v15683_v43 = vpop.permute.xlu1 %12614 }
 0x369   : > { %v6565_v62 = vsel %vm1674_vm3, %v18473_v24, %v18472_v50  ;;  %v6726_v13 = vsel %vm6626_vm15, %v6694_v5, %v12597_v57  ;;  %v12602_v37 = vunpack.i.h.bf16 %v15652_v44  ;;  %v4668_v11 = vmax.f32 %v4666_v1, %v4667_v2  ;;  %v18477_v5 = vld [vmem:[#allocation37_spill] sm:$0xff]  ;;  %v15712_v57 = vpop.permute.xlu0 %12624 }
 0x36a   : > { %v15674_v20 = vsel %vm6593_vm14, %v15518_v53, %v18474_v55  ;;  %v4674_v63 = vrot.slane %v4673_v8, 1  ;;  %v6759_v10 = vpack.c.bf16 %v6726_v13, %v6725_v19  ;;  %v5527_v53 = vsel %vm5356_vm10, %v4661_v51, %v5526_v18  ;;  %v13383_v19 = vld [vmem:[#allocation2 + $0x50] sm:$0xff]  ;;  %v15734_v18 = vld [vmem:[%s18332_s2] ss:$0 sm:$0xff] }
 0x36b   : > { %v1460_v21 = vadd.f32 %v15288_v39, %v15235_v60  ;;  %v18475_v58 = vunpack.i.l.bf16 %v15482_v36  ;;  %v18476_v30 = vunpack.i.h.bf16 %v15482_v36  ;;  %v15697_v52 = vsel %vm6593_vm14, %v6565_v62, %v12591_v25  ;;  %v18480_v13 = vld [vmem:[#allocation39_spill] sm:$0xff] }
 0x36c   : > { %v4675_v31 = vmax.f32 %v4673_v8, %v4674_v63  ;;  %v5528_v15 = vsel %vm5358_vm11, %v4668_v11, %v5527_v53  ;;  %7042 = vmatprep.mubr.bf16.mxu1 %v6759_v10  ;;  %v1452_v60 = vadd.f32 %v15288_v39, %v15238_v7  ;;  %v12612_v1 = vunpack.i.h.bf16 %v12610_v17  ;;  %v18479_v7 = vld [vmem:[#allocation13_spill] sm:$0xff]  ;;  %v15729_v51 = vpop.permute.xlu1 %12619  ;;  %v18481_v11 = vld [vmem:[#allocation40_spill] sm:$0xff] }
 0x36d   : > { %v6629_v16 = vsel %vm6626_vm15, %v15492_v27, %v18475_v58  ;;  %v6630_v49 = vsel %vm6626_vm15, %v15509_v28, %v18476_v30  ;;  %v12833_v36 = vpack.i.bf16 %v15681_v6, %v15679_v9  ;;  %v15705_v27 = vld [vmem:[#allocation2 + $0x118] sm:$0xff]  ;;  %v1463_v23 = vadd.f32 %v15288_v39, %v18477_v5  ;;  %v18484_v5 = vld [vmem:[#allocation41_spill] sm:$0xff] }
 0x36e   : > { %v6758_v42 = vpack.c.bf16 %v6630_v49, %v6629_v16  ;;  %v5529_v28 = vsel %vm5360_vm12, %v4675_v31, %v5528_v15  ;;  %v1455_v29 = vadd.f32 %v15288_v39, %v18478_v59  ;;  %v15716_v3 = vsel %vm1674_vm3, %v18479_v7, %v12602_v37  ;;  %v13385_v49 = vld [vmem:[#allocation2 + $0x48] sm:$0xff]  ;;  %v18485_v59 = vld [vmem:[#allocation42_spill] sm:$0xff]  ;;  %v15768_v7 = vpop.f32.mrb[125].mxu0 }
 0x36f   : > { %5635 = vst.msk [vmem:[#allocation2 + $0x138] sm:$0xff] %vm1674_vm3, %v5529_v28  ;;  %v12611_v2 = vunpack.i.l.bf16 %v12610_v17  ;;  %v1652_v50 = vmax.f32 %v1460_v21, 0.0  ;;  %12834 = vrot.lane.b32.xlu0 %v12833_v36, %s13476_s24  ;;  %v1650_v24 = vmax.f32 %v1452_v60, 0.0  ;;  %12839 = vrot.lane.b32.xlu1 %v12833_v36, %s13474_s21  ;;  %v5708_v39 = vrot.slane %v15679_v9, 7  ;;  %18486 = vst [vmem:[#allocation38_spill] sm:$0xff] %v15768_v7 }
 0x370   : > { %7043 = vmatmul.mubr.bf16.gmra.mrb[4].mxu1 %v6758_v42  ;;  %v5726_v62 = vrot.slane %v15681_v6, 7  ;;  %v5744_v25 = vrot.slane %v15705_v27, 7  ;;  %v15727_v55 = vsel %vm1674_vm3, %v13383_v19, %v12612_v1  ;;  %v1476_v37 = vadd.f32 %v15734_v18, %v18480_v13  ;;  %v15756_v42 = vpop.permute.xlu0 %12634 }
 0x371   : > { %v1468_v63 = vadd.f32 %v15734_v18, %v18481_v11  ;;  %v1653_v17 = vmax.f32 %v1463_v23, 0.0  ;;  %v1651_v10 = vmax.f32 %v1455_v29, 0.0  ;;  %v15751_v31 = vsel %vm1674_vm3, %v13385_v49, %v12611_v2 }
 0x372   : > { %v15742_v53 = vsel %vm5753_vm13, %v5708_v39, %v5726_v62  ;;  %v15746_v21 = vsel %vm5753_vm13, %v5744_v25, %v5708_v39  ;;  %v1656_v16 = vmax.f32 %v1476_v37, 0.0  ;;  %v1837_v60 = vsel %vm1674_vm3, %v1652_v50, -inf  ;;  %v15774_v62 = vpop.f32.mrb[126].mxu0 }
 0x373   : > { %18482 = vst [vmem:[#allocation12_spill] sm:$0xff] %v15742_v53  ;;  %18483 = vst [vmem:[#allocation37_spill] sm:$0xff] %v15746_v21  ;;  %v12843_v58 = vpack.i.bf16 %v15742_v53, %v15746_v21  ;;  %v1654_v30 = vmax.f32 %v1468_v63, 0.0  ;;  %v1831_v1 = vsel %vm1674_vm3, %v1650_v24, -inf  ;;  %v1479_v23 = vadd.f32 %v15734_v18, %v18484_v5  ;;  %v15779_v11 = vpop.f32.mrb[127].mxu0 }
 0x374   : > { %v1838_v36 = vsel %vm1674_vm3, %v1656_v16, -inf  ;;  %v15766_v29 = vadd.f32 %v15734_v18, %v18485_v59  ;;  %v1840_v2 = vsel %vm1674_vm3, %v1653_v17, -inf  ;;  %v15772_v50 = vsel %vm1674_vm3, %v1651_v10, -inf  ;;  %18487 = vst [vmem:[#allocation13_spill] sm:$0xff] %v15774_v62  ;;  %18488 = vst [vmem:[#allocation39_spill] sm:$0xff] %v15779_v11 }
 0x375   : > { %12844 = vrot.lane.b32.xlu0 %v12843_v58, %s13473_s17  ;;  %12854 = vrot.lane.b32.xlu1 %v12843_v58, %s13476_s24  ;;  %v1832_v28 = vsel %vm1674_vm3, %v1654_v30, -inf  ;;  %v1839_v24 = vmax.f32 %v1837_v60, %v1838_v36  ;;  %v1657_v13 = vmax.f32 %v1479_v23, 0.0  ;;  %v5837_v60 = vrot.slane %v15705_v27, 1 }
 0x376   : > { %v1833_v39 = vmax.f32 %v1831_v1, %v1832_v28  ;;  %v1655_v30 = vmax.f32 %v15766_v29, 0.0 }
 0x377   : > { %v2849_v63 = vcombine.high %v1839_v24, %v1839_v24  ;;  %v2856_v58 = vrot.slane %v1839_v24, %v13775_v41  ;;  %v1841_v16 = vsel %vm1674_vm3, %v1657_v13, -inf }
 0x378   : > { %v2815_v17 = vcombine.high %v1833_v39, %v1833_v39  ;;  %v2822_v10 = vrot.slane %v1833_v39, %v13775_v41  ;;  %v1842_v39 = vmax.f32 %v1840_v2, %v1841_v16 }
 0x379   : > { %v2863_v1 = vrot.slane %v2849_v63, %v13775_v41  ;;  %v2864_v36 = vcombine.high %v2856_v58, %v2856_v58  ;;  %v4788_v28 = vsel %vm3275_vm5, %v2856_v58, -inf }
 0x37a   : > { %v2829_v5 = vrot.slane %v2815_v17, %v13775_v41  ;;  %v4789_v23 = vrot.slane %v4788_v28, 4  ;;  %v2830_v59 = vcombine.high %v2822_v10, %v2822_v10  ;;  %v4732_v24 = vsel %vm3275_vm5, %v2822_v10, -inf }
 0x37b   : > { %v2865_v35 = vcombine.high %v2863_v1, %v2863_v1  ;;  %v4795_v13 = vsel %vm3275_vm5, %v2864_v36, -inf  ;;  %v4802_v29 = vsel %vm3275_vm5, %v2863_v1, -inf  ;;  %v4733_v63 = vrot.slane %v4732_v24, 4 }
 0x37c   : > { %v2831_v8 = vcombine.high %v2829_v5, %v2829_v5  ;;  %v4790_v15 = vmax.f32 %v4788_v28, %v4789_v23  ;;  %v4796_v27 = vrot.slane %v4795_v13, 4  ;;  %v4803_v47 = vrot.slane %v4802_v29, 4 }
 0x37d   : > { %v4809_v25 = vsel %vm3275_vm5, %v2865_v35, -inf  ;;  %v4739_v58 = vsel %vm3275_vm5, %v2830_v59, -inf  ;;  %v4746_v17 = vsel %vm3275_vm5, %v2829_v5, -inf  ;;  %v4734_v36 = vmax.f32 %v4732_v24, %v4733_v63 }
 0x37e   : > { %v4753_v19 = vsel %vm3275_vm5, %v2831_v8, -inf  ;;  %v4791_v10 = vrot.slane %v4790_v15, 2  ;;  %v4797_v2 = vmax.f32 %v4795_v13, %v4796_v27  ;;  %v4804_v16 = vmax.f32 %v4802_v29, %v4803_v47 }
 0x37f   : > { %v4810_v37 = vrot.slane %v4809_v25, 4  ;;  %v4740_v49 = vrot.slane %v4739_v58, 4  ;;  %v4747_v1 = vrot.slane %v4746_v17, 4  ;;  %v4754_v45 = vrot.slane %v4753_v19, 4 }
 0x380   : > { %v4792_v28 = vmax.f32 %v4790_v15, %v4791_v10  ;;  %v4798_v23 = vrot.slane %v4797_v2, 2  ;;  %v4805_v21 = vrot.slane %v4804_v16, 2  ;;  %v4735_v33 = vrot.slane %v4734_v36, 2 }
 0x381   : > { %v4811_v53 = vmax.f32 %v4809_v25, %v4810_v37  ;;  %v4741_v35 = vmax.f32 %v4739_v58, %v4740_v49  ;;  %v4748_v4 = vmax.f32 %v4746_v17, %v4747_v1  ;;  %v4755_v59 = vmax.f32 %v4753_v19, %v4754_v45 }
 0x382   : > { %v4793_v11 = vrot.slane %v4792_v28, 1  ;;  %v4799_v5 = vmax.f32 %v4797_v2, %v4798_v23  ;;  %v4806_v62 = vmax.f32 %v4804_v16, %v4805_v21  ;;  %v4736_v7 = vmax.f32 %v4734_v36, %v4735_v33 }
 0x383   : > { %v4812_v8 = vrot.slane %v4811_v53, 2  ;;  %v4742_v13 = vrot.slane %v4741_v35, 2  ;;  %v4749_v47 = vrot.slane %v4748_v4, 2  ;;  %v4756_v29 = vrot.slane %v4755_v59, 2 }
 0x384   : > { %v4800_v24 = vrot.slane %v4799_v5, 1  ;;  %v4807_v27 = vrot.slane %v4806_v62, 1  ;;  %v1835_v15 = vsel %vm1674_vm3, %v1655_v30, -inf  ;;  %v4737_v10 = vrot.slane %v4736_v7, 1 }
 0x385   : > { %v4813_v63 = vmax.f32 %v4811_v53, %v4812_v8  ;;  %v4743_v54 = vmax.f32 %v4741_v35, %v4742_v13  ;;  %v4750_v25 = vmax.f32 %v4748_v4, %v4749_v47  ;;  %v4757_v37 = vmax.f32 %v4755_v59, %v4756_v29 }
 0x386   : > { %v4794_v49 = vmax.f32 %v4792_v28, %v4793_v11  ;;  %v4801_v58 = vmax.f32 %v4799_v5, %v4800_v24  ;;  %v2866_v19 = vcombine.high %v1842_v39, %v1842_v39  ;;  %v4808_v17 = vmax.f32 %v4806_v62, %v4807_v27 }
 0x387   : > { %v4814_v45 = vrot.slane %v4813_v63, 1  ;;  %v4744_v21 = vrot.slane %v4743_v54, 1  ;;  %v4751_v2 = vrot.slane %v4750_v25, 1  ;;  %v18489_v33 = vrot.slane %v15681_v6, 1 }
 0x388   : > { %v5544_v53 = vsel %vm5348_vm6, %v4801_v58, %v4794_v49  ;;  %v2873_v30 = vrot.slane %v1842_v39, %v13775_v41  ;;  %v2880_v4 = vrot.slane %v2866_v19, %v13775_v41  ;;  %v18491_v36 = vrot.slane %v15679_v9, 1 }
 0x389   : > { %v15802_v16 = vsel %vm5844_vm4, %v18489_v33, %v5837_v60  ;;  %v18490_v11 = vmov %v18489_v33  ;;  %v4815_v1 = vmax.f32 %v4813_v63, %v4814_v45  ;;  %v4738_v28 = vmax.f32 %v4736_v7, %v4737_v10 }
 0x38a   : > { %v15813_v62 = vsel %vm5844_vm4, %v18491_v36, %v18490_v11  ;;  %v4745_v23 = vmax.f32 %v4743_v54, %v4744_v21  ;;  %v4758_v35 = vrot.slane %v4757_v37, 1  ;;  %v2881_v60 = vcombine.high %v2873_v30, %v2873_v30 }
 0x38b   : > { %v2882_v59 = vcombine.high %v2880_v4, %v2880_v4  ;;  %v4816_v5 = vsel %vm3275_vm5, %v2873_v30, -inf  ;;  %v4830_v39 = vsel %vm3275_vm5, %v2880_v4, -inf  ;;  %v5545_v8 = vsel %vm5350_vm7, %v4808_v17, %v5544_v53 }
 0x38c   : > { %v4752_v13 = vmax.f32 %v4750_v25, %v4751_v2  ;;  %v4817_v6 = vrot.slane %v4816_v5, 4  ;;  %v4831_v47 = vrot.slane %v4830_v39, 4  ;;  %v5537_v9 = vsel %vm5348_vm6, %v4745_v23, %v4738_v28 }
 0x38d   : > { %v4823_v29 = vsel %vm3275_vm5, %v2881_v60, -inf  ;;  %v4837_v24 = vsel %vm3275_vm5, %v2882_v59, -inf  ;;  %v1836_v54 = vmax.f32 %v15772_v50, %v1835_v15  ;;  %v5546_v49 = vsel %vm5352_vm8, %v4815_v1, %v5545_v8 }
 0x38e   : > { %v4818_v7 = vmax.f32 %v4816_v5, %v4817_v6  ;;  %v4824_v27 = vrot.slane %v4823_v29, 4  ;;  %v4832_v63 = vmax.f32 %v4830_v39, %v4831_v47  ;;  %v4838_v10 = vrot.slane %v4837_v24, 4 }
 0x38f   : > { %v2832_v58 = vcombine.high %v1836_v54, %v1836_v54  ;;  %v2839_v45 = vrot.slane %v1836_v54, %v13775_v41  ;;  %v12848_v25 = vpack.i.bf16 %v15802_v16, %v15813_v62 }
 0x390   : > { %v4819_v19 = vrot.slane %v4818_v7, 2  ;;  %v4825_v17 = vmax.f32 %v4823_v29, %v4824_v27  ;;  %v4833_v21 = vrot.slane %v4832_v63, 2  ;;  %v4839_v2 = vmax.f32 %v4837_v24, %v4838_v10 }
 0x391   : > { %v2846_v33 = vrot.slane %v2832_v58, %v13775_v41  ;;  %v2847_v53 = vcombine.high %v2839_v45, %v2839_v45  ;;  %v4760_v50 = vsel %vm3275_vm5, %v2839_v45, -inf  ;;  %12849 = vrot.lane.b32.xlu0 %v12848_v25, %s13474_s21  ;;  %12859 = vrot.lane.b32.xlu1 %v12848_v25, %s13473_s17  ;;  %v4759_v24 = vmax.f32 %v4757_v37, %v4758_v35 }
 0x392   : > { %v4820_v15 = vmax.f32 %v4818_v7, %v4819_v19  ;;  %v4826_v30 = vrot.slane %v4825_v17, 2  ;;  %v4834_v4 = vmax.f32 %v4832_v63, %v4833_v21  ;;  %v4840_v11 = vrot.slane %v4839_v2, 2 }
 0x393   : > { %v2848_v36 = vcombine.high %v2846_v33, %v2846_v33  ;;  %v4761_v1 = vrot.slane %v4760_v50, 4  ;;  %v4767_v28 = vsel %vm3275_vm5, %v2847_v53, -inf  ;;  %v4774_v23 = vsel %vm3275_vm5, %v2846_v33, -inf }
 0x394   : > { %v4821_v60 = vrot.slane %v4820_v15, 1  ;;  %v4827_v59 = vmax.f32 %v4825_v17, %v4826_v30  ;;  %v4835_v5 = vrot.slane %v4834_v4, 1  ;;  %v4841_v39 = vmax.f32 %v4839_v2, %v4840_v11 }
 0x395   : > { %v4762_v8 = vmax.f32 %v4760_v50, %v4761_v1  ;;  %v4768_v6 = vrot.slane %v4767_v28, 4  ;;  %v4775_v47 = vrot.slane %v4774_v23, 4  ;;  %v4781_v29 = vsel %vm3275_vm5, %v2848_v36, -inf  ;;  %v15841_v36 = vpop.permute.xlu1 %12629 }
 0x396   : > { %v4822_v54 = vmax.f32 %v4820_v15, %v4821_v60  ;;  %v4828_v7 = vrot.slane %v4827_v59, 1  ;;  %v4842_v27 = vrot.slane %v4841_v39, 1  ;;  %v4782_v45 = vrot.slane %v4781_v29, 4 }
 0x397   : > { %v4763_v63 = vrot.slane %v4762_v8, 2  ;;  %v4769_v10 = vmax.f32 %v4767_v28, %v4768_v6  ;;  %v4776_v58 = vmax.f32 %v4774_v23, %v4775_v47  ;;  %v5538_v19 = vsel %vm5350_vm7, %v4752_v13, %v5537_v9  ;;  %v18495_v47 = vld [vmem:[#allocation14_spill] sm:$0xff] }
 0x398   : > { %v4829_v25 = vmax.f32 %v4827_v59, %v4828_v7  ;;  %v4836_v21 = vmax.f32 %v4834_v4, %v4835_v5  ;;  %v5547_v17 = vsel %vm5354_vm9, %v4822_v54, %v5546_v49  ;;  %v4783_v50 = vmax.f32 %v4781_v29, %v4782_v45  ;;  %v12640_v45 = vpop.permute.xlu0 %12639 }
 0x399   : > { %v4764_v2 = vmax.f32 %v4762_v8, %v4763_v63  ;;  %v4770_v33 = vrot.slane %v4769_v10, 2  ;;  %v4777_v53 = vrot.slane %v4776_v58, 2  ;;  %v12626_v30 = vunpack.i.l.bf16 %v15712_v57 }
 0x39a   : > { %v18492_v37 = vunpack.i.l.bf16 %v15756_v42  ;;  %v4843_v15 = vmax.f32 %v4841_v39, %v4842_v27  ;;  %v5548_v11 = vsel %vm5356_vm10, %v4829_v25, %v5547_v17  ;;  %v18493_v1 = vunpack.i.h.bf16 %v15756_v42  ;;  %v15867_v25 = vld [vmem:[#allocation2 + $0x120] sm:$0xff] }
 0x39b   : > { %v5549_v13 = vsel %vm5358_vm11, %v4836_v21, %v5548_v11  ;;  %v4765_v9 = vrot.slane %v4764_v2, 1  ;;  %v4771_v49 = vmax.f32 %v4769_v10, %v4770_v33  ;;  %v4778_v4 = vmax.f32 %v4776_v58, %v4777_v53  ;;  %v15869_v21 = vld [vmem:[#allocation2 + $0x128] sm:$0xff] }
 0x39c   : > { %v6695_v35 = vsel %vm6593_vm14, %v15751_v31, %v18492_v37  ;;  %v6696_v28 = vsel %vm6593_vm14, %v15727_v55, %v18493_v1  ;;  %v5550_v23 = vsel %vm5360_vm12, %v4843_v15, %v5549_v13  ;;  %v4784_v60 = vrot.slane %v4783_v50, 2 }
 0x39d   : > { %v5539_v31 = vsel %vm5352_vm8, %v4759_v24, %v5538_v19  ;;  %v12627_v59 = vunpack.i.h.bf16 %v15712_v57  ;;  %5638 = vst.msk [vmem:[#allocation2 + $0x158] sm:$0xff] %vm1674_vm3, %v5550_v23  ;;  %v4766_v5 = vmax.f32 %v4764_v2, %v4765_v9  ;;  %v4772_v39 = vrot.slane %v4771_v49, 1 }
 0x39e   : > { %v4779_v8 = vrot.slane %v4778_v4, 1  ;;  %v18494_v6 = vunpack.i.l.bf16 %v15652_v44  ;;  %v12621_v29 = vunpack.i.l.bf16 %v15729_v51  ;;  %v4785_v55 = vmax.f32 %v4783_v50, %v4784_v60 }
 0x39f   : > { %v6727_v54 = vsel %vm6626_vm15, %v6695_v35, %v12626_v30  ;;  %v18496_v7 = vunpack.i.h.bf16 %v15729_v51  ;;  %v4773_v24 = vmax.f32 %v4771_v49, %v4772_v39  ;;  %v5540_v27 = vsel %vm5354_vm9, %v4766_v5, %v5539_v31  ;;  %v15871_v51 = vpop.permute.xlu1 %12644  ;;  %v13386_v39 = vld [vmem:[#allocation2 + $0x68] sm:$0xff] }
 0x3a0   : > { %v6567_v42 = vsel %vm1674_vm3, %v18495_v47, %v18494_v6  ;;  %v6728_v63 = vsel %vm6626_vm15, %v6696_v28, %v12627_v59  ;;  %v12632_v44 = vunpack.i.h.bf16 %v15841_v36  ;;  %v4780_v10 = vmax.f32 %v4778_v4, %v4779_v8  ;;  %v15900_v4 = vpop.permute.xlu0 %12654 }
 0x3a1   : > { %v15862_v57 = vsel %vm6593_vm14, %v15716_v3, %v18496_v7  ;;  %v4786_v58 = vrot.slane %v4785_v55, 1  ;;  %v6762_v19 = vpack.c.bf16 %v6728_v63, %v6727_v54  ;;  %v5541_v3 = vsel %vm5356_vm10, %v4773_v24, %v5540_v27 }
 0x3a2   : > { %v1492_v17 = vadd.f32 %v15734_v18, %v15414_v56  ;;  %v18497_v2 = vunpack.i.l.bf16 %v15683_v43  ;;  %v18498_v53 = vunpack.i.h.bf16 %v15683_v43  ;;  %v15885_v30 = vsel %vm6593_vm14, %v6567_v42, %v12621_v29 }
 0x3a3   : > { %v4787_v37 = vmax.f32 %v4785_v55, %v4786_v58  ;;  %v5542_v35 = vsel %vm5358_vm11, %v4780_v10, %v5541_v3  ;;  %7050 = vmatprep.mubr.bf16.mxu1 %v6762_v19  ;;  %v1484_v56 = vadd.f32 %v15734_v18, %v15427_v48  ;;  %v12642_v11 = vunpack.i.h.bf16 %v12640_v45  ;;  %v18499_v48 = vld [vmem:[#allocation17_spill] sm:$0xff]  ;;  %v15917_v6 = vpop.permute.xlu1 %12649 }
 0x3a4   : > { %v6631_v33 = vsel %vm6626_vm15, %v15697_v52, %v18497_v2  ;;  %v6632_v50 = vsel %vm6626_vm15, %v15674_v20, %v18498_v53  ;;  %v12863_v43 = vpack.i.bf16 %v15869_v21, %v15867_v25  ;;  %v15893_v52 = vld [vmem:[#allocation2 + $0x130] sm:$0xff]  ;;  %v1495_v9 = vadd.f32 %v15734_v18, %v15432_v34 }
 0x3a5   : > { %v6761_v13 = vpack.c.bf16 %v6632_v50, %v6631_v33  ;;  %v5543_v20 = vsel %vm5360_vm12, %v4787_v37, %v5542_v35  ;;  %v1487_v49 = vadd.f32 %v15734_v18, %v15437_v46  ;;  %v15904_v1 = vsel %vm1674_vm3, %v18499_v48, %v12632_v44  ;;  %v13387_v44 = vld [vmem:[#allocation2 + $0x60] sm:$0xff] }
 0x3a6   : > { %5637 = vst.msk [vmem:[#allocation2 + $0x150] sm:$0xff] %vm1674_vm3, %v5543_v20  ;;  %v12641_v23 = vunpack.i.l.bf16 %v12640_v45  ;;  %v1660_v60 = vmax.f32 %v1492_v17, 0.0  ;;  %12864 = vrot.lane.b32.xlu0 %v12863_v43, %s13476_s24  ;;  %v1658_v31 = vmax.f32 %v1484_v56, 0.0  ;;  %12869 = vrot.lane.b32.xlu1 %v12863_v43, %s13474_s21  ;;  %v5709_v34 = vrot.slane %v15867_v25, 7  ;;  %v15939_v45 = vpop.permute.xlu0 %12664 }
 0x3a7   : > { %7051 = vmatmul.mubr.bf16.gmra.mrb[8].mxu1 %v6761_v13  ;;  %v5727_v46 = vrot.slane %v15869_v21, 7  ;;  %v5745_v59 = vrot.slane %v15893_v52, 7  ;;  %v15915_v8 = vsel %vm1674_vm3, %v13386_v39, %v12642_v11  ;;  %v1508_v47 = vadd.f32 %v15734_v18, %v15443_v32 }
 0x3a8   : > { %v1500_v42 = vadd.f32 %v15734_v18, %v15565_v12  ;;  %v1661_v29 = vmax.f32 %v1495_v9, 0.0  ;;  %v1659_v55 = vmax.f32 %v1487_v49, 0.0  ;;  %v15934_v32 = vsel %vm1674_vm3, %v13387_v44, %v12641_v23 }
 0x3a9   : > { %v15925_v54 = vsel %vm5753_vm13, %v5709_v34, %v5727_v46  ;;  %v15929_v7 = vsel %vm5753_vm13, %v5745_v59, %v5709_v34  ;;  %v1664_v27 = vmax.f32 %v1508_v47, 0.0  ;;  %v1849_v10 = vsel %vm1674_vm3, %v1660_v60, -inf }
 0x3aa   : > { %v12873_v24 = vpack.i.bf16 %v15925_v54, %v15929_v7  ;;  %v1662_v63 = vmax.f32 %v1500_v42, 0.0  ;;  %v1843_v58 = vsel %vm1674_vm3, %v1658_v31, -inf  ;;  %v1511_v17 = vadd.f32 %v15734_v18, %v15572_v38 }
 0x3ab   : > { %v1850_v19 = vsel %vm1674_vm3, %v1664_v27, -inf  ;;  %v15949_v2 = vadd.f32 %v15734_v18, %v15576_v40  ;;  %v1852_v33 = vsel %vm1674_vm3, %v1661_v29, -inf  ;;  %v15953_v53 = vsel %vm1674_vm3, %v1659_v55, -inf }
 0x3ac   : > { %12874 = vrot.lane.b32.xlu0 %v12873_v24, %s13473_s17  ;;  %12884 = vrot.lane.b32.xlu1 %v12873_v24, %s13476_s24  ;;  %v1844_v3 = vsel %vm1674_vm3, %v1662_v63, -inf  ;;  %v1851_v50 = vmax.f32 %v1849_v10, %v1850_v19  ;;  %v12666_v56 = vunpack.i.l.bf16 %v15939_v45  ;;  %v1665_v11 = vmax.f32 %v1511_v17, 0.0 }
 0x3ad   : > { %v1845_v37 = vmax.f32 %v1843_v58, %v1844_v3  ;;  %v5802_v13 = vrot.slane %v15867_v25, 1  ;;  %v1663_v49 = vmax.f32 %v15949_v2, 0.0  ;;  %v5820_v48 = vrot.slane %v15869_v21, 1 }
 0x3ae   : > { %v2917_v43 = vcombine.high %v1851_v50, %v1851_v50  ;;  %v2924_v38 = vrot.slane %v1851_v50, %v13775_v41  ;;  %v1853_v9 = vsel %vm1674_vm3, %v1665_v11, -inf  ;;  %v5838_v23 = vrot.slane %v15893_v52, 1 }
 0x3af   : > { %v2883_v20 = vcombine.high %v1845_v37, %v1845_v37  ;;  %v2890_v40 = vrot.slane %v1845_v37, %v13775_v41  ;;  %v1854_v42 = vmax.f32 %v1852_v33, %v1853_v9  ;;  %v13105_v33 = vld [vmem:[%s18333_s3 + $0x80] sm:$0xff]  }
 0x3b0   : > { %v2931_v60 = vrot.slane %v2917_v43, %v13775_v41  ;;  %v2932_v31 = vcombine.high %v2924_v38, %v2924_v38  ;;  %v4900_v34 = vsel %vm3275_vm5, %v2924_v38, -inf  ;;  %12431 = vmatprep.subr.bf16.mxu1 %v13105_v33 }
 0x3b1   : > { %v2897_v46 = vrot.slane %v2883_v20, %v13775_v41  ;;  %v4901_v59 = vrot.slane %v4900_v34, 4  ;;  %v2898_v39 = vcombine.high %v2890_v40, %v2890_v40  ;;  %v4844_v47 = vsel %vm3275_vm5, %v2890_v40, -inf  ;;  %12432 = vmatpush3.bf16.msra.mxu1 %v13105_v33 }
 0x3b2   : > { %v2933_v29 = vcombine.high %v2931_v60, %v2931_v60  ;;  %v4907_v55 = vsel %vm3275_vm5, %v2932_v31, -inf  ;;  %v4914_v24 = vsel %vm3275_vm5, %v2931_v60, -inf  ;;  %v4845_v58 = vrot.slane %v4844_v47, 4 }
 0x3b3   : > { %v2899_v27 = vcombine.high %v2897_v46, %v2897_v46  ;;  %v4902_v63 = vmax.f32 %v4900_v34, %v4901_v59  ;;  %v4908_v44 = vrot.slane %v4907_v55, 4  ;;  %v4915_v10 = vrot.slane %v4914_v24, 4 }
 0x3b4   : > { %v4921_v19 = vsel %vm3275_vm5, %v2933_v29, -inf  ;;  %v4851_v3 = vsel %vm3275_vm5, %v2898_v39, -inf  ;;  %v4858_v17 = vsel %vm3275_vm5, %v2897_v46, -inf  ;;  %v4846_v38 = vmax.f32 %v4844_v47, %v4845_v58 }
 0x3b5   : > { %v4865_v2 = vsel %vm3275_vm5, %v2899_v27, -inf  ;;  %v4903_v50 = vrot.slane %v4902_v63, 2  ;;  %v4909_v37 = vmax.f32 %v4907_v55, %v4908_v44  ;;  %v4916_v11 = vmax.f32 %v4914_v24, %v4915_v10 }
 0x3b6   : > { %v4922_v43 = vrot.slane %v4921_v19, 4  ;;  %v4852_v20 = vrot.slane %v4851_v3, 4  ;;  %v4859_v40 = vrot.slane %v4858_v17, 4  ;;  %v4866_v9 = vrot.slane %v4865_v2, 4 }
 0x3b7   : > { %v4904_v60 = vmax.f32 %v4902_v63, %v4903_v50  ;;  %v4910_v31 = vrot.slane %v4909_v37, 2  ;;  %v4917_v34 = vrot.slane %v4916_v11, 2  ;;  %v4847_v46 = vrot.slane %v4846_v38, 2 }
 0x3b8   : > { %v4923_v59 = vmax.f32 %v4921_v19, %v4922_v43  ;;  %v4853_v39 = vmax.f32 %v4851_v3, %v4852_v20  ;;  %v4860_v29 = vmax.f32 %v4858_v17, %v4859_v40  ;;  %v4867_v27 = vmax.f32 %v4865_v2, %v4866_v9 }
 0x3b9   : > { %v4905_v28 = vrot.slane %v4904_v60, 1  ;;  %v4911_v5 = vmax.f32 %v4909_v37, %v4910_v31  ;;  %v4918_v12 = vmax.f32 %v4916_v11, %v4917_v34  ;;  %v4848_v24 = vmax.f32 %v4846_v38, %v4847_v46 }
 0x3ba   : > { %v4924_v55 = vrot.slane %v4923_v59, 2  ;;  %v4854_v44 = vrot.slane %v4853_v39, 2  ;;  %v4861_v47 = vrot.slane %v4860_v29, 2  ;;  %v4868_v10 = vrot.slane %v4867_v27, 2 }
 0x3bb   : > { %v4912_v58 = vrot.slane %v4911_v5, 1  ;;  %v4919_v15 = vrot.slane %v4918_v12, 1  ;;  %v1847_v63 = vsel %vm1674_vm3, %v1663_v49, -inf  ;;  %v4849_v50 = vrot.slane %v4848_v24, 1 }
 0x3bc   : > { %v4925_v35 = vmax.f32 %v4923_v59, %v4924_v55  ;;  %v4855_v19 = vmax.f32 %v4853_v39, %v4854_v44  ;;  %v4862_v33 = vmax.f32 %v4860_v29, %v4861_v47  ;;  %v4869_v43 = vmax.f32 %v4867_v27, %v4868_v10 }
 0x3bd   : > { %v4906_v3 = vmax.f32 %v4904_v60, %v4905_v28  ;;  %v4913_v17 = vmax.f32 %v4911_v5, %v4912_v58  ;;  %v2934_v20 = vcombine.high %v1854_v42, %v1854_v42  ;;  %v4920_v37 = vmax.f32 %v4918_v12, %v4919_v15 }
 0x3be   : > { %v4926_v2 = vrot.slane %v4925_v35, 1  ;;  %v4856_v11 = vrot.slane %v4855_v19, 1  ;;  %v4863_v40 = vrot.slane %v4862_v33, 1  ;;  %v15984_v38 = vsel %vm5844_vm4, %v5820_v48, %v5838_v23 }
 0x3bf   : > { %v5558_v49 = vsel %vm5348_vm6, %v4913_v17, %v4906_v3  ;;  %v2941_v9 = vrot.slane %v1854_v42, %v13775_v41  ;;  %v2948_v28 = vrot.slane %v2934_v20, %v13775_v41  ;;  %v15995_v15 = vsel %vm5844_vm4, %v5802_v13, %v5820_v48 }
 0x3c0   : > { %v4927_v52 = vmax.f32 %v4925_v35, %v4926_v2  ;;  %v4850_v5 = vmax.f32 %v4848_v24, %v4849_v50  ;;  %v4857_v12 = vmax.f32 %v4855_v19, %v4856_v11  ;;  %v4870_v60 = vrot.slane %v4869_v43, 1 }
 0x3c1   : > { %v2949_v23 = vcombine.high %v2941_v9, %v2941_v9  ;;  %v2950_v31 = vcombine.high %v2948_v28, %v2948_v28  ;;  %v4928_v34 = vsel %vm3275_vm5, %v2941_v9, -inf  ;;  %v4942_v42 = vsel %vm3275_vm5, %v2948_v28, -inf }
 0x3c2   : > { %v5559_v59 = vsel %vm5350_vm7, %v4920_v37, %v5558_v49  ;;  %v4864_v46 = vmax.f32 %v4862_v33, %v4863_v40  ;;  %v4929_v21 = vrot.slane %v4928_v34, 4  ;;  %v4943_v39 = vrot.slane %v4942_v42, 4 }
 0x3c3   : > { %v5551_v25 = vsel %vm5348_vm6, %v4857_v12, %v4850_v5  ;;  %v4935_v13 = vsel %vm3275_vm5, %v2949_v23, -inf  ;;  %v4949_v35 = vsel %vm3275_vm5, %v2950_v31, -inf  ;;  %v1848_v48 = vmax.f32 %v15953_v53, %v1847_v63 }
 0x3c4   : > { %v4930_v29 = vmax.f32 %v4928_v34, %v4929_v21  ;;  %v4936_v27 = vrot.slane %v4935_v13, 4  ;;  %v4944_v55 = vmax.f32 %v4942_v42, %v4943_v39  ;;  %v4950_v24 = vrot.slane %v4949_v35, 4 }
 0x3c5   : > { %v5560_v44 = vsel %vm5352_vm8, %v4927_v52, %v5559_v59  ;;  %v2900_v47 = vcombine.high %v1848_v48, %v1848_v48  ;;  %v2907_v10 = vrot.slane %v1848_v48, %v13775_v41  ;;  %v12878_v58 = vpack.i.bf16 %v15984_v38, %v15995_v15 }
 0x3c6   : > { %v4931_v50 = vrot.slane %v4930_v29, 2  ;;  %v4937_v19 = vmax.f32 %v4935_v13, %v4936_v27  ;;  %v4945_v33 = vrot.slane %v4944_v55, 2  ;;  %v4951_v3 = vmax.f32 %v4949_v35, %v4950_v24 }
 0x3c7   : > { %v2914_v17 = vrot.slane %v2900_v47, %v13775_v41  ;;  %v2915_v2 = vcombine.high %v2907_v10, %v2907_v10  ;;  %v4872_v53 = vsel %vm3275_vm5, %v2907_v10, -inf  ;;  %12879 = vrot.lane.b32.xlu0 %v12878_v58, %s13474_s21  ;;  %12889 = vrot.lane.b32.xlu1 %v12878_v58, %s13473_s17  ;;  %v4871_v21 = vmax.f32 %v4869_v43, %v4870_v60 }
 0x3c8   : > { %v4932_v63 = vmax.f32 %v4930_v29, %v4931_v50  ;;  %v4938_v20 = vrot.slane %v4937_v19, 2  ;;  %v4946_v37 = vmax.f32 %v4944_v55, %v4945_v33  ;;  %v4952_v11 = vrot.slane %v4951_v3, 2 }
 0x3c9   : > { %v2916_v40 = vcombine.high %v2914_v17, %v2914_v17  ;;  %v4873_v49 = vrot.slane %v4872_v53, 4  ;;  %v4879_v9 = vsel %vm3275_vm5, %v2915_v2, -inf  ;;  %v4886_v28 = vsel %vm3275_vm5, %v2914_v17, -inf }
 0x3ca   : > { %v4933_v52 = vrot.slane %v4932_v63, 1  ;;  %v4939_v5 = vmax.f32 %v4937_v19, %v4938_v20  ;;  %v4947_v12 = vrot.slane %v4946_v37, 1  ;;  %v4953_v23 = vmax.f32 %v4951_v3, %v4952_v11  ;;  %v16026_v20 = vpop.permute.xlu1 %12659 }
 0x3cb   : > { %v4874_v31 = vmax.f32 %v4872_v53, %v4873_v49  ;;  %v4880_v34 = vrot.slane %v4879_v9, 4  ;;  %v4887_v42 = vrot.slane %v4886_v28, 4  ;;  %v4893_v59 = vsel %vm3275_vm5, %v2916_v40, -inf  ;;  %v16023_v53 = vpop.permute.xlu0 %12669 }
 0x3cc   : > { %v4934_v39 = vmax.f32 %v4932_v63, %v4933_v52  ;;  %v4940_v13 = vrot.slane %v4939_v5, 1  ;;  %v4954_v35 = vrot.slane %v4953_v23, 1  ;;  %v4894_v55 = vrot.slane %v4893_v59, 4 }
 0x3cd   : > { %v4875_v48 = vrot.slane %v4874_v31, 2  ;;  %v4881_v29 = vmax.f32 %v4879_v9, %v4880_v34  ;;  %v4888_v27 = vmax.f32 %v4886_v28, %v4887_v42  ;;  %v5552_v24 = vsel %vm5350_vm7, %v4864_v46, %v5551_v25 }
 0x3ce   : > { %v4941_v47 = vmax.f32 %v4939_v5, %v4940_v13  ;;  %v4948_v10 = vmax.f32 %v4946_v37, %v4947_v12  ;;  %v5561_v58 = vsel %vm5354_vm9, %v4934_v39, %v5560_v44  ;;  %v4895_v3 = vmax.f32 %v4893_v59, %v4894_v55  ;;  %v18502_v12 = vld [vmem:[#allocation18_spill] sm:$0xff] }
 0x3cf   : > { %v4876_v50 = vmax.f32 %v4874_v31, %v4875_v48  ;;  %v4882_v19 = vrot.slane %v4881_v29, 2  ;;  %v4889_v33 = vrot.slane %v4888_v27, 2  ;;  %v12656_v17 = vunpack.i.l.bf16 %v15900_v4  ;;  %v16042_v34 = vpop.permute.xlu0 %12684 }
 0x3d0   : > { %v6697_v43 = vsel %vm6593_vm14, %v15934_v32, %v12666_v56  ;;  %v4955_v60 = vmax.f32 %v4953_v23, %v4954_v35  ;;  %v5562_v2 = vsel %vm5356_vm10, %v4941_v47, %v5561_v58  ;;  %v18500_v37 = vunpack.i.h.bf16 %v15939_v45 }
 0x3d1   : > { %v5563_v46 = vsel %vm5358_vm11, %v4948_v10, %v5562_v2  ;;  %v4877_v25 = vrot.slane %v4876_v50, 1  ;;  %v4883_v44 = vmax.f32 %v4881_v29, %v4882_v19  ;;  %v4890_v63 = vmax.f32 %v4888_v27, %v4889_v33  ;;  %v16053_v29 = vld [vmem:[#allocation2 + $0x138] sm:$0xff]  ;;  %v16055_v27 = vld [vmem:[#allocation2 + $0x140] sm:$0xff] }
 0x3d2   : > { %v6698_v11 = vsel %vm6593_vm14, %v15915_v8, %v18500_v37  ;;  %v5564_v40 = vsel %vm5360_vm12, %v4955_v60, %v5563_v46  ;;  %v4896_v32 = vrot.slane %v4895_v3, 2  ;;  %v5553_v56 = vsel %vm5352_vm8, %v4871_v21, %v5552_v24 }
 0x3d3   : > { %v12657_v49 = vunpack.i.h.bf16 %v15900_v4  ;;  %5640 = vst.msk [vmem:[#allocation2 + $0x170] sm:$0xff] %vm1674_vm3, %v5564_v40  ;;  %v4878_v9 = vmax.f32 %v4876_v50, %v4877_v25  ;;  %v4884_v28 = vrot.slane %v4883_v44, 1  ;;  %v4891_v52 = vrot.slane %v4890_v63, 1  ;;  %v16071_v50 = vpop.permute.xlu1 %12674  ;;  %v16087_v46 = vpop.permute.xlu0 %12694 }
 0x3d4   : > { %v18501_v5 = vunpack.i.l.bf16 %v15841_v36  ;;  %v12651_v23 = vunpack.i.l.bf16 %v15917_v6  ;;  %v4897_v8 = vmax.f32 %v4895_v3, %v4896_v32  ;;  %v6729_v31 = vsel %vm6626_vm15, %v6697_v43, %v12656_v17  ;;  %v16080_v17 = vld [vmem:[#allocation2 + $0x148] sm:$0xff] }
 0x3d5   : > { %v18503_v42 = vunpack.i.h.bf16 %v15917_v6  ;;  %v4885_v59 = vmax.f32 %v4883_v44, %v4884_v28  ;;  %v5554_v21 = vsel %vm5354_vm9, %v4878_v9, %v5553_v56  ;;  %v6730_v36 = vsel %vm6626_vm15, %v6698_v11, %v12657_v49  ;;  %v13388_v56 = vld [vmem:[#allocation2 + $0x80] sm:$0xff]  ;;  %v18508_v28 = vld [vmem:[#allocation38_spill] sm:$0xff] }
 0x3d6   : > { %v6569_v45 = vsel %vm1674_vm3, %v18502_v12, %v18501_v5  ;;  %v12662_v39 = vunpack.i.h.bf16 %v16026_v20  ;;  %v4892_v13 = vmax.f32 %v4890_v63, %v4891_v52  ;;  %v4898_v35 = vrot.slane %v4897_v8, 1 }
 0x3d7   : > { %v16048_v4 = vsel %vm6593_vm14, %v15904_v1, %v18503_v42  ;;  %v6765_v48 = vpack.c.bf16 %v6730_v36, %v6729_v31  ;;  %v5555_v6 = vsel %vm5356_vm10, %v4885_v59, %v5554_v21  ;;  %v1524_v1 = vadd.f32 %v15734_v18, %v15607_v0  ;;  %v13389_v59 = vld [vmem:[#allocation2 + $0x78] sm:$0xff] }
 0x3d8   : > { %v18504_v55 = vunpack.i.l.bf16 %v15871_v51  ;;  %v18505_v47 = vunpack.i.h.bf16 %v15871_v51  ;;  %v16069_v58 = vsel %vm6593_vm14, %v6569_v45, %v12651_v23  ;;  %v4899_v19 = vmax.f32 %v4897_v8, %v4898_v35  ;;  %v16125_v35 = vpop.permute.xlu0 %12699 }
 0x3d9   : > { %v5556_v33 = vsel %vm5358_vm11, %v4892_v13, %v5555_v6  ;;  %7058 = vmatprep.mubr.bf16.mxu1 %v6765_v48  ;;  %v1516_v0 = vadd.f32 %v15734_v18, %v15627_v26  ;;  %v1527_v60 = vadd.f32 %v15734_v18, %v15633_v14  ;;  %v1519_v2 = vadd.f32 %v15734_v18, %v15635_v22  ;;  %v18506_v26 = vld [vmem:[#allocation22_spill] sm:$0xff] }
 0x3da   : > { %v6633_v24 = vsel %vm6626_vm15, %v15885_v30, %v18504_v55  ;;  %v6634_v10 = vsel %vm6626_vm15, %v15862_v57, %v18505_v47  ;;  %v12672_v30 = vunpack.i.h.bf16 %v16023_v53  ;;  %v12893_v57 = vpack.i.bf16 %v16055_v27, %v16053_v29 }
 0x3db   : > { %v6764_v51 = vpack.c.bf16 %v6634_v10, %v6633_v24  ;;  %v5557_v43 = vsel %vm5360_vm12, %v4899_v19, %v5556_v33  ;;  %v16091_v25 = vsel %vm1674_vm3, %v18506_v26, %v12662_v39  ;;  %v12671_v63 = vunpack.i.l.bf16 %v16023_v53  ;;  %v18507_v53 = vld [vmem:[#allocation48_spill] sm:$0xff]  ;;  %v18510_v24 = vld [vmem:[#allocation39_spill] sm:$0xff] }
 0x3dc   : > { %5639 = vst.msk [vmem:[#allocation2 + $0x168] sm:$0xff] %vm1674_vm3, %v5557_v43  ;;  %v1668_v37 = vmax.f32 %v1524_v1, 0.0  ;;  %12894 = vrot.lane.b32.xlu0 %v12893_v57, %s13476_s24  ;;  %v1666_v14 = vmax.f32 %v1516_v0, 0.0  ;;  %12899 = vrot.lane.b32.xlu1 %v12893_v57, %s13474_s21  ;;  %v5710_v22 = vrot.slane %v16053_v29, 7  ;;  %v5728_v11 = vrot.slane %v16055_v27, 7  ;;  %v18509_v1 = vld [vmem:[#allocation13_spill] sm:$0xff] }
 0x3dd   : > { %7059 = vmatmul.mubr.bf16.gmra.mrb[12].mxu1 %v6764_v51  ;;  %v5746_v40 = vrot.slane %v16080_v17, 7  ;;  %v16103_v49 = vsel %vm1674_vm3, %v13388_v56, %v12672_v30  ;;  %v1540_v9 = vadd.f32 %v15734_v18, %v18507_v53  ;;  %v1532_v52 = vadd.f32 %v15734_v18, %v18508_v28  ;;  %v16141_v30 = vpop.permute.xlu1 %12679 }
 0x3de   : > { %v1669_v5 = vmax.f32 %v1527_v60, 0.0  ;;  %v1667_v12 = vmax.f32 %v1519_v2, 0.0  ;;  %v16111_v45 = vsel %vm5753_vm13, %v5710_v22, %v5728_v11  ;;  %v16120_v21 = vsel %vm1674_vm3, %v13389_v59, %v12671_v63 }
 0x3df   : > { %v16115_v23 = vsel %vm5753_vm13, %v5746_v40, %v5710_v22  ;;  %v1672_v31 = vmax.f32 %v1540_v9, 0.0  ;;  %v1670_v42 = vmax.f32 %v1532_v52, 0.0  ;;  %v1861_v36 = vsel %vm1674_vm3, %v1668_v37, -inf  ;;  %v16148_v37 = vpop.permute.xlu0 %12714 }
 0x3e0   : > { %v12903_v8 = vpack.i.bf16 %v16111_v45, %v16115_v23  ;;  %v1855_v39 = vsel %vm1674_vm3, %v1666_v14, -inf  ;;  %v1543_v55 = vadd.f32 %v15734_v18, %v18509_v1  ;;  %v16135_v47 = vadd.f32 %v15734_v18, %v18510_v24 }
 0x3e1   : > { %v1862_v48 = vsel %vm1674_vm3, %v1672_v31, -inf  ;;  %v1856_v6 = vsel %vm1674_vm3, %v1670_v42, -inf  ;;  %v1864_v10 = vsel %vm1674_vm3, %v1669_v5, -inf  ;;  %v16139_v19 = vsel %vm1674_vm3, %v1667_v12, -inf  ;;  %v16157_v52 = vpop.permute.xlu1 %12689 }
 0x3e2   : > { %12904 = vrot.lane.b32.xlu0 %v12903_v8, %s13473_s17  ;;  %12914 = vrot.lane.b32.xlu1 %v12903_v8, %s13476_s24  ;;  %v1863_v33 = vmax.f32 %v1861_v36, %v1862_v48  ;;  %v1857_v0 = vmax.f32 %v1855_v39, %v1856_v6  ;;  %v1673_v43 = vmax.f32 %v1543_v55, 0.0  ;;  %v1671_v22 = vmax.f32 %v16135_v47, 0.0 }
 0x3e3   : > { %v5839_v40 = vrot.slane %v16080_v17, 1 }
 0x3e4   : > { %v2985_v2 = vcombine.high %v1863_v33, %v1863_v33  ;;  %v2992_v18 = vrot.slane %v1863_v33, %v13775_v41  ;;  %v2951_v26 = vcombine.high %v1857_v0, %v1857_v0  ;;  %v2958_v63 = vrot.slane %v1857_v0, %v13775_v41 }
 0x3e5   : > { %v1865_v14 = vsel %vm1674_vm3, %v1673_v43, -inf  ;;  %v16166_v43 = vpop.permute.xlu0 %12724  ;;  %v16168_v44 = vpop.permute.xlu1 %12704 }
 0x3e6   : > { %v2999_v56 = vrot.slane %v2985_v2, %v13775_v41  ;;  %v3000_v53 = vcombine.high %v2992_v18, %v2992_v18  ;;  %v5012_v9 = vsel %vm3275_vm5, %v2992_v18, -inf  ;;  %v2965_v28 = vrot.slane %v2951_v26, %v13775_v41 }
 0x3e7   : > { %v5013_v5 = vrot.slane %v5012_v9, 4  ;;  %v2966_v12 = vcombine.high %v2958_v63, %v2958_v63  ;;  %v4956_v8 = vsel %vm3275_vm5, %v2958_v63, -inf  ;;  %v1866_v31 = vmax.f32 %v1864_v10, %v1865_v14 }
 0x3e8   : > { %v3001_v42 = vcombine.high %v2999_v56, %v2999_v56  ;;  %v5019_v59 = vsel %vm3275_vm5, %v3000_v53, -inf  ;;  %v5026_v36 = vsel %vm3275_vm5, %v2999_v56, -inf  ;;  %v2967_v39 = vcombine.high %v2965_v28, %v2965_v28 }
 0x3e9   : > { %v5014_v48 = vmax.f32 %v5012_v9, %v5013_v5  ;;  %v5020_v6 = vrot.slane %v5019_v59, 4  ;;  %v5027_v1 = vrot.slane %v5026_v36, 4  ;;  %v4957_v55 = vrot.slane %v4956_v8, 4 }
 0x3ea   : > { %v5033_v24 = vsel %vm3275_vm5, %v3001_v42, -inf  ;;  %v4963_v47 = vsel %vm3275_vm5, %v2966_v12, -inf  ;;  %v4970_v33 = vsel %vm3275_vm5, %v2965_v28, -inf  ;;  %v4977_v0 = vsel %vm3275_vm5, %v2967_v39, -inf }
 0x3eb   : > { %v5015_v10 = vrot.slane %v5014_v48, 2  ;;  %v5021_v2 = vmax.f32 %v5019_v59, %v5020_v6  ;;  %v5028_v18 = vmax.f32 %v5026_v36, %v5027_v1  ;;  %v5034_v26 = vrot.slane %v5033_v24, 4 }
 0x3ec   : > { %v4958_v63 = vmax.f32 %v4956_v8, %v4957_v55  ;;  %v4964_v14 = vrot.slane %v4963_v47, 4  ;;  %v4971_v56 = vrot.slane %v4970_v33, 4  ;;  %v4978_v53 = vrot.slane %v4977_v0, 4  ;;  %v16170_v55 = vpop.permute.xlu0 %12729 }
 0x3ed   : > { %v5016_v9 = vmax.f32 %v5014_v48, %v5015_v10  ;;  %v5022_v5 = vrot.slane %v5021_v2, 2  ;;  %v5029_v3 = vrot.slane %v5028_v18, 2  ;;  %v5035_v42 = vmax.f32 %v5033_v24, %v5034_v26 }
 0x3ee   : > { %v4959_v12 = vrot.slane %v4958_v63, 2  ;;  %v4965_v28 = vmax.f32 %v4963_v47, %v4964_v14  ;;  %v4972_v32 = vmax.f32 %v4970_v33, %v4971_v56  ;;  %v4979_v39 = vmax.f32 %v4977_v0, %v4978_v53 }
 0x3ef   : > { %v5017_v13 = vrot.slane %v5016_v9, 1  ;;  %v5023_v51 = vmax.f32 %v5021_v2, %v5022_v5  ;;  %v5030_v57 = vmax.f32 %v5028_v18, %v5029_v3  ;;  %v5036_v59 = vrot.slane %v5035_v42, 2 }
 0x3f0   : > { %v4960_v36 = vmax.f32 %v4958_v63, %v4959_v12  ;;  %v4966_v6 = vrot.slane %v4965_v28, 2  ;;  %v4973_v8 = vrot.slane %v4972_v32, 2  ;;  %v4980_v1 = vrot.slane %v4979_v39, 2  ;;  %v16175_v63 = vpop.permute.xlu1 %12709 }
 0x3f1   : > { %v5024_v48 = vrot.slane %v5023_v51, 1  ;;  %v5031_v10 = vrot.slane %v5030_v57, 1  ;;  %v5037_v60 = vmax.f32 %v5035_v42, %v5036_v59  ;;  %v1859_v24 = vsel %vm1674_vm3, %v1671_v22, -inf }
 0x3f2   : > { %v4961_v26 = vrot.slane %v4960_v36, 1  ;;  %v4967_v11 = vmax.f32 %v4965_v28, %v4966_v6  ;;  %v4974_v47 = vmax.f32 %v4972_v32, %v4973_v8  ;;  %v16173_v33 = vmax.f32 %v4979_v39, %v4980_v1  ;;  %v16185_v32 = vpop.permute.xlu0 %12744 }
 0x3f3   : > { %v5018_v0 = vmax.f32 %v5016_v9, %v5017_v13  ;;  %v5025_v2 = vmax.f32 %v5023_v51, %v5024_v48  ;;  %v5038_v3 = vrot.slane %v5037_v60, 1  ;;  %v3002_v18 = vcombine.high %v1866_v31, %v1866_v31  ;;  %v13106_v13 = vld [vmem:[%s18333_s3 + $0x88] sm:$0xff]  }
 0x3f4   : > { %v5032_v14 = vmax.f32 %v5030_v57, %v5031_v10  ;;  %v4968_v56 = vrot.slane %v4967_v11, 1  ;;  %v4975_v53 = vrot.slane %v4974_v47, 1  ;;  %v18511_v5 = vrot.slane %v16055_v27, 1  ;;  %12433 = vmatprep.subr.bf16.mxu1 %v13106_v13  ;;  %v16204_v48 = vpop.permute.xlu1 %12719 }
 0x3f5   : > { %v5572_v51 = vsel %vm5348_vm6, %v5025_v2, %v5018_v0  ;;  %v3009_v57 = vrot.slane %v1866_v31, %v13775_v41  ;;  %v3016_v9 = vrot.slane %v3002_v18, %v13775_v41  ;;  %v18514_v42 = vrot.slane %v16053_v29, 1  ;;  %12434 = vmatpush3.bf16.msra.mxu1 %v13106_v13 }
 0x3f6   : > { %v16183_v22 = vsel %vm5844_vm4, %v18511_v5, %v5839_v40  ;;  %v18513_v17 = vmov %v18511_v5  ;;  %v5039_v12 = vmax.f32 %v5037_v60, %v5038_v3  ;;  %v4962_v28 = vmax.f32 %v4960_v36, %v4961_v26  ;;  %v16211_v5 = vpop.permute.xlu0 %12754 }
 0x3f7   : > { %18512 = vst [vmem:[#allocation40_spill] sm:$0xff] %v16183_v22  ;;  %v16199_v40 = vsel %vm5844_vm4, %v18514_v42, %v18513_v17  ;;  %v4969_v39 = vmax.f32 %v4967_v11, %v4968_v56  ;;  %v4982_v59 = vrot.slane %v16173_v33, 1  ;;  %v3017_v6 = vcombine.high %v3009_v57, %v3009_v57 }
 0x3f8   : > { %18515 = vst [vmem:[#allocation41_spill] sm:$0xff] %v16199_v40  ;;  %v3018_v8 = vcombine.high %v3016_v9, %v3016_v9  ;;  %v5040_v31 = vsel %vm3275_vm5, %v3009_v57, -inf  ;;  %v5054_v1 = vsel %vm3275_vm5, %v3016_v9, -inf  ;;  %v5573_v29 = vsel %vm5350_vm7, %v5032_v14, %v5572_v51 }
 0x3f9   : > { %v4976_v27 = vmax.f32 %v4974_v47, %v4975_v53  ;;  %v5041_v10 = vrot.slane %v5040_v31, 4  ;;  %v5055_v0 = vrot.slane %v5054_v1, 4  ;;  %v5565_v60 = vsel %vm5348_vm6, %v4969_v39, %v4962_v28  ;;  %v16220_v28 = vpop.permute.xlu1 %12734 }
 0x3fa   : > { %v5047_v11 = vsel %vm3275_vm5, %v3017_v6, -inf  ;;  %v5061_v36 = vsel %vm3275_vm5, %v3018_v8, -inf  ;;  %v1860_v26 = vmax.f32 %v16139_v19, %v1859_v24  ;;  %v5574_v13 = vsel %vm5352_vm8, %v5039_v12, %v5573_v29 }
 0x3fb   : > { %v5042_v2 = vmax.f32 %v5040_v31, %v5041_v10  ;;  %v5048_v3 = vrot.slane %v5047_v11, 4  ;;  %v5056_v18 = vmax.f32 %v5054_v1, %v5055_v0  ;;  %v5062_v56 = vrot.slane %v5061_v36, 4 }
 0x3fc   : > { %v2968_v14 = vcombine.high %v1860_v26, %v1860_v26  ;;  %v2975_v47 = vrot.slane %v1860_v26, %v13775_v41  ;;  %v12908_v53 = vpack.i.bf16 %v16183_v22, %v16199_v40 }
 0x3fd   : > { %v5043_v51 = vrot.slane %v5042_v2, 2  ;;  %v5049_v57 = vmax.f32 %v5047_v11, %v5048_v3  ;;  %v5057_v9 = vrot.slane %v5056_v18, 2  ;;  %v5063_v17 = vmax.f32 %v5061_v36, %v5062_v56  ;;  %v16225_v3 = vpop.permute.xlu0 %12759  ;;  %v16229_v40 = vpop.permute.xlu1 %12739 }
 0x3fe   : > { %v2982_v19 = vrot.slane %v2968_v14, %v13775_v41  ;;  %v2983_v24 = vcombine.high %v2975_v47, %v2975_v47  ;;  %v4984_v42 = vsel %vm3275_vm5, %v2975_v47, -inf  ;;  %12909 = vrot.lane.b32.xlu0 %v12908_v53, %s13474_s21  ;;  %12919 = vrot.lane.b32.xlu1 %v12908_v53, %s13473_s17  ;;  %v4983_v47 = vmax.f32 %v16173_v33, %v4982_v59 }
 0x3ff   : > { %v5044_v12 = vmax.f32 %v5042_v2, %v5043_v51  ;;  %v5050_v39 = vrot.slane %v5049_v57, 2  ;;  %v5058_v6 = vmax.f32 %v5056_v18, %v5057_v9  ;;  %v5064_v8 = vrot.slane %v5063_v17, 2 }
 0x400   : > { %v2984_v31 = vcombine.high %v2982_v19, %v2982_v19  ;;  %v4985_v1 = vrot.slane %v4984_v42, 4  ;;  %v4991_v29 = vsel %vm3275_vm5, %v2983_v24, -inf  ;;  %v4998_v10 = vsel %vm3275_vm5, %v2982_v19, -inf }
 0x401   : > { %v5045_v0 = vrot.slane %v5044_v12, 1  ;;  %v5051_v11 = vmax.f32 %v5049_v57, %v5050_v39  ;;  %v5059_v36 = vrot.slane %v5058_v6, 1  ;;  %v5065_v26 = vmax.f32 %v5063_v17, %v5064_v8  ;;  %v16233_v8 = vpop.permute.xlu0 %12774 }
 0x402   : > { %v4986_v56 = vmax.f32 %v4984_v42, %v4985_v1  ;;  %v4992_v14 = vrot.slane %v4991_v29, 4  ;;  %v4999_v2 = vrot.slane %v4998_v10, 4  ;;  %v5005_v18 = vsel %vm3275_vm5, %v2984_v31, -inf }
 0x403   : > { %v5046_v51 = vmax.f32 %v5044_v12, %v5045_v0  ;;  %v5052_v9 = vrot.slane %v5051_v11, 1  ;;  %v5066_v24 = vrot.slane %v5065_v26, 1  ;;  %v5006_v53 = vrot.slane %v5005_v18, 4 }
 0x404   : > { %v4987_v41 = vrot.slane %v4986_v56, 2  ;;  %v4993_v19 = vmax.f32 %v4991_v29, %v4992_v14  ;;  %v5000_v22 = vmax.f32 %v4998_v10, %v4999_v2  ;;  %v5566_v57 = vsel %vm5350_vm7, %v4976_v27, %v5565_v60 }
 0x405   : > { %v5053_v17 = vmax.f32 %v5051_v11, %v5052_v9  ;;  %v5060_v39 = vmax.f32 %v5058_v6, %v5059_v36  ;;  %v5575_v42 = vsel %vm5354_vm9, %v5046_v51, %v5574_v13  ;;  %v5007_v59 = vmax.f32 %v5005_v18, %v5006_v53  ;;  %v16245_v36 = vpop.permute.xlu1 %12749  ;;  %v16252_v51 = vld [vmem:[#allocation2 + $0x150] sm:$0xff]  ;;  %v16254_v9 = vld [vmem:[#allocation2 + $0x158] sm:$0xff] }
 0x406   : > { %v4988_v31 = vmax.f32 %v4986_v56, %v4987_v41  ;;  %v4994_v1 = vrot.slane %v4993_v19, 2  ;;  %v5001_v33 = vrot.slane %v5000_v22, 2  ;;  %v18516_v12 = vunpack.i.l.bf16 %v16087_v46 }
 0x407   : > { %v18517_v10 = vunpack.i.h.bf16 %v16087_v46  ;;  %v5067_v60 = vmax.f32 %v5065_v26, %v5066_v24  ;;  %v5576_v6 = vsel %vm5356_vm10, %v5053_v17, %v5575_v42  ;;  %v12686_v56 = vunpack.i.l.bf16 %v16042_v34 }
 0x408   : > { %v6699_v29 = vsel %vm6593_vm14, %v16120_v21, %v18516_v12  ;;  %v5577_v13 = vsel %vm5358_vm11, %v5060_v39, %v5576_v6  ;;  %v4989_v0 = vrot.slane %v4988_v31, 1  ;;  %v4995_v41 = vmax.f32 %v4993_v19, %v4994_v1 }
 0x409   : > { %v6700_v27 = vsel %vm6593_vm14, %v16103_v49, %v18517_v10  ;;  %v5002_v11 = vmax.f32 %v5000_v22, %v5001_v33  ;;  %v5578_v14 = vsel %vm5360_vm12, %v5067_v60, %v5577_v13  ;;  %v5008_v21 = vrot.slane %v5007_v59, 2  ;;  %v5687_v10 = vld [vmem:[#allocation2 + $0x160] sm:$0xff]  ;;  %v16276_v13 = vpop.permute.xlu1 %12764 }
 0x40a   : > { %v5567_v46 = vsel %vm5352_vm8, %v4983_v47, %v5566_v57  ;;  %v12682_v2 = vunpack.i.h.bf16 %v16141_v30  ;;  %5642 = vst.msk [vmem:[#allocation2 + $0x188] sm:$0xff] %vm1674_vm3, %v5578_v14  ;;  %v4990_v49 = vmax.f32 %v4988_v31, %v4989_v0  ;;  %v4996_v26 = vrot.slane %v4995_v41, 1  ;;  %v16261_v57 = vpop.permute.xlu0 %12784 }
 0x40b   : > { %v5003_v18 = vrot.slane %v5002_v11, 1  ;;  %v5009_v22 = vmax.f32 %v5007_v59, %v5008_v21  ;;  %v12702_v24 = vunpack.i.h.bf16 %v16125_v35  ;;  %v6731_v19 = vsel %vm6626_vm15, %v6699_v29, %v12686_v56 }
 0x40c   : > { %v18518_v53 = vunpack.i.h.bf16 %v16042_v34  ;;  %v4997_v17 = vmax.f32 %v4995_v41, %v4996_v26  ;;  %v5568_v42 = vsel %vm5354_vm9, %v4990_v49, %v5567_v46  ;;  %v18519_v33 = vunpack.i.l.bf16 %v16071_v50 }
 0x40d   : > { %v5004_v39 = vmax.f32 %v5002_v11, %v5003_v18  ;;  %v5010_v1 = vrot.slane %v5009_v22, 1  ;;  %v18520_v12 = vunpack.i.h.bf16 %v16071_v50  ;;  %v12923_v29 = vpack.i.bf16 %v16254_v9, %v16252_v51  ;;  %v13391_v18 = vld [vmem:[#allocation2 + $0x90] sm:$0xff] }
 0x40e   : > { %v6732_v47 = vsel %vm6626_vm15, %v6700_v27, %v18518_v53  ;;  %v6635_v59 = vsel %vm6626_vm15, %v16069_v58, %v18519_v33  ;;  %v5569_v27 = vsel %vm5356_vm10, %v4997_v17, %v5568_v42  ;;  %v12701_v60 = vunpack.i.l.bf16 %v16125_v35  ;;  %v16290_v26 = vpop.permute.xlu0 %12789  ;;  %v16310_v33 = vpop.permute.xlu1 %12769 }
 0x40f   : > { %v6768_v31 = vpack.c.bf16 %v6732_v47, %v6731_v19  ;;  %v6636_v34 = vsel %vm6626_vm15, %v16048_v4, %v18520_v12  ;;  %v12681_v0 = vunpack.i.l.bf16 %v16141_v30  ;;  %v12692_v58 = vunpack.i.h.bf16 %v16157_v52  ;;  %12924 = vrot.lane.b32.xlu0 %v12923_v29, %s13476_s24  ;;  %12929 = vrot.lane.b32.xlu1 %v12923_v29, %s13474_s21  ;;  %v13390_v30 = vld [vmem:[#allocation2 + $0x98] sm:$0xff] }
 0x410   : > { %v6767_v6 = vpack.c.bf16 %v6636_v34, %v6635_v59  ;;  %v5011_v50 = vmax.f32 %v5009_v22, %v5010_v1  ;;  %v5570_v41 = vsel %vm5358_vm11, %v5004_v39, %v5569_v27  ;;  %v12706_v4 = vunpack.i.l.bf16 %v16168_v44  ;;  %v18522_v12 = vld [vmem:[#allocation23_spill] sm:$0xff] }
 0x411   : > { %7066 = vmatprep.mubr.bf16.mxu1 %v6768_v31  ;;  %v5711_v35 = vrot.slane %v16252_v51, 7  ;;  %v5729_v11 = vrot.slane %v16254_v9, 7  ;;  %v5747_v56 = vrot.slane %v5687_v10, 7  ;;  %v6670_v21 = vsel %vm1674_vm3, %v13390_v30, %v12702_v24 }
 0x412   : > { %7067 = vmatmul.mubr.bf16.gmra.mrb[16].mxu1 %v6767_v6  ;;  %v5571_v14 = vsel %vm5360_vm12, %v5011_v50, %v5570_v41  ;;  %v12727_v46 = vunpack.i.h.bf16 %v16166_v43  ;;  %v12726_v49 = vunpack.i.l.bf16 %v16166_v43  ;;  %v6669_v22 = vsel %vm1674_vm3, %v13391_v18, %v12701_v60  ;;  %v18524_v50 = vld [vmem:[#allocation26_spill] sm:$0xff] }
 0x413   : > { %5641 = vst.msk [vmem:[#allocation2 + $0x180] sm:$0xff] %vm1674_vm3, %v5571_v14  ;;  %v12717_v19 = vunpack.i.h.bf16 %v16148_v37  ;;  %v16297_v53 = vsel %vm5753_vm13, %v5711_v35, %v5729_v11  ;;  %v16301_v24 = vsel %vm5753_vm13, %v5747_v56, %v5711_v35  ;;  %v12716_v39 = vunpack.i.l.bf16 %v16148_v37  ;;  %v16322_v37 = vpop.permute.xlu0 %12804 }
 0x414   : > { %v12933_v43 = vpack.i.bf16 %v16297_v53, %v16301_v24  ;;  %v6701_v47 = vsel %vm6593_vm14, %v6669_v22, %v12726_v49  ;;  %v6702_v17 = vsel %vm6593_vm14, %v6670_v21, %v12727_v46  ;;  %v5804_v42 = vrot.slane %v16252_v51, 1  ;;  %v5690_v21 = vld [vmem:[#allocation2 + $0x178] sm:$0xff]  ;;  %v16346_v46 = vpop.permute.xlu1 %12779 }
 0x415   : > { %v5822_v31 = vrot.slane %v16254_v9, 1  ;;  %v5840_v1 = vrot.slane %v5687_v10, 1  ;;  %v18521_v59 = vunpack.i.l.bf16 %v16026_v20  ;;  %v6605_v29 = vsel %vm6593_vm14, %v16091_v25, %v12682_v2  ;;  %v16334_v2 = vld [vmem:[#allocation2 + $0x168] sm:$0xff]  ;;  %v18525_v49 = vld [vmem:[#allocation27_spill] sm:$0xff] }
 0x416   : > { %v12691_v27 = vunpack.i.l.bf16 %v16157_v52  ;;  %v12707_v60 = vunpack.i.h.bf16 %v16168_v44  ;;  %12934 = vrot.lane.b32.xlu0 %v12933_v43, %s13473_s17  ;;  %12944 = vrot.lane.b32.xlu1 %v12933_v43, %s13476_s24  ;;  %v6733_v25 = vsel %vm6626_vm15, %v6701_v47, %v12716_v39  ;;  %v6734_v52 = vsel %vm6626_vm15, %v6702_v17, %v12717_v19  ;;  %v16336_v44 = vld [vmem:[#allocation2 + $0x170] sm:$0xff] }
 0x417   : > { %v6571_v34 = vsel %vm1674_vm3, %v18522_v12, %v18521_v59  ;;  %v16326_v10 = vsel %vm5844_vm4, %v5822_v31, %v5840_v1  ;;  %v16330_v20 = vsel %vm5844_vm4, %v5804_v42, %v5822_v31  ;;  %v6574_v41 = vsel %vm1674_vm3, %v18524_v50, %v12692_v58  ;;  %v16360_v39 = vpop.permute.xlu0 %12814  ;;  %v13392_v42 = vld [vmem:[#allocation2 + $0xb0] sm:$0xff]  ;;  %v13393_v1 = vld [vmem:[#allocation2 + $0xa8] sm:$0xff] }
 0x418   : > { %18523 = vst [vmem:[#allocation42_spill] sm:$0xff] %v16326_v10  ;;  %v6604_v6 = vsel %vm6593_vm14, %v6571_v34, %v12681_v0  ;;  %v12938_v35 = vpack.i.bf16 %v16326_v10, %v16330_v20  ;;  %v12732_v11 = vunpack.i.h.bf16 %v16170_v55  ;;  %v12731_v56 = vunpack.i.l.bf16 %v16170_v55  ;;  %v16366_v34 = vpop.f32.mrb[0].mxu1 }
 0x419   : > { %v6771_v14 = vpack.c.bf16 %v6734_v52, %v6733_v25  ;;  %v6637_v30 = vsel %vm6626_vm15, %v6604_v6, %v12706_v4  ;;  %v6638_v0 = vsel %vm6626_vm15, %v6605_v29, %v12707_v60  ;;  %v12953_v58 = vpack.i.bf16 %v16336_v44, %v16334_v2  ;;  %v16380_v52 = vpop.f32.mrb[1].mxu1 }
 0x41a   : > { %12939 = vrot.lane.b32.xlu0 %v12938_v35, %s13474_s21  ;;  %12949 = vrot.lane.b32.xlu1 %v12938_v35, %s13473_s17  ;;  %v6573_v18 = vsel %vm1674_vm3, %v18525_v49, %v12691_v27  ;;  %v12712_v55 = vunpack.i.h.bf16 %v16175_v63  ;;  %v12711_v22 = vunpack.i.l.bf16 %v16175_v63  ;;  %v6770_v4 = vpack.c.bf16 %v6638_v0, %v6637_v30  ;;  %v16391_v30 = vpop.f32.mrb[2].mxu1 }
 0x41b   : > { %7074 = vmatprep.mubr.bf16.mxu1 %v6771_v14  ;;  %v5712_v19 = vrot.slane %v16334_v2, 7  ;;  %v5730_v43 = vrot.slane %v16336_v44, 7  ;;  %v5748_v47 = vrot.slane %v5690_v21, 7  ;;  %v12757_v17 = vunpack.i.h.bf16 %v16211_v5 }
 0x41c   : > { %v6672_v31 = vsel %vm1674_vm3, %v13392_v42, %v12732_v11  ;;  %v6671_v59 = vsel %vm1674_vm3, %v13393_v1, %v12731_v56  ;;  %7075 = vmatmul.mubr.bf16.gmra.mrb[20].mxu1 %v6770_v4  ;;  %v12747_v63 = vunpack.i.h.bf16 %v16185_v32  ;;  %v12756_v12 = vunpack.i.l.bf16 %v16211_v5  ;;  %v16419_v42 = vld [vmem:[#allocation2 + $0x188] sm:$0xff] }
 0x41d   : > { %v12746_v29 = vunpack.i.l.bf16 %v16185_v32  ;;  %v16373_v27 = vsel %vm5753_vm13, %v5712_v19, %v5730_v43  ;;  %v16377_v60 = vsel %vm5753_vm13, %v5748_v47, %v5712_v19  ;;  %v6704_v25 = vsel %vm6593_vm14, %v6672_v31, %v12757_v17  ;;  %v16386_v32 = vpop.permute.xlu1 %12794  ;;  %v16397_v19 = vpop.f32.mrb[3].mxu1  ;;  %v16417_v17 = vld [vmem:[#allocation2 + $0x180] sm:$0xff]  ;;  %v16421_v31 = vld [vmem:[#allocation2 + $0x190] sm:$0xff] }
 0x41e   : > { %12954 = vrot.lane.b32.xlu0 %v12953_v58, %s13476_s24  ;;  %12959 = vrot.lane.b32.xlu1 %v12953_v58, %s13474_s21  ;;  %v12963_v5 = vpack.i.bf16 %v16373_v27, %v16377_v60  ;;  %v6703_v6 = vsel %vm6593_vm14, %v6671_v59, %v12756_v12  ;;  %v5805_v50 = vrot.slane %v16334_v2, 1  ;;  %v12737_v35 = vunpack.i.h.bf16 %v16220_v28  ;;  %v18528_v12 = vld [vmem:[#allocation31_spill] sm:$0xff] }
 0x41f   : > { %v12736_v11 = vunpack.i.l.bf16 %v16220_v28  ;;  %v5823_v56 = vrot.slane %v16336_v44, 1  ;;  %v5841_v14 = vrot.slane %v5690_v21, 1  ;;  %v6607_v0 = vsel %vm6593_vm14, %v6574_v41, %v12712_v55  ;;  %v16410_v21 = vpop.permute.xlu0 %12819 }
 0x420   : > { %v12721_v58 = vunpack.i.l.bf16 %v16204_v48  ;;  %v6735_v49 = vsel %vm6626_vm15, %v6703_v6, %v12746_v29  ;;  %v6736_v4 = vsel %vm6626_vm15, %v6704_v25, %v12747_v63  ;;  %v6606_v43 = vsel %vm6593_vm14, %v6573_v18, %v12711_v22 }
 0x421   : > { %v16404_v28 = vsel %vm5844_vm4, %v5823_v56, %v5841_v14  ;;  %v16408_v41 = vsel %vm5844_vm4, %v5805_v50, %v5823_v56  ;;  %v12722_v55 = vunpack.i.h.bf16 %v16204_v48  ;;  %v12742_v47 = vunpack.i.h.bf16 %v16229_v40  ;;  %v18529_v14 = vld [vmem:[#allocation30_spill] sm:$0xff] }
 0x422   : > { %12964 = vrot.lane.b32.xlu0 %v12963_v5, %s13473_s17  ;;  %12974 = vrot.lane.b32.xlu1 %v12963_v5, %s13476_s24  ;;  %18526 = vst [vmem:[#allocation14_spill] sm:$0xff] %v16404_v28  ;;  %18527 = vst [vmem:[#allocation17_spill] sm:$0xff] %v16408_v41  ;;  %v12741_v18 = vunpack.i.l.bf16 %v16229_v40  ;;  %v12968_v22 = vpack.i.bf16 %v16404_v28, %v16408_v41  ;;  %v6774_v1 = vpack.c.bf16 %v6736_v4, %v6735_v49  ;;  %v16429_v5 = vpop.permute.xlu1 %12799  ;;  %v16445_v4 = vld [vmem:[#allocation2 + $0x198] sm:$0xff] }
 0x423   : > { %v6639_v59 = vsel %vm6626_vm15, %v6606_v43, %v12736_v11  ;;  %v6640_v63 = vsel %vm6626_vm15, %v6607_v0, %v12737_v35  ;;  %v6575_v48 = vsel %vm1674_vm3, %v18528_v12, %v12721_v58  ;;  %v12762_v29 = vunpack.i.h.bf16 %v16225_v3  ;;  %v16438_v56 = vpop.permute.xlu0 %12834  ;;  %v16447_v43 = vld [vmem:[#allocation2 + $0x1a0] sm:$0xff] }
 0x424   : > { %v12761_v40 = vunpack.i.l.bf16 %v16225_v3  ;;  %v6773_v25 = vpack.c.bf16 %v6640_v63, %v6639_v59  ;;  %v12978_v6 = vpack.i.bf16 %v16419_v42, %v16417_v17  ;;  %v5713_v50 = vrot.slane %v16417_v17, 7  ;;  %7082 = vmatprep.mubr.bf16.mxu1 %v6774_v1 }
 0x425   : > { %v5731_v35 = vrot.slane %v16419_v42, 7  ;;  %v5749_v11 = vrot.slane %v16421_v31, 7  ;;  %v6576_v3 = vsel %vm1674_vm3, %v18529_v14, %v12722_v55  ;;  %v6608_v0 = vsel %vm6593_vm14, %v6575_v48, %v12741_v18  ;;  %v13395_v48 = vld [vmem:[#allocation2 + $0xc0] sm:$0xff] }
 0x426   : > { %12969 = vrot.lane.b32.xlu0 %v12968_v22, %s13474_s21  ;;  %12994 = vrot.lane.b32.xlu1 %v12968_v22, %s13473_s17  ;;  %v12787_v58 = vunpack.i.h.bf16 %v16261_v57  ;;  %v12786_v49 = vunpack.i.l.bf16 %v16261_v57  ;;  %v16449_v22 = vld [vmem:[#allocation2 + $0x1a8] sm:$0xff]  ;;  %v6609_v59 = vsel %vm6593_vm14, %v6576_v3, %v12742_v47  ;;  %v12752_v63 = vunpack.i.h.bf16 %v16245_v36  ;;  %v16460_v41 = vpop.permute.xlu1 %12809 }
 0x427   : > { %18530 = vst [vmem:[#allocation18_spill] sm:$0xff] %v16449_v22  ;;  %7083 = vmatmul.mubr.bf16.gmra.mrb[24].mxu1 %v6773_v25  ;;  %v5770_v55 = vsel %vm5753_vm13, %v5713_v50, %v5731_v35  ;;  %v5788_v18 = vsel %vm5753_vm13, %v5749_v11, %v5713_v50  ;;  %v12767_v1 = vunpack.i.h.bf16 %v16276_v13  ;;  %v13394_v57 = vld [vmem:[#allocation2 + $0xc8] sm:$0xff]  ;;  %v6673_v14 = vsel %vm1674_vm3, %v13395_v48, %v12761_v40 }
 0x428   : > { %v6674_v12 = vsel %vm1674_vm3, %v13394_v57, %v12762_v29  ;;  %v13008_v28 = vpack.i.bf16 %v5770_v55, %v5788_v18  ;;  %v5714_v47 = vrot.slane %v16445_v4, 7  ;;  %v5732_v25 = vrot.slane %v16447_v43, 7  ;;  %v16477_v57 = vpop.permute.xlu0 %12844 }
 0x429   : > { %v5750_v35 = vrot.slane %v16449_v22, 7  ;;  %v12766_v50 = vunpack.i.l.bf16 %v16276_v13  ;;  %v12776_v11 = vunpack.i.l.bf16 %v16233_v8  ;;  %v6705_v29 = vsel %vm6593_vm14, %v6673_v14, %v12786_v49 }
 0x42a   : > { %12979 = vrot.lane.b32.xlu0 %v12978_v6, %s13476_s24  ;;  %13009 = vrot.lane.b32.xlu1 %v13008_v28, %s13476_s24  ;;  %v6706_v40 = vsel %vm6593_vm14, %v6674_v12, %v12787_v58  ;;  %v5771_v3 = vsel %vm5753_vm13, %v5714_v47, %v5732_v25  ;;  %v5806_v55 = vrot.slane %v16417_v17, 1  ;;  %v5824_v18 = vrot.slane %v16419_v42, 1  ;;  %v16494_v10 = vpop.permute.xlu1 %12824 }
 0x42b   : > { %v5789_v6 = vsel %vm5753_vm13, %v5750_v35, %v5714_v47  ;;  %v12751_v13 = vunpack.i.l.bf16 %v16245_v36  ;;  %v12771_v48 = vunpack.i.l.bf16 %v16310_v33  ;;  %v12777_v49 = vunpack.i.h.bf16 %v16233_v8 }
 0x42c   : > { %v12792_v58 = vunpack.i.h.bf16 %v16290_v26  ;;  %v12988_v12 = vpack.i.bf16 %v5771_v3, %v5789_v6  ;;  %v5842_v14 = vrot.slane %v16421_v31, 1  ;;  %v16487_v47 = vsel %vm5844_vm4, %v5806_v55, %v5824_v18  ;;  %v18532_v55 = vld [vmem:[#allocation34_spill] sm:$0xff] }
 0x42d   : > { %v6737_v25 = vsel %vm6626_vm15, %v6705_v29, %v12776_v11  ;;  %v12791_v35 = vunpack.i.l.bf16 %v16290_v26  ;;  %v6738_v36 = vsel %vm6626_vm15, %v6706_v40, %v12777_v49  ;;  %v6641_v22 = vsel %vm6626_vm15, %v6608_v0, %v12766_v50  ;;  %v16512_v40 = vpop.permute.xlu0 %12849  ;;  %v13397_v49 = vld [vmem:[#allocation2 + $0xd8] sm:$0xff] }
 0x42e   : > { %12984 = vrot.lane.b32.xlu0 %v13008_v28, %s13473_s17  ;;  %v6642_v8 = vsel %vm6626_vm15, %v6609_v59, %v12767_v1  ;;  %v18531_v28 = vld [vmem:[#allocation33_spill] sm:$0xff]  ;;  %v16500_v31 = vsel %vm5844_vm4, %v5824_v18, %v5842_v14  ;;  %v6777_v6 = vpack.c.bf16 %v6738_v36, %v6737_v25  ;;  %v6577_v11 = vsel %vm1674_vm3, %v18532_v55, %v12751_v13 }
 0x42f   : > { %v6578_v3 = vsel %vm1674_vm3, %v18531_v28, %v12752_v63  ;;  %v12772_v26 = vunpack.i.h.bf16 %v16310_v33  ;;  %v6799_v0 = vpack.c.bf16 %v16500_v31, %v16487_v47  ;;  %v6776_v50 = vpack.c.bf16 %v6642_v8, %v6641_v22  ;;  %v13396_v33 = vld [vmem:[#allocation2 + $0xe0] sm:$0xff] }
 0x430   : > { %v12797_v59 = vunpack.i.h.bf16 %v16386_v32  ;;  %v12796_v1 = vunpack.i.l.bf16 %v16386_v32  ;;  %7090 = vmatprep.mubr.bf16.mxu1 %v6777_v6  ;;  %v12817_v63 = vunpack.i.h.bf16 %v16360_v39  ;;  %v12816_v29 = vunpack.i.l.bf16 %v16360_v39 }
 0x431   : > { %v6610_v18 = vsel %vm6593_vm14, %v6577_v11, %v12771_v48  ;;  %v6676_v13 = vsel %vm1674_vm3, %v13396_v33, %v12792_v58  ;;  %v6675_v22 = vsel %vm1674_vm3, %v13397_v49, %v12791_v35  ;;  %7091 = vmatmul.mubr.bf16.gmra.mrb[28].mxu1 %v6776_v50  ;;  %v12806_v32 = vunpack.i.l.bf16 %v16322_v37  ;;  %v16527_v35 = vpop.permute.xlu1 %12829  ;;  %v13398_v49 = vld [vmem:[#allocation2 + $0xf8] sm:$0xff] }
 0x432   : > { %12989 = vrot.lane.b32.xlu0 %v12988_v12, %s13473_s17  ;;  %v12998_v12 = vpack.i.bf16 %v16500_v31, %v16487_v47  ;;  %v12807_v14 = vunpack.i.h.bf16 %v16322_v37  ;;  %v6707_v39 = vsel %vm6593_vm14, %v6675_v22, %v12816_v29  ;;  %v6708_v25 = vsel %vm6593_vm14, %v6676_v13, %v12817_v63  ;;  %v13399_v22 = vld [vmem:[#allocation2 + $0xf0] sm:$0xff] }
 0x433   : > { %v6611_v48 = vsel %vm6593_vm14, %v6578_v3, %v12772_v26  ;;  %v13003_v58 = vpack.i.bf16 %v16447_v43, %v16445_v4  ;;  %v12822_v36 = vunpack.i.h.bf16 %v16410_v21  ;;  %v6739_v8 = vsel %vm6626_vm15, %v6707_v39, %v12806_v32  ;;  %v12865_v3 = vpop.permute.xlu0 %12864 }
 0x434   : > { %v12821_v28 = vunpack.i.l.bf16 %v16410_v21  ;;  %v6740_v37 = vsel %vm6626_vm15, %v6708_v25, %v12807_v14  ;;  %v6643_v6 = vsel %vm6626_vm15, %v6610_v18, %v12796_v1  ;;  %v6644_v55 = vsel %vm6626_vm15, %v6611_v48, %v12797_v59  ;;  %v18533_v14 = vld [vmem:[#allocation8_spill] sm:$0xff]  ;;  %v18534_v25 = vld [vmem:[#allocation7_spill] sm:$0xff] }
 0x435   : > { %v12782_v11 = vunpack.i.h.bf16 %v16346_v46  ;;  %v12781_v26 = vunpack.i.l.bf16 %v16346_v46  ;;  %v6780_v50 = vpack.c.bf16 %v6740_v37, %v6739_v8  ;;  %v12802_v63 = vunpack.i.h.bf16 %v16429_v5  ;;  %v16543_v18 = vpop.permute.xlu1 %12839 }
 0x436   : > { %12999 = vrot.lane.b32.xlu0 %v12998_v12, %s13474_s21  ;;  %v12801_v29 = vunpack.i.l.bf16 %v16429_v5  ;;  %v12827_v33 = vunpack.i.h.bf16 %v16494_v10  ;;  %v12847_v21 = vunpack.i.h.bf16 %v16477_v57  ;;  %v12826_v13 = vunpack.i.l.bf16 %v16494_v10  ;;  %s323_s21 = sand.u32 1, %s13461_s10  }
 0x437   : > { %v6678_v1 = vsel %vm1674_vm3, %v13398_v49, %v12822_v36  ;;  %7098 = vmatprep.mubr.bf16.mxu1 %v6780_v50  ;;  %v6779_v59 = vpack.c.bf16 %v6644_v55, %v6643_v6  ;;  %v12846_v46 = vunpack.i.l.bf16 %v16477_v57  ;;  %v6677_v5 = vsel %vm1674_vm3, %v13399_v22, %v12821_v28  ;;  %v13401_v22 = vld [vmem:[#allocation2 + $0x108] sm:$0xff]  ;;  %s324_s26 = scalar_lea.vmem [#allocation3], %s323_s21  ;;  %s11235_s14 = scalar_lea.sflag [#allocation4], %s323_s21 }
 0x438   : > { %v12837_v32 = vunpack.i.h.bf16 %v16438_v56  ;;  %v12836_v12 = vunpack.i.l.bf16 %v16438_v56  ;;  %v6710_v10 = vsel %vm6593_vm14, %v6678_v1, %v12847_v21  ;;  %v6580_v39 = vsel %vm1674_vm3, %v18533_v14, %v12782_v11  ;;  %v12875_v56 = vpop.permute.xlu0 %12874  ;;  %s11247_s27 = sshll.u32 %s324_s26, 4  ;;  %s18290_s27 = int_to_ptr.vmem [resolvable:$true] %s11247_s27 }
 0x439   : > { %v6579_v48 = vsel %vm1674_vm3, %v18534_v25, %v12781_v26  ;;  %7099 = vmatmul.mubr.bf16.gmra.mrb[32].mxu1 %v6779_v59  ;;  %v6709_v57 = vsel %vm6593_vm14, %v6677_v5, %v12846_v46  ;;  %v12851_v36 = vunpack.i.l.bf16 %v16512_v40  ;;  %v6613_v6 = vsel %vm6593_vm14, %v6580_v39, %v12802_v63  ;;  %v12855_v49 = vpop.permute.xlu1 %12854  ;;  %v18535_v25 = vld [vmem:[#allocation11_spill] sm:$0xff]  ;;  %s13407_s13 = scalar_lea.vmem %s18290_s27, 16  ;;  %p13414_p0 = scmp.lt.s32.totalorder %s18290_s27, %s13412_s22 }
 0x43a   : > { %13004 = vrot.lane.b32.xlu0 %v13003_v58, %s13476_s24  ;;  %v12852_v58 = vunpack.i.h.bf16 %v16512_v40  ;;  %v6741_v8 = vsel %vm6626_vm15, %v6709_v57, %v12836_v12  ;;  %v6742_v28 = vsel %vm6626_vm15, %v6710_v10, %v12837_v32  ;;  %v6612_v37 = vsel %vm6593_vm14, %v6579_v48, %v12801_v29  ;;  %v13400_v29 = vld [vmem:[#allocation2 + $0x110] sm:$0xff]  ;;  %p13408_p11 = scmp.ne.s32.totalorder %s18290_s27, %s13407_s13  ;;  %s13413_s24 = scalar_lea.vmem %s13412_s22, 32 }
 0x43b   : > { %v6783_v55 = vpack.c.bf16 %v6742_v28, %v6741_v8  ;;  %v12812_v11 = vunpack.i.h.bf16 %v16460_v41  ;;  %v6645_v26 = vsel %vm6626_vm15, %v6612_v37, %v12826_v13  ;;  %v6646_v50 = vsel %vm6626_vm15, %v6613_v6, %v12827_v33  ;;  %v18536_v57 = vld [vmem:[#allocation45_spill] sm:$0xff]  ;;  %p13415_p1 = scmp.lt.s32.totalorder %s13413_s24, %s13407_s13 }
 0x43c   : > { %v12811_v21 = vunpack.i.l.bf16 %v16460_v41  ;;  %v12832_v40 = vunpack.i.h.bf16 %v16527_v35  ;;  %v12877_v1 = vunpack.i.h.bf16 %v12875_v56  ;;  %v12876_v59 = vunpack.i.l.bf16 %v12875_v56  ;;  %p13409_p12 = pnand %p13408_p11, %p13567_p5 }
 0x43d   : > { %7106 = vmatprep.mubr.bf16.mxu1 %v6783_v55  ;;  %v12831_v46 = vunpack.i.l.bf16 %v16527_v35  ;;  %v6680_v63 = vsel %vm1674_vm3, %v13400_v29, %v12852_v58  ;;  %v6679_v5 = vsel %vm1674_vm3, %v13401_v22, %v12851_v36  ;;  %v12866_v32 = vunpack.i.l.bf16 %v12865_v3  ;;  %p13416_p2 = por %p13415_p1, %p13414_p0 }
 0x43e   : > { %v6782_v13 = vpack.c.bf16 %v6646_v50, %v6645_v26  ;;  %v12867_v12 = vunpack.i.h.bf16 %v12865_v3  ;;  %v6711_v33 = vsel %vm6593_vm14, %v6679_v5, %v12876_v59  ;;  %v6712_v41 = vsel %vm6593_vm14, %v6680_v63, %v12877_v1  ;;  %p13410_p13 = pneg %p13409_p12 }
 0x43f   : > { %v12857_v10 = vunpack.i.h.bf16 %v12855_v49  ;;  %v12856_v14 = vunpack.i.l.bf16 %v12855_v49  ;;  %v6743_v39 = vsel %vm6626_vm15, %v6711_v33, %v12866_v32  ;;  %v6582_v48 = vsel %vm1674_vm3, %v18535_v25, %v12812_v11 }
 0x440   : > { %v6744_v35 = vsel %vm6626_vm15, %v6712_v41, %v12867_v12  ;;  %v6581_v58 = vsel %vm1674_vm3, %v18536_v57, %v12811_v21  ;;  %v6615_v28 = vsel %vm6593_vm14, %v6582_v48, %v12832_v40  ;;  %v16582_v56 = vadd.f32 %v16380_v52, %v16366_v34  ;;  %v12860_v21 = vpop.permute.xlu1 %12859  ;;  %v12880_v52 = vpop.permute.xlu0 %12879  ;;  %v18537_v12 = vld [vmem:[#allocation12_spill] sm:$0xff]  ;;  %v18538_v41 = vld [vmem:[#allocation37_spill] sm:$0xff]  ;;  %p13417_p3 = pnand %p13416_p2, %p13410_p13 }
 0x441   : > { %7107 = vmatmul.mubr.bf16.gmra.mrb[36].mxu1 %v6782_v13  ;;  %v6786_v36 = vpack.c.bf16 %v6744_v35, %v6743_v39  ;;  %v6614_v3 = vsel %vm6593_vm14, %v6581_v58, %v12831_v46  ;;  %v16586_v37 = vadd.f32 %v16397_v19, %v16391_v30  ;;  %v6648_v11 = vsel %vm6626_vm15, %v6615_v28, %v12857_v10  ;;  %v13402_v48 = vld [vmem:[#allocation2 + $0x128] sm:$0xff]  ;;  %v13403_v58 = vld [vmem:[#allocation2 + $0x120] sm:$0xff] }
 0x442   : > { %v6647_v55 = vsel %vm6626_vm15, %v6614_v3, %v12856_v14  ;;  %v12842_v30 = vunpack.i.h.bf16 %v16543_v18  ;;  %v12841_v19 = vunpack.i.l.bf16 %v16543_v18  ;;  %v12862_v29 = vunpack.i.h.bf16 %v12860_v21 }
 0x443   : > { %v11830_v8 = vpop.f32.mrb[4].mxu1  ;;  %7114 = vmatprep.mubr.bf16.mxu1 %v6786_v36  ;;  %v6785_v1 = vpack.c.bf16 %v6648_v11, %v6647_v55  ;;  %v12861_v63 = vunpack.i.l.bf16 %v12860_v21  ;;  %v12882_v22 = vunpack.i.h.bf16 %v12880_v52  ;;  %v12881_v5 = vunpack.i.l.bf16 %v12880_v52 }
 0x444   : > { %v11831_v6 = vpop.f32.mrb[5].mxu1  ;;  %v12870_v34 = vpop.permute.xlu1 %12869  ;;  %v6584_v33 = vsel %vm1674_vm3, %v18537_v12, %v12842_v30  ;;  %v6583_v10 = vsel %vm1674_vm3, %v18538_v41, %v12841_v19 }
 0x445   : > { %v16590_v26 = vadd.f32 %v11831_v6, %v11830_v8  ;;  %v11833_v50 = vpop.f32.mrb[6].mxu1  ;;  %v6616_v39 = vsel %vm6593_vm14, %v6583_v10, %v12861_v63  ;;  %v6617_v35 = vsel %vm6593_vm14, %v6584_v33, %v12862_v29  ;;  %v6682_v57 = vsel %vm1674_vm3, %v13402_v48, %v12882_v22 }
 0x446   : > { %v11834_v49 = vpop.f32.mrb[7].mxu1  ;;  %v6681_v36 = vsel %vm1674_vm3, %v13403_v58, %v12881_v5  ;;  %v12872_v33 = vunpack.i.h.bf16 %v12870_v34  ;;  %v12871_v41 = vunpack.i.l.bf16 %v12870_v34 }
 0x447   : > { %v16592_v40 = vadd.f32 %v11834_v49, %v11833_v50 }
 0x448   : > { %v12885_v46 = vpop.permute.xlu1 %12884  ;;  %v6586_v58 = vsel %vm1674_vm3, %v15925_v54, %v12872_v33 }
 0x449   : > { %7115 = vmatmul.mubr.bf16.gmra.mrb[40].mxu1 %v6785_v1  ;;  %v12887_v32 = vunpack.i.h.bf16 %v12885_v46  ;;  %v12886_v13 = vunpack.i.l.bf16 %v12885_v46 }
 0x44b   : > { %v6649_v55 = vsel %vm6626_vm15, %v6616_v39, %v12886_v13  ;;  %v6650_v11 = vsel %vm6626_vm15, %v6617_v35, %v12887_v32 }
 0x44c   : > { %v6788_v1 = vpack.c.bf16 %v6650_v11, %v6649_v55  ;;  %v12890_v52 = vpop.permute.xlu1 %12889 }
 0x44d   : > { %v12892_v35 = vunpack.i.h.bf16 %v12890_v52 }
 0x44e   : > { %v12895_v59 = vpop.permute.xlu0 %12894 }
 0x44f   : > { %v12897_v8 = vunpack.i.h.bf16 %v12895_v59  ;;  %v12896_v3 = vunpack.i.l.bf16 %v12895_v59 }
 0x450   : > { %v12900_v30 = vpop.permute.xlu1 %12899 }
 0x451   : > { %v12902_v33 = vunpack.i.h.bf16 %v12900_v30 }
 0x454   : > { %v12905_v14 = vpop.permute.xlu0 %12904  ;;  %v12915_v46 = vpop.permute.xlu1 %12914 }
 0x455   : > { %v12907_v25 = vunpack.i.h.bf16 %v12905_v14  ;;  %v12906_v18 = vunpack.i.l.bf16 %v12905_v14  ;;  %v12916_v48 = vunpack.i.l.bf16 %v12915_v46 }
 0x457   : > { %v6713_v28 = vsel %vm6593_vm14, %v6681_v36, %v12906_v18  ;;  %v6714_v6 = vsel %vm6593_vm14, %v6682_v57, %v12907_v25  ;;  %v12891_v25 = vunpack.i.l.bf16 %v12890_v52  ;;  %v12917_v18 = vunpack.i.h.bf16 %v12915_v46 }
 0x458   : > { %v6745_v50 = vsel %vm6626_vm15, %v6713_v28, %v12896_v3  ;;  %v6746_v21 = vsel %vm6626_vm15, %v6714_v6, %v12897_v8  ;;  %v6585_v36 = vsel %vm1674_vm3, %v15929_v7, %v12871_v41  ;;  %v13404_v28 = vld [vmem:[#allocation2 + $0x140] sm:$0xff]  ;;  %v13405_v6 = vld [vmem:[#allocation2 + $0x138] sm:$0xff]  ;;  %v12901_v41 = vunpack.i.l.bf16 %v12900_v30 }
 0x459   : > { %v6789_v49 = vpack.c.bf16 %v6746_v21, %v6745_v50  ;;  %v6618_v21 = vsel %vm6593_vm14, %v6585_v36, %v12891_v25 }
 0x45a   : > { %v6651_v46 = vsel %vm6626_vm15, %v6618_v21, %v12916_v48  ;;  %v6588_v48 = vsel %vm1674_vm3, %v16111_v45, %v12902_v33 }
 0x45b   : > { %7122 = vmatprep.mubr.bf16.mxu1 %v6789_v49  ;;  %v6619_v49 = vsel %vm6593_vm14, %v6586_v58, %v12892_v35 }
 0x45c   : > { %7123 = vmatmul.mubr.bf16.gmra.mrb[44].mxu1 %v6788_v1 }
 0x470   : > { %v12910_v5 = vpop.permute.xlu0 %12909  ;;  %v12920_v32 = vpop.permute.xlu1 %12919 }
 0x471   : > { %v12912_v10 = vunpack.i.h.bf16 %v12910_v5  ;;  %v12911_v14 = vunpack.i.l.bf16 %v12910_v5  ;;  %v12922_v25 = vunpack.i.h.bf16 %v12920_v32 }
 0x473   : > { %v6684_v34 = vsel %vm1674_vm3, %v13404_v28, %v12912_v10  ;;  %v6683_v55 = vsel %vm1674_vm3, %v13405_v6, %v12911_v14 }
 0x47a   : > { %v11836_v19 = vpop.f32.mrb[8].mxu1 }
 0x47b   : > { %v11837_v59 = vpop.f32.mrb[9].mxu1 }
 0x47c   : > { %v16610_v29 = vadd.f32 %v11837_v59, %v11836_v19  ;;  %v11839_v63 = vpop.f32.mrb[10].mxu1 }
 0x47d   : > { %v11840_v22 = vpop.f32.mrb[11].mxu1 }
 0x47e   : > { %v16612_v13 = vadd.f32 %v11840_v22, %v11839_v63  ;;  %v6652_v63 = vsel %vm6626_vm15, %v6619_v49, %v12917_v18  ;;  %v6587_v18 = vsel %vm1674_vm3, %v16115_v23, %v12901_v41 }
 0x47f   : > { %v6791_v5 = vpack.c.bf16 %v6652_v63, %v6651_v46 }
 0x481   : > { %v12925_v12 = vpop.permute.xlu0 %12924  ;;  %v16614_v39 = vpop.permute.xlu1 %12929 }
 0x482   : > { %v12927_v11 = vunpack.i.h.bf16 %v12925_v12  ;;  %v12926_v50 = vunpack.i.l.bf16 %v12925_v12 }
 0x488   : > { %v12935_v57 = vpop.permute.xlu0 %12934  ;;  %v12945_v52 = vpop.permute.xlu1 %12944 }
 0x489   : > { %v12937_v8 = vunpack.i.h.bf16 %v12935_v57  ;;  %v12936_v3 = vunpack.i.l.bf16 %v12935_v57  ;;  %v12921_v57 = vunpack.i.l.bf16 %v12920_v32  ;;  %v12947_v58 = vunpack.i.h.bf16 %v12945_v52 }
 0x48a   : > { %v12946_v36 = vunpack.i.l.bf16 %v12945_v52 }
 0x48b   : > { %v6715_v1 = vsel %vm6593_vm14, %v6683_v55, %v12936_v3  ;;  %v6716_v54 = vsel %vm6593_vm14, %v6684_v34, %v12937_v8 }
 0x48c   : > { %v12940_v7 = vpop.permute.xlu0 %12939  ;;  %v6747_v19 = vsel %vm6626_vm15, %v6715_v1, %v12926_v50  ;;  %v6748_v59 = vsel %vm6626_vm15, %v6716_v54, %v12927_v11  ;;  %v12950_v35 = vpop.permute.xlu1 %12949  ;;  %v6620_v11 = vsel %vm6593_vm14, %v6587_v18, %v12921_v57  ;;  %v6621_v50 = vsel %vm6593_vm14, %v6588_v48, %v12922_v25 }
 0x48d   : > { %v6792_v22 = vpack.c.bf16 %v6748_v59, %v6747_v19  ;;  %v12942_v10 = vunpack.i.h.bf16 %v12940_v7  ;;  %v12941_v14 = vunpack.i.l.bf16 %v12940_v7  ;;  %v12932_v7 = vunpack.i.h.bf16 %v16614_v39 }
 0x48e   : > { %v12931_v19 = vunpack.i.l.bf16 %v16614_v39  ;;  %v12952_v63 = vunpack.i.h.bf16 %v12950_v35 }
 0x48f   : > { %7130 = vmatprep.mubr.bf16.mxu1 %v6792_v22  ;;  %v6686_v30 = vsel %vm1674_vm3, %v16254_v9, %v12942_v10  ;;  %v6685_v34 = vsel %vm1674_vm3, %v16252_v51, %v12941_v14  ;;  %v6653_v9 = vsel %vm6626_vm15, %v6620_v11, %v12946_v36  ;;  %v6654_v51 = vsel %vm6626_vm15, %v6621_v50, %v12947_v58 }
 0x490   : > { %v12955_v12 = vpop.permute.xlu0 %12954  ;;  %7131 = vmatmul.mubr.bf16.gmra.mrb[48].mxu1 %v6791_v5  ;;  %v12960_v32 = vpop.permute.xlu1 %12959  ;;  %v6794_v52 = vpack.c.bf16 %v6654_v51, %v6653_v9  ;;  %v12951_v22 = vunpack.i.l.bf16 %v12950_v35  ;;  %v6590_v10 = vsel %vm1674_vm3, %v16297_v53, %v12932_v7  ;;  %v6589_v14 = vsel %vm1674_vm3, %v16301_v24, %v12931_v19 }
 0x491   : > { %v12957_v6 = vunpack.i.h.bf16 %v12955_v12  ;;  %v12956_v55 = vunpack.i.l.bf16 %v12955_v12  ;;  %v6623_v39 = vsel %vm6593_vm14, %v6590_v10, %v12952_v63 }
 0x492   : > { %v6622_v57 = vsel %vm6593_vm14, %v6589_v14, %v12951_v22 }
 0x494   : > { %v12965_v8 = vpop.permute.xlu0 %12964  ;;  %v12975_v59 = vpop.permute.xlu1 %12974 }
 0x495   : > { %v12967_v3 = vunpack.i.h.bf16 %v12965_v8  ;;  %v12966_v28 = vunpack.i.l.bf16 %v12965_v8  ;;  %v12977_v33 = vunpack.i.h.bf16 %v12975_v59  ;;  %v12976_v41 = vunpack.i.l.bf16 %v12975_v59 }
 0x497   : > { %v6717_v45 = vsel %vm6593_vm14, %v6685_v34, %v12966_v28  ;;  %v6718_v21 = vsel %vm6593_vm14, %v6686_v30, %v12967_v3  ;;  %v6655_v28 = vsel %vm6626_vm15, %v6622_v57, %v12976_v41  ;;  %v6656_v30 = vsel %vm6626_vm15, %v6623_v39, %v12977_v33 }
 0x498   : > { %v12970_v23 = vpop.permute.xlu0 %12969  ;;  %v6749_v49 = vsel %vm6626_vm15, %v6717_v45, %v12956_v55  ;;  %v6750_v1 = vsel %vm6626_vm15, %v6718_v21, %v12957_v6  ;;  %v12995_v3 = vpop.permute.xlu1 %12994  ;;  %v6797_v11 = vpack.c.bf16 %v6656_v30, %v6655_v28  ;;  %v12961_v45 = vunpack.i.l.bf16 %v12960_v32  ;;  %v18543_v30 = vld [vmem:[#allocation16_spill] sm:$0xff] }
 0x499   : > { %v6795_v54 = vpack.c.bf16 %v6750_v1, %v6749_v49  ;;  %v12972_v5 = vunpack.i.h.bf16 %v12970_v23  ;;  %v12971_v12 = vunpack.i.l.bf16 %v12970_v23  ;;  %v12997_v23 = vunpack.i.h.bf16 %v12995_v3 }
 0x49a   : > { %v12996_v49 = vunpack.i.l.bf16 %v12995_v3 }
 0x49b   : > { %7138 = vmatprep.mubr.bf16.mxu1 %v6795_v54  ;;  %v6688_v35 = vsel %vm1674_vm3, %v16336_v44, %v12972_v5  ;;  %v6687_v8 = vsel %vm1674_vm3, %v16334_v2, %v12971_v12  ;;  %v12962_v2 = vunpack.i.h.bf16 %v12960_v32  ;;  %v6591_v32 = vsel %vm1674_vm3, %v16377_v60, %v12961_v45 }
 0x49c   : > { %v12980_v46 = vpop.permute.xlu0 %12979  ;;  %7139 = vmatmul.mubr.bf16.gmra.mrb[52].mxu1 %v6794_v52  ;;  %v13010_v50 = vpop.permute.xlu1 %13009  ;;  %v6624_v22 = vsel %vm6593_vm14, %v6591_v32, %v12996_v49  ;;  %v18557_v32 = vld [vmem:[#allocation47_spill] sm:$0xff] }
 0x49d   : > { %v12982_v48 = vunpack.i.h.bf16 %v12980_v46  ;;  %v12981_v18 = vunpack.i.l.bf16 %v12980_v46  ;;  %v13012_v51 = vunpack.i.h.bf16 %v13010_v50  ;;  %v13011_v54 = vunpack.i.l.bf16 %v13010_v50  ;;  %v18548_v50 = vld [vmem:[#allocation28_spill] sm:$0xff] }
 0x49e   : > { %v6592_v19 = vsel %vm1674_vm3, %v16373_v27, %v12962_v2  ;;  %v18549_v2 = vld [vmem:[#allocation29_spill] sm:$0xff] }
 0x49f   : > { %v6625_v5 = vsel %vm6593_vm14, %v6592_v19, %v12997_v23  ;;  %v6769_v45 = vpack.c.bf16 %v18549_v2, %v18548_v50  ;;  %v18551_v23 = vld [vmem:[#allocation21_spill] sm:$0xff]  ;;  %v18556_v19 = vld [vmem:[#allocation46_spill] sm:$0xff] }
 0x4a0   : > { %v12985_v25 = vpop.permute.xlu0 %12984  ;;  %v6658_v27 = vsel %vm6626_vm15, %v6625_v5, %v13012_v51  ;;  %v18559_v5 = vld [vmem:[#allocation40_spill] sm:$0xff] }
 0x4a1   : > { %v12987_v58 = vunpack.i.h.bf16 %v12985_v25  ;;  %v12986_v36 = vunpack.i.l.bf16 %v12985_v25 }
 0x4a3   : > { %v6719_v53 = vsel %vm6593_vm14, %v6687_v8, %v12986_v36  ;;  %v6720_v24 = vsel %vm6593_vm14, %v6688_v35, %v12987_v58  ;;  %v18539_v58 = vld [vmem:[#allocation10_spill] sm:$0xff]  ;;  %v18540_v36 = vld [vmem:[#allocation9_spill] sm:$0xff] }
 0x4a4   : > { %v12990_v34 = vpop.permute.xlu0 %12989  ;;  %v6751_v6 = vsel %vm6626_vm15, %v6719_v53, %v12981_v18  ;;  %v6752_v55 = vsel %vm6626_vm15, %v6720_v24, %v12982_v48  ;;  %v6757_v35 = vpack.c.bf16 %v18540_v36, %v18539_v58  ;;  %v18541_v53 = vld [vmem:[#allocation20_spill] sm:$0xff]  ;;  %v18542_v24 = vld [vmem:[#allocation19_spill] sm:$0xff] }
 0x4a5   : > { %v6798_v44 = vpack.c.bf16 %v6752_v55, %v6751_v6  ;;  %v12992_v59 = vunpack.i.h.bf16 %v12990_v34  ;;  %v12991_v46 = vunpack.i.l.bf16 %v12990_v34  ;;  %v6763_v28 = vpack.c.bf16 %v18542_v24, %v18541_v53  ;;  %v18544_v34 = vld [vmem:[#allocation15_spill] sm:$0xff]  ;;  %v18546_v55 = vld [vmem:[#allocation24_spill] sm:$0xff] }
 0x4a6   : > { %v18545_v6 = vpack.c.bf16 %v18543_v30, %v18544_v34 }
 0x4a7   : > { %7146 = vmatprep.mubr.bf16.mxu1 %v6798_v44  ;;  %v18547_v44 = vld [vmem:[#allocation25_spill] sm:$0xff] }
 0x4a8   : > { %v13000_v21 = vpop.permute.xlu0 %12999  ;;  %7147 = vmatmul.mubr.bf16.gmra.mrb[56].mxu1 %v6797_v11  ;;  %v6766_v11 = vpack.c.bf16 %v18547_v44, %v18546_v55 }
 0x4a9   : > { %v13002_v1 = vunpack.i.h.bf16 %v13000_v21  ;;  %v13001_v9 = vunpack.i.l.bf16 %v13000_v21  ;;  %v18550_v21 = vld [vmem:[#allocation32_spill] sm:$0xff] }
 0x4aa   : > { %v6772_v49 = vpack.c.bf16 %v18551_v23, %v18550_v21 }
 0x4ab   : > { %v6690_v52 = vsel %vm1674_vm3, %v16419_v42, %v13002_v1  ;;  %v6689_v7 = vsel %vm1674_vm3, %v16417_v17, %v13001_v9  ;;  %v6657_v17 = vsel %vm6626_vm15, %v6624_v22, %v13011_v54  ;;  %v18552_v1 = vld [vmem:[#allocation36_spill] sm:$0xff]  ;;  %v18553_v9 = vld [vmem:[#allocation35_spill] sm:$0xff]  ;;  %v18558_v22 = vld [vmem:[#allocation41_spill] sm:$0xff] }
 0x4ac   : > { %v13005_v63 = vpop.permute.xlu0 %13004  ;;  %v6721_v42 = vsel %vm6593_vm14, %v6689_v7, %v12991_v46  ;;  %v6722_v41 = vsel %vm6593_vm14, %v6690_v52, %v12992_v59  ;;  %v6800_v57 = vpack.c.bf16 %v6658_v27, %v6657_v17  ;;  %v6775_v51 = vpack.c.bf16 %v18553_v9, %v18552_v1  ;;  %v18554_v54 = vld [vmem:[#allocation44_spill] sm:$0xff]  ;;  %v18555_v52 = vld [vmem:[#allocation43_spill] sm:$0xff] }
 0x4ad   : > { %v13007_v12 = vunpack.i.h.bf16 %v13005_v63  ;;  %v13006_v33 = vunpack.i.l.bf16 %v13005_v63  ;;  %v6778_v7 = vpack.c.bf16 %v18555_v52, %v18554_v54  ;;  %v6781_v59 = vpack.c.bf16 %v18557_v32, %v18556_v19 }
 0x4ae   : > { %v6784_v46 = vpack.c.bf16 %v15802_v16, %v15813_v62  ;;  %v6787_v63 = vpack.c.bf16 %v15984_v38, %v15995_v15  ;;  %v18561_v15 = vld [vmem:[#allocation18_spill] sm:$0xff] }
 0x4af   : > { %v6753_v10 = vsel %vm6626_vm15, %v6721_v42, %v13006_v33  ;;  %v6754_v60 = vsel %vm6626_vm15, %v6722_v41, %v13007_v12  ;;  %v6790_v12 = vpack.c.bf16 %v18559_v5, %v18558_v22  ;;  %v18560_v33 = vld [vmem:[#allocation42_spill] sm:$0xff]  ;;  %v5843_v27 = vrot.slane %v18561_v15, 1 }
 0x4b0   : > { %v6801_v14 = vpack.c.bf16 %v6754_v60, %v6753_v10  ;;  %v11842_v25 = vpop.f32.mrb[12].mxu1  ;;  %v6793_v42 = vpack.c.bf16 %v18560_v33, %v16330_v20  ;;  %v5807_v60 = vrot.slane %v16445_v4, 1  ;;  %v18563_v20 = vld [vmem:[#allocation14_spill] sm:$0xff] }
 0x4b1   : > { %v11843_v39 = vpop.f32.mrb[13].mxu1 }
 0x4b2   : > { %7154 = vmatprep.mubr.bf16.mxu1 %v6801_v14  ;;  %v16682_v8 = vadd.f32 %v11843_v39, %v11842_v25  ;;  %v11845_v48 = vpop.f32.mrb[14].mxu1  ;;  %v5825_v14 = vrot.slane %v16447_v43, 1  ;;  %v18562_v25 = vld [vmem:[#allocation17_spill] sm:$0xff] }
 0x4b3   : > { %7155 = vmatmul.mubr.bf16.gmra.mrb[60].mxu1 %v6800_v57  ;;  %v11846_v18 = vpop.f32.mrb[15].mxu1  ;;  %v6796_v57 = vpack.c.bf16 %v18563_v20, %v18562_v25 }
 0x4b4   : > { %12435 = vmatprep.mubr.msk.bf16.mxu1 %vm1674_vm3, %v6757_v35  ;;  %v16685_v3 = vadd.f32 %v11846_v18, %v11845_v48  ;;  %v5862_v39 = vsel %vm5844_vm4, %v5825_v14, %v5843_v27  ;;  %v5880_v58 = vsel %vm5844_vm4, %v5807_v60, %v5825_v14 }
 0x4b5   : > { %v6802_v36 = vpack.c.bf16 %v5862_v39, %v5880_v58 }
 0x4bb   : > { %12436 = vmatmul.mubr.msk.bf16.vlgmr.msra.gmra.mrb[64].mxu1 %vm1674_vm3, %v18545_v6 }
 0x4bc   : > { %12439 = vmatprep.mubr.msk.bf16.mxu1 %vm1674_vm3, %v6763_v28 }
 0x4c3   : > { %12440 = vmatmul.mubr.msk.bf16.gmra.mrb[68].mxu1 %vm1674_vm3, %v6766_v11 }
 0x4c4   : > { %12443 = vmatprep.mubr.msk.bf16.mxu1 %vm1674_vm3, %v6769_v45 }
 0x4cb   : > { %12444 = vmatmul.mubr.msk.bf16.gmra.mrb[72].mxu1 %vm1674_vm3, %v6772_v49 }
 0x4cc   : > { %12447 = vmatprep.mubr.msk.bf16.mxu1 %vm1674_vm3, %v6775_v51 }
 0x4d3   : > { %12448 = vmatmul.mubr.msk.bf16.gmra.mrb[76].mxu1 %vm1674_vm3, %v6778_v7 }
 0x4d4   : > { %12451 = vmatprep.mubr.msk.bf16.mxu1 %vm1674_vm3, %v6781_v59 }
 0x4db   : > { %12452 = vmatmul.mubr.msk.bf16.gmra.mrb[80].mxu1 %vm1674_vm3, %v6784_v46 }
 0x4dc   : > { %12455 = vmatprep.mubr.msk.bf16.mxu1 %vm1674_vm3, %v6787_v63 }
 0x4e3   : > { %12456 = vmatmul.mubr.msk.bf16.gmra.mrb[84].mxu1 %vm1674_vm3, %v6790_v12 }
 0x4e4   : > { %12459 = vmatprep.mubr.msk.bf16.mxu1 %vm1674_vm3, %v6793_v42 }
 0x4e5   : > { %v11848_v41 = vpop.f32.mrb[16].mxu1 }
 0x4e6   : > { %v11849_v17 = vpop.f32.mrb[17].mxu1 }
 0x4e7   : > { %v16724_v16 = vadd.f32 %v11849_v17, %v11848_v41  ;;  %v11851_v62 = vpop.f32.mrb[18].mxu1 }
 0x4e8   : > { %v11852_v38 = vpop.f32.mrb[19].mxu1 }
 0x4e9   : > { %v16727_v10 = vadd.f32 %v11852_v38, %v11851_v62  ;;  %v13107_v62 = vld [vmem:[%s18335_s5 + $0x140] sm:$0xff]  }
 0x4ea   : > { %v13108_v38 = vld [vmem:[%s18335_s5 + $0x100] sm:$0xff]   ;;  %11982 = vmatprep.subr.bf16.mxu0 %v13107_v62 }
 0x4eb   : > { %12460 = vmatmul.mubr.msk.bf16.gmra.mrb[88].mxu1 %vm1674_vm3, %v6796_v57  ;;  %11983 = vmatpush3.bf16.msra.mxu0 %v13108_v38 }
 0x4ec   : > { %12463 = vmatprep.mubr.msk.bf16.mxu1 %vm1674_vm3, %v6799_v0 }
 0x4ef   : > { %v11854_v4 = vpop.f32.mrb[20].mxu1 }
 0x4f0   : > { %v11855_v35 = vpop.f32.mrb[21].mxu1 }
 0x4f1   : > { %v16742_v43 = vadd.f32 %v11855_v35, %v11854_v4  ;;  %v11857_v48 = vpop.f32.mrb[22].mxu1 }
 0x4f2   : > { %v11858_v18 = vpop.f32.mrb[23].mxu1 }
 0x4f3   : > { %12464 = vmatmul.mubr.msk.bf16.gmra.mrb[92].mxu1 %vm1674_vm3, %v6802_v36  ;;  %v16745_v53 = vadd.f32 %v11858_v18, %v11857_v48 }
 0x4fa   : > { %v11860_v47 = vpop.f32.mrb[24].mxu1 }
 0x4fb   : > { %v11861_v31 = vpop.f32.mrb[25].mxu1 }
 0x4fc   : > { %v16747_v0 = vadd.f32 %v11861_v31, %v11860_v47  ;;  %v11863_v24 = vpop.f32.mrb[26].mxu1 }
 0x4fd   : > { %v11864_v28 = vpop.f32.mrb[27].mxu1 }
 0x4fe   : > { %v16749_v30 = vadd.f32 %v11864_v28, %v11863_v24 }
 0x504   : > { %v11866_v61 = vpop.f32.mrb[28].mxu1 }
 0x505   : > { %v11867_v34 = vpop.f32.mrb[29].mxu1 }
 0x506   : > { %v16751_v6 = vadd.f32 %v11867_v34, %v11866_v61  ;;  %v11869_v55 = vpop.f32.mrb[30].mxu1 }
 0x507   : > { %v11870_v44 = vpop.f32.mrb[31].mxu1 }
 0x508   : > { %v16753_v11 = vadd.f32 %v11870_v44, %v11869_v55 }
 0x50c   : > { %v11872_v50 = vpop.f32.mrb[32].mxu1 }
 0x50d   : > { %v11873_v2 = vpop.f32.mrb[33].mxu1 }
 0x50e   : > { %v16755_v45 = vadd.f32 %v11873_v2, %v11872_v50  ;;  %v11875_v21 = vpop.f32.mrb[34].mxu1 }
 0x50f   : > { %v11876_v23 = vpop.f32.mrb[35].mxu1 }
 0x510   : > { %v16757_v49 = vadd.f32 %v11876_v23, %v11875_v21  ;;  %v16796_v21 = vld [vmem:[%s18334_s4] ss:$0 sm:$0xff] }
 0x511   : > { %v7045_v23 = vadd.f32 %v16590_v26, %v16796_v21 }
 0x514   : > { %v11878_v1 = vpop.f32.mrb[36].mxu1 }
 0x515   : > { %v11879_v9 = vpop.f32.mrb[37].mxu1 }
 0x516   : > { %v16759_v51 = vadd.f32 %v11879_v9, %v11878_v1  ;;  %v11881_v54 = vpop.f32.mrb[38].mxu1  ;;  %v7037_v9 = vadd.f32 %v16582_v56, %v16796_v21  ;;  %v16812_v56 = vadd.f32 %v16685_v3, %v16796_v21 }
 0x517   : > { %v11882_v52 = vpop.f32.mrb[39].mxu1 }
 0x518   : > { %v16761_v7 = vadd.f32 %v11882_v52, %v11881_v54  ;;  %v7040_v54 = vadd.f32 %v16586_v37, %v16796_v21  ;;  %v16816_v37 = vadd.f32 %v16612_v13, %v16796_v21  ;;  %v16832_v13 = vadd.f32 %v16727_v10, %v16796_v21 }
 0x519   : > { %v16850_v10 = vadd.f32 %v16749_v30, %v16796_v21 }
 0x51a   : > { %v16869_v30 = vadd.f32 %v16761_v7, %v16796_v21 }
 0x51c   : > { %v11884_v19 = vpop.f32.mrb[40].mxu1 }
 0x51d   : > { %v11885_v32 = vpop.f32.mrb[41].mxu1 }
 0x51e   : > { %v16763_v59 = vadd.f32 %v11885_v32, %v11884_v19  ;;  %v11887_v46 = vpop.f32.mrb[42].mxu1  ;;  %v7048_v32 = vadd.f32 %v16592_v40, %v16796_v21 }
 0x51f   : > { %v11888_v63 = vpop.f32.mrb[43].mxu1 }
 0x520   : > { %v16765_v22 = vadd.f32 %v11888_v63, %v11887_v46  ;;  %v7061_v46 = vadd.f32 %v16682_v8, %v16796_v21  ;;  %v7053_v63 = vadd.f32 %v16610_v29, %v16796_v21  ;;  %v16824_v29 = vadd.f32 %v16724_v16, %v16796_v21 }
 0x521   : > { %v16841_v16 = vadd.f32 %v16747_v0, %v16796_v21  ;;  %v13109_v0 = vld [vmem:[%s18335_s5 + $0x148] sm:$0xff]  }
 0x522   : > { %11984 = vmatprep.subr.bf16.mxu0 %v13109_v0 }
 0x52f   : > { %v11890_v5 = vpop.f32.mrb[44].mxu1 }
 0x530   : > { %v11891_v12 = vpop.f32.mrb[45].mxu1 }
 0x531   : > { %v16767_v33 = vadd.f32 %v11891_v12, %v11890_v5  ;;  %v11893_v42 = vpop.f32.mrb[46].mxu1  ;;  %v16820_v12 = vadd.f32 %v16742_v43, %v16796_v21  ;;  %v16836_v43 = vadd.f32 %v16751_v6, %v16796_v21  ;;  %v16854_v6 = vadd.f32 %v16759_v51, %v16796_v21 }
 0x532   : > { %v11894_v41 = vpop.f32.mrb[47].mxu1 }
 0x533   : > { %v16769_v17 = vadd.f32 %v11894_v41, %v11893_v42  ;;  %v16828_v41 = vadd.f32 %v16745_v53, %v16796_v21  ;;  %v16845_v53 = vadd.f32 %v16753_v11, %v16796_v21  ;;  %v13110_v11 = vld [vmem:[%s18335_s5 + $0x108] sm:$0xff]  }
 0x534   : > { %11985 = vmatpush3.bf16.msra.mxu0 %v13110_v11 }
 0x563   : > { %v11896_v15 = vpop.f32.mrb[48].mxu1 }
 0x564   : > { %v11897_v27 = vpop.f32.mrb[49].mxu1 }
 0x565   : > { %v16777_v60 = vadd.f32 %v11897_v27, %v11896_v15  ;;  %v11899_v14 = vpop.f32.mrb[50].mxu1 }
 0x566   : > { %v11900_v25 = vpop.f32.mrb[51].mxu1 }
 0x567   : > { %v16779_v20 = vadd.f32 %v11900_v25, %v11899_v14 }
 0x56f   : > { %v11902_v57 = vpop.f32.mrb[52].mxu1 }
 0x570   : > { %v11903_v39 = vpop.f32.mrb[53].mxu1 }
 0x571   : > { %v16781_v58 = vadd.f32 %v11903_v39, %v11902_v57  ;;  %v11905_v36 = vpop.f32.mrb[54].mxu1  ;;  %v16865_v39 = vadd.f32 %v16755_v45, %v16796_v21 }
 0x572   : > { %v11906_v4 = vpop.f32.mrb[55].mxu1 }
 0x573   : > { %v16783_v35 = vadd.f32 %v11906_v4, %v11905_v36  ;;  %v16874_v4 = vadd.f32 %v16757_v49, %v16796_v21 }
 0x57b   : > { %v11908_v48 = vpop.f32.mrb[56].mxu1 }
 0x57c   : > { %v11909_v18 = vpop.f32.mrb[57].mxu1 }
 0x57d   : > { %v16785_v47 = vadd.f32 %v11909_v18, %v11908_v48  ;;  %v11911_v31 = vpop.f32.mrb[58].mxu1  ;;  %v16878_v48 = vadd.f32 %v16767_v33, %v16796_v21  ;;  %v16882_v18 = vadd.f32 %v16763_v59, %v16796_v21  ;;  %v16893_v33 = vadd.f32 %v16769_v17, %v16796_v21 }
 0x57e   : > { %v11912_v24 = vpop.f32.mrb[59].mxu1  ;;  %v16897_v59 = vadd.f32 %v16765_v22, %v16796_v21  ;;  %v16911_v22 = vadd.f32 %v16777_v60, %v16796_v21 }
 0x57f   : > { %18564 = vst [vmem:[#allocation22_spill] sm:$0xff] %v16785_v47  ;;  %v16787_v28 = vadd.f32 %v11912_v24, %v11911_v31  ;;  %v18567_v31 = vld [vmem:[#allocation6_spill] sm:$0xff] }
 0x581   : > { %18565 = vst [vmem:[#allocation48_spill] sm:$0xff] %v16787_v28 }
 0x586   : > { %v11914_v61 = vpop.f32.mrb[60].mxu1 }
 0x587   : > { %v11915_v34 = vpop.f32.mrb[61].mxu1 }
 0x588   : > { %v16789_v55 = vadd.f32 %v11915_v34, %v11914_v61  ;;  %v11917_v44 = vpop.f32.mrb[62].mxu1 }
 0x589   : > { %v11918_v50 = vpop.f32.mrb[63].mxu1 }
 0x58a   : > { %v16791_v2 = vadd.f32 %v11918_v50, %v11917_v44  ;;  %v16901_v50 = vadd.f32 %v16781_v58, %v16796_v21 }
 0x58c   : > { %18566 = vst [vmem:[#allocation38_spill] sm:$0xff] %v16791_v2 }
 0x58e   : > { %v12437_v1 = vpop.f32.mrb[64].mxu1 }
 0x58f   : > { %v7206_v52 = vadd.f32 %v12437_v1, %v7045_v23  ;;  %v7197_v19 = vpop.f32.mrb[65].mxu1 }
 0x590   : > { %v7198_v26 = vadd.f32 %v7197_v19, %v7037_v9  ;;  %v12438_v5 = vpop.f32.mrb[66].mxu1 }
 0x591   : > { %v7326_v40 = vmax.f32 %v7206_v52, 0.0  ;;  %v7209_v42 = vadd.f32 %v12438_v5, %v7048_v32  ;;  %v7200_v8 = vpop.f32.mrb[67].mxu1 }
 0x592   : > { %v7324_v3 = vmax.f32 %v7198_v26, 0.0  ;;  %v7201_v62 = vadd.f32 %v7200_v8, %v7040_v54 }
 0x593   : > { %v7357_v38 = vsel %vm6593_vm14, %v7326_v40, -inf  ;;  %v7327_v15 = vmax.f32 %v7209_v42, 0.0 }
 0x594   : > { %v7356_v27 = vsel %vm6593_vm14, %v7324_v3, -inf  ;;  %v7325_v14 = vmax.f32 %v7201_v62, 0.0 }
 0x595   : > { %v7358_v25 = vmax.f32 %v7356_v27, %v7357_v38  ;;  %v7360_v57 = vsel %vm6593_vm14, %v7327_v15, -inf }
 0x596   : > { %v7359_v51 = vsel %vm6593_vm14, %v7325_v14, -inf  ;;  %v12441_v36 = vpop.f32.mrb[68].mxu1 }
 0x597   : > { %v7420_v45 = vcombine.high %v7358_v25, %v7358_v25  ;;  %v7427_v7 = vrot.slane %v7358_v25, %v18567_v31  ;;  %v7361_v24 = vmax.f32 %v7359_v51, %v7360_v57  ;;  %v16885_v61 = vadd.f32 %v12441_v36, %v7061_v46  ;;  %v7213_v34 = vpop.f32.mrb[69].mxu1 }
 0x598   : > { %v16887_v44 = vadd.f32 %v7213_v34, %v7053_v63  ;;  %v16889_v49 = vpop.f32.mrb[70].mxu1 }
 0x599   : > { %v7434_v23 = vrot.slane %v7420_v45, %v18567_v31  ;;  %v7435_v1 = vcombine.high %v7427_v7, %v7427_v7  ;;  %v7757_v9 = vsel %vm7756_vm0, %v7427_v7, -inf  ;;  %v7437_v54 = vcombine.high %v7361_v24, %v7361_v24  ;;  %v16905_v52 = vpop.f32.mrb[71].mxu1 }
 0x59a   : > { %v7758_v19 = vrot.slane %v7757_v9, 4  ;;  %v7444_v17 = vrot.slane %v7361_v24, %v18567_v31  ;;  %v7330_v32 = vmax.f32 %v16885_v61, 0.0 }
 0x59b   : > { %v7436_v46 = vcombine.high %v7434_v23, %v7434_v23  ;;  %v7764_v58 = vsel %vm7756_vm0, %v7435_v1, -inf  ;;  %v7771_v63 = vsel %vm7756_vm0, %v7434_v23, -inf  ;;  %v7451_v26 = vrot.slane %v7437_v54, %v18567_v31 }
 0x59c   : > { %v7759_v5 = vmax.f32 %v7757_v9, %v7758_v19  ;;  %v7765_v40 = vrot.slane %v7764_v58, 4  ;;  %v7772_v42 = vrot.slane %v7771_v63, 4  ;;  %v7452_v8 = vcombine.high %v7444_v17, %v7444_v17 }
 0x59d   : > { %v7778_v3 = vsel %vm7756_vm0, %v7436_v46, -inf  ;;  %v7453_v62 = vcombine.high %v7451_v26, %v7451_v26  ;;  %v7785_v38 = vsel %vm7756_vm0, %v7444_v17, -inf  ;;  %v7799_v15 = vsel %vm7756_vm0, %v7451_v26, -inf }
 0x59e   : > { %v7760_v60 = vrot.slane %v7759_v5, 2  ;;  %v7766_v21 = vmax.f32 %v7764_v58, %v7765_v40  ;;  %v7773_v27 = vmax.f32 %v7771_v63, %v7772_v42  ;;  %v7779_v14 = vrot.slane %v7778_v3, 4  ;;  %v12445_v0 = vpop.f32.mrb[72].mxu1 }
 0x59f   : > { %v7786_v11 = vrot.slane %v7785_v38, 4  ;;  %v7792_v25 = vsel %vm7756_vm0, %v7452_v8, -inf  ;;  %v7800_v57 = vrot.slane %v7799_v15, 4  ;;  %v7806_v51 = vsel %vm7756_vm0, %v7453_v62, -inf  ;;  %v7229_v36 = vpop.f32.mrb[73].mxu1 }
 0x5a0   : > { %v7761_v45 = vmax.f32 %v7759_v5, %v7760_v60  ;;  %v7767_v7 = vrot.slane %v7766_v21, 2  ;;  %v7774_v24 = vrot.slane %v7773_v27, 2  ;;  %v7780_v61 = vmax.f32 %v7778_v3, %v7779_v14  ;;  %v12446_v34 = vpop.f32.mrb[74].mxu1 }
 0x5a1   : > { %v7787_v23 = vmax.f32 %v7785_v38, %v7786_v11  ;;  %v7793_v1 = vrot.slane %v7792_v25, 4  ;;  %v7801_v9 = vmax.f32 %v7799_v15, %v7800_v57  ;;  %v7807_v54 = vrot.slane %v7806_v51, 4  ;;  %v7232_v19 = vpop.f32.mrb[75].mxu1 }
 0x5a2   : > { %v7762_v17 = vrot.slane %v7761_v45, 1  ;;  %v7768_v46 = vmax.f32 %v7766_v21, %v7767_v7  ;;  %v7775_v58 = vmax.f32 %v7773_v27, %v7774_v24  ;;  %v7781_v63 = vrot.slane %v7780_v61, 2 }
 0x5a3   : > { %v7788_v26 = vrot.slane %v7787_v23, 2  ;;  %v7794_v40 = vmax.f32 %v7792_v25, %v7793_v1  ;;  %v7802_v42 = vrot.slane %v7801_v9, 2  ;;  %v7808_v8 = vmax.f32 %v7806_v51, %v7807_v54 }
 0x5a4   : > { %v7769_v62 = vrot.slane %v7768_v46, 1  ;;  %v7776_v28 = vrot.slane %v7775_v58, 1  ;;  %v7782_v5 = vmax.f32 %v7780_v61, %v7781_v63  ;;  %v7328_v60 = vmax.f32 %v16887_v44, 0.0 }
 0x5a5   : > { %v7789_v3 = vmax.f32 %v7787_v23, %v7788_v26  ;;  %v7795_v14 = vrot.slane %v7794_v40, 2  ;;  %v7803_v38 = vmax.f32 %v7801_v9, %v7802_v42  ;;  %v7809_v11 = vrot.slane %v7808_v8, 2 }
 0x5a6   : > { %v16922_v15 = vmax.f32 %v7761_v45, %v7762_v17  ;;  %v16924_v57 = vmax.f32 %v7768_v46, %v7769_v62  ;;  %v7783_v21 = vrot.slane %v7782_v5, 1  ;;  %v7363_v27 = vsel %vm6593_vm14, %v7330_v32, -inf  ;;  %v16927_v7 = vpop.f32.mrb[76].mxu1 }
 0x5a7   : > { %v7790_v25 = vrot.slane %v7789_v3, 1  ;;  %v7796_v51 = vmax.f32 %v7794_v40, %v7795_v14  ;;  %v7804_v24 = vrot.slane %v7803_v38, 1  ;;  %v7810_v1 = vmax.f32 %v7808_v8, %v7809_v11  ;;  %v16929_v61 = vpop.f32.mrb[77].mxu1 }
 0x5a8   : > { %18568 = vst [vmem:[#allocation13_spill] sm:$0xff] %v16924_v57  ;;  %v16931_v44 = vmax.f32 %v7775_v58, %v7776_v28  ;;  %v7362_v23 = vsel %vm6593_vm14, %v7328_v60, -inf  ;;  %v7225_v45 = vadd.f32 %v16889_v49, %v16812_v56  ;;  %v7217_v9 = vadd.f32 %v16905_v52, %v16816_v37  ;;  %v16938_v54 = vpop.f32.mrb[78].mxu1 }
 0x5a9   : > { %v16940_v32 = vmax.f32 %v7782_v5, %v7783_v21  ;;  %v16942_v17 = vmax.f32 %v7789_v3, %v7790_v25  ;;  %v7797_v46 = vrot.slane %v7796_v51, 1  ;;  %v7811_v63 = vrot.slane %v7810_v1, 1  ;;  %v16944_v26 = vpop.f32.mrb[79].mxu1 }
 0x5aa   : > { %v7364_v28 = vmax.f32 %v7362_v23, %v7363_v27  ;;  %v7331_v58 = vmax.f32 %v7225_v45, 0.0  ;;  %v7329_v40 = vmax.f32 %v7217_v9, 0.0  ;;  %v7238_v42 = vadd.f32 %v12445_v0, %v16820_v12 }
 0x5ab   : > { %18569 = vst [vmem:[#allocation39_spill] sm:$0xff] %v16940_v32  ;;  %v16947_v8 = vmax.f32 %v7796_v51, %v7797_v46  ;;  %v16949_v56 = vmax.f32 %v7803_v38, %v7804_v24  ;;  %v7230_v37 = vadd.f32 %v7229_v36, %v16824_v29  ;;  %v16953_v49 = vadd.f32 %v12446_v34, %v16828_v41 }
 0x5ac   : > { %v7454_v52 = vcombine.high %v7364_v28, %v7364_v28  ;;  %v7461_v62 = vrot.slane %v7364_v28, %v18567_v31  ;;  %v7366_v5 = vsel %vm6593_vm14, %v7331_v58, -inf  ;;  %v7365_v60 = vsel %vm6593_vm14, %v7329_v40, -inf }
 0x5ad   : > { %18570 = vst [vmem:[#allocation23_spill] sm:$0xff] %v16947_v8  ;;  %v16958_v3 = vmax.f32 %v7810_v1, %v7811_v63  ;;  %v7367_v14 = vmax.f32 %v7365_v60, %v7366_v5  ;;  %v7334_v12 = vmax.f32 %v7238_v42, 0.0  ;;  %v7332_v0 = vmax.f32 %v7230_v37, 0.0 }
 0x5ae   : > { %v7468_v38 = vrot.slane %v7454_v52, %v18567_v31  ;;  %v7469_v11 = vcombine.high %v7461_v62, %v7461_v62  ;;  %v7813_v29 = vsel %vm7756_vm0, %v7461_v62, -inf  ;;  %v16963_v41 = vadd.f32 %v7232_v19, %v16832_v13  ;;  %v16965_v36 = vpop.f32.mrb[80].mxu1 }
 0x5af   : > { %18571 = vst [vmem:[#allocation26_spill] sm:$0xff] %v16958_v3  ;;  %v7814_v34 = vrot.slane %v7813_v29, 4  ;;  %v7471_v21 = vcombine.high %v7367_v14, %v7367_v14  ;;  %v7478_v27 = vrot.slane %v7367_v14, %v18567_v31  ;;  %v7369_v25 = vsel %vm6593_vm14, %v7334_v12, -inf  ;;  %v16969_v51 = vpop.f32.mrb[81].mxu1 }
 0x5b0   : > { %v7470_v24 = vcombine.high %v7468_v38, %v7468_v38  ;;  %v7820_v1 = vsel %vm7756_vm0, %v7469_v11, -inf  ;;  %v7827_v23 = vsel %vm7756_vm0, %v7468_v38, -inf  ;;  %v7368_v45 = vsel %vm6593_vm14, %v7332_v0, -inf  ;;  %v16974_v9 = vpop.f32.mrb[82].mxu1  ;;  %v13111_v11 = vld [vmem:[%s18335_s5 + $0x150] sm:$0xff]  }
 0x5b1   : > { %v7815_v13 = vmax.f32 %v7813_v29, %v7814_v34  ;;  %v7821_v19 = vrot.slane %v7820_v1, 4  ;;  %v7828_v46 = vrot.slane %v7827_v23, 4  ;;  %v7485_v63 = vrot.slane %v7471_v21, %v18567_v31  ;;  %v16977_v28 = vpop.f32.mrb[83].mxu1  ;;  %v13112_v29 = vld [vmem:[%s18335_s5 + $0x110] sm:$0xff]   ;;  %11986 = vmatprep.subr.bf16.mxu0 %v13111_v11 }
 0x5b2   : > { %v7834_v58 = vsel %vm7756_vm0, %v7470_v24, -inf  ;;  %v7486_v40 = vcombine.high %v7478_v27, %v7478_v27  ;;  %v7841_v42 = vsel %vm7756_vm0, %v7478_v27, -inf  ;;  %v7370_v37 = vmax.f32 %v7368_v45, %v7369_v25  ;;  %11987 = vmatpush3.bf16.msra.mxu0 %v13112_v29 }
 0x5b3   : > { %v7816_v52 = vrot.slane %v7815_v13, 2  ;;  %v7822_v62 = vmax.f32 %v7820_v1, %v7821_v19  ;;  %v7829_v5 = vmax.f32 %v7827_v23, %v7828_v46  ;;  %v7835_v60 = vrot.slane %v7834_v58, 4 }
 0x5b4   : > { %v7487_v14 = vcombine.high %v7485_v63, %v7485_v63  ;;  %v7842_v12 = vrot.slane %v7841_v42, 4  ;;  %v7848_v0 = vsel %vm7756_vm0, %v7486_v40, -inf  ;;  %v7855_v38 = vsel %vm7756_vm0, %v7485_v63, -inf }
 0x5b5   : > { %v7817_v34 = vmax.f32 %v7815_v13, %v7816_v52  ;;  %v7823_v21 = vrot.slane %v7822_v62, 2  ;;  %v7830_v27 = vrot.slane %v7829_v5, 2  ;;  %v7836_v25 = vmax.f32 %v7834_v58, %v7835_v60 }
 0x5b6   : > { %v7843_v24 = vmax.f32 %v7841_v42, %v7842_v12  ;;  %v7849_v1 = vrot.slane %v7848_v0, 4  ;;  %v7856_v23 = vrot.slane %v7855_v38, 4  ;;  %v7862_v45 = vsel %vm7756_vm0, %v7487_v14, -inf  ;;  %v16990_v19 = vpop.f32.mrb[84].mxu1 }
 0x5b7   : > { %v7818_v46 = vrot.slane %v7817_v34, 1  ;;  %v7824_v63 = vmax.f32 %v7822_v62, %v7823_v21  ;;  %v7831_v40 = vmax.f32 %v7829_v5, %v7830_v27  ;;  %v7837_v3 = vrot.slane %v7836_v25, 2  ;;  %v16992_v8 = vpop.f32.mrb[85].mxu1 }
 0x5b8   : > { %v7844_v32 = vrot.slane %v7843_v24, 2  ;;  %v7850_v13 = vmax.f32 %v7848_v0, %v7849_v1  ;;  %v7857_v52 = vmax.f32 %v7855_v38, %v7856_v23  ;;  %v7863_v57 = vrot.slane %v7862_v45, 4  ;;  %v16994_v58 = vpop.f32.mrb[86].mxu1 }
 0x5b9   : > { %v7819_v42 = vmax.f32 %v7817_v34, %v7818_v46  ;;  %v7825_v60 = vrot.slane %v7824_v63, 1  ;;  %v7832_v12 = vrot.slane %v7831_v40, 1  ;;  %v7838_v14 = vmax.f32 %v7836_v25, %v7837_v3  ;;  %v16996_v2 = vpop.f32.mrb[87].mxu1 }
 0x5ba   : > { %v7845_v11 = vmax.f32 %v7843_v24, %v7844_v32  ;;  %v7851_v47 = vrot.slane %v7850_v13, 2  ;;  %v7858_v62 = vrot.slane %v7857_v52, 2  ;;  %v7864_v5 = vmax.f32 %v7862_v45, %v7863_v57 }
 0x5bb   : > { %v7833_v21 = vmax.f32 %v7831_v40, %v7832_v12  ;;  %v7839_v27 = vrot.slane %v7838_v14, 1  ;;  %v17000_v29 = vsel %vm5348_vm6, %v7819_v42, %v16922_v15  ;;  %v7335_v0 = vmax.f32 %v16953_v49, 0.0 }
 0x5bc   : > { %v7846_v38 = vrot.slane %v7845_v11, 1  ;;  %v7852_v1 = vmax.f32 %v7850_v13, %v7851_v47  ;;  %v7859_v34 = vmax.f32 %v7857_v52, %v7858_v62  ;;  %v7865_v23 = vrot.slane %v7864_v5, 2 }
 0x5bd   : > { %v17003_v46 = vmax.f32 %v7824_v63, %v7825_v60  ;;  %v17007_v32 = vsel %vm5348_vm6, %v7833_v21, %v16931_v44  ;;  %v7488_v3 = vcombine.high %v7370_v37, %v7370_v37  ;;  %v7495_v57 = vrot.slane %v7370_v37, %v18567_v31 }
 0x5be   : > { %18572 = vst [vmem:[#allocation27_spill] sm:$0xff] %v17007_v32  ;;  %v7847_v25 = vmax.f32 %v7845_v11, %v7846_v38  ;;  %v7853_v24 = vrot.slane %v7852_v1, 1  ;;  %v7860_v45 = vrot.slane %v7859_v34, 1  ;;  %v17010_v15 = vmax.f32 %v7864_v5, %v7865_v23  ;;  %v17012_v40 = vpop.f32.mrb[88].mxu1  ;;  %v13115_v23 = vld [vmem:[%s18335_s5 + $0x160] sm:$0xff]  }
 0x5bf   : > { %v17014_v49 = vmax.f32 %v7838_v14, %v7839_v27  ;;  %v7502_v47 = vrot.slane %v7488_v3, %v18567_v31  ;;  %v7503_v63 = vcombine.high %v7495_v57, %v7495_v57  ;;  %v7869_v13 = vsel %vm7756_vm0, %v7495_v57, -inf  ;;  %v17018_v52 = vpop.f32.mrb[89].mxu1 }
 0x5c0   : > { %v17020_v44 = vmax.f32 %v7852_v1, %v7853_v24  ;;  %v7861_v42 = vmax.f32 %v7859_v34, %v7860_v45  ;;  %v17024_v37 = vsel %vm5348_vm6, %v7847_v25, %v16942_v17  ;;  %v7372_v60 = vsel %vm6593_vm14, %v7335_v0, -inf  ;;  %v17027_v12 = vpop.f32.mrb[90].mxu1  ;;  %v13113_v0 = vld [vmem:[%s18335_s5 + $0x158] sm:$0xff]   ;;  %v13117_v24 = vld [vmem:[%s18335_s5 + $0x40] sm:$0xff]  }
 0x5c1   : > { %v7504_v14 = vcombine.high %v7502_v47, %v7502_v47  ;;  %v7870_v11 = vrot.slane %v7869_v13, 4  ;;  %v7876_v62 = vsel %vm7756_vm0, %v7503_v63, -inf  ;;  %v7883_v5 = vsel %vm7756_vm0, %v7502_v47, -inf  ;;  %v17031_v21 = vpop.f32.mrb[91].mxu1  ;;  %v13114_v34 = vld [vmem:[%s18335_s5 + $0x118] sm:$0xff]   ;;  %v13118_v45 = vld [vmem:[%s18335_s5] sm:$0xff]   ;;  %11988 = vmatprep.subr.bf16.mxu0 %v13113_v0  ;;  %11938 = vmatprep.subr.bf16.mxu1 %v13117_v24 }
 0x5c2   : > { %18573 = vst [vmem:[#allocation31_spill] sm:$0xff] %v17020_v44  ;;  %v7867_v27 = vrot.slane %v17010_v15, 1  ;;  %v17036_v38 = vsel %vm5348_vm6, %v7861_v42, %v16949_v56  ;;  %v7877_v17 = vrot.slane %v7876_v62, 4  ;;  %v7884_v1 = vrot.slane %v7883_v5, 4  ;;  %11989 = vmatpush3.bf16.msra.mxu0 %v13114_v34  ;;  %11939 = vmatpush3.bf16.msra.mxu1 %v13118_v45  ;;  %v13120_v0 = vld [vmem:[%s18335_s5 + $0x8] sm:$0xff]  }
 0x5c3   : > { %18574 = vst [vmem:[#allocation30_spill] sm:$0xff] %v17036_v38  ;;  %v7871_v3 = vmax.f32 %v7869_v13, %v7870_v11  ;;  %v7890_v57 = vsel %vm7756_vm0, %v7504_v14, -inf  ;;  %v7333_v56 = vmax.f32 %v16963_v41, 0.0  ;;  %v7254_v25 = vadd.f32 %v16927_v7, %v16836_v43  ;;  %v13119_v41 = vld [vmem:[%s18335_s5 + $0x48] sm:$0xff]   ;;  %11990 = vmatprep.subr.bf16.mxu0 %v13115_v23 }
 0x5c4   : > { %v7878_v47 = vmax.f32 %v7876_v62, %v7877_v17  ;;  %v7885_v63 = vmax.f32 %v7883_v5, %v7884_v1  ;;  %v7891_v42 = vrot.slane %v7890_v57, 4  ;;  %v7246_v13 = vadd.f32 %v16929_v61, %v16841_v16  ;;  %v13116_v62 = vld [vmem:[%s18335_s5 + $0x120] sm:$0xff]   ;;  %11940 = vmatprep.subr.bf16.mxu1 %v13119_v41 }
 0x5c5   : > { %v7872_v43 = vrot.slane %v7871_v3, 2  ;;  %v7371_v7 = vsel %vm6593_vm14, %v7333_v56, -inf  ;;  %v7338_v14 = vmax.f32 %v7254_v25, 0.0  ;;  %v7257_v11 = vadd.f32 %v16938_v54, %v16845_v53  ;;  %v13125_v53 = vld [vmem:[%s18335_s5 + $0x168] sm:$0xff]  }
 0x5c6   : > { %v7879_v5 = vrot.slane %v7878_v47, 2  ;;  %v7886_v16 = vrot.slane %v7885_v63, 2  ;;  %v7892_v61 = vmax.f32 %v7890_v57, %v7891_v42  ;;  %v7373_v17 = vmax.f32 %v7371_v7, %v7372_v60  ;;  %v17068_v1 = vpop.f32.mrb[92].mxu1  ;;  %v13121_v60 = vld [vmem:[%s18335_s5 + $0x50] sm:$0xff]   ;;  %11991 = vmatpush3.bf16.msra.mxu0 %v13116_v62  ;;  %11941 = vmatpush3.bf16.msra.mxu1 %v13120_v0 }
 0x5c7   : > { %v7873_v54 = vmax.f32 %v7871_v3, %v7872_v43  ;;  %v7375_v34 = vsel %vm6593_vm14, %v7338_v14, -inf  ;;  %v7336_v56 = vmax.f32 %v7246_v13, 0.0  ;;  %v7339_v25 = vmax.f32 %v7257_v11, 0.0  ;;  %v17077_v24 = vpop.f32.mrb[93].mxu1  ;;  %11992 = vmatprep.subr.bf16.mxu0 %v13125_v53  ;;  %11942 = vmatprep.subr.bf16.mxu1 %v13121_v60 }
 0x5c8   : > { %v7880_v23 = vmax.f32 %v7878_v47, %v7879_v5  ;;  %v7887_v57 = vmax.f32 %v7885_v63, %v7886_v16  ;;  %v7893_v45 = vrot.slane %v7892_v61, 2  ;;  %v7505_v42 = vcombine.high %v7373_v17, %v7373_v17  ;;  %v17082_v7 = vpop.f32.mrb[94].mxu1  ;;  %v13126_v47 = vld [vmem:[%s18335_s5 + $0x128] sm:$0xff]  }
 0x5c9   : > { %v17085_v38 = vmax.f32 %v17010_v15, %v7867_v27  ;;  %v7874_v3 = vrot.slane %v7873_v54, 1  ;;  %v7512_v13 = vrot.slane %v7373_v17, %v18567_v31  ;;  %v7374_v43 = vsel %vm6593_vm14, %v7336_v56, -inf  ;;  %v17089_v14 = vpop.f32.mrb[95].mxu1  ;;  %v13122_v15 = vld [vmem:[%s18335_s5 + $0x10] sm:$0xff]  }
 0x5ca   : > { %v7881_v63 = vrot.slane %v7880_v23, 1  ;;  %v7888_v41 = vrot.slane %v7887_v57, 1  ;;  %v17094_v11 = vmax.f32 %v7892_v61, %v7893_v45  ;;  %v7519_v5 = vrot.slane %v7505_v42, %v18567_v31  ;;  %v13135_v27 = vld [vmem:[%s18335_s5 + $0x170] sm:$0xff]   ;;  %v13123_v61 = vld [vmem:[%s18335_s5 + $0x58] sm:$0xff]   ;;  %11993 = vmatpush3.bf16.msra.mxu0 %v13126_v47  ;;  %11943 = vmatpush3.bf16.msra.mxu1 %v13122_v15  ;;  %v13127_v47 = vld [vmem:[%s18335_s5 + $0x60] sm:$0xff]  }
 0x5cb   : > { %18575 = vst [vmem:[#allocation33_spill] sm:$0xff] %v17085_v38  ;;  %v7875_v62 = vmax.f32 %v7873_v54, %v7874_v3  ;;  %v7520_v16 = vcombine.high %v7512_v13, %v7512_v13  ;;  %v7897_v17 = vsel %vm7756_vm0, %v7512_v13, -inf  ;;  %v7376_v56 = vmax.f32 %v7374_v43, %v7375_v34  ;;  %11994 = vmatprep.subr.bf16.mxu0 %v13135_v27 }
 0x5cc   : > { %v17107_v0 = vmax.f32 %v7880_v23, %v7881_v63  ;;  %v17109_v45 = vmax.f32 %v7887_v57, %v7888_v41  ;;  %v7521_v42 = vcombine.high %v7519_v5, %v7519_v5  ;;  %v17112_v53 = vsel %vm6593_vm14, %v7339_v25, -inf  ;;  %v13124_v25 = vld [vmem:[%s18335_s5 + $0x18] sm:$0xff]   ;;  %11944 = vmatprep.subr.bf16.mxu1 %v13123_v61 }
 0x5cd   : > { %v17116_v54 = vsel %vm5350_vm7, %v7875_v62, %v17000_v29  ;;  %v7898_v3 = vrot.slane %v7897_v17, 4  ;;  %v7904_v34 = vsel %vm7756_vm0, %v7520_v16, -inf  ;;  %v7911_v60 = vsel %vm7756_vm0, %v7519_v5, -inf }
 0x5ce   : > { %18576 = vst [vmem:[#allocation34_spill] sm:$0xff] %v17109_v45  ;;  %18577 = vst [vmem:[#allocation8_spill] sm:$0xff] %v17116_v54  ;;  %v7895_v13 = vrot.slane %v17094_v11, 1  ;;  %v7905_v23 = vrot.slane %v7904_v34, 4  ;;  %v7912_v43 = vrot.slane %v7911_v60, 4  ;;  %v7918_v57 = vsel %vm7756_vm0, %v7521_v42, -inf  ;;  %11945 = vmatpush3.bf16.msra.mxu1 %v13124_v25 }
 0x5cf   : > { %v7899_v29 = vmax.f32 %v7897_v17, %v7898_v3  ;;  %v7919_v63 = vrot.slane %v7918_v57, 4  ;;  %v7522_v41 = vcombine.high %v7376_v56, %v7376_v56  ;;  %v7529_v62 = vrot.slane %v7376_v56, %v18567_v31  ;;  %11946 = vmatprep.subr.bf16.mxu1 %v13127_v47  ;;  %v13130_v47 = vld [vmem:[%s18335_s5 + $0x28] sm:$0xff]  }
 0x5d0   : > { %v7906_v5 = vmax.f32 %v7904_v34, %v7905_v23  ;;  %v7913_v16 = vmax.f32 %v7911_v60, %v7912_v43  ;;  %v7249_v15 = vadd.f32 %v16944_v26, %v16850_v10  ;;  %v17133_v42 = vadd.f32 %v16965_v36, %v16854_v6  ;;  %v13128_v34 = vld [vmem:[%s18335_s5 + $0x20] sm:$0xff]   ;;  %v13129_v36 = vld [vmem:[%s18335_s5 + $0x68] sm:$0xff]  }
 0x5d1   : > { %v7900_v27 = vrot.slane %v7899_v29, 2  ;;  %v7920_v17 = vmax.f32 %v7918_v57, %v7919_v63  ;;  %v7536_v3 = vrot.slane %v7522_v41, %v18567_v31  ;;  %v7537_v45 = vcombine.high %v7529_v62, %v7529_v62 }
 0x5d2   : > { %v7907_v56 = vrot.slane %v7906_v5, 2  ;;  %v7914_v61 = vrot.slane %v7913_v16, 2  ;;  %v7925_v32 = vsel %vm7756_vm0, %v7529_v62, -inf  ;;  %v7337_v54 = vmax.f32 %v7249_v15, 0.0  ;;  %11947 = vmatpush3.bf16.msra.mxu1 %v13128_v34 }
 0x5d3   : > { %v7901_v10 = vmax.f32 %v7899_v29, %v7900_v27  ;;  %v7921_v26 = vrot.slane %v7920_v17, 2  ;;  %v7538_v60 = vcombine.high %v7536_v3, %v7536_v3  ;;  %v7926_v6 = vrot.slane %v7925_v32, 4  ;;  %11948 = vmatprep.subr.bf16.mxu1 %v13129_v36 }
 0x5d4   : > { %v7908_v23 = vmax.f32 %v7906_v5, %v7907_v56  ;;  %v7915_v43 = vmax.f32 %v7913_v16, %v7914_v61  ;;  %v7932_v57 = vsel %vm7756_vm0, %v7537_v45, -inf  ;;  %v7939_v63 = vsel %vm7756_vm0, %v7536_v3, -inf }
 0x5d5   : > { %v7902_v25 = vrot.slane %v7901_v10, 1  ;;  %v7922_v41 = vmax.f32 %v7920_v17, %v7921_v26  ;;  %v7927_v62 = vmax.f32 %v7925_v32, %v7926_v6  ;;  %v7933_v15 = vrot.slane %v7932_v57, 4  ;;  %v13131_v32 = vld [vmem:[%s18335_s5 + $0x70] sm:$0xff]  }
 0x5d6   : > { %v7909_v38 = vrot.slane %v7908_v23, 1  ;;  %v7916_v29 = vrot.slane %v7915_v43, 1  ;;  %v7940_v27 = vrot.slane %v7939_v63, 4  ;;  %v7946_v44 = vsel %vm7756_vm0, %v7538_v60, -inf  ;;  %11949 = vmatpush3.bf16.msra.mxu1 %v13130_v47 }
 0x5d7   : > { %v17150_v5 = vmax.f32 %v17094_v11, %v7895_v13  ;;  %v7903_v45 = vmax.f32 %v7901_v10, %v7902_v25  ;;  %v7928_v16 = vrot.slane %v7927_v62, 2  ;;  %v7934_v3 = vmax.f32 %v7932_v57, %v7933_v15  ;;  %11950 = vmatprep.subr.bf16.mxu1 %v13131_v32 }
 0x5d8   : > { %v17155_v17 = vmax.f32 %v7908_v23, %v7909_v38  ;;  %v7923_v56 = vrot.slane %v7922_v41, 1  ;;  %v7941_v61 = vmax.f32 %v7939_v63, %v7940_v27  ;;  %v7947_v34 = vrot.slane %v7946_v44, 4  ;;  %v13132_v38 = vld [vmem:[%s18335_s5 + $0x30] sm:$0xff]  }
 0x5d9   : > { %v17157_v26 = vmax.f32 %v7915_v43, %v7916_v29  ;;  %v17161_v60 = vsel %vm5350_vm7, %v7903_v45, %v17024_v37  ;;  %v7929_v11 = vmax.f32 %v7927_v62, %v7928_v16  ;;  %v7935_v13 = vrot.slane %v7934_v3, 2 }
 0x5da   : > { %v7942_v10 = vrot.slane %v7941_v61, 2  ;;  %v7948_v6 = vmax.f32 %v7946_v44, %v7947_v34  ;;  %v7377_v36 = vsel %vm6593_vm14, %v7337_v54, -inf  ;;  %v7342_v57 = vmax.f32 %v17133_v42, 0.0  ;;  %v13133_v44 = vld [vmem:[%s18335_s5 + $0x78] sm:$0xff]   ;;  %11951 = vmatpush3.bf16.msra.mxu1 %v13132_v38 }
 0x5db   : > { %18578 = vst [vmem:[#allocation7_spill] sm:$0xff] %v17157_v26  ;;  %v7930_v23 = vrot.slane %v7929_v11, 1  ;;  %v7936_v43 = vmax.f32 %v7934_v3, %v7935_v13  ;;  %v7379_v63 = vmax.f32 %v7377_v36, %v17112_v53  ;;  %v7262_v37 = vadd.f32 %v16969_v51, %v16865_v39  ;;  %11952 = vmatprep.subr.bf16.mxu1 %v13133_v44 }
 0x5dc   : > { %v17174_v54 = vmax.f32 %v7922_v41, %v7923_v56  ;;  %v7943_v42 = vmax.f32 %v7941_v61, %v7942_v10  ;;  %v7949_v25 = vrot.slane %v7948_v6, 2  ;;  %v7273_v62 = vadd.f32 %v16974_v9, %v16869_v30  ;;  %v13134_v41 = vld [vmem:[%s18335_s5 + $0x38] sm:$0xff]  }
 0x5dd   : > { %v7937_v15 = vrot.slane %v7936_v43, 1  ;;  %v7539_v29 = vcombine.high %v7379_v63, %v7379_v63  ;;  %v7546_v27 = vrot.slane %v7379_v63, %v18567_v31  ;;  %v7381_v53 = vsel %vm6593_vm14, %v7342_v57, -inf }
 0x5de   : > { %v17180_v47 = vmax.f32 %v7929_v11, %v7930_v23  ;;  %v7944_v39 = vrot.slane %v7943_v42, 1  ;;  %v7950_v51 = vmax.f32 %v7948_v6, %v7949_v25  ;;  %v7340_v45 = vmax.f32 %v7262_v37, 0.0  ;;  %11953 = vmatpush3.bf16.msra.mxu1 %v13134_v41 }
 0x5df   : > { %v7553_v16 = vrot.slane %v7539_v29, %v18567_v31  ;;  %v7554_v3 = vcombine.high %v7546_v27, %v7546_v27  ;;  %v7953_v30 = vsel %vm7756_vm0, %v7546_v27, -inf  ;;  %v7343_v9 = vmax.f32 %v7273_v62, 0.0 }
 0x5e0   : > { %v17187_v32 = vmax.f32 %v7936_v43, %v7937_v15  ;;  %v7951_v56 = vrot.slane %v7950_v51, 1  ;;  %v7954_v61 = vrot.slane %v7953_v30, 4  ;;  %v7380_v34 = vsel %vm6593_vm14, %v7340_v45, -inf }
 0x5e1   : > { %v7555_v11 = vcombine.high %v7553_v16, %v7553_v16  ;;  %v7960_v13 = vsel %vm7756_vm0, %v7554_v3, -inf  ;;  %v7967_v10 = vsel %vm7756_vm0, %v7553_v16, -inf  ;;  %v7382_v6 = vmax.f32 %v7380_v34, %v7381_v53 }
 0x5e2   : > { %v17192_v36 = vmax.f32 %v7943_v42, %v7944_v39  ;;  %v7955_v57 = vmax.f32 %v7953_v30, %v7954_v61  ;;  %v7961_v38 = vrot.slane %v7960_v13, 4  ;;  %v7968_v23 = vrot.slane %v7967_v10, 4 }
 0x5e3   : > { %v17194_v63 = vmax.f32 %v7950_v51, %v7951_v56  ;;  %v7974_v43 = vsel %vm7756_vm0, %v7555_v11, -inf  ;;  %v7556_v37 = vcombine.high %v7382_v6, %v7382_v6  ;;  %v7563_v44 = vrot.slane %v7382_v6, %v18567_v31 }
 0x5e4   : > { %v7956_v25 = vrot.slane %v7955_v57, 2  ;;  %v7962_v62 = vmax.f32 %v7960_v13, %v7961_v38  ;;  %v7969_v15 = vmax.f32 %v7967_v10, %v7968_v23  ;;  %v7975_v29 = vrot.slane %v7974_v43, 4 }
 0x5e5   : > { %v7570_v27 = vrot.slane %v7556_v37, %v18567_v31  ;;  %v7571_v53 = vcombine.high %v7563_v44, %v7563_v44  ;;  %v7981_v42 = vsel %vm7756_vm0, %v7563_v44, -inf  ;;  %v7265_v39 = vadd.f32 %v16977_v28, %v16874_v4 }
 0x5e6   : > { %v7957_v45 = vmax.f32 %v7955_v57, %v7956_v25  ;;  %v7963_v51 = vrot.slane %v7962_v62, 2  ;;  %v7970_v41 = vrot.slane %v7969_v15, 2  ;;  %v7976_v16 = vmax.f32 %v7974_v43, %v7975_v29 }
 0x5e7   : > { %v7572_v3 = vcombine.high %v7570_v27, %v7570_v27  ;;  %v7982_v30 = vrot.slane %v7981_v42, 4  ;;  %v7988_v56 = vsel %vm7756_vm0, %v7571_v53, -inf  ;;  %v7995_v61 = vsel %vm7756_vm0, %v7570_v27, -inf }
 0x5e8   : > { %v7958_v34 = vrot.slane %v7957_v45, 1  ;;  %v7964_v11 = vmax.f32 %v7962_v62, %v7963_v51  ;;  %v7971_v13 = vmax.f32 %v7969_v15, %v7970_v41  ;;  %v7977_v10 = vrot.slane %v7976_v16, 2 }
 0x5e9   : > { %v7983_v6 = vmax.f32 %v7981_v42, %v7982_v30  ;;  %v7989_v38 = vrot.slane %v7988_v56, 4  ;;  %v7996_v23 = vrot.slane %v7995_v61, 4  ;;  %v8002_v37 = vsel %vm7756_vm0, %v7572_v3, -inf }
 0x5ea   : > { %v7965_v4 = vrot.slane %v7964_v11, 1  ;;  %v7972_v28 = vrot.slane %v7971_v13, 1  ;;  %v7978_v57 = vmax.f32 %v7976_v16, %v7977_v10  ;;  %v7384_v43 = vsel %vm6593_vm14, %v7343_v9, -inf }
 0x5eb   : > { %v7984_v44 = vrot.slane %v7983_v6, 2  ;;  %v7990_v25 = vmax.f32 %v7988_v56, %v7989_v38  ;;  %v7997_v29 = vmax.f32 %v7995_v61, %v7996_v23  ;;  %v8003_v53 = vrot.slane %v8002_v37, 4 }
 0x5ec   : > { %v17206_v26 = vmax.f32 %v7957_v45, %v7958_v34  ;;  %v17208_v27 = vmax.f32 %v7964_v11, %v7965_v4  ;;  %v7979_v62 = vrot.slane %v7978_v57, 1  ;;  %v7341_v15 = vmax.f32 %v7265_v39, 0.0 }
 0x5ed   : > { %v7985_v42 = vmax.f32 %v7983_v6, %v7984_v44  ;;  %v7991_v51 = vrot.slane %v7990_v25, 2  ;;  %v7998_v41 = vrot.slane %v7997_v29, 2  ;;  %v8004_v30 = vmax.f32 %v8002_v37, %v8003_v53 }
 0x5ee   : > { %v17210_v3 = vmax.f32 %v7971_v13, %v7972_v28  ;;  %v7383_v16 = vsel %vm6593_vm14, %v7341_v15, -inf  ;;  %v7286_v9 = vadd.f32 %v16990_v19, %v16878_v48  ;;  %v7278_v56 = vadd.f32 %v16992_v8, %v16882_v18 }
 0x5ef   : > { %v7986_v45 = vrot.slane %v7985_v42, 1  ;;  %v7992_v61 = vmax.f32 %v7990_v25, %v7991_v51  ;;  %v7999_v34 = vmax.f32 %v7997_v29, %v7998_v41  ;;  %v8005_v11 = vrot.slane %v8004_v30, 2 }
 0x5f0   : > { %18579 = vst [vmem:[#allocation11_spill] sm:$0xff] %v17210_v3  ;;  %v7385_v10 = vmax.f32 %v7383_v16, %v7384_v43  ;;  %v7346_v39 = vmax.f32 %v7286_v9, 0.0  ;;  %v7344_v6 = vmax.f32 %v7278_v56, 0.0  ;;  %v7289_v38 = vadd.f32 %v16994_v58, %v16893_v33 }
 0x5f1   : > { %v17219_v13 = vmax.f32 %v7978_v57, %v7979_v62  ;;  %v7993_v23 = vrot.slane %v7992_v61, 1  ;;  %v8000_v37 = vrot.slane %v7999_v34, 1  ;;  %v17221_v4 = vmax.f32 %v8004_v30, %v8005_v11 }
 0x5f2   : > { %v7573_v48 = vcombine.high %v7385_v10, %v7385_v10  ;;  %v7580_v19 = vrot.slane %v7385_v10, %v18567_v31  ;;  %v7387_v18 = vsel %vm6593_vm14, %v7346_v39, -inf  ;;  %v7386_v8 = vsel %vm6593_vm14, %v7344_v6, -inf }
 0x5f3   : > { %v17226_v28 = vmax.f32 %v7985_v42, %v7986_v45  ;;  %v17228_v43 = vmax.f32 %v7992_v61, %v7993_v23  ;;  %v17230_v44 = vmax.f32 %v7999_v34, %v8000_v37  ;;  %v7388_v33 = vmax.f32 %v7386_v8, %v7387_v18 }
 0x5f4   : > { %v7587_v57 = vrot.slane %v7573_v48, %v18567_v31  ;;  %v7588_v25 = vcombine.high %v7580_v19, %v7580_v19  ;;  %v8009_v29 = vsel %vm7756_vm0, %v7580_v19, -inf  ;;  %v7281_v42 = vadd.f32 %v16996_v2, %v16897_v59 }
 0x5f5   : > { %v8010_v53 = vrot.slane %v8009_v29, 4  ;;  %v7590_v62 = vcombine.high %v7388_v33, %v7388_v33  ;;  %v7597_v15 = vrot.slane %v7388_v33, %v18567_v31  ;;  %v7347_v16 = vmax.f32 %v7289_v38, 0.0 }
 0x5f6   : > { %v7589_v51 = vcombine.high %v7587_v57, %v7587_v57  ;;  %v8016_v41 = vsel %vm7756_vm0, %v7588_v25, -inf  ;;  %v8023_v30 = vsel %vm7756_vm0, %v7587_v57, -inf  ;;  %v7345_v39 = vmax.f32 %v7281_v42, 0.0 }
 0x5f7   : > { %v8011_v9 = vmax.f32 %v8009_v29, %v8010_v53  ;;  %v8017_v56 = vrot.slane %v8016_v41, 4  ;;  %v8024_v45 = vrot.slane %v8023_v30, 4  ;;  %v7604_v61 = vrot.slane %v7590_v62, %v18567_v31 }
 0x5f8   : > { %v8030_v34 = vsel %vm7756_vm0, %v7589_v51, -inf  ;;  %v7605_v11 = vcombine.high %v7597_v15, %v7597_v15  ;;  %v8037_v10 = vsel %vm7756_vm0, %v7597_v15, -inf }
 0x5f9   : > { %v8012_v6 = vrot.slane %v8011_v9, 2  ;;  %v8018_v23 = vmax.f32 %v8016_v41, %v8017_v56  ;;  %v8025_v2 = vmax.f32 %v8023_v30, %v8024_v45  ;;  %v8031_v59 = vrot.slane %v8030_v34, 4 }
 0x5fa   : > { %v7606_v37 = vcombine.high %v7604_v61, %v7604_v61  ;;  %v8038_v48 = vrot.slane %v8037_v10, 4  ;;  %v8044_v19 = vsel %vm7756_vm0, %v7605_v11, -inf  ;;  %v8051_v38 = vsel %vm7756_vm0, %v7604_v61, -inf }
 0x5fb   : > { %v8013_v18 = vmax.f32 %v8011_v9, %v8012_v6  ;;  %v8019_v8 = vrot.slane %v8018_v23, 2  ;;  %v8026_v33 = vrot.slane %v8025_v2, 2  ;;  %v8032_v57 = vmax.f32 %v8030_v34, %v8031_v59 }
 0x5fc   : > { %v8039_v25 = vmax.f32 %v8037_v10, %v8038_v48  ;;  %v8045_v29 = vrot.slane %v8044_v19, 4  ;;  %v8052_v53 = vrot.slane %v8051_v38, 4  ;;  %v8058_v62 = vsel %vm7756_vm0, %v7606_v37, -inf }
 0x5fd   : > { %v8014_v15 = vrot.slane %v8013_v18, 1  ;;  %v8020_v42 = vmax.f32 %v8018_v23, %v8019_v8  ;;  %v8027_v51 = vmax.f32 %v8025_v2, %v8026_v33  ;;  %v8033_v41 = vrot.slane %v8032_v57, 2 }
 0x5fe   : > { %v8040_v30 = vrot.slane %v8039_v25, 2  ;;  %v8046_v56 = vmax.f32 %v8044_v19, %v8045_v29  ;;  %v8053_v45 = vmax.f32 %v8051_v38, %v8052_v53  ;;  %v8059_v58 = vrot.slane %v8058_v62, 4 }
 0x5ff   : > { %v8021_v11 = vrot.slane %v8020_v42, 1  ;;  %v8028_v3 = vrot.slane %v8027_v51, 1  ;;  %v17246_v61 = vmax.f32 %v8032_v57, %v8033_v41  ;;  %v7390_v9 = vsel %vm6593_vm14, %v7347_v16, -inf }
 0x600   : > { %v8041_v34 = vmax.f32 %v8039_v25, %v8040_v30  ;;  %v8047_v10 = vrot.slane %v8046_v56, 2  ;;  %v8054_v6 = vrot.slane %v8053_v45, 2  ;;  %v8060_v59 = vmax.f32 %v8058_v62, %v8059_v58 }
 0x601   : > { %v17249_v48 = vmax.f32 %v8013_v18, %v8014_v15  ;;  %v17251_v37 = vmax.f32 %v8020_v42, %v8021_v11  ;;  %v17253_v23 = vmax.f32 %v8027_v51, %v8028_v3  ;;  %v7389_v2 = vsel %vm6593_vm14, %v7345_v39, -inf  ;;  %v17269_v39 = vld [vmem:[%s18334_s4] ss:$0 sm:$0xff] }
 0x602   : > { %v8042_v19 = vrot.slane %v8041_v34, 1  ;;  %v17256_v38 = vmax.f32 %v8046_v56, %v8047_v10  ;;  %v8055_v8 = vmax.f32 %v8053_v45, %v8054_v6  ;;  %v8061_v33 = vrot.slane %v8060_v59, 2 }
 0x603   : > { %v7391_v16 = vmax.f32 %v7389_v2, %v7390_v9  ;;  %v7302_v25 = vadd.f32 %v17012_v40, %v16901_v50  ;;  %v7294_v58 = vadd.f32 %v17018_v52, %v16911_v22  ;;  %v7144_v53 = vadd.f32 %v17269_v39, %v16783_v35 }
 0x604   : > { %v17263_v18 = vmax.f32 %v8041_v34, %v8042_v19  ;;  %v8049_v3 = vrot.slane %v17256_v38, 1  ;;  %v8056_v29 = vrot.slane %v8055_v8, 1  ;;  %v17276_v22 = vmax.f32 %v8060_v59, %v8061_v33 }
 0x605   : > { %v7607_v62 = vcombine.high %v7391_v16, %v7391_v16  ;;  %v7614_v15 = vrot.slane %v7391_v16, %v18567_v31  ;;  %v7350_v50 = vmax.f32 %v7302_v25, 0.0  ;;  %v7348_v40 = vmax.f32 %v7294_v58, 0.0 }
 0x606   : > { %v17274_v42 = vmax.f32 %v8055_v8, %v8056_v29  ;;  %v7305_v52 = vadd.f32 %v17027_v12, %v7144_v53  ;;  %v7136_v51 = vadd.f32 %v17269_v39, %v16779_v20 }
 0x607   : > { %v7621_v41 = vrot.slane %v7607_v62, %v18567_v31  ;;  %v7622_v30 = vcombine.high %v7614_v15, %v7614_v15  ;;  %v8065_v56 = vsel %vm7756_vm0, %v7614_v15, -inf  ;;  %v7393_v35 = vsel %vm6593_vm14, %v7350_v50, -inf }
 0x608   : > { %v8066_v45 = vrot.slane %v8065_v56, 4  ;;  %v7392_v11 = vsel %vm6593_vm14, %v7348_v40, -inf  ;;  %v7351_v9 = vmax.f32 %v7305_v52, 0.0  ;;  %v7297_v34 = vadd.f32 %v17031_v21, %v7136_v51 }
 0x609   : > { %v7623_v10 = vcombine.high %v7621_v41, %v7621_v41  ;;  %v8072_v6 = vsel %vm7756_vm0, %v7622_v30, -inf  ;;  %v8079_v12 = vsel %vm7756_vm0, %v7621_v41, -inf  ;;  %v7394_v59 = vmax.f32 %v7392_v11, %v7393_v35 }
 0x60a   : > { %v8067_v20 = vmax.f32 %v8065_v56, %v8066_v45  ;;  %v8073_v2 = vrot.slane %v8072_v6, 4  ;;  %v8080_v19 = vrot.slane %v8079_v12, 4  ;;  %v7396_v8 = vsel %vm6593_vm14, %v7351_v9, -inf }
 0x60b   : > { %v8086_v33 = vsel %vm7756_vm0, %v7623_v10, -inf  ;;  %v7624_v16 = vcombine.high %v7394_v59, %v7394_v59  ;;  %v7631_v25 = vrot.slane %v7394_v59, %v18567_v31  ;;  %v7349_v58 = vmax.f32 %v7297_v34, 0.0 }
 0x60c   : > { %v8068_v29 = vrot.slane %v8067_v20, 2  ;;  %v8074_v53 = vmax.f32 %v8072_v6, %v8073_v2  ;;  %v8081_v21 = vmax.f32 %v8079_v12, %v8080_v19  ;;  %v8087_v62 = vrot.slane %v8086_v33, 4 }
 0x60d   : > { %v7638_v15 = vrot.slane %v7624_v16, %v18567_v31  ;;  %v7639_v50 = vcombine.high %v7631_v25, %v7631_v25  ;;  %v8093_v40 = vsel %vm7756_vm0, %v7631_v25, -inf  ;;  %v7395_v52 = vsel %vm6593_vm14, %v7349_v58, -inf }
 0x60e   : > { %v8069_v51 = vmax.f32 %v8067_v20, %v8068_v29  ;;  %v8075_v41 = vrot.slane %v8074_v53, 2  ;;  %v8082_v30 = vrot.slane %v8081_v21, 2  ;;  %v8088_v56 = vmax.f32 %v8086_v33, %v8087_v62 }
 0x60f   : > { %v7640_v35 = vcombine.high %v7638_v15, %v7638_v15  ;;  %v8094_v45 = vrot.slane %v8093_v40, 4  ;;  %v8100_v11 = vsel %vm7756_vm0, %v7639_v50, -inf  ;;  %v8107_v9 = vsel %vm7756_vm0, %v7638_v15, -inf }
 0x610   : > { %v8070_v34 = vrot.slane %v8069_v51, 1  ;;  %v17296_v10 = vmax.f32 %v8074_v53, %v8075_v41  ;;  %v8083_v6 = vmax.f32 %v8081_v21, %v8082_v30  ;;  %v8089_v12 = vrot.slane %v8088_v56, 2  ;;  %v18580_v41 = vld [vmem:[#allocation22_spill] sm:$0xff] }
 0x611   : > { %v8095_v59 = vmax.f32 %v8093_v40, %v8094_v45  ;;  %v8101_v2 = vrot.slane %v8100_v11, 4  ;;  %v8108_v19 = vrot.slane %v8107_v9, 4  ;;  %v8114_v16 = vsel %vm7756_vm0, %v7640_v35, -inf }
 0x612   : > { %v17299_v20 = vmax.f32 %v8069_v51, %v8070_v34  ;;  %v8084_v25 = vrot.slane %v8083_v6, 1  ;;  %v7157_v58 = vadd.f32 %v17269_v39, %v16789_v55  ;;  %v8115_v53 = vrot.slane %v8114_v16, 4 }
 0x613   : > { %v8096_v29 = vrot.slane %v8095_v59, 2  ;;  %v8102_v62 = vmax.f32 %v8100_v11, %v8101_v2  ;;  %v8109_v15 = vmax.f32 %v8107_v9, %v8108_v19  ;;  %v17304_v50 = vmax.f32 %v8088_v56, %v8089_v12 }
 0x614   : > { %v7397_v21 = vmax.f32 %v7395_v52, %v7396_v8  ;;  %v7318_v40 = vadd.f32 %v17068_v1, %v7157_v58  ;;  %v7149_v30 = vadd.f32 %v17269_v39, %v18580_v41  ;;  %v17309_v34 = vmax.f32 %v8114_v16, %v8115_v53 }
 0x615   : > { %v8097_v51 = vmax.f32 %v8095_v59, %v8096_v29  ;;  %v8103_v35 = vrot.slane %v8102_v62, 2  ;;  %v8110_v45 = vrot.slane %v8109_v15, 2  ;;  %v17313_v9 = vmax.f32 %v8083_v6, %v8084_v25 }
 0x616   : > { %v7641_v33 = vcombine.high %v7397_v21, %v7397_v21  ;;  %v7648_v55 = vrot.slane %v7397_v21, %v18567_v31  ;;  %v7354_v57 = vmax.f32 %v7318_v40, 0.0  ;;  %v7310_v11 = vadd.f32 %v17077_v24, %v7149_v30 }
 0x617   : > { %v8098_v56 = vrot.slane %v8097_v51, 1  ;;  %v17315_v8 = vmax.f32 %v8102_v62, %v8103_v35  ;;  %v17317_v1 = vmax.f32 %v8109_v15, %v8110_v45  ;;  %v8117_v52 = vrot.slane %v17309_v34, 2  ;;  %v18581_v62 = vld [vmem:[#allocation38_spill] sm:$0xff] }
 0x618   : > { %v7655_v12 = vrot.slane %v7641_v33, %v18567_v31  ;;  %v7656_v59 = vcombine.high %v7648_v55, %v7648_v55  ;;  %v8121_v2 = vsel %vm7756_vm0, %v7648_v55, -inf  ;;  %v7399_v58 = vsel %vm6593_vm14, %v7354_v57, -inf  ;;  %v18582_v57 = vld [vmem:[#allocation48_spill] sm:$0xff] }
 0x619   : > { %v17322_v19 = vmax.f32 %v8097_v51, %v8098_v56  ;;  %v8122_v16 = vrot.slane %v8121_v2, 4  ;;  %v7352_v24 = vmax.f32 %v7310_v11, 0.0  ;;  %v7160_v15 = vadd.f32 %v17269_v39, %v18581_v62 }
 0x61a   : > { %v7657_v6 = vcombine.high %v7655_v12, %v7655_v12  ;;  %v8128_v25 = vsel %vm7756_vm0, %v7656_v59, -inf  ;;  %v8135_v29 = vsel %vm7756_vm0, %v7655_v12, -inf  ;;  %v7152_v35 = vadd.f32 %v17269_v39, %v18582_v57 }
 0x61b   : > { %v8123_v53 = vmax.f32 %v8121_v2, %v8122_v16  ;;  %v8129_v21 = vrot.slane %v8128_v25, 4  ;;  %v8136_v33 = vrot.slane %v8135_v29, 4  ;;  %v7398_v40 = vsel %vm6593_vm14, %v7352_v24, -inf }
 0x61c   : > { %v8142_v41 = vsel %vm7756_vm0, %v7657_v6, -inf  ;;  %v7400_v30 = vmax.f32 %v7398_v40, %v7399_v58  ;;  %v7321_v51 = vadd.f32 %v17082_v7, %v7160_v15  ;;  %v7313_v16 = vadd.f32 %v17089_v14, %v7152_v35 }
 0x61d   : > { %v8124_v45 = vrot.slane %v8123_v53, 2  ;;  %v8130_v55 = vmax.f32 %v8128_v25, %v8129_v21  ;;  %v8137_v11 = vmax.f32 %v8135_v29, %v8136_v33  ;;  %v8143_v56 = vrot.slane %v8142_v41, 4 }
 0x61e   : > { %v7658_v12 = vcombine.high %v7400_v30, %v7400_v30  ;;  %v7665_v59 = vrot.slane %v7400_v30, %v18567_v31  ;;  %v7355_v2 = vmax.f32 %v7321_v51, 0.0 }
 0x61f   : > { %v17336_v62 = vmax.f32 %v8123_v53, %v8124_v45  ;;  %v8131_v24 = vrot.slane %v8130_v55, 2  ;;  %v8138_v6 = vrot.slane %v8137_v11, 2  ;;  %v17338_v58 = vmax.f32 %v8142_v41, %v8143_v56 }
 0x620   : > { %v7672_v39 = vrot.slane %v7658_v12, %v18567_v31  ;;  %v7673_v15 = vcombine.high %v7665_v59, %v7665_v59  ;;  %v8149_v25 = vsel %vm7756_vm0, %v7665_v59, -inf  ;;  %v7402_v14 = vsel %vm6593_vm14, %v7355_v2, -inf }
 0x621   : > { %v17344_v21 = vmax.f32 %v8130_v55, %v8131_v24  ;;  %v17346_v33 = vmax.f32 %v8137_v11, %v8138_v6  ;;  %v8150_v40 = vrot.slane %v8149_v25, 4  ;;  %v8145_v57 = vrot.slane %v17338_v58, 2 }
 0x622   : > { %v7674_v53 = vcombine.high %v7672_v39, %v7672_v39  ;;  %v8156_v41 = vsel %vm7756_vm0, %v7673_v15, -inf  ;;  %v8163_v30 = vsel %vm7756_vm0, %v7672_v39, -inf  ;;  %v7353_v12 = vmax.f32 %v7313_v16, 0.0 }
 0x623   : > { %v8157_v35 = vrot.slane %v8156_v41, 4  ;;  %v8164_v45 = vrot.slane %v8163_v30, 4  ;;  %v8151_v56 = vmax.f32 %v8149_v25, %v8150_v40  ;;  %v18583_v11 = vrot.slane %v17221_v4, 1 }
 0x624   : > { %v8170_v55 = vsel %vm7756_vm0, %v7674_v53, -inf  ;;  %v8050_v39 = vmax.f32 %v17256_v38, %v8049_v3  ;;  %v7401_v51 = vsel %vm6593_vm14, %v7353_v12, -inf  ;;  %v8063_v25 = vrot.slane %v17276_v22, 1 }
 0x625   : > { %v17357_v59 = vmax.f32 %v17221_v4, %v18583_v11  ;;  %v8158_v2 = vmax.f32 %v8156_v41, %v8157_v35  ;;  %v8165_v24 = vmax.f32 %v8163_v30, %v8164_v45  ;;  %v8171_v6 = vrot.slane %v8170_v55, 4 }
 0x626   : > { %v8152_v15 = vrot.slane %v8151_v56, 2  ;;  %v8105_v53 = vrot.slane %v17315_v8, 1  ;;  %v7403_v7 = vmax.f32 %v7401_v51, %v7402_v14  ;;  %v8064_v41 = vmax.f32 %v17276_v22, %v8063_v25  ;;  %v18584_v51 = vld [vmem:[#allocation13_spill] sm:$0xff] }
 0x627   : > { %v8159_v16 = vrot.slane %v8158_v2, 2  ;;  %v8166_v40 = vrot.slane %v8165_v24, 2  ;;  %v8172_v29 = vmax.f32 %v8170_v55, %v8171_v6  ;;  %v8118_v38 = vmax.f32 %v17309_v34, %v8117_v52 }
 0x628   : > { %v17365_v4 = vmax.f32 %v8151_v56, %v8152_v15  ;;  %v8106_v30 = vmax.f32 %v17315_v8, %v8105_v53  ;;  %v7675_v35 = vcombine.high %v7403_v7, %v7403_v7  ;;  %v7682_v45 = vrot.slane %v7403_v7, %v18567_v31 }
 0x629   : > { %v17372_v3 = vmax.f32 %v8165_v24, %v8166_v40  ;;  %v8160_v12 = vmax.f32 %v8158_v2, %v8159_v16  ;;  %v8119_v55 = vrot.slane %v8118_v38, 1  ;;  %v8173_v14 = vrot.slane %v8172_v29, 2 }
 0x62a   : > { %v8154_v11 = vrot.slane %v17365_v4, 1  ;;  %v8229_v22 = vsel %vm5348_vm6, %v17003_v46, %v18584_v51  ;;  %v7689_v8 = vrot.slane %v7675_v35, %v18567_v31  ;;  %v7690_v56 = vcombine.high %v7682_v45, %v7682_v45 }
 0x62b   : > { %v8177_v6 = vsel %vm7756_vm0, %v7682_v45, -inf  ;;  %v8161_v34 = vrot.slane %v8160_v12, 1  ;;  %v8120_v24 = vmax.f32 %v8118_v38, %v8119_v55  ;;  %v8174_v15 = vmax.f32 %v8172_v29, %v8173_v14  ;;  %v18585_v38 = vld [vmem:[#allocation39_spill] sm:$0xff] }
 0x62c   : > { %v8178_v52 = vrot.slane %v8177_v6, 4  ;;  %v8230_v7 = vsel %vm5350_vm7, %v17107_v0, %v8229_v22  ;;  %v7691_v2 = vcombine.high %v7689_v8, %v7689_v8  ;;  %v8184_v25 = vsel %vm7756_vm0, %v7690_v56, -inf }
 0x62d   : > { %v8191_v53 = vsel %vm7756_vm0, %v7689_v8, -inf  ;;  %v8162_v16 = vmax.f32 %v8160_v12, %v8161_v34  ;;  %v8185_v46 = vrot.slane %v8184_v25, 4  ;;  %v8175_v31 = vrot.slane %v8174_v15, 1  ;;  %v13136_v12 = vld [vmem:[%s18335_s5 + $0x130] sm:$0xff]  }
 0x62e   : > { %v8179_v40 = vmax.f32 %v8177_v6, %v8178_v52  ;;  %v8192_v51 = vrot.slane %v8191_v53, 4  ;;  %v8198_v35 = vsel %vm7756_vm0, %v7691_v2, -inf  ;;  %v8231_v45 = vsel %vm5352_vm8, %v17187_v32, %v8230_v7  ;;  %11995 = vmatpush3.bf16.msra.mxu0 %v13136_v12  ;;  %v18588_v12 = vld [vmem:[#allocation23_spill] sm:$0xff] }
 0x62f   : > { %v8263_v29 = vsel %vm5348_vm6, %v17014_v49, %v18585_v38  ;;  %v18586_v0 = vrot.slane %v17246_v61, 1  ;;  %v8186_v22 = vmax.f32 %v8184_v25, %v8185_v46  ;;  %v8199_v56 = vrot.slane %v8198_v35, 4 }
 0x630   : > { %v8180_v14 = vrot.slane %v8179_v40, 2  ;;  %v8193_v8 = vmax.f32 %v8191_v53, %v8192_v51  ;;  %v8176_v6 = vmax.f32 %v8174_v15, %v8175_v31  ;;  %v8232_v32 = vsel %vm5354_vm9, %v17228_v43, %v8231_v45 }
 0x631   : > { %v8036_v55 = vmax.f32 %v17246_v61, %v18586_v0  ;;  %v8264_v34 = vsel %vm5350_vm7, %v17150_v5, %v8263_v29  ;;  %v18587_v49 = vrot.slane %v17296_v10, 1  ;;  %v8187_v7 = vrot.slane %v8186_v22, 2 }
 0x632   : > { %v17404_v61 = vmax.f32 %v8179_v40, %v8180_v14  ;;  %v8194_v2 = vrot.slane %v8193_v8, 2  ;;  %v8200_v38 = vmax.f32 %v8198_v35, %v8199_v56  ;;  %v8233_v25 = vsel %vm5356_vm10, %v8050_v39, %v8232_v32  ;;  %v18590_v14 = vld [vmem:[#allocation26_spill] sm:$0xff] }
 0x633   : > { %v8078_v52 = vmax.f32 %v17296_v10, %v18587_v49  ;;  %v8265_v15 = vsel %vm5352_vm8, %v17194_v63, %v8264_v34  ;;  %v8091_v43 = vrot.slane %v17304_v50, 1  ;;  %v8133_v53 = vrot.slane %v17344_v21, 1 }
 0x634   : > { %v8182_v5 = vrot.slane %v17404_v61, 1  ;;  %v17412_v46 = vmax.f32 %v8193_v8, %v8194_v2  ;;  %v8234_v10 = vsel %vm5358_vm11, %v8106_v30, %v8233_v25  ;;  %v8266_v40 = vsel %vm5354_vm9, %v17357_v59, %v8265_v15  ;;  %v18589_v59 = vld [vmem:[#allocation31_spill] sm:$0xff] }
 0x635   : > { %v8235_v51 = vsel %vm5360_vm12, %v8162_v16, %v8234_v10  ;;  %v8267_v39 = vsel %vm5356_vm10, %v8064_v41, %v8266_v40  ;;  %v8092_v31 = vmax.f32 %v17304_v50, %v8091_v43  ;;  %v8134_v63 = vmax.f32 %v17344_v21, %v8133_v53  ;;  %v18591_v41 = vld [vmem:[#allocation33_spill] sm:$0xff]  ;;  %v18593_v43 = vld [vmem:[#allocation8_spill] sm:$0xff] }
 0x636   : > { %v8268_v35 = vsel %vm5358_vm11, %v8120_v24, %v8267_v39  ;;  %v8146_v45 = vmax.f32 %v17338_v58, %v8145_v57  ;;  %v8188_v29 = vmax.f32 %v8186_v22, %v8187_v7  ;;  %v8201_v0 = vrot.slane %v8200_v38, 2  ;;  %v13137_v58 = vld [vmem:[%s18335_s5 + $0x178] sm:$0xff]   ;;  %v13139_v22 = vld [vmem:[%s18335_s5 + $0xc0] sm:$0xff]  }
 0x637   : > { %v8269_v30 = vsel %vm5360_vm12, %v8176_v6, %v8268_v35  ;;  %v8297_v16 = vsel %vm5348_vm6, %v18589_v59, %v18588_v12  ;;  %v8331_v50 = vsel %vm5348_vm6, %v18591_v41, %v18590_v14  ;;  %v18592_v21 = vrot.slane %v17317_v1, 1  ;;  %v13138_v57 = vld [vmem:[%s18335_s5 + $0x138] sm:$0xff]   ;;  %11996 = vmatprep.subr.bf16.mxu0 %v13137_v58  ;;  %11960 = vmatprep.subr.bf16.mxu1 %v13139_v22 }
 0x638   : > { %v13013_v8 = vpack.i.bf16 %v8235_v51, %v8269_v30  ;;  %v8147_v56 = vrot.slane %v8146_v45, 1  ;;  %v8189_v6 = vrot.slane %v8188_v29, 1  ;;  %v8202_v32 = vmax.f32 %v8200_v38, %v8201_v0  ;;  %11997 = vmatpush3.bf16.msra.mxu0 %v13138_v57  ;;  %v18595_v35 = vld [vmem:[#allocation34_spill] sm:$0xff]  ;;  %v18599_v41 = vld [vmem:[#allocation7_spill] sm:$0xff] }
 0x639   : > { %v8113_v24 = vmax.f32 %v17317_v1, %v18592_v21  ;;  %v8298_v34 = vsel %vm5350_vm7, %v17155_v17, %v8297_v16  ;;  %v8332_v1 = vsel %vm5350_vm7, %v17174_v54, %v8331_v50  ;;  %v8155_v49 = vmax.f32 %v17365_v4, %v8154_v11  ;;  %v13141_v17 = vld [vmem:[%s18335_s5 + $0x240] sm:$0xff]   ;;  %v18598_v14 = vld [vmem:[#allocation30_spill] sm:$0xff] }
 0x63a   : > { %v8168_v7 = vrot.slane %v17372_v3, 1  ;;  %13014 = vrot.lane.b32.xlu0 %v13013_v8, %s13473_s17  ;;  %v8148_v2 = vmax.f32 %v8146_v45, %v8147_v56  ;;  %v8190_v25 = vmax.f32 %v8188_v29, %v8189_v6  ;;  %v8203_v15 = vrot.slane %v8202_v32, 1  ;;  %12026 = vmatprep.subr.bf16.mxu0 %v13141_v17 }
 0x63b   : > { %v8299_v38 = vsel %vm5352_vm8, %v17208_v27, %v8298_v34  ;;  %v8333_v4 = vsel %vm5352_vm8, %v17219_v13, %v8332_v1  ;;  %v8215_v53 = vsel %vm5352_vm8, %v17180_v47, %v18593_v43  ;;  %v13147_v43 = vld [vmem:[%s18335_s5 + $0xd0] sm:$0xff]  }
 0x63c   : > { %v8300_v54 = vsel %vm5354_vm9, %v17251_v37, %v8299_v38  ;;  %v8169_v11 = vmax.f32 %v17372_v3, %v8168_v7  ;;  %v8204_v10 = vmax.f32 %v8202_v32, %v8203_v15  ;;  %v8334_v40 = vsel %vm5354_vm9, %v8036_v55, %v8333_v4  ;;  %v18594_v3 = vld [vmem:[#allocation27_spill] sm:$0xff]  ;;  %v13145_v38 = vld [vmem:[%s18335_s5 + $0x248] sm:$0xff]  }
 0x63d   : > { %v8301_v27 = vsel %vm5356_vm10, %v8078_v52, %v8300_v54  ;;  %v8216_v51 = vsel %vm5354_vm9, %v17226_v28, %v8215_v53  ;;  %v8335_v39 = vsel %vm5356_vm10, %v8092_v31, %v8334_v40  ;;  %v8248_v47 = vsel %vm5350_vm7, %v18595_v35, %v18594_v3  ;;  %v13140_v32 = vld [vmem:[%s18335_s5 + $0x80] sm:$0xff]   ;;  %v13144_v4 = vld [vmem:[%s18335_s5 + $0x88] sm:$0xff]   ;;  %v13152_v3 = vld [vmem:[%s18335_s5 + $0x98] sm:$0xff]  }
 0x63e   : > { %v8302_v37 = vsel %vm5358_vm11, %v8134_v63, %v8301_v27  ;;  %v8217_v13 = vsel %vm5356_vm10, %v17263_v18, %v8216_v51  ;;  %v8336_v52 = vsel %vm5358_vm11, %v8148_v2, %v8335_v39  ;;  %v8249_v28 = vsel %vm5352_vm8, %v17192_v36, %v8248_v47  ;;  %v13142_v15 = vld [vmem:[%s18335_s5 + $0x200] sm:$0xff]   ;;  %v13146_v53 = vld [vmem:[%s18335_s5 + $0x208] sm:$0xff]   ;;  %v13149_v27 = vld [vmem:[%s18335_s5 + $0x250] sm:$0xff]  }
 0x63f   : > { %v8303_v45 = vsel %vm5360_vm12, %v8190_v25, %v8302_v37  ;;  %v8218_v55 = vsel %vm5358_vm11, %v17322_v19, %v8217_v13  ;;  %v18596_v63 = vrot.slane %v17336_v62, 1  ;;  %v8337_v18 = vsel %vm5360_vm12, %v8204_v10, %v8336_v52  ;;  %v13148_v51 = vld [vmem:[%s18335_s5 + $0x90] sm:$0xff]   ;;  %v13151_v37 = vld [vmem:[%s18335_s5 + $0xd8] sm:$0xff]   ;;  %v13155_v35 = vld [vmem:[%s18335_s5 + $0xe0] sm:$0xff]  }
 0x640   : > { %v8219_v29 = vsel %vm5360_vm12, %v8155_v49, %v8218_v55  ;;  %v8250_v0 = vsel %vm5354_vm9, %v17230_v44, %v8249_v28  ;;  %v13018_v30 = vpack.i.bf16 %v8303_v45, %v8337_v18  ;;  %v18597_v19 = vrot.slane %v17346_v33, 1  ;;  %v13143_v49 = vld [vmem:[%s18335_s5 + $0xc8] sm:$0xff]   ;;  %v13150_v39 = vld [vmem:[%s18335_s5 + $0x210] sm:$0xff]   ;;  %v13153_v13 = vld [vmem:[%s18335_s5 + $0x258] sm:$0xff]  }
 0x641   : > { %v8127_v31 = vmax.f32 %v17336_v62, %v18596_v63  ;;  %v8251_v12 = vsel %vm5356_vm10, %v17274_v42, %v8250_v0  ;;  %v8196_v36 = vrot.slane %v17412_v46, 1  ;;  %v8183_v62 = vmax.f32 %v17404_v61, %v8182_v5  ;;  %v13154_v47 = vld [vmem:[%s18335_s5 + $0x218] sm:$0xff]   ;;  %v13157_v45 = vld [vmem:[%s18335_s5 + $0x260] sm:$0xff]   ;;  %v13159_v55 = vld [vmem:[%s18335_s5 + $0xe8] sm:$0xff]  }
 0x642   : > { %v8141_v59 = vmax.f32 %v17346_v33, %v18597_v19  ;;  %v8252_v16 = vsel %vm5358_vm11, %v8113_v24, %v8251_v12  ;;  %v8283_v44 = vsel %vm5352_vm8, %v17206_v26, %v17161_v60  ;;  %v8316_v42 = vsel %vm5350_vm7, %v18599_v41, %v18598_v14  ;;  %13019 = vrot.lane.b32.xlu1 %v13018_v30, %s13473_s17  ;;  %v18600_v24 = vld [vmem:[#allocation11_spill] sm:$0xff]  ;;  %v13161_v63 = vld [vmem:[%s18335_s5 + $0x268] sm:$0xff]   ;;  %v13163_v18 = vld [vmem:[%s18335_s5 + $0xf0] sm:$0xff]  }
 0x643   : > { %v8253_v33 = vsel %vm5360_vm12, %v8169_v11, %v8252_v16  ;;  %v8197_v50 = vmax.f32 %v17412_v46, %v8196_v36  ;;  %v8284_v21 = vsel %vm5354_vm9, %v17249_v48, %v8283_v44  ;;  %v8317_v61 = vsel %vm5352_vm8, %v18600_v24, %v8316_v42  ;;  %v13156_v52 = vld [vmem:[%s18335_s5 + $0xa0] sm:$0xff]   ;;  %v13165_v0 = vld [vmem:[%s18335_s5 + $0x270] sm:$0xff]   ;;  %v13167_v12 = vld [vmem:[%s18335_s5 + $0xf8] sm:$0xff]  }
 0x644   : > { %v8285_v5 = vsel %vm5356_vm10, %v17299_v20, %v8284_v21  ;;  %v8318_v26 = vsel %vm5354_vm9, %v17253_v23, %v8317_v61  ;;  %v13158_v28 = vld [vmem:[%s18335_s5 + $0x220] sm:$0xff]   ;;  %v13164_v30 = vld [vmem:[%s18335_s5 + $0xb0] sm:$0xff]   ;;  %v13169_v36 = vld [vmem:[%s18335_s5 + $0x278] sm:$0xff]  }
 0x645   : > { %v8286_v60 = vsel %vm5358_vm11, %v8127_v31, %v8285_v5  ;;  %v8319_v58 = vsel %vm5356_vm10, %v17313_v9, %v8318_v26  ;;  %v13160_v31 = vld [vmem:[%s18335_s5 + $0xa8] sm:$0xff]   ;;  %v13168_v16 = vld [vmem:[%s18335_s5 + $0xb8] sm:$0xff]   ;;  %v13174_v26 = vld [vmem:[%s18335_s5 + $0x300] sm:$0xff]  }
 0x646   : > { %v17521_v57 = vsel %vm5360_vm12, %v8183_v62, %v8286_v60  ;;  %v8320_v46 = vsel %vm5358_vm11, %v8141_v59, %v8319_v58  ;;  %v13166_v59 = vld [vmem:[%s18335_s5 + $0x230] sm:$0xff]   ;;  %v13171_v62 = vld [vmem:[%s18335_s5 + $0x1c0] sm:$0xff]   ;;  %v13170_v14 = vld [vmem:[%s18335_s5 + $0x238] sm:$0xff]  }
 0x647   : > { %v8321_v48 = vsel %vm5360_vm12, %v8197_v50, %v8320_v46  ;;  %v13172_v50 = vld [vmem:[%s18335_s5 + $0x180] sm:$0xff]   ;;  %v13175_v61 = vld [vmem:[%s18335_s5 + $0x1c8] sm:$0xff]  }
 0x648   : > { %v13177_v58 = vld [vmem:[%s18335_s5 + $0x348] sm:$0xff]  }
 0x649   : > { %v13176_v46 = vld [vmem:[%s18335_s5 + $0x188] sm:$0xff]  }
 0x6ac   : > { %v13015_v22 = vpop.permute.xlu0 %13014 }
 0x6ad   : > { %v13017_v8 = vunpack.i.h.bf16 %v13015_v22  ;;  %v13016_v56 = vunpack.i.l.bf16 %v13015_v22  ;;  %v13178_v22 = vld [vmem:[%s18335_s5 + $0x308] sm:$0xff]  }
 0x6af   : > { %v17526_v20 = vsel %vm6593_vm14, %v8219_v29, %v13017_v8  ;;  %v17529_v23 = vsel %vm6593_vm14, %v8253_v33, %v13016_v56  ;;  %v13162_v29 = vld [vmem:[%s18335_s5 + $0x228] sm:$0xff]   ;;  %v13173_v33 = vld [vmem:[%s18335_s5 + $0x340] sm:$0xff]   ;;  %v13181_v8 = vld [vmem:[%s18335_s5 + $0x350] sm:$0xff]  }
 0x6b0   : > { %v8406_v6 = vpack.c.bf16 %v17529_v23, %v17529_v23  ;;  %v8405_v9 = vpack.c.bf16 %v17526_v20, %v17526_v20  ;;  %v8350_v34 = vrot.slane %v17529_v23, 1  ;;  %v8349_v1 = vrot.slane %v17526_v20, 1  ;;  %v13180_v56 = vld [vmem:[%s18335_s5 + $0x190] sm:$0xff]  }
 0x6b1   : > { %v8358_v7 = vrot.slane %v17529_v23, 2  ;;  %v8357_v42 = vrot.slane %v17526_v20, 2  ;;  %v8366_v21 = vrot.slane %v17529_v23, 3 }
 0x6b2   : > { %10518 = vmatprep.mubr.bf16.mxu1 %v8406_v6  ;;  %v8410_v2 = vpack.c.bf16 %v8350_v34, %v8350_v34  ;;  %v8409_v25 = vpack.c.bf16 %v8349_v1, %v8349_v1  ;;  %v13183_v6 = vld [vmem:[%s18335_s5 + $0x1d8] sm:$0xff]   ;;  %v13187_v1 = vld [vmem:[%s18335_s5 + $0x1e0] sm:$0xff]  }
 0x6b3   : > { %10519 = vmatmul.mubr.bf16.vlgmr.msra.gmra.mrb[96].mxu1 %v8405_v9  ;;  %v8414_v54 = vpack.c.bf16 %v8358_v7, %v8358_v7  ;;  %v8413_v60 = vpack.c.bf16 %v8357_v42, %v8357_v42  ;;  %v13182_v9 = vld [vmem:[%s18335_s5 + $0x310] sm:$0xff]   ;;  %v13184_v34 = vld [vmem:[%s18335_s5 + $0x198] sm:$0xff]   ;;  %v13189_v7 = vld [vmem:[%s18335_s5 + $0x360] sm:$0xff]  }
 0x6b4   : > { %v17550_v17 = vpop.permute.xlu1 %13019  ;;  %11961 = vmatpush3.bf16.msra.mxu1 %v13140_v32  ;;  %10598 = vmatprep.mubr.bf16.mxu0 %v8410_v2  ;;  %v13185_v32 = vld [vmem:[%s18335_s5 + $0x358] sm:$0xff]   ;;  %v13188_v2 = vld [vmem:[%s18335_s5 + $0x1a0] sm:$0xff]  }
 0x6b5   : > { %v13021_v11 = vunpack.i.l.bf16 %v17550_v17  ;;  %10599 = vmatmul.mubr.bf16.vlgmr.msra.gmra.mrb[128].mxu0 %v8409_v25  ;;  %11962 = vmatprep.subr.bf16.mxu1 %v13143_v49  ;;  %v13022_v19 = vunpack.i.h.bf16 %v17550_v17  ;;  %v13186_v49 = vld [vmem:[%s18335_s5 + $0x318] sm:$0xff]   ;;  %v13191_v25 = vld [vmem:[%s18335_s5 + $0x1e8] sm:$0xff]   ;;  %v13219_v42 = vld [vmem:[%s18335_s5 + $0x2e0] sm:$0xff]  }
 0x6b6   : > { %12027 = vmatpush3.bf16.msra.mxu0 %v13142_v15  ;;  %10678 = vmatprep.mubr.bf16.mxu0 %v8414_v54  ;;  %v13190_v15 = vld [vmem:[%s18335_s5 + $0x320] sm:$0xff]   ;;  %v13192_v17 = vld [vmem:[%s18335_s5 + $0x1a8] sm:$0xff]   ;;  %v13195_v54 = vld [vmem:[%s18335_s5 + $0x1f0] sm:$0xff]  }
 0x6b7   : > { %v17563_v10 = vsel %vm6593_vm14, %v8321_v48, %v13021_v11  ;;  %12028 = vmatprep.subr.bf16.mxu0 %v13145_v38  ;;  %v17639_v44 = vsel %vm6593_vm14, %v17521_v57, %v13022_v19  ;;  %v8418_v57 = vpack.c.bf16 %v8366_v21, %v8366_v21  ;;  %v13179_v48 = vld [vmem:[%s18335_s5 + $0x1d0] sm:$0xff]   ;;  %v13193_v38 = vld [vmem:[%s18335_s5 + $0x368] sm:$0xff]   ;;  %v13220_v21 = vld [vmem:[%s18335_s5 + $0x2a0] sm:$0xff]  }
 0x6b8   : > { %v8408_v40 = vpack.c.bf16 %v17563_v10, %v17563_v10  ;;  %11963 = vmatpush3.bf16.msra.mxu1 %v13144_v4  ;;  %v8352_v41 = vrot.slane %v17563_v10, 1  ;;  %v8407_v24 = vpack.c.bf16 %v17639_v44, %v17639_v44  ;;  %v13194_v4 = vld [vmem:[%s18335_s5 + $0x328] sm:$0xff]   ;;  %v13197_v11 = vld [vmem:[%s18335_s5 + $0x370] sm:$0xff]  }
 0x6b9   : > { %11964 = vmatprep.subr.bf16.mxu1 %v13147_v43  ;;  %v13196_v43 = vld [vmem:[%s18335_s5 + $0x1b0] sm:$0xff]   ;;  %v13210_v19 = vld [vmem:[%s18335_s5 + $0x408] sm:$0xff]  }
 0x6ba   : > { %10558 = vmatprep.mubr.bf16.mxu1 %v8408_v40  ;;  %12029 = vmatpush3.bf16.msra.mxu0 %v13146_v53  ;;  %v8412_v5 = vpack.c.bf16 %v8352_v41, %v8352_v41  ;;  %v13199_v53 = vld [vmem:[%s18335_s5 + $0x1f8] sm:$0xff]  }
 0x6bb   : > { %12030 = vmatprep.subr.bf16.mxu0 %v13149_v27  ;;  %v13198_v27 = vld [vmem:[%s18335_s5 + $0x330] sm:$0xff]   ;;  %v13201_v40 = vld [vmem:[%s18335_s5 + $0x378] sm:$0xff]  }
 0x6bc   : > { %11965 = vmatpush3.bf16.msra.mxu1 %v13148_v51  ;;  %v13200_v51 = vld [vmem:[%s18335_s5 + $0x1b8] sm:$0xff]  }
 0x6bd   : > { %11966 = vmatprep.subr.bf16.mxu1 %v13151_v37  ;;  %v8351_v37 = vrot.slane %v17639_v44, 1  ;;  %v13216_v41 = vld [vmem:[%s18335_s5 + $0x298] sm:$0xff]  }
 0x6be   : > { %12031 = vmatpush3.bf16.msra.mxu0 %v13150_v39  ;;  %v13203_v39 = vld [vmem:[%s18335_s5 + $0x2c0] sm:$0xff]  }
 0x6bf   : > { %12032 = vmatprep.subr.bf16.mxu0 %v13153_v13  ;;  %v13202_v13 = vld [vmem:[%s18335_s5 + $0x338] sm:$0xff]  }
 0x6c0   : > { %11967 = vmatpush3.bf16.msra.mxu1 %v13152_v3  ;;  %v8360_v3 = vrot.slane %v17563_v10, 2 }
 0x6c1   : > { %11968 = vmatprep.subr.bf16.mxu1 %v13155_v35  ;;  %v8365_v35 = vrot.slane %v17526_v20, 3 }
 0x6c2   : > { %12033 = vmatpush3.bf16.msra.mxu0 %v13154_v47  ;;  %v13205_v47 = vld [vmem:[%s18335_s5 + $0x440] sm:$0xff]  }
 0x6c3   : > { %12034 = vmatprep.subr.bf16.mxu0 %v13157_v45  ;;  %v13204_v45 = vld [vmem:[%s18335_s5 + $0x280] sm:$0xff]  }
 0x6c4   : > { %11969 = vmatpush3.bf16.msra.mxu1 %v13156_v52  ;;  %v8374_v52 = vrot.slane %v17529_v23, 4 }
 0x6c5   : > { %11970 = vmatprep.subr.bf16.mxu1 %v13159_v55  ;;  %v8411_v55 = vpack.c.bf16 %v8351_v37, %v8351_v37  ;;  %v13247_v37 = vld [vmem:[%s18335_s5 + $0x3d8] sm:$0xff]  }
 0x6c6   : > { %12035 = vmatpush3.bf16.msra.mxu0 %v13158_v28  ;;  %v13207_v28 = vld [vmem:[%s18335_s5 + $0x2c8] sm:$0xff]  }
 0x6c7   : > { %12036 = vmatprep.subr.bf16.mxu0 %v13161_v63  ;;  %v8416_v63 = vpack.c.bf16 %v8360_v3, %v8360_v3  ;;  %v13248_v3 = vld [vmem:[%s18335_s5 + $0x398] sm:$0xff]  }
 0x6c8   : > { %11971 = vmatpush3.bf16.msra.mxu1 %v13160_v31  ;;  %v13206_v31 = vld [vmem:[%s18335_s5 + $0x400] sm:$0xff]  }
 0x6c9   : > { %11972 = vmatprep.subr.bf16.mxu1 %v13163_v18  ;;  %v8417_v18 = vpack.c.bf16 %v8365_v35, %v8365_v35  ;;  %v13251_v35 = vld [vmem:[%s18335_s5 + $0x3e0] sm:$0xff]  }
 0x6ca   : > { %12037 = vmatpush3.bf16.msra.mxu0 %v13162_v29  ;;  %v13209_v29 = vld [vmem:[%s18335_s5 + $0x448] sm:$0xff]  }
 0x6cb   : > { %12038 = vmatprep.subr.bf16.mxu0 %v13165_v0  ;;  %v8422_v0 = vpack.c.bf16 %v8374_v52, %v8374_v52  ;;  %v13252_v52 = vld [vmem:[%s18335_s5 + $0x3a0] sm:$0xff]  }
 0x6cc   : > { %11973 = vmatpush3.bf16.msra.mxu1 %v13164_v30  ;;  %v13208_v30 = vld [vmem:[%s18335_s5 + $0x288] sm:$0xff]  }
 0x6cd   : > { %11974 = vmatprep.subr.bf16.mxu1 %v13167_v12  ;;  %v13211_v12 = vld [vmem:[%s18335_s5 + $0x2d0] sm:$0xff]  }
 0x6ce   : > { %12039 = vmatpush3.bf16.msra.mxu0 %v13166_v59  ;;  %v13213_v59 = vld [vmem:[%s18335_s5 + $0x450] sm:$0xff]  }
 0x6cf   : > { %12040 = vmatprep.subr.bf16.mxu0 %v13169_v36  ;;  %v13212_v36 = vld [vmem:[%s18335_s5 + $0x290] sm:$0xff]  }
 0x6d0   : > { %11975 = vmatpush3.bf16.msra.mxu1 %v13168_v16  ;;  %v13215_v16 = vld [vmem:[%s18335_s5 + $0x2d8] sm:$0xff]  }
 0x6d1   : > { %12004 = vmatprep.subr.bf16.mxu1 %v13171_v62  ;;  %v13214_v62 = vld [vmem:[%s18335_s5 + $0x410] sm:$0xff]  }
 0x6d2   : > { %12041 = vmatpush3.bf16.msra.mxu0 %v13170_v14  ;;  %v13217_v14 = vld [vmem:[%s18335_s5 + $0x458] sm:$0xff]  }
 0x6d3   : > { %10559 = vmatmul.mubr.bf16.vlgmr.msra.gmra.mrb[100].mxu1 %v8407_v24  ;;  %12070 = vmatprep.subr.bf16.mxu0 %v13173_v33  ;;  %v13218_v33 = vld [vmem:[%s18335_s5 + $0x418] sm:$0xff]   ;;  %v13223_v24 = vld [vmem:[%s18335_s5 + $0x2e8] sm:$0xff]  }
 0x6d4   : > { %12005 = vmatpush3.bf16.msra.mxu1 %v13172_v50  ;;  %10638 = vmatprep.mubr.bf16.mxu1 %v8412_v5  ;;  %v13221_v50 = vld [vmem:[%s18335_s5 + $0x460] sm:$0xff]   ;;  %v13225_v5 = vld [vmem:[%s18335_s5 + $0x468] sm:$0xff]  }
 0x6d5   : > { %10679 = vmatmul.mubr.bf16.vlgmr.msra.gmra.mrb[132].mxu0 %v8413_v60  ;;  %12006 = vmatprep.subr.bf16.mxu1 %v13175_v61  ;;  %v13222_v61 = vld [vmem:[%s18335_s5 + $0x420] sm:$0xff]   ;;  %v13227_v60 = vld [vmem:[%s18335_s5 + $0x2f0] sm:$0xff]  }
 0x6d6   : > { %12071 = vmatpush3.bf16.msra.mxu0 %v13174_v26  ;;  %10758 = vmatprep.mubr.bf16.mxu0 %v8418_v57  ;;  %v13224_v26 = vld [vmem:[%s18335_s5 + $0x2a8] sm:$0xff]   ;;  %v13229_v57 = vld [vmem:[%s18335_s5 + $0x470] sm:$0xff]  }
 0x6d7   : > { %12072 = vmatprep.subr.bf16.mxu0 %v13177_v58  ;;  %v13226_v58 = vld [vmem:[%s18335_s5 + $0x428] sm:$0xff]  }
 0x6d8   : > { %12007 = vmatpush3.bf16.msra.mxu1 %v13176_v46  ;;  %v13228_v46 = vld [vmem:[%s18335_s5 + $0x2b0] sm:$0xff]  }
 0x6d9   : > { %12008 = vmatprep.subr.bf16.mxu1 %v13179_v48  ;;  %v13231_v48 = vld [vmem:[%s18335_s5 + $0x2f8] sm:$0xff]  }
 0x6da   : > { %12073 = vmatpush3.bf16.msra.mxu0 %v13178_v22  ;;  %v13230_v22 = vld [vmem:[%s18335_s5 + $0x430] sm:$0xff]  }
 0x6db   : > { %12074 = vmatprep.subr.bf16.mxu0 %v13181_v8  ;;  %v13233_v8 = vld [vmem:[%s18335_s5 + $0x478] sm:$0xff]  }
 0x6dc   : > { %12009 = vmatpush3.bf16.msra.mxu1 %v13180_v56  ;;  %v13232_v56 = vld [vmem:[%s18335_s5 + $0x2b8] sm:$0xff]  }
 0x6dd   : > { %12010 = vmatprep.subr.bf16.mxu1 %v13183_v6  ;;  %v8359_v6 = vrot.slane %v17639_v44, 2 }
 0x6de   : > { %12075 = vmatpush3.bf16.msra.mxu0 %v13182_v9  ;;  %v13235_v9 = vld [vmem:[%s18335_s5 + $0x3c0] sm:$0xff]  }
 0x6df   : > { %12076 = vmatprep.subr.bf16.mxu0 %v13185_v32  ;;  %v13234_v32 = vld [vmem:[%s18335_s5 + $0x438] sm:$0xff]  }
 0x6e0   : > { %12011 = vmatpush3.bf16.msra.mxu1 %v13184_v34  ;;  %v8368_v34 = vrot.slane %v17563_v10, 3 }
 0x6e1   : > { %12012 = vmatprep.subr.bf16.mxu1 %v13187_v1  ;;  %v8373_v1 = vrot.slane %v17526_v20, 4 }
 0x6e2   : > { %12077 = vmatpush3.bf16.msra.mxu0 %v13186_v49  ;;  %v13237_v49 = vld [vmem:[%s18335_s5 + $0x540] sm:$0xff]  }
 0x6e3   : > { %12078 = vmatprep.subr.bf16.mxu0 %v13189_v7  ;;  %v13236_v7 = vld [vmem:[%s18335_s5 + $0x380] sm:$0xff]  }
 0x6e4   : > { %12013 = vmatpush3.bf16.msra.mxu1 %v13188_v2  ;;  %v8382_v2 = vrot.slane %v17529_v23, 5 }
 0x6e5   : > { %12014 = vmatprep.subr.bf16.mxu1 %v13191_v25  ;;  %v8415_v25 = vpack.c.bf16 %v8359_v6, %v8359_v6  ;;  %v13279_v6 = vld [vmem:[%s18335_s5 + $0x4d8] sm:$0xff]  }
 0x6e6   : > { %12079 = vmatpush3.bf16.msra.mxu0 %v13190_v15  ;;  %v13239_v15 = vld [vmem:[%s18335_s5 + $0x3c8] sm:$0xff]  }
 0x6e7   : > { %12080 = vmatprep.subr.bf16.mxu0 %v13193_v38  ;;  %v8420_v38 = vpack.c.bf16 %v8368_v34, %v8368_v34  ;;  %v13280_v34 = vld [vmem:[%s18335_s5 + $0x498] sm:$0xff]  }
 0x6e8   : > { %12015 = vmatpush3.bf16.msra.mxu1 %v13192_v17  ;;  %v13238_v17 = vld [vmem:[%s18335_s5 + $0x500] sm:$0xff]  }
 0x6e9   : > { %12016 = vmatprep.subr.bf16.mxu1 %v13195_v54  ;;  %v8421_v54 = vpack.c.bf16 %v8373_v1, %v8373_v1  ;;  %v13283_v1 = vld [vmem:[%s18335_s5 + $0x4e0] sm:$0xff]  }
 0x6ea   : > { %12081 = vmatpush3.bf16.msra.mxu0 %v13194_v4  ;;  %v13241_v4 = vld [vmem:[%s18335_s5 + $0x548] sm:$0xff]  }
 0x6eb   : > { %12082 = vmatprep.subr.bf16.mxu0 %v13197_v11  ;;  %v8426_v11 = vpack.c.bf16 %v8382_v2, %v8382_v2  ;;  %v13284_v2 = vld [vmem:[%s18335_s5 + $0x4a0] sm:$0xff]  }
 0x6ec   : > { %12017 = vmatpush3.bf16.msra.mxu1 %v13196_v43  ;;  %v13240_v43 = vld [vmem:[%s18335_s5 + $0x388] sm:$0xff]  }
 0x6ed   : > { %12018 = vmatprep.subr.bf16.mxu1 %v13199_v53  ;;  %v13243_v53 = vld [vmem:[%s18335_s5 + $0x3d0] sm:$0xff]  }
 0x6ee   : > { %12083 = vmatpush3.bf16.msra.mxu0 %v13198_v27  ;;  %v13242_v27 = vld [vmem:[%s18335_s5 + $0x508] sm:$0xff]  }
 0x6ef   : > { %12084 = vmatprep.subr.bf16.mxu0 %v13201_v40  ;;  %v13245_v40 = vld [vmem:[%s18335_s5 + $0x550] sm:$0xff]  }
 0x6f0   : > { %12019 = vmatpush3.bf16.msra.mxu1 %v13200_v51  ;;  %v13244_v51 = vld [vmem:[%s18335_s5 + $0x390] sm:$0xff]  }
 0x6f1   : > { %12048 = vmatprep.subr.bf16.mxu1 %v13203_v39  ;;  %v13246_v39 = vld [vmem:[%s18335_s5 + $0x510] sm:$0xff]  }
 0x6f2   : > { %12085 = vmatpush3.bf16.msra.mxu0 %v13202_v13  ;;  %v13249_v13 = vld [vmem:[%s18335_s5 + $0x558] sm:$0xff]  }
 0x6f3   : > { %10639 = vmatmul.mubr.bf16.vlgmr.msra.gmra.mrb[104].mxu1 %v8411_v55  ;;  %12114 = vmatprep.subr.bf16.mxu0 %v13205_v47  ;;  %v13250_v47 = vld [vmem:[%s18335_s5 + $0x518] sm:$0xff]   ;;  %v13255_v55 = vld [vmem:[%s18335_s5 + $0x3e8] sm:$0xff]  }
 0x6f4   : > { %12049 = vmatpush3.bf16.msra.mxu1 %v13204_v45  ;;  %10718 = vmatprep.mubr.bf16.mxu1 %v8416_v63  ;;  %v13253_v45 = vld [vmem:[%s18335_s5 + $0x560] sm:$0xff]   ;;  %v13257_v63 = vld [vmem:[%s18335_s5 + $0x568] sm:$0xff]  }
 0x6f5   : > { %10759 = vmatmul.mubr.bf16.vlgmr.msra.gmra.mrb[136].mxu0 %v8417_v18  ;;  %12050 = vmatprep.subr.bf16.mxu1 %v13207_v28  ;;  %v13254_v28 = vld [vmem:[%s18335_s5 + $0x520] sm:$0xff]   ;;  %v13259_v18 = vld [vmem:[%s18335_s5 + $0x3f0] sm:$0xff]  }
 0x6f6   : > { %12115 = vmatpush3.bf16.msra.mxu0 %v13206_v31  ;;  %10838 = vmatprep.mubr.bf16.mxu0 %v8422_v0  ;;  %v13256_v31 = vld [vmem:[%s18335_s5 + $0x3a8] sm:$0xff]   ;;  %v13261_v0 = vld [vmem:[%s18335_s5 + $0x570] sm:$0xff]  }
 0x6f7   : > { %12116 = vmatprep.subr.bf16.mxu0 %v13209_v29  ;;  %v13258_v29 = vld [vmem:[%s18335_s5 + $0x528] sm:$0xff]  }
 0x6f8   : > { %12051 = vmatpush3.bf16.msra.mxu1 %v13208_v30  ;;  %v13260_v30 = vld [vmem:[%s18335_s5 + $0x3b0] sm:$0xff]  }
 0x6f9   : > { %12052 = vmatprep.subr.bf16.mxu1 %v13211_v12  ;;  %v13263_v12 = vld [vmem:[%s18335_s5 + $0x3f8] sm:$0xff]  }
 0x6fa   : > { %12117 = vmatpush3.bf16.msra.mxu0 %v13210_v19  ;;  %v13262_v19 = vld [vmem:[%s18335_s5 + $0x530] sm:$0xff]  }
 0x6fb   : > { %12118 = vmatprep.subr.bf16.mxu0 %v13213_v59  ;;  %v13265_v59 = vld [vmem:[%s18335_s5 + $0x578] sm:$0xff]  }
 0x6fc   : > { %12053 = vmatpush3.bf16.msra.mxu1 %v13212_v36  ;;  %v13264_v36 = vld [vmem:[%s18335_s5 + $0x3b8] sm:$0xff]  }
 0x6fd   : > { %12054 = vmatprep.subr.bf16.mxu1 %v13215_v16  ;;  %v8367_v16 = vrot.slane %v17639_v44, 3 }
 0x6fe   : > { %12119 = vmatpush3.bf16.msra.mxu0 %v13214_v62  ;;  %v13267_v62 = vld [vmem:[%s18335_s5 + $0x4c0] sm:$0xff]  }
 0x6ff   : > { %12120 = vmatprep.subr.bf16.mxu0 %v13217_v14  ;;  %v13266_v14 = vld [vmem:[%s18335_s5 + $0x538] sm:$0xff]  }
 0x700   : > { %12055 = vmatpush3.bf16.msra.mxu1 %v13216_v41  ;;  %v8376_v41 = vrot.slane %v17563_v10, 4 }
 0x701   : > { %12056 = vmatprep.subr.bf16.mxu1 %v13219_v42  ;;  %v8381_v42 = vrot.slane %v17526_v20, 5 }
 0x702   : > { %12121 = vmatpush3.bf16.msra.mxu0 %v13218_v33  ;;  %v13269_v33 = vld [vmem:[%s18335_s5 + $0x640] sm:$0xff]  }
 0x703   : > { %12122 = vmatprep.subr.bf16.mxu0 %v13221_v50  ;;  %v13268_v50 = vld [vmem:[%s18335_s5 + $0x480] sm:$0xff]  }
 0x704   : > { %12057 = vmatpush3.bf16.msra.mxu1 %v13220_v21  ;;  %v8390_v21 = vrot.slane %v17529_v23, 6 }
 0x705   : > { %12058 = vmatprep.subr.bf16.mxu1 %v13223_v24  ;;  %v8419_v24 = vpack.c.bf16 %v8367_v16, %v8367_v16  ;;  %v13310_v16 = vld [vmem:[%s18335_s5 + $0x710] sm:$0xff]  }
 0x706   : > { %12123 = vmatpush3.bf16.msra.mxu0 %v13222_v61  ;;  %v13271_v61 = vld [vmem:[%s18335_s5 + $0x4c8] sm:$0xff]  }
 0x707   : > { %12124 = vmatprep.subr.bf16.mxu0 %v13225_v5  ;;  %v8424_v5 = vpack.c.bf16 %v8376_v41, %v8376_v41  ;;  %v13315_v41 = vld [vmem:[%s18335_s5 + $0x5e0] sm:$0xff]  }
 0x708   : > { %12059 = vmatpush3.bf16.msra.mxu1 %v13224_v26  ;;  %v13270_v26 = vld [vmem:[%s18335_s5 + $0x600] sm:$0xff]  }
 0x709   : > { %12060 = vmatprep.subr.bf16.mxu1 %v13227_v60  ;;  %v8425_v60 = vpack.c.bf16 %v8381_v42, %v8381_v42  ;;  %v13314_v42 = vld [vmem:[%s18335_s5 + $0x718] sm:$0xff]  }
 0x70a   : > { %12125 = vmatpush3.bf16.msra.mxu0 %v13226_v58  ;;  %v13273_v58 = vld [vmem:[%s18335_s5 + $0x648] sm:$0xff]  }
 0x70b   : > { %12126 = vmatprep.subr.bf16.mxu0 %v13229_v57  ;;  %v8430_v57 = vpack.c.bf16 %v8390_v21, %v8390_v21  ;;  %v13319_v21 = vld [vmem:[%s18335_s5 + $0x5e8] sm:$0xff]  }
 0x70c   : > { %12061 = vmatpush3.bf16.msra.mxu1 %v13228_v46  ;;  %v13272_v46 = vld [vmem:[%s18335_s5 + $0x488] sm:$0xff]  }
 0x70d   : > { %12062 = vmatprep.subr.bf16.mxu1 %v13231_v48  ;;  %v13275_v48 = vld [vmem:[%s18335_s5 + $0x4d0] sm:$0xff]  }
 0x70e   : > { %12127 = vmatpush3.bf16.msra.mxu0 %v13230_v22  ;;  %v13274_v22 = vld [vmem:[%s18335_s5 + $0x608] sm:$0xff]  }
 0x70f   : > { %12128 = vmatprep.subr.bf16.mxu0 %v13233_v8  ;;  %v13277_v8 = vld [vmem:[%s18335_s5 + $0x650] sm:$0xff]  }
 0x710   : > { %12063 = vmatpush3.bf16.msra.mxu1 %v13232_v56  ;;  %v13276_v56 = vld [vmem:[%s18335_s5 + $0x490] sm:$0xff]  }
 0x711   : > { %12092 = vmatprep.subr.bf16.mxu1 %v13235_v9  ;;  %v13278_v9 = vld [vmem:[%s18335_s5 + $0x610] sm:$0xff]  }
 0x712   : > { %12129 = vmatpush3.bf16.msra.mxu0 %v13234_v32  ;;  %v13281_v32 = vld [vmem:[%s18335_s5 + $0x658] sm:$0xff]  }
 0x713   : > { %10719 = vmatmul.mubr.bf16.vlgmr.msra.gmra.mrb[108].mxu1 %v8415_v25  ;;  %12158 = vmatprep.subr.bf16.mxu0 %v13237_v49  ;;  %v13282_v49 = vld [vmem:[%s18335_s5 + $0x618] sm:$0xff]   ;;  %v13287_v25 = vld [vmem:[%s18335_s5 + $0x4e8] sm:$0xff]  }
 0x714   : > { %12093 = vmatpush3.bf16.msra.mxu1 %v13236_v7  ;;  %10798 = vmatprep.mubr.bf16.mxu1 %v8420_v38  ;;  %v13285_v7 = vld [vmem:[%s18335_s5 + $0x660] sm:$0xff]   ;;  %v13289_v38 = vld [vmem:[%s18335_s5 + $0x668] sm:$0xff]  }
 0x715   : > { %10839 = vmatmul.mubr.bf16.vlgmr.msra.gmra.mrb[140].mxu0 %v8421_v54  ;;  %12094 = vmatprep.subr.bf16.mxu1 %v13239_v15  ;;  %v13286_v15 = vld [vmem:[%s18335_s5 + $0x620] sm:$0xff]   ;;  %v13291_v54 = vld [vmem:[%s18335_s5 + $0x4f0] sm:$0xff]  }
 0x716   : > { %12159 = vmatpush3.bf16.msra.mxu0 %v13238_v17  ;;  %10918 = vmatprep.mubr.bf16.mxu0 %v8426_v11  ;;  %v13288_v17 = vld [vmem:[%s18335_s5 + $0x4a8] sm:$0xff]   ;;  %v13293_v11 = vld [vmem:[%s18335_s5 + $0x670] sm:$0xff]  }
 0x717   : > { %12160 = vmatprep.subr.bf16.mxu0 %v13241_v4  ;;  %v13290_v4 = vld [vmem:[%s18335_s5 + $0x628] sm:$0xff]  }
 0x718   : > { %12095 = vmatpush3.bf16.msra.mxu1 %v13240_v43  ;;  %v13292_v43 = vld [vmem:[%s18335_s5 + $0x4b0] sm:$0xff]  }
 0x719   : > { %12096 = vmatprep.subr.bf16.mxu1 %v13243_v53  ;;  %v13295_v53 = vld [vmem:[%s18335_s5 + $0x4f8] sm:$0xff]  }
 0x71a   : > { %12161 = vmatpush3.bf16.msra.mxu0 %v13242_v27  ;;  %v13294_v27 = vld [vmem:[%s18335_s5 + $0x630] sm:$0xff]  }
 0x71b   : > { %12162 = vmatprep.subr.bf16.mxu0 %v13245_v40  ;;  %v13297_v40 = vld [vmem:[%s18335_s5 + $0x678] sm:$0xff]  }
 0x71c   : > { %12097 = vmatpush3.bf16.msra.mxu1 %v13244_v51  ;;  %v13296_v51 = vld [vmem:[%s18335_s5 + $0x4b8] sm:$0xff]  }
 0x71d   : > { %12098 = vmatprep.subr.bf16.mxu1 %v13247_v37  ;;  %v8375_v37 = vrot.slane %v17639_v44, 4 }
 0x71e   : > { %12163 = vmatpush3.bf16.msra.mxu0 %v13246_v39  ;;  %v13299_v39 = vld [vmem:[%s18335_s5 + $0x5c0] sm:$0xff]  }
 0x71f   : > { %12164 = vmatprep.subr.bf16.mxu0 %v13249_v13  ;;  %v13298_v13 = vld [vmem:[%s18335_s5 + $0x638] sm:$0xff]  }
 0x720   : > { %12099 = vmatpush3.bf16.msra.mxu1 %v13248_v3  ;;  %v8384_v3 = vrot.slane %v17563_v10, 5 }
 0x721   : > { %12100 = vmatprep.subr.bf16.mxu1 %v13251_v35  ;;  %v8389_v35 = vrot.slane %v17526_v20, 6 }
 0x722   : > { %12165 = vmatpush3.bf16.msra.mxu0 %v13250_v47  ;;  %v13301_v47 = vld [vmem:[%s18335_s5 + $0x740] sm:$0xff]  }
 0x723   : > { %12166 = vmatprep.subr.bf16.mxu0 %v13253_v45  ;;  %v13300_v45 = vld [vmem:[%s18335_s5 + $0x580] sm:$0xff]  }
 0x724   : > { %12101 = vmatpush3.bf16.msra.mxu1 %v13252_v52  ;;  %v8398_v52 = vrot.slane %v17529_v23, 7 }
 0x725   : > { %12102 = vmatprep.subr.bf16.mxu1 %v13255_v55  ;;  %v8423_v55 = vpack.c.bf16 %v8375_v37, %v8375_v37 }
 0x726   : > { %12167 = vmatpush3.bf16.msra.mxu0 %v13254_v28  ;;  %v13303_v28 = vld [vmem:[%s18335_s5 + $0x5c8] sm:$0xff]   ;;  %v8434_v23 = vpack.c.bf16 %v8398_v52, %v8398_v52  ;;  %v13345_v52 = vld [vmem:[%s18335_s5 + $0x6f8] sm:$0xff]  }
 0x727   : > { %12168 = vmatprep.subr.bf16.mxu0 %v13257_v63  ;;  %v8428_v63 = vpack.c.bf16 %v8384_v3, %v8384_v3 }
 0x728   : > { %12103 = vmatpush3.bf16.msra.mxu1 %v13256_v31  ;;  %v13302_v31 = vld [vmem:[%s18335_s5 + $0x700] sm:$0xff]  }
 0x729   : > { %12104 = vmatprep.subr.bf16.mxu1 %v13259_v18  ;;  %v8429_v18 = vpack.c.bf16 %v8389_v35, %v8389_v35  ;;  %v13344_v35 = vld [vmem:[%s18335_s5 + $0x6b0] sm:$0xff]  }
 0x72a   : > { %12169 = vmatpush3.bf16.msra.mxu0 %v13258_v29  ;;  %v13305_v29 = vld [vmem:[%s18335_s5 + $0x748] sm:$0xff]  }
 0x72b   : > { %12170 = vmatprep.subr.bf16.mxu0 %v13261_v0  ;;  %v13304_v0 = vld [vmem:[%s18335_s5 + $0x588] sm:$0xff]  }
 0x72c   : > { %12105 = vmatpush3.bf16.msra.mxu1 %v13260_v30  ;;  %v13307_v30 = vld [vmem:[%s18335_s5 + $0x5d0] sm:$0xff]  }
 0x72d   : > { %12106 = vmatprep.subr.bf16.mxu1 %v13263_v12  ;;  %v13306_v12 = vld [vmem:[%s18335_s5 + $0x708] sm:$0xff]  }
 0x72e   : > { %12171 = vmatpush3.bf16.msra.mxu0 %v13262_v19  ;;  %v13309_v19 = vld [vmem:[%s18335_s5 + $0x750] sm:$0xff]  }
 0x72f   : > { %12172 = vmatprep.subr.bf16.mxu0 %v13265_v59  ;;  %v13308_v59 = vld [vmem:[%s18335_s5 + $0x590] sm:$0xff]  }
 0x730   : > { %12107 = vmatpush3.bf16.msra.mxu1 %v13264_v36  ;;  %v13311_v36 = vld [vmem:[%s18335_s5 + $0x5d8] sm:$0xff]  }
 0x731   : > { %12136 = vmatprep.subr.bf16.mxu1 %v13267_v62  ;;  %v13313_v62 = vld [vmem:[%s18335_s5 + $0x758] sm:$0xff]  }
 0x732   : > { %12173 = vmatpush3.bf16.msra.mxu0 %v13266_v14  ;;  %v13312_v14 = vld [vmem:[%s18335_s5 + $0x598] sm:$0xff]  }
 0x733   : > { %10799 = vmatmul.mubr.bf16.vlgmr.msra.gmra.mrb[112].mxu1 %v8419_v24  ;;  %12202 = vmatprep.subr.bf16.mxu0 %v13269_v33  ;;  %v13317_v33 = vld [vmem:[%s18335_s5 + $0x760] sm:$0xff]  }
 0x734   : > { %12137 = vmatpush3.bf16.msra.mxu1 %v13268_v50  ;;  %10878 = vmatprep.mubr.bf16.mxu1 %v8424_v5  ;;  %v13316_v50 = vld [vmem:[%s18335_s5 + $0x5a0] sm:$0xff]   ;;  %v13320_v5 = vld [vmem:[%s18335_s5 + $0x5a8] sm:$0xff]  }
 0x735   : > { %10919 = vmatmul.mubr.bf16.vlgmr.msra.gmra.mrb[144].mxu0 %v8425_v60  ;;  %12138 = vmatprep.subr.bf16.mxu1 %v13271_v61  ;;  %v13318_v24 = vld [vmem:[%s18335_s5 + $0x720] sm:$0xff]   ;;  %v13321_v61 = vld [vmem:[%s18335_s5 + $0x768] sm:$0xff]  }
 0x736   : > { %12203 = vmatpush3.bf16.msra.mxu0 %v13270_v26  ;;  %10998 = vmatprep.mubr.bf16.mxu0 %v8430_v57  ;;  %v13323_v26 = vld [vmem:[%s18335_s5 + $0x5f0] sm:$0xff]   ;;  %v13322_v60 = vld [vmem:[%s18335_s5 + $0x728] sm:$0xff]  }
 0x737   : > { %12204 = vmatprep.subr.bf16.mxu0 %v13273_v58  ;;  %v13325_v58 = vld [vmem:[%s18335_s5 + $0x770] sm:$0xff]  }
 0x738   : > { %12139 = vmatpush3.bf16.msra.mxu1 %v13272_v46  ;;  %v13324_v57 = vld [vmem:[%s18335_s5 + $0x5b0] sm:$0xff]   ;;  %v13327_v46 = vld [vmem:[%s18335_s5 + $0x5f8] sm:$0xff]  }
 0x739   : > { %12140 = vmatprep.subr.bf16.mxu1 %v13275_v48  ;;  %v13326_v48 = vld [vmem:[%s18335_s5 + $0x730] sm:$0xff]  }
 0x73a   : > { %12205 = vmatpush3.bf16.msra.mxu0 %v13274_v22  ;;  %v13329_v22 = vld [vmem:[%s18335_s5 + $0x778] sm:$0xff]  }
 0x73b   : > { %12206 = vmatprep.subr.bf16.mxu0 %v13277_v8  ;;  %v13328_v8 = vld [vmem:[%s18335_s5 + $0x5b8] sm:$0xff]  }
 0x73c   : > { %12141 = vmatpush3.bf16.msra.mxu1 %v13276_v56  ;;  %v8383_v56 = vrot.slane %v17639_v44, 5 }
 0x73d   : > { %12142 = vmatprep.subr.bf16.mxu1 %v13279_v6  ;;  %v13331_v6 = vld [vmem:[%s18335_s5 + $0x6c0] sm:$0xff]  }
 0x73e   : > { %12207 = vmatpush3.bf16.msra.mxu0 %v13278_v9  ;;  %v13330_v9 = vld [vmem:[%s18335_s5 + $0x738] sm:$0xff]  }
 0x73f   : > { %12208 = vmatprep.subr.bf16.mxu0 %v13281_v32  ;;  %v8392_v32 = vrot.slane %v17563_v10, 6 }
 0x740   : > { %12143 = vmatpush3.bf16.msra.mxu1 %v13280_v34  ;;  %v8397_v34 = vrot.slane %v17526_v20, 7  ;;  %v13334_v20 = vld [vmem:[%s18335_s5 + $0x688] sm:$0xff]  }
 0x741   : > { %12144 = vmatprep.subr.bf16.mxu1 %v13283_v1  ;;  %v13332_v1 = vld [vmem:[%s18335_s5 + $0x680] sm:$0xff]  }
 0x742   : > { %12209 = vmatpush3.bf16.msra.mxu0 %v13282_v49  ;;  %v8427_v49 = vpack.c.bf16 %v8383_v56, %v8383_v56 }
 0x743   : > { %12210 = vmatprep.subr.bf16.mxu0 %v13285_v7  ;;  %v13333_v7 = vld [vmem:[%s18335_s5 + $0x6c8] sm:$0xff]  }
 0x744   : > { %12145 = vmatpush3.bf16.msra.mxu1 %v13284_v2  ;;  %v8432_v2 = vpack.c.bf16 %v8392_v32, %v8392_v32  ;;  %v13362_v32 = vld [vmem:[%s18335_s5 + $0x7b8] sm:$0xff]  }
 0x745   : > { %12146 = vmatprep.subr.bf16.mxu1 %v13287_v25  ;;  %v8433_v25 = vpack.c.bf16 %v8397_v34, %v8397_v34 }
 0x746   : > { %12211 = vmatpush3.bf16.msra.mxu0 %v13286_v15  ;;  %v18601_v15 = vmov 0.0  }
 0x747   : > { %12212 = vmatprep.subr.bf16.mxu0 %v13289_v38  ;;  %v13335_v38 = vld [vmem:[%s18335_s5 + $0x6d0] sm:$0xff]  }
 0x748   : > { %12147 = vmatpush3.bf16.msra.mxu1 %v13288_v17  ;;  %v13336_v17 = vld [vmem:[%s18335_s5 + $0x690] sm:$0xff]  }
 0x749   : > { %12148 = vmatprep.subr.bf16.mxu1 %v13291_v54  ;;  %v13337_v54 = vld [vmem:[%s18335_s5 + $0x6d8] sm:$0xff]  }
 0x74a   : > { %12213 = vmatpush3.bf16.msra.mxu0 %v13290_v4  ;;  %v13338_v4 = vld [vmem:[%s18335_s5 + $0x698] sm:$0xff]  }
 0x74b   : > { %12214 = vmatprep.subr.bf16.mxu0 %v13293_v11  ;;  %v13339_v11 = vld [vmem:[%s18335_s5 + $0x6e0] sm:$0xff]  }
 0x74c   : > { %12149 = vmatpush3.bf16.msra.mxu1 %v13292_v43  ;;  %v13340_v43 = vld [vmem:[%s18335_s5 + $0x6a0] sm:$0xff]  }
 0x74d   : > { %12150 = vmatprep.subr.bf16.mxu1 %v13295_v53  ;;  %v13341_v53 = vld [vmem:[%s18335_s5 + $0x6e8] sm:$0xff]  }
 0x74e   : > { %12215 = vmatpush3.bf16.msra.mxu0 %v13294_v27  ;;  %v13342_v27 = vld [vmem:[%s18335_s5 + $0x6a8] sm:$0xff]  }
 0x74f   : > { %12216 = vmatprep.subr.bf16.mxu0 %v13297_v40  ;;  %v13343_v40 = vld [vmem:[%s18335_s5 + $0x6f0] sm:$0xff]  }
 0x750   : > { %12151 = vmatpush3.bf16.msra.mxu1 %v13296_v51 }
 0x751   : > { %12180 = vmatprep.subr.bf16.mxu1 %v13299_v39 }
 0x752   : > { %12217 = vmatpush3.bf16.msra.mxu0 %v13298_v13 }
 0x753   : > { %10879 = vmatmul.mubr.bf16.vlgmr.msra.gmra.mrb[116].mxu1 %v8423_v55  ;;  %12246 = vmatprep.subr.bf16.mxu0 %v13301_v47 }
 0x754   : > { %12181 = vmatpush3.bf16.msra.mxu1 %v13300_v45  ;;  %10958 = vmatprep.mubr.bf16.mxu1 %v8428_v63 }
 0x755   : > { %10999 = vmatmul.mubr.bf16.vlgmr.msra.gmra.mrb[148].mxu0 %v8429_v18  ;;  %12182 = vmatprep.subr.bf16.mxu1 %v13303_v28  ;;  %v8391_v18 = vrot.slane %v17639_v44, 6 }
 0x756   : > { %12247 = vmatpush3.bf16.msra.mxu0 %v13302_v31  ;;  %11078 = vmatprep.mubr.bf16.mxu0 %v8434_v23  ;;  %v13346_v31 = vld [vmem:[%s18335_s5 + $0x6b8] sm:$0xff]   ;;  %v8400_v23 = vrot.slane %v17563_v10, 7  ;;  %v13351_v10 = vld [vmem:[%s18335_s5 + $0x7d0] sm:$0xff]  }
 0x757   : > { %12248 = vmatprep.subr.bf16.mxu0 %v13305_v29  ;;  %v13347_v29 = vld [vmem:[%s18335_s5 + $0x7c0] sm:$0xff]  }
 0x758   : > { %12183 = vmatpush3.bf16.msra.mxu1 %v13304_v0  ;;  %v13348_v0 = vld [vmem:[%s18335_s5 + $0x780] sm:$0xff]  }
 0x759   : > { %12184 = vmatprep.subr.bf16.mxu1 %v13307_v30  ;;  %v8431_v30 = vpack.c.bf16 %v8391_v18, %v8391_v18  ;;  %v13366_v18 = vld [vmem:[%s18337_s7 + $0x18] sm:$0xff]  }
 0x75a   : > { %12249 = vmatpush3.bf16.msra.mxu0 %v13306_v12  ;;  %v13349_v12 = vld [vmem:[%s18335_s5 + $0x7c8] sm:$0xff]  }
 0x75b   : > { %12250 = vmatprep.subr.bf16.mxu0 %v13309_v19  ;;  %v8436_v19 = vpack.c.bf16 %v8400_v23, %v8400_v23  ;;  %v13368_v23 = vld [vmem:[%s18337_s7 + $0x28] sm:$0xff]  }
 0x75c   : > { %12185 = vmatpush3.bf16.msra.mxu1 %v13308_v59  ;;  %v13350_v59 = vld [vmem:[%s18335_s5 + $0x788] sm:$0xff]  }
 0x75d   : > { %12186 = vmatprep.subr.bf16.mxu1 %v13311_v36  ;;  %v13352_v36 = vld [vmem:[%s18335_s5 + $0x790] sm:$0xff]  }
 0x75e   : > { %12251 = vmatpush3.bf16.msra.mxu0 %v13310_v16  ;;  %v13353_v16 = vld [vmem:[%s18335_s5 + $0x7d8] sm:$0xff]  }
 0x75f   : > { %12252 = vmatprep.subr.bf16.mxu0 %v13313_v62  ;;  %v13354_v62 = vld [vmem:[%s18335_s5 + $0x798] sm:$0xff]  }
 0x760   : > { %12187 = vmatpush3.bf16.msra.mxu1 %v13312_v14  ;;  %v13355_v14 = vld [vmem:[%s18335_s5 + $0x7e0] sm:$0xff]  }
 0x761   : > { %12188 = vmatprep.subr.bf16.mxu1 %v13315_v41  ;;  %v13356_v41 = vld [vmem:[%s18335_s5 + $0x7a0] sm:$0xff]  }
 0x762   : > { %12253 = vmatpush3.bf16.msra.mxu0 %v13314_v42  ;;  %v13357_v42 = vld [vmem:[%s18335_s5 + $0x7e8] sm:$0xff]  }
 0x763   : > { %12254 = vmatprep.subr.bf16.mxu0 %v13317_v33  ;;  %v13358_v33 = vld [vmem:[%s18335_s5 + $0x7a8] sm:$0xff]  }
 0x764   : > { %12189 = vmatpush3.bf16.msra.mxu1 %v13316_v50  ;;  %v8949_v50 = vld [vmem:[%s18336_s6] sm:$0x1] }
 0x765   : > { %12190 = vmatprep.subr.bf16.mxu1 %v13319_v21  ;;  %v13359_v21 = vld [vmem:[%s18335_s5 + $0x7f0] sm:$0xff]  }
 0x766   : > { %12255 = vmatpush3.bf16.msra.mxu0 %v13318_v24 }
 0x767   : > { %12256 = vmatprep.subr.bf16.mxu0 %v13321_v61 }
 0x768   : > { %12191 = vmatpush3.bf16.msra.mxu1 %v13320_v5 }
 0x769   : > { %12192 = vmatprep.subr.bf16.mxu1 %v13323_v26 }
 0x76a   : > { %12257 = vmatpush3.bf16.msra.mxu0 %v13322_v60 }
 0x76b   : > { %12258 = vmatprep.subr.bf16.mxu0 %v13325_v58 }
 0x76c   : > { %12193 = vmatpush3.bf16.msra.mxu1 %v13324_v57  ;;  %v13360_v57 = vld [vmem:[%s18335_s5 + $0x7b0] sm:$0xff]  }
 0x76d   : > { %12194 = vmatprep.subr.bf16.mxu1 %v13327_v46 }
 0x76e   : > { %12259 = vmatpush3.bf16.msra.mxu0 %v13326_v48 }
 0x76f   : > { %12260 = vmatprep.subr.bf16.mxu0 %v13329_v22  ;;  %v13361_v22 = vld [vmem:[%s18335_s5 + $0x7f8] sm:$0xff]  }
 0x770   : > { %12195 = vmatpush3.bf16.msra.mxu1 %v13328_v8 }
 0x771   : > { %12224 = vmatprep.subr.bf16.mxu1 %v13331_v6 }
 0x772   : > { %12261 = vmatpush3.bf16.msra.mxu0 %v13330_v9 }
 0x773   : > { %10959 = vmatmul.mubr.bf16.vlgmr.msra.gmra.mrb[120].mxu1 %v8427_v49  ;;  %12467 = vmatprep.subr.bf16.mxu0 %v18601_v15 }
 0x774   : > { %12225 = vmatpush3.bf16.msra.mxu1 %v13332_v1  ;;  %11038 = vmatprep.mubr.bf16.mxu1 %v8432_v2  ;;  %v8399_v1 = vrot.slane %v17639_v44, 7 }
 0x775   : > { %11079 = vmatmul.mubr.bf16.vlgmr.msra.gmra.mrb[152].mxu0 %v8433_v25  ;;  %12226 = vmatprep.subr.bf16.mxu1 %v13333_v7 }
 0x776   : > { %v8435_v49 = vpack.c.bf16 %v8399_v1, %v8399_v1  ;;  %12483 = vmatprep.mubr.msk.bf16.mxu0 %vm13477_vm1, %v18601_v15 }
 0x778   : > { %12227 = vmatpush3.bf16.msra.mxu1 %v13334_v20 }
 0x779   : > { %12228 = vmatprep.subr.bf16.mxu1 %v13335_v38 }
 0x77c   : > { %12229 = vmatpush3.bf16.msra.mxu1 %v13336_v17 }
 0x77d   : > { %12230 = vmatprep.subr.bf16.mxu1 %v13337_v54 }
 0x780   : > { %12231 = vmatpush3.bf16.msra.mxu1 %v13338_v4 }
 0x781   : > { %12232 = vmatprep.subr.bf16.mxu1 %v13339_v11 }
 0x784   : > { %12233 = vmatpush3.bf16.msra.mxu1 %v13340_v43 }
 0x785   : > { %12234 = vmatprep.subr.bf16.mxu1 %v13341_v53 }
 0x786   : > { %v11954_v51 = vpop.f32.mrb[96].mxu1 }
 0x787   : > { %v11955_v37 = vpop.f32.mrb[97].mxu1 }
 0x788   : > { %v11956_v39 = vadd.f32 %v11955_v37, %v11954_v51  ;;  %12235 = vmatpush3.bf16.msra.mxu1 %v13342_v27  ;;  %v11957_v13 = vpop.f32.mrb[98].mxu1  ;;  %v11998_v3 = vpop.f32.mrb[128].mxu0 }
 0x789   : > { %v11958_v47 = vpop.f32.mrb[99].mxu1  ;;  %v11999_v45 = vpop.f32.mrb[129].mxu0  ;;  %12236 = vmatprep.subr.bf16.mxu1 %v13343_v40 }
 0x78a   : > { %v12000_v55 = vadd.f32 %v11999_v45, %v11998_v3  ;;  %v12001_v28 = vpop.f32.mrb[130].mxu0  ;;  %v10521_v5 = vadd.f32 %v11956_v39, %v8949_v50  ;;  %v13370_v50 = vld [vmem:[%s18337_s7 + $0x38] sm:$0xff]  }
 0x78b   : > { %v12002_v63 = vpop.f32.mrb[131].mxu0 }
 0x78c   : > { %12237 = vmatpush3.bf16.msra.mxu1 %v13344_v35  ;;  %v13364_v63 = vld [vmem:[%s18337_s7 + $0x8] sm:$0xff]  }
 0x78d   : > { %12238 = vmatprep.subr.bf16.mxu1 %v13345_v52  ;;  %v13363_v52 = vld [vmem:[%s18337_s7] sm:$0xff]  }
 0x78e   : > { %12468 = vmatpush3.bf16.msra.mxu0 %v13363_v52 }
 0x78f   : > { %12469 = vmatprep.subr.bf16.mxu0 %v18601_v15 }
 0x790   : > { %12239 = vmatpush3.bf16.msra.mxu1 %v13346_v31  ;;  %v13365_v31 = vld [vmem:[%s18337_s7 + $0x10] sm:$0xff]  }
 0x791   : > { %12268 = vmatprep.subr.bf16.mxu1 %v13347_v29  ;;  %v13367_v29 = vld [vmem:[%s18337_s7 + $0x20] sm:$0xff]  }
 0x792   : > { %12470 = vmatpush3.bf16.msra.mxu0 %v13364_v63 }
 0x793   : > { %11039 = vmatmul.mubr.bf16.vlgmr.msra.gmra.mrb[124].mxu1 %v8431_v30  ;;  %12471 = vmatprep.subr.bf16.mxu0 %v18601_v15 }
 0x794   : > { %12269 = vmatpush3.bf16.msra.mxu1 %v13348_v0  ;;  %11118 = vmatprep.mubr.bf16.mxu1 %v8436_v19 }
 0x795   : > { %12270 = vmatprep.subr.bf16.mxu1 %v13349_v12 }
 0x796   : > { %12472 = vmatpush3.bf16.msra.mxu0 %v13365_v31 }
 0x797   : > { %12473 = vmatprep.subr.bf16.mxu0 %v18601_v15 }
 0x798   : > { %12271 = vmatpush3.bf16.msra.mxu1 %v13350_v59 }
 0x799   : > { %12272 = vmatprep.subr.bf16.mxu1 %v13351_v10 }
 0x79a   : > { %12474 = vmatpush3.bf16.msra.mxu0 %v13366_v18 }
 0x79b   : > { %12475 = vmatprep.subr.bf16.mxu0 %v18601_v15 }
 0x79c   : > { %12273 = vmatpush3.bf16.msra.mxu1 %v13352_v36 }
 0x79d   : > { %12274 = vmatprep.subr.bf16.mxu1 %v13353_v16 }
 0x79e   : > { %12476 = vmatpush3.bf16.msra.mxu0 %v13367_v29 }
 0x79f   : > { %12477 = vmatprep.subr.bf16.mxu0 %v18601_v15 }
 0x7a0   : > { %12275 = vmatpush3.bf16.msra.mxu1 %v13354_v62 }
 0x7a1   : > { %12276 = vmatprep.subr.bf16.mxu1 %v13355_v14 }
 0x7a2   : > { %12478 = vmatpush3.bf16.msra.mxu0 %v13368_v23 }
 0x7a3   : > { %12479 = vmatprep.subr.bf16.mxu0 %v18601_v15 }
 0x7a4   : > { %12277 = vmatpush3.bf16.msra.mxu1 %v13356_v41 }
 0x7a5   : > { %12278 = vmatprep.subr.bf16.mxu1 %v13357_v42 }
 0x7a6   : > { %v11976_v24 = vpop.f32.mrb[100].mxu1 }
 0x7a7   : > { %v11977_v61 = vpop.f32.mrb[101].mxu1 }
 0x7a8   : > { %v11978_v26 = vadd.f32 %v11977_v61, %v11976_v24  ;;  %v11979_v60 = vpop.f32.mrb[102].mxu1  ;;  %v12042_v58 = vpop.f32.mrb[132].mxu0  ;;  %12279 = vmatpush3.bf16.msra.mxu1 %v13358_v33  ;;  %v13369_v33 = vld [vmem:[%s18337_s7 + $0x30] sm:$0xff]  }
 0x7a9   : > { %v11980_v46 = vpop.f32.mrb[103].mxu1  ;;  %v12043_v48 = vpop.f32.mrb[133].mxu0  ;;  %12280 = vmatprep.subr.bf16.mxu1 %v13359_v21  ;;  %12480 = vmatpush3.bf16.msra.mxu0 %v13369_v33 }
 0x7aa   : > { %v10561_v8 = vadd.f32 %v11978_v26, %v10521_v5  ;;  %v12044_v56 = vadd.f32 %v12043_v48, %v12042_v58  ;;  %v12045_v6 = vpop.f32.mrb[134].mxu0  ;;  %12481 = vmatprep.subr.bf16.mxu0 %v18601_v15 }
 0x7ab   : > { %v12046_v9 = vpop.f32.mrb[135].mxu0 }
 0x7ac   : > { %12281 = vmatpush3.bf16.msra.mxu1 %v13360_v57  ;;  %v10601_v34 = vadd.f32 %v12000_v55, %v10561_v8 }
 0x7ad   : > { %12282 = vmatprep.subr.bf16.mxu1 %v13361_v22  ;;  %12482 = vmatpush3.bf16.msra.mxu0 %v13370_v50 }
 0x7b0   : > { %12283 = vmatpush3.bf16.msra.mxu1 %v13362_v32 }
 0x7b3   : > { %11119 = vmatmul.mubr.bf16.vlgmr.msra.gmra.mrb[128].mxu1 %v8435_v49 }
 0x7c6   : > { %v12020_v7 = vpop.f32.mrb[104].mxu1 }
 0x7c7   : > { %v12021_v2 = vpop.f32.mrb[105].mxu1 }
 0x7c8   : > { %v12022_v25 = vadd.f32 %v12021_v2, %v12020_v7  ;;  %v12023_v20 = vpop.f32.mrb[106].mxu1  ;;  %v12086_v38 = vpop.f32.mrb[136].mxu0 }
 0x7c9   : > { %v12024_v17 = vpop.f32.mrb[107].mxu1  ;;  %v12087_v54 = vpop.f32.mrb[137].mxu0 }
 0x7ca   : > { %v10641_v4 = vadd.f32 %v12022_v25, %v10601_v34  ;;  %v12088_v11 = vadd.f32 %v12087_v54, %v12086_v38  ;;  %v12089_v43 = vpop.f32.mrb[138].mxu0 }
 0x7cb   : > { %v12090_v53 = vpop.f32.mrb[139].mxu0 }
 0x7cc   : > { %v10681_v27 = vadd.f32 %v12044_v56, %v10641_v4 }
 0x7e6   : > { %v12064_v40 = vpop.f32.mrb[108].mxu1 }
 0x7e7   : > { %v12065_v51 = vpop.f32.mrb[109].mxu1 }
 0x7e8   : > { %v12066_v37 = vadd.f32 %v12065_v51, %v12064_v40  ;;  %v12067_v39 = vpop.f32.mrb[110].mxu1  ;;  %v12130_v44 = vpop.f32.mrb[140].mxu0 }
 0x7e9   : > { %v12068_v13 = vpop.f32.mrb[111].mxu1  ;;  %v12131_v3 = vpop.f32.mrb[141].mxu0 }
 0x7ea   : > { %v10721_v35 = vadd.f32 %v12066_v37, %v10681_v27  ;;  %v12132_v47 = vadd.f32 %v12131_v3, %v12130_v44  ;;  %v12133_v45 = vpop.f32.mrb[142].mxu0 }
 0x7eb   : > { %v12134_v55 = vpop.f32.mrb[143].mxu0 }
 0x7ec   : > { %v10761_v28 = vadd.f32 %v12088_v11, %v10721_v35  ;;  %v11144_v35 = vld [vmem:[%s18338_s8] sm:$0x1] }
 0x806   : > { %v12108_v0 = vpop.f32.mrb[112].mxu1 }
 0x807   : > { %v12109_v30 = vpop.f32.mrb[113].mxu1 }
 0x808   : > { %v12110_v12 = vadd.f32 %v12109_v30, %v12108_v0  ;;  %v12111_v19 = vpop.f32.mrb[114].mxu1  ;;  %v12174_v59 = vpop.f32.mrb[144].mxu0 }
 0x809   : > { %v12112_v10 = vpop.f32.mrb[115].mxu1  ;;  %v12175_v36 = vpop.f32.mrb[145].mxu0 }
 0x80a   : > { %v10801_v16 = vadd.f32 %v12110_v12, %v10761_v28  ;;  %v12176_v62 = vadd.f32 %v12175_v36, %v12174_v59  ;;  %v12177_v14 = vpop.f32.mrb[146].mxu0 }
 0x80b   : > { %v12178_v41 = vpop.f32.mrb[147].mxu0 }
 0x80c   : > { %v10841_v42 = vadd.f32 %v12132_v47, %v10801_v16 }
 0x826   : > { %v12152_v21 = vpop.f32.mrb[116].mxu1 }
 0x827   : > { %v12153_v24 = vpop.f32.mrb[117].mxu1 }
 0x828   : > { %v12154_v61 = vadd.f32 %v12153_v24, %v12152_v21  ;;  %v12155_v5 = vpop.f32.mrb[118].mxu1  ;;  %v12218_v26 = vpop.f32.mrb[148].mxu0 }
 0x829   : > { %v12156_v60 = vpop.f32.mrb[119].mxu1  ;;  %v12219_v58 = vpop.f32.mrb[149].mxu0 }
 0x82a   : > { %v10881_v57 = vadd.f32 %v12154_v61, %v10841_v42  ;;  %v12220_v46 = vadd.f32 %v12219_v58, %v12218_v26  ;;  %v12221_v48 = vpop.f32.mrb[150].mxu0 }
 0x82b   : > { %v12222_v22 = vpop.f32.mrb[151].mxu0 }
 0x82c   : > { %v10921_v8 = vadd.f32 %v12176_v62, %v10881_v57 }
 0x846   : > { %v12196_v56 = vpop.f32.mrb[120].mxu1 }
 0x847   : > { %v12197_v6 = vpop.f32.mrb[121].mxu1 }
 0x848   : > { %v12198_v9 = vadd.f32 %v12197_v6, %v12196_v56  ;;  %v12199_v32 = vpop.f32.mrb[122].mxu1  ;;  %v12262_v34 = vpop.f32.mrb[152].mxu0 }
 0x849   : > { %v12200_v1 = vpop.f32.mrb[123].mxu1  ;;  %v12263_v15 = vpop.f32.mrb[153].mxu0 }
 0x84a   : > { %v10961_v49 = vadd.f32 %v12198_v9, %v10921_v8  ;;  %v12264_v7 = vadd.f32 %v12263_v15, %v12262_v34  ;;  %v12265_v2 = vpop.f32.mrb[154].mxu0 }
 0x84b   : > { %v12266_v25 = vpop.f32.mrb[155].mxu0 }
 0x84c   : > { %v11001_v20 = vadd.f32 %v12220_v46, %v10961_v49 }
 0x866   : > { %v12240_v38 = vpop.f32.mrb[124].mxu1 }
 0x867   : > { %v12241_v17 = vpop.f32.mrb[125].mxu1 }
 0x868   : > { %v12242_v54 = vadd.f32 %v12241_v17, %v12240_v38  ;;  %v12243_v4 = vpop.f32.mrb[126].mxu1 }
 0x869   : > { %v12244_v11 = vpop.f32.mrb[127].mxu1 }
 0x86a   : > { %v11041_v43 = vadd.f32 %v12242_v54, %v11001_v20 }
 0x86c   : > { %v11081_v53 = vadd.f32 %v12264_v7, %v11041_v43 }
 0x886   : > { %v12284_v27 = vpop.f32.mrb[128].mxu1 }
 0x887   : > { %v12285_v40 = vpop.f32.mrb[129].mxu1 }
 0x888   : > { %v12286_v51 = vadd.f32 %v12285_v40, %v12284_v27  ;;  %v12287_v37 = vpop.f32.mrb[130].mxu1 }
 0x889   : > { %v12288_v39 = vpop.f32.mrb[131].mxu1 }
 0x88a   : > { %v11121_v44 = vadd.f32 %v12286_v51, %v11081_v53 }
 0x88c   : > { %v11126_v13 = vmax.f32 %v11121_v44, 0.0 }
 0x88e   : > { %v11127_v3 = vpack.c.bf16 %v11126_v13, %v11126_v13 }
 0x890   : > { %12484 = vmatmul.mubr.bf16.vlgmr.msra.gmra.mrb[156].mxu0 %v11127_v3 }
 0x963   : > { %v11227_v47 = vpop.f32.mrb[156].mxu0 }
 0x964   : > { %v11228_v45 = vadd.f32 %v11227_v47, %v11144_v35  ;;  %v12485_v52 = vpop.f32.mrb[157].mxu0 }
 0x965   : > { %v11230_v55 = vpop.f32.mrb[158].mxu0 }
 0x966   : > { %11233 = vst [vmem:[%s324_s26] sm:$0x1] %v11228_v45  ;;  %v12486_v28 = vpop.f32.mrb[159].mxu0 }
 0x967   : > { %13420 = shalt.err (!%p13417_p3)
}
 0x968   : > { %s13421_s21 = scalar_lea.hbm %s18288_s29, 16  ;;  %s13425_s26 = scalar_lea.hbm %s18339_s9, 32 }
 0x969   : > { %p13422_p4 = scmp.ne.s32.totalorder %s18288_s29, %s13421_s21  ;;  %p13426_p9 = scmp.lt.u32.totalorder %s18288_s29, %s18339_s9 }
 0x96a   : > { %p13427_p10 = scmp.lt.u32.totalorder %s13425_s26, %s13421_s21  ;;  %p13429_p12 = scmp.lt.u32.totalorder %s13421_s21, %s18288_s29 }
 0x96b   : > { %p13423_p7 = pnand %p13422_p4, %p13567_p5 }
 0x96c   : > { %p13428_p11 = por %p13427_p10, %p13426_p9 }
 0x96d   : > { %p13424_p8 = pneg %p13423_p7 }
 0x96e   : > { %p13430_p13 = por %p13429_p12, %p13428_p11 }
 0x970   : > { %p13431_p0 = pnand %p13430_p13, %p13424_p8 }
 0x972   : > { %13434 = shalt.err (!%p13431_p0)
}
 0x973   : > { %12487 = dma.vmem_to_hbm [thread:$0]  (%p13567_p5), %s18290_s27, 16, %s18288_s29, %s11235_s14  }
 0x974 PF: > { %p12493_p1 = scmp.ge.s32.totalorder %s13469_s12, 2  ;;  %s11259_s13 = sand.u32 1, %s13457_s30  }
 0x975   : > { %s11260_s16 = scalar_lea.sflag [#allocation4], %s11259_s13 }
 0x976   : > { %p12490_p2 = pnand %p12493_p1, %p13571_p6 }
 0x978   : > { %13452 = dma.done.wait (!%p12490_p2), %s11260_s16, 16  }
 0x979   : > { %13454 = vsyncadd (!%p12490_p2), %s11260_s16, 4294967280  ;;  %p19_p3 = scmp.ge.s32.totalorder %s13554_s15, 4   ;;  %s18602_s30 = smov %s13461_s10 }
 0x97a   : > { %s18603_s10 = smov %s13465_s11  ;;  %s18604_s11 = smov %s13565_s18 }
 0x97b   : > { %s18605_s12 = smov %s13554_s15  ;;  %21 = sbr.rel (!%p19_p3) target bundleno = 3 (0x3), region = 93 }
 0x982   :  { %11264 = vsyncpa [#allocation4], 1 }
 0x983   :  { %11266 = vsyncpa [#allocation4 + $0x1], 1 }

</bundles_post_ra>
